<compile_context>
chip_gen: v7x
topology: tpu7x:2x2x1
jax: 0.10.0
libtpu: 0.0.40
codegen_flags: <defaults>
</compile_context>

<pallas_src>
import math

import jax
import jax.numpy as jnp
from jax import lax
from jax.experimental import pallas as pl
from jax.experimental.pallas import tpu as pltpu

# ----------------------------------------------------------------------------
# Model constants (H must be 8 and size must be 256 so torso2 emits 64*15=960).
# ----------------------------------------------------------------------------
SIZE = 256
HIST = 8
N_GROUPS = 3
N_ENTITIES = 6
N_ACTIONS = 10  # 4 moves + 6 switches

NUM_SPECIES, NUM_ITEMS, NUM_ABILITIES, NUM_MOVES = 32, 16, 16, 16
SPECIES_DIM, ITEM_DIM, ABILITY_DIM, MOVES_DIM = 300, 200, 200, 176
ENTITY_FEAT = SPECIES_DIM + ITEM_DIM + ABILITY_DIM + MOVES_DIM + 1 + 2 + 2 + 7  # 888
FEAT_PAD = 896                      # 888 padded up to a lane multiple
EXTRA_FEAT = 14 + 23 + 210 + 30     # 277 fused extra features
EXTRA_PAD = 384

P2 = 15                             # torso2 final pooled length
CONV_OUT = 64 * P2                  # 960
COEFF = 1.0 / math.sqrt(SIZE)


def _ru(x, m):
    return ((x + m - 1) // m) * m


def _full(a):
    nd = a.ndim
    return pl.BlockSpec(a.shape, lambda *_: (0,) * nd)


# ----------------------------------------------------------------------------
# Kernel 1: ee1 MLP  (x @ W1 -> relu -> @ W2), 512-row tiles, bf16 GEMMs.
# ----------------------------------------------------------------------------
def _ee1_kernel(x_ref, w1_ref, w2_ref, o_ref):
    h = jnp.dot(x_ref[...], w1_ref[...], preferred_element_type=jnp.float32)
    h = jnp.maximum(h, 0.0).astype(jnp.bfloat16)
    o_ref[...] = jnp.dot(h, w2_ref[...],
                         preferred_element_type=jnp.float32).astype(o_ref.dtype)


def ee1_pallas(x, w1, w2, *, row_tile=512):
    n, k = x.shape
    rt = row_tile if n >= row_tile else _ru(n, 8)
    n_pad = _ru(n, rt)
    xp = jnp.pad(x, ((0, n_pad - n), (0, 0)))
    out = pl.pallas_call(
        _ee1_kernel,
        out_shape=jax.ShapeDtypeStruct((n_pad, w2.shape[1]), jnp.bfloat16),
        grid=(n_pad // rt,),
        in_specs=[pl.BlockSpec((rt, k), lambda i: (i, 0)), _full(w1), _full(w2)],
        out_specs=pl.BlockSpec((rt, w2.shape[1]), lambda i: (i, 0)),
        compiler_params=pltpu.CompilerParams(dimension_semantics=("parallel",)),
    )(xp, w1, w2)
    return out[:n]


# ----------------------------------------------------------------------------
# Kernel 2: fused state embedding.
#   max over 6 entities (entity axis leading -> elementwise maxima) -> relu -> @Wee2
#   + (boosts/6 | field | volatile | sidecon) @ Wextra   (single fused GEMM)
# ----------------------------------------------------------------------------
def _state_kernel(ent_ref, extra_ref, wee2_ref, wex_ref, o_ref):
    pooled = ent_ref[0]
    for e in range(1, N_ENTITIES):
        pooled = jnp.maximum(pooled, ent_ref[e])
    pooled = jnp.maximum(pooled, 0.0)                                  # (RT, 768) bf16
    out = jnp.dot(pooled, wee2_ref[...], preferred_element_type=jnp.float32)
    out = out + jnp.dot(extra_ref[...], wex_ref[...],
                        preferred_element_type=jnp.float32)
    o_ref[...] = out.astype(o_ref.dtype)


def state_pallas(ent_t, extra, wee2, wex, *, row_tile=256):
    n = extra.shape[0]
    rt = row_tile if n >= row_tile else _ru(n, 8)
    n_pad = _ru(n, rt)
    ent_p = jnp.pad(ent_t, ((0, 0), (0, n_pad - n), (0, 0)))
    ex_p = jnp.pad(extra, ((0, n_pad - n), (0, 0)))
    out = pl.pallas_call(
        _state_kernel,
        out_shape=jax.ShapeDtypeStruct((n_pad, SIZE), jnp.bfloat16),
        grid=(n_pad // rt,),
        in_specs=[
            pl.BlockSpec((N_ENTITIES, rt, N_GROUPS * SIZE), lambda i: (0, i, 0)),
            pl.BlockSpec((rt, EXTRA_PAD), lambda i: (i, 0)),
            _full(wee2), _full(wex),
        ],
        out_specs=pl.BlockSpec((rt, SIZE), lambda i: (i, 0)),
        compiler_params=pltpu.CompilerParams(dimension_semantics=("parallel",)),
    )(ent_p, ex_p, wee2, wex)
    return out[:n]


# ----------------------------------------------------------------------------
# Kernel 3: torso2 conv stack (relu -> conv(8->32,k3,s2) -> maxpool2 -> relu ->
# conv(32->64,k3,s2) -> maxpool2), batched samples per grid step.
#
# Packed layout (built in the wrapper): each sample contributes 16 rows; row m holds
# positions 16m..16m+15, channels-last, so lanes 0..127 = (position-within-row, channel)
# and lanes 128..255 hold the same data shifted by one row (next 16 positions).
# Conv windows and maxpool pairs then reduce to contiguous 24-lane slices + jnp.maximum.
# ----------------------------------------------------------------------------
def _torso2_kernel(x_ref, wc1_ref, b1_ref, wc2_ref, b2_ref, o_ref):
    x = jnp.maximum(x_ref[...], 0.0)                     # torso2[0] ReLU; (R, 256) bf16
    wc1 = wc1_ref[...]                                   # (24, 32) = stacked k=0,1,2 taps
    b1 = b1_ref[...]                                     # (1, 32)

    def win(q):  # conv1 window starting at position 16*m + q  -> (R, 32) f32
        return jnp.dot(x[:, 8 * q:8 * q + 24], wc1, preferred_element_type=jnp.float32)

    # conv1 (stride 2) + maxpool(2): pooled phase r pairs conv windows at 4r and 4r+2
    r1 = []
    for r in range(4):
        p = jnp.maximum(win(4 * r), win(4 * r + 2)) + b1
        r1.append(jnp.maximum(p, 0.0).astype(jnp.bfloat16))
    # phase 0 of the NEXT row (positions 16(m+1)+{0..4}) comes from the shifted copy
    p0s = jnp.maximum(win(16), win(18)) + b1
    r0s = jnp.maximum(p0s, 0.0).astype(jnp.bfloat16)

    # conv2 (stride 2) + maxpool(2)
    za = (jnp.dot(r1[0], wc2_ref[0], preferred_element_type=jnp.float32)
          + jnp.dot(r1[1], wc2_ref[1], preferred_element_type=jnp.float32)
          + jnp.dot(r1[2], wc2_ref[2], preferred_element_type=jnp.float32))
    zb = (jnp.dot(r1[2], wc2_ref[0], preferred_element_type=jnp.float32)
          + jnp.dot(r1[3], wc2_ref[1], preferred_element_type=jnp.float32)
          + jnp.dot(r0s, wc2_ref[2], preferred_element_type=jnp.float32))
    o_ref[...] = (jnp.maximum(za, zb) + b2_ref[...]).astype(o_ref.dtype)


def torso2_pallas(xcat, wc1, b1, wc2, b2, *, samp_tile=16):
    n = xcat.shape[0]                                    # (n, 16, 256) bf16
    samp = samp_tile if n >= samp_tile else n
    n_pad = _ru(n, samp)
    xp = jnp.pad(xcat, ((0, n_pad - n), (0, 0), (0, 0))).reshape(n_pad * 16, 256)
    rows = samp * 16
    out = pl.pallas_call(
        _torso2_kernel,
        out_shape=jax.ShapeDtypeStruct((n_pad * 16, 64), jnp.bfloat16),
        grid=(n_pad // samp,),
        in_specs=[pl.BlockSpec((rows, 256), lambda i: (i, 0)),
                  _full(wc1), _full(b1), _full(wc2), _full(b2)],
        out_specs=pl.BlockSpec((rows, 64), lambda i: (i, 0)),
        compiler_params=pltpu.CompilerParams(dimension_semantics=("parallel",)),
    )(xp, wc1, b1, wc2, b2)
    # rows with m == 15 are padding/garbage -> keep only the 15 valid pooled positions
    return out.reshape(n_pad, 16, 64)[:n, :P2, :]


# ----------------------------------------------------------------------------
# Kernel 4: heads — key/query attention logits, value head (ResBlocks), masked
# softmax policy + legal log-policy.  Batched: up to 128 samples per grid step.
# Queries are lane-packed as (NS, 10*256) so each action slab is a 256-lane slice.
# ----------------------------------------------------------------------------
def _heads_kernel(s_ref, q_ref, m_ref,
                  wk_ref, bk_ref, wq1_ref, bq1_ref, wq2_ref, bq2_ref,
                  wv1_ref, bv1_ref, wr1_ref, br1_ref, wr2_ref, br2_ref,
                  wvo_ref, bvo_ref,
                  logits_ref, value_ref, policy_ref, logp_ref):
    s = s_ref[...]                                       # (NS, 960) bf16
    q = q_ref[...]                                       # (NS, 2560) bf16
    m = m_ref[...]                                       # (NS, 10) f32
    ns = s.shape[0]

    # key head (1/sqrt(size) coeff is pre-folded into wk / bk)
    k = jnp.dot(s, wk_ref[...], preferred_element_type=jnp.float32) + bk_ref[...]

    # query MLP per action slab + contraction against the key
    act_iota = lax.broadcasted_iota(jnp.int32, (1, N_ACTIONS), 1)
    logits = jnp.zeros((ns, N_ACTIONS), jnp.float32)
    for a in range(N_ACTIONS):
        qa = q[:, a * SIZE:(a + 1) * SIZE]
        h = jnp.maximum(jnp.dot(qa, wq1_ref[...],
                                preferred_element_type=jnp.float32) + bq1_ref[...], 0.0)
        q2 = jnp.dot(h.astype(jnp.bfloat16), wq2_ref[...],
                     preferred_element_type=jnp.float32) + bq2_ref[...]
        col = jnp.sum(k * q2, axis=-1, keepdims=True)    # (NS, 1)
        logits = logits + col * (act_iota == a).astype(jnp.float32)

    # value head: relu -> Linear(960,256) -> ResBlock x2 -> relu -> Linear(256,1)
    v = jnp.dot(jnp.maximum(s, 0.0), wv1_ref[...],
                preferred_element_type=jnp.float32) + bv1_ref[...]
    v = jnp.dot(jnp.maximum(v, 0.0).astype(jnp.bfloat16), wr1_ref[...],
                preferred_element_type=jnp.float32) + br1_ref[...] + v
    v = jnp.dot(jnp.maximum(v, 0.0).astype(jnp.bfloat16), wr2_ref[...],
                preferred_element_type=jnp.float32) + br2_ref[...] + v
    value = jnp.dot(jnp.maximum(v, 0.0).astype(jnp.bfloat16), wvo_ref[...],
                    preferred_element_type=jnp.float32) + bvo_ref[...]   # (NS, 1)

    legal = m > 0.0
    # _legal_policy (masked softmax over legal actions)
    l_min = jnp.min(logits, axis=-1, keepdims=True)
    lp = jnp.where(legal, logits, l_min)
    lp = lp - jnp.max(lp, axis=-1, keepdims=True)
    lp = jnp.where(legal, lp, 0.0)
    exp_lp = jnp.where(legal, jnp.exp(lp), 0.0)
    denom = jnp.sum(exp_lp, axis=-1, keepdims=True)
    policy = exp_lp / jnp.maximum(denom, 1e-30)          # guard: all-illegal row -> zeros
    # _legal_log_policy
    masked = jnp.where(legal, logits, -1e30)
    max_legal = jnp.max(masked, axis=-1, keepdims=True)
    sum_exp = jnp.sum(jnp.exp(masked - max_legal), axis=-1, keepdims=True)
    logp = m * (logits - max_legal - jnp.log(sum_exp))

    logits_ref[...] = logits
    value_ref[...] = value
    policy_ref[...] = policy
    logp_ref[...] = logp


def heads_pallas(state, queries, mask, p, *, ns_tile=128):
    n = state.shape[0]
    ns = ns_tile if n >= ns_tile else _ru(n, 8)
    n_pad = _ru(n, ns)
    pad = ((0, n_pad - n), (0, 0))
    state = jnp.pad(state, pad)
    queries = jnp.pad(queries, pad)
    mask = jnp.pad(mask, pad)
    weights = (p["key_w"], p["key_b"], p["q1_w"], p["q1_b"], p["q2_w"], p["q2_b"],
               p["v1_w"], p["v1_b"], p["vr1_w"], p["vr1_b"], p["vr2_w"], p["vr2_b"],
               p["vo_w"], p["vo_b"])
    in_specs = [pl.BlockSpec((ns, CONV_OUT), lambda i: (i, 0)),
                pl.BlockSpec((ns, N_ACTIONS * SIZE), lambda i: (i, 0)),
                pl.BlockSpec((ns, N_ACTIONS), lambda i: (i, 0))]
    in_specs += [_full(w) for w in weights]
    out_shape = (jax.ShapeDtypeStruct((n_pad, N_ACTIONS), jnp.float32),
                 jax.ShapeDtypeStruct((n_pad, 1), jnp.float32),
                 jax.ShapeDtypeStruct((n_pad, N_ACTIONS), jnp.float32),
                 jax.ShapeDtypeStruct((n_pad, N_ACTIONS), jnp.float32))
    out_specs = (pl.BlockSpec((ns, N_ACTIONS), lambda i: (i, 0)),
                 pl.BlockSpec((ns, 1), lambda i: (i, 0)),
                 pl.BlockSpec((ns, N_ACTIONS), lambda i: (i, 0)),
                 pl.BlockSpec((ns, N_ACTIONS), lambda i: (i, 0)))
    logits, value, policy, logp = pl.pallas_call(
        _heads_kernel, out_shape=out_shape, grid=(n_pad // ns,),
        in_specs=in_specs, out_specs=out_specs,
        compiler_params=pltpu.CompilerParams(dimension_semantics=("parallel",)),
    )(state, queries, mask, *weights)
    return logits[:n], value[:n], policy[:n], logp[:n]


# ----------------------------------------------------------------------------
# Parameters (deterministic synthetic init, already in kernel-ready layout).
# ----------------------------------------------------------------------------
def init_params(key):
    keys = iter(jax.random.split(key, 48))

    def nrm(shape, std):
        return jax.random.normal(next(keys), shape, jnp.float32) * std

    bf = lambda a: a.astype(jnp.bfloat16)
    p = {}
    # frozen EntityEmbedding lookup tables (kept f32 for the XLA gathers)
    p["species_table"] = nrm((NUM_SPECIES + 1, SPECIES_DIM), 1 / math.sqrt(NUM_SPECIES + 1))
    p["item_table"] = nrm((NUM_ITEMS + 1, ITEM_DIM), 1 / math.sqrt(NUM_ITEMS + 1))
    p["ability_table"] = nrm((NUM_ABILITIES + 1, ABILITY_DIM), 1 / math.sqrt(NUM_ABILITIES + 1))
    p["moves_table"] = nrm((NUM_MOVES + 1, MOVES_DIM), 1 / math.sqrt(NUM_MOVES + 1))
    p["move_embeddings"] = nrm((NUM_MOVES + 1, SIZE), 1 / math.sqrt(NUM_MOVES + 1))

    # ee1 MLP (feature dim zero-padded 888 -> 896 for lane alignment)
    p["ee1_w1"] = bf(jnp.pad(nrm((ENTITY_FEAT, SIZE), 1 / math.sqrt(ENTITY_FEAT)),
                             ((0, FEAT_PAD - ENTITY_FEAT), (0, 0))))
    p["ee1_w2"] = bf(nrm((SIZE, SIZE), 1 / math.sqrt(SIZE)))

    # fused state embedding: ee2 + one combined weight for all extra features
    # (the 1/6 boosts scale is folded into the boost rows).
    p["ee2_w"] = bf(nrm((N_GROUPS * SIZE, SIZE), 1 / math.sqrt(N_GROUPS * SIZE)))
    wextra = jnp.concatenate([
        nrm((14, SIZE), 1 / math.sqrt(14)) / 6.0,
        nrm((23, SIZE), 1 / math.sqrt(23)),
        nrm((210, SIZE), 1 / math.sqrt(210)),
        nrm((30, SIZE), 1 / math.sqrt(30)),
    ], axis=0)
    p["extra_w"] = bf(jnp.pad(wextra, ((0, EXTRA_PAD - EXTRA_FEAT), (0, 0))))

    # torso2 conv weights: conv1 stacked as (3*HIST, 32) rows ordered (tap, in_ch);
    # conv2 as (3, 32, 64) taps.
    p["conv1_w"] = bf(nrm((3 * HIST, 32), 1 / math.sqrt(3 * HIST)))
    p["conv1_b"] = jnp.zeros((1, 32), jnp.float32)
    p["conv2_w"] = bf(nrm((3, 32, 64), 1 / math.sqrt(3 * 32)))
    p["conv2_b"] = jnp.zeros((1, 64), jnp.float32)

    # heads (1/sqrt(size) folded into the key projection weight & bias)
    p["key_w"] = bf(nrm((CONV_OUT, SIZE), 1 / math.sqrt(CONV_OUT)) * COEFF)
    p["key_b"] = jnp.zeros((1, SIZE), jnp.float32)          # * COEFF (zero anyway)
    p["q1_w"] = bf(nrm((SIZE, SIZE), 1 / math.sqrt(SIZE)))
    p["q1_b"] = jnp.zeros((1, SIZE), jnp.float32)
    p["q2_w"] = bf(nrm((SIZE, SIZE), 1 / math.sqrt(SIZE)))
    p["q2_b"] = jnp.zeros((1, SIZE), jnp.float32)
    p["v1_w"] = bf(nrm((CONV_OUT, SIZE), 1 / math.sqrt(CONV_OUT)))
    p["v1_b"] = jnp.zeros((1, SIZE), jnp.float32)
    p["vr1_w"] = bf(nrm((SIZE, SIZE), 1 / math.sqrt(SIZE)))
    p["vr1_b"] = jnp.zeros((1, SIZE), jnp.float32)
    p["vr2_w"] = bf(nrm((SIZE, SIZE), 1 / math.sqrt(SIZE)))
    p["vr2_b"] = jnp.zeros((1, SIZE), jnp.float32)
    p["vo_w"] = bf(nrm((SIZE, 1), 1 / math.sqrt(SIZE)))
    p["vo_b"] = jnp.zeros((1, 1), jnp.float32)
    return p


# ----------------------------------------------------------------------------
# Forward pass (glue: gathers / one-hots / layout; Pallas: all dense math).
# ----------------------------------------------------------------------------
@jax.jit
def forward(params, teams, side_conditions, volatile_status, boosts, field, mask):
    f32, bf16 = jnp.float32, jnp.bfloat16
    T, B, H = teams.shape[:3]
    n_state = T * B * H
    n_tb = T * B

    teams_ = teams + 1
    species_token = teams_[..., 0]
    item_token = teams_[..., 1]
    ability_token = teams_[..., 2]
    hp = (teams[..., 3].astype(f32) / 1000.0)[..., None]
    active_token = jnp.maximum(teams[..., 4], 0)
    fainted_token = jnp.maximum(teams[..., 5], 0)
    status_token = teams_[..., 6]
    move_tokens = teams_[..., -4:]

    species_emb = params["species_table"][species_token]
    item_emb = params["item_table"][item_token]
    ability_emb = params["ability_table"][ability_token]
    moveset_emb = params["moves_table"][move_tokens].sum(-2)

    entity_embedding = jnp.concatenate([
        species_emb, item_emb, ability_emb, moveset_emb, hp,
        jax.nn.one_hot(active_token, 2, dtype=f32),
        jax.nn.one_hot(fainted_token, 2, dtype=f32),
        jax.nn.one_hot(status_token, 7, dtype=f32)], axis=-1)       # (T,B,H,3,6,888)

    ent_in = entity_embedding.reshape(-1, ENTITY_FEAT).astype(bf16)
    ent_in = jnp.pad(ent_in, ((0, 0), (0, FEAT_PAD - ENTITY_FEAT)))

    # --- Pallas kernel 1: ee1 MLP over every entity row
    entities_flat = ee1_pallas(ent_in, params["ee1_w1"], params["ee1_w2"])
    entities_embedding = entities_flat.reshape(T, B, H, N_GROUPS, N_ENTITIES, SIZE)

    # --- Pallas kernel 2: fused state embedding
    ent_t = jnp.transpose(entities_embedding, (4, 0, 1, 2, 3, 5)).reshape(
        N_ENTITIES, n_state, N_GROUPS * SIZE)
    pseudoweather = field[..., :9].reshape(T, B, H, 3, 3)
    pw_oh = jax.nn.one_hot(pseudoweather[..., 0], 9, dtype=f32)[..., 1:].sum(-2)
    weather_oh = jax.nn.one_hot(field[..., 10], 9, dtype=f32)
    terrain_oh = jax.nn.one_hot(field[..., 13], 6, dtype=f32)
    vol_oh = jax.nn.one_hot(volatile_status[..., 0, :], 106, dtype=f32)[..., 1:].sum(-2)
    sc_oh = jax.nn.one_hot((side_conditions > 0).astype(jnp.int32), 16,
                           dtype=f32)[..., 1:].sum(-2)
    extra = jnp.concatenate([
        boosts.astype(f32).reshape(T, B, H, 14),
        jnp.concatenate([pw_oh, weather_oh, terrain_oh], axis=-1),
        vol_oh.reshape(T, B, H, 210),
        sc_oh.reshape(T, B, H, 30)], axis=-1).reshape(n_state, EXTRA_FEAT)
    extra = jnp.pad(extra, ((0, 0), (0, EXTRA_PAD - EXTRA_FEAT))).astype(bf16)

    state_flat = state_pallas(ent_t, extra, params["ee2_w"], params["extra_w"])

    # --- Pallas kernel 3: torso2 conv stack (lane-packed layout, see kernel docstring)
    x_cl = jnp.transpose(state_flat.reshape(n_tb, HIST, SIZE), (0, 2, 1))  # (n,256,8)
    packed = x_cl.reshape(n_tb, 16, 16 * HIST)                              # (n,16,128)
    shifted = jnp.concatenate([packed[:, 1:], jnp.zeros_like(packed[:, :1])], axis=1)
    xcat = jnp.concatenate([packed, shifted], axis=-1)                      # (n,16,256)
    conv_out = torso2_pallas(xcat, params["conv1_w"], params["conv1_b"],
                             params["conv2_w"], params["conv2_b"])          # (n,15,64)
    state_embedding = jnp.transpose(conv_out, (0, 2, 1)).reshape(n_tb, CONV_OUT)

    # --- Pallas kernel 4: heads (batched rows, queries lane-packed)
    switch_emb = entities_embedding[:, :, -1, 0, :6, :]                     # (T,B,6,256)
    move_emb = params["move_embeddings"][move_tokens[:, :, -1, 0, 0, :]].astype(bf16)
    queries = jnp.concatenate([move_emb, switch_emb], axis=-2).reshape(
        n_tb, N_ACTIONS * SIZE)
    logits, value, policy, log_policy = heads_pallas(
        state_embedding, queries, mask.astype(f32).reshape(n_tb, N_ACTIONS), params)

    return dict(policy=policy.reshape(T, B, N_ACTIONS),
                value=value.reshape(T, B, 1),
                log_policy=log_policy.reshape(T, B, N_ACTIONS),
                logits=logits.reshape(T, B, N_ACTIONS))


# ----------------------------------------------------------------------------
if __name__ == "__main__":
    T, B = 2, 2
    key = jax.random.PRNGKey(0)
    kp, kd = jax.random.split(key)
    params = init_params(kp)

    base = (T, B, HIST, N_GROUPS, N_ENTITIES)
    ks = jax.random.split(kd, 16)
    species = jax.random.randint(ks[0], base, -1, NUM_SPECIES)
    item = jax.random.randint(ks[1], base, -1, NUM_ITEMS)
    ability = jax.random.randint(ks[2], base, -1, NUM_ABILITIES)
    hp = jax.random.randint(ks[3], base, 0, 1001)
    active = jax.random.randint(ks[4], base, -1, 2)
    fainted = jax.random.randint(ks[5], base, -1, 2)
    status = jax.random.randint(ks[6], base, -1, 6)
    moves = jax.random.randint(ks[7], base + (4,), -1, NUM_MOVES)
    teams = jnp.concatenate(
        [jnp.stack([species, item, ability, hp, active, fainted, status], axis=-1), moves],
        axis=-1).astype(jnp.int32)                                   # (T,B,H,3,6,11)

    side_conditions = jax.random.randint(ks[8], (T, B, HIST, 2, 15), 0, 4, dtype=jnp.int32)
    volatile_status = jax.random.randint(ks[9], (T, B, HIST, 2, 2, 4), 0, 106, dtype=jnp.int32)
    boosts = jax.random.randint(ks[10], (T, B, HIST, 2, 7), -6, 7, dtype=jnp.int32)
    field = jax.random.randint(ks[11], (T, B, HIST, 14), 0, 6, dtype=jnp.int32)
    mask = jax.random.bernoulli(ks[12], 0.7, (T, B, N_ACTIONS))
    mask = mask.at[..., 0].set(True)

    out = forward(params, teams, side_conditions, volatile_status, boosts, field, mask)
    out = jax.block_until_ready(out)
    assert out["policy"].shape == (T, B, N_ACTIONS)
    assert out["value"].shape == (T, B, 1)
    assert all(bool(jnp.all(jnp.isfinite(v))) for v in out.values())
    print("KERNEL_OK")
</pallas_src>

<mosaic_0001>
module attributes {stable_mosaic.version = 11 : i64} {
  func.func @_ee1_kernel(%arg0: i32, %arg1: memref<512x896xbf16, #tpu.memory_space<vmem>>, %arg2: memref<896x256xbf16, #tpu.memory_space<vmem>>, %arg3: memref<256x256xbf16, #tpu.memory_space<vmem>>, %arg4: memref<512x256xbf16, #tpu.memory_space<vmem>>) attributes {dimension_semantics = [#tpu.dimension_semantics<parallel>], iteration_bounds = array<i64: 2>, scalar_prefetch = 0 : i64, scratch_operands = 0 : i64, tpu.core_type = #tpu.core_type<tc>, window_params = [{transform_indices = @transform_0, window_bounds = array<i64: 512, 896>}, {pipeline_mode = #tpu.pipeline_mode<synchronous>, transform_indices = @transform_1, window_bounds = array<i64: 896, 256>}, {pipeline_mode = #tpu.pipeline_mode<synchronous>, transform_indices = @transform_2, window_bounds = array<i64: 256, 256>}, {transform_indices = @transform_3, window_bounds = array<i64: 512, 256>}]} {
    %c0 = arith.constant 0 : index
    %c0_0 = arith.constant 0 : index
    %0 = vector.load %arg1[%c0, %c0_0] : memref<512x896xbf16, #tpu.memory_space<vmem>>, vector<512x896xbf16>
    %c0_1 = arith.constant 0 : index
    %c0_2 = arith.constant 0 : index
    %1 = vector.load %arg2[%c0_1, %c0_2] : memref<896x256xbf16, #tpu.memory_space<vmem>>, vector<896x256xbf16>
    %cst = arith.constant dense<0.000000e+00> : vector<512x256xf32>
    %2 = tpu.matmul %0, %1, %cst {dimension_numbers = #tpu.dot_dimension_numbers<[1], [0], [0], [1], [0, 0, 1, 1], [], []>} : vector<512x896xbf16>, vector<896x256xbf16>, vector<512x256xf32> -> vector<512x256xf32>
    %cst_3 = arith.constant 0.000000e+00 : f32
    %3 = vector.broadcast %cst_3 : f32 to vector<512x256xf32>
    %4 = arith.maximumf %2, %3 : vector<512x256xf32>
    %5 = arith.truncf %4 : vector<512x256xf32> to vector<512x256xbf16>
    %c0_4 = arith.constant 0 : index
    %c0_5 = arith.constant 0 : index
    %6 = vector.load %arg3[%c0_4, %c0_5] : memref<256x256xbf16, #tpu.memory_space<vmem>>, vector<256x256xbf16>
    %cst_6 = arith.constant dense<0.000000e+00> : vector<512x256xf32>
    %7 = tpu.matmul %5, %6, %cst_6 {dimension_numbers = #tpu.dot_dimension_numbers<[1], [0], [0], [1], [0, 0, 1, 1], [], []>} : vector<512x256xbf16>, vector<256x256xbf16>, vector<512x256xf32> -> vector<512x256xf32>
    %8 = arith.truncf %7 : vector<512x256xf32> to vector<512x256xbf16>
    %c0_7 = arith.constant 0 : index
    %c0_8 = arith.constant 0 : index
    %9 = vector.load %arg4[%c0_7, %c0_8] : memref<512x256xbf16, #tpu.memory_space<vmem>>, vector<512x256xbf16>
    tpu.vector_store %arg4[%c0_7, %c0_8], %8 {strides = array<i32>} : memref<512x256xbf16, #tpu.memory_space<vmem>>, vector<512x256xbf16>,
    return
  }
  func.func @transform_0(%arg0: i32) -> (i32, i32) {
    %c0_i32 = arith.constant 0 : i32
    %c0_i32_0 = arith.constant 0 : i32
    return %arg0, %c0_i32 : i32, i32
  }
  func.func @transform_1(%arg0: i32) -> (i32, i32) {
    %c0_i32 = arith.constant 0 : i32
    %c0_i32_0 = arith.constant 0 : i32
    %c0_i32_1 = arith.constant 0 : i32
    return %c0_i32, %c0_i32_0 : i32, i32
  }
  func.func @transform_2(%arg0: i32) -> (i32, i32) {
    %c0_i32 = arith.constant 0 : i32
    %c0_i32_0 = arith.constant 0 : i32
    %c0_i32_1 = arith.constant 0 : i32
    return %c0_i32, %c0_i32_0 : i32, i32
  }
  func.func @transform_3(%arg0: i32) -> (i32, i32) {
    %c0_i32 = arith.constant 0 : i32
    %c0_i32_0 = arith.constant 0 : i32
    return %arg0, %c0_i32 : i32, i32
  }
}

module attributes {stable_mosaic.version = 11 : i64} {
  func.func @_state_kernel(%arg0: i32, %arg1: memref<6x32x768xbf16, #tpu.memory_space<vmem>>, %arg2: memref<32x384xbf16, #tpu.memory_space<vmem>>, %arg3: memref<768x256xbf16, #tpu.memory_space<vmem>>, %arg4: memref<384x256xbf16, #tpu.memory_space<vmem>>, %arg5: memref<32x256xbf16, #tpu.memory_space<vmem>>) attributes {dimension_semantics = [#tpu.dimension_semantics<parallel>], iteration_bounds = array<i64: 1>, scalar_prefetch = 0 : i64, scratch_operands = 0 : i64, tpu.core_type = #tpu.core_type<tc>, window_params = [{transform_indices = @transform_0, window_bounds = array<i64: 6, 32, 768>}, {transform_indices = @transform_1, window_bounds = array<i64: 32, 384>}, {pipeline_mode = #tpu.pipeline_mode<synchronous>, transform_indices = @transform_2, window_bounds = array<i64: 768, 256>}, {pipeline_mode = #tpu.pipeline_mode<synchronous>, transform_indices = @transform_3, window_bounds = array<i64: 384, 256>}, {transform_indices = @transform_4, window_bounds = array<i64: 32, 256>}]} {
    %c0 = arith.constant 0 : index
    %c0_0 = arith.constant 0 : index
    %c0_1 = arith.constant 0 : index
    %0 = vector.load %arg1[%c0, %c0_0, %c0_1] : memref<6x32x768xbf16, #tpu.memory_space<vmem>>, vector<1x32x768xbf16>
    %1 = vector.shape_cast %0 : vector<1x32x768xbf16> to vector<32x768xbf16>
    %c1 = arith.constant 1 : index
    %c0_2 = arith.constant 0 : index
    %c0_3 = arith.constant 0 : index
    %2 = vector.load %arg1[%c1, %c0_2, %c0_3] : memref<6x32x768xbf16, #tpu.memory_space<vmem>>, vector<1x32x768xbf16>
    %3 = vector.shape_cast %2 : vector<1x32x768xbf16> to vector<32x768xbf16>
    %4 = arith.maximumf %1, %3 : vector<32x768xbf16>
    %c2 = arith.constant 2 : index
    %c0_4 = arith.constant 0 : index
    %c0_5 = arith.constant 0 : index
    %5 = vector.load %arg1[%c2, %c0_4, %c0_5] : memref<6x32x768xbf16, #tpu.memory_space<vmem>>, vector<1x32x768xbf16>
    %6 = vector.shape_cast %5 : vector<1x32x768xbf16> to vector<32x768xbf16>
    %7 = arith.maximumf %4, %6 : vector<32x768xbf16>
    %c3 = arith.constant 3 : index
    %c0_6 = arith.constant 0 : index
    %c0_7 = arith.constant 0 : index
    %8 = vector.load %arg1[%c3, %c0_6, %c0_7] : memref<6x32x768xbf16, #tpu.memory_space<vmem>>, vector<1x32x768xbf16>
    %9 = vector.shape_cast %8 : vector<1x32x768xbf16> to vector<32x768xbf16>
    %10 = arith.maximumf %7, %9 : vector<32x768xbf16>
    %c4 = arith.constant 4 : index
    %c0_8 = arith.constant 0 : index
    %c0_9 = arith.constant 0 : index
    %11 = vector.load %arg1[%c4, %c0_8, %c0_9] : memref<6x32x768xbf16, #tpu.memory_space<vmem>>, vector<1x32x768xbf16>
    %12 = vector.shape_cast %11 : vector<1x32x768xbf16> to vector<32x768xbf16>
    %13 = arith.maximumf %10, %12 : vector<32x768xbf16>
    %c5 = arith.constant 5 : index
    %c0_10 = arith.constant 0 : index
    %c0_11 = arith.constant 0 : index
    %14 = vector.load %arg1[%c5, %c0_10, %c0_11] : memref<6x32x768xbf16, #tpu.memory_space<vmem>>, vector<1x32x768xbf16>
    %15 = vector.shape_cast %14 : vector<1x32x768xbf16> to vector<32x768xbf16>
    %16 = arith.maximumf %13, %15 : vector<32x768xbf16>
    %cst = arith.constant 0.000000e+00 : bf16
    %17 = vector.broadcast %cst : bf16 to vector<32x768xbf16>
    %18 = arith.maximumf %16, %17 : vector<32x768xbf16>
    %c0_12 = arith.constant 0 : index
    %c0_13 = arith.constant 0 : index
    %19 = vector.load %arg3[%c0_12, %c0_13] : memref<768x256xbf16, #tpu.memory_space<vmem>>, vector<768x256xbf16>
    %cst_14 = arith.constant dense<0.000000e+00> : vector<32x256xf32>
    %20 = tpu.matmul %18, %19, %cst_14 {dimension_numbers = #tpu.dot_dimension_numbers<[1], [0], [0], [1], [0, 0, 1, 1], [], []>} : vector<32x768xbf16>, vector<768x256xbf16>, vector<32x256xf32> -> vector<32x256xf32>
    %c0_15 = arith.constant 0 : index
    %c0_16 = arith.constant 0 : index
    %21 = vector.load %arg2[%c0_15, %c0_16] : memref<32x384xbf16, #tpu.memory_space<vmem>>, vector<32x384xbf16>
    %c0_17 = arith.constant 0 : index
    %c0_18 = arith.constant 0 : index
    %22 = vector.load %arg4[%c0_17, %c0_18] : memref<384x256xbf16, #tpu.memory_space<vmem>>, vector<384x256xbf16>
    %cst_19 = arith.constant dense<0.000000e+00> : vector<32x256xf32>
    %23 = tpu.matmul %21, %22, %cst_19 {dimension_numbers = #tpu.dot_dimension_numbers<[1], [0], [0], [1], [0, 0, 1, 1], [], []>} : vector<32x384xbf16>, vector<384x256xbf16>, vector<32x256xf32> -> vector<32x256xf32>
    %24 = arith.addf %20, %23 : vector<32x256xf32>
    %25 = arith.truncf %24 : vector<32x256xf32> to vector<32x256xbf16>
    %c0_20 = arith.constant 0 : index
    %c0_21 = arith.constant 0 : index
    %26 = vector.load %arg5[%c0_20, %c0_21] : memref<32x256xbf16, #tpu.memory_space<vmem>>, vector<32x256xbf16>
    tpu.vector_store %arg5[%c0_20, %c0_21], %25 {strides = array<i32>} : memref<32x256xbf16, #tpu.memory_space<vmem>>, vector<32x256xbf16>,
    return
  }
  func.func @transform_0(%arg0: i32) -> (i32, i32, i32) {
    %c0_i32 = arith.constant 0 : i32
    %c0_i32_0 = arith.constant 0 : i32
    %c0_i32_1 = arith.constant 0 : i32
    return %c0_i32, %arg0, %c0_i32_0 : i32, i32, i32
  }
  func.func @transform_1(%arg0: i32) -> (i32, i32) {
    %c0_i32 = arith.constant 0 : i32
    %c0_i32_0 = arith.constant 0 : i32
    return %arg0, %c0_i32 : i32, i32
  }
  func.func @transform_2(%arg0: i32) -> (i32, i32) {
    %c0_i32 = arith.constant 0 : i32
    %c0_i32_0 = arith.constant 0 : i32
    %c0_i32_1 = arith.constant 0 : i32
    return %c0_i32, %c0_i32_0 : i32, i32
  }
  func.func @transform_3(%arg0: i32) -> (i32, i32) {
    %c0_i32 = arith.constant 0 : i32
    %c0_i32_0 = arith.constant 0 : i32
    %c0_i32_1 = arith.constant 0 : i32
    return %c0_i32, %c0_i32_0 : i32, i32
  }
  func.func @transform_4(%arg0: i32) -> (i32, i32) {
    %c0_i32 = arith.constant 0 : i32
    %c0_i32_0 = arith.constant 0 : i32
    return %arg0, %c0_i32 : i32, i32
  }
}

module attributes {stable_mosaic.version = 11 : i64} {
  func.func @_torso2_kernel(%arg0: i32, %arg1: memref<64x256xbf16, #tpu.memory_space<vmem>>, %arg2: memref<24x32xbf16, #tpu.memory_space<vmem>>, %arg3: memref<1x32xf32, #tpu.memory_space<vmem>>, %arg4: memref<3x32x64xbf16, #tpu.memory_space<vmem>>, %arg5: memref<1x64xf32, #tpu.memory_space<vmem>>, %arg6: memref<64x64xbf16, #tpu.memory_space<vmem>>) attributes {dimension_semantics = [#tpu.dimension_semantics<parallel>], iteration_bounds = array<i64: 1>, scalar_prefetch = 0 : i64, scratch_operands = 0 : i64, tpu.core_type = #tpu.core_type<tc>, window_params = [{transform_indices = @transform_0, window_bounds = array<i64: 64, 256>}, {pipeline_mode = #tpu.pipeline_mode<synchronous>, transform_indices = @transform_1, window_bounds = array<i64: 24, 32>}, {pipeline_mode = #tpu.pipeline_mode<synchronous>, transform_indices = @transform_2, window_bounds = array<i64: 1, 32>}, {pipeline_mode = #tpu.pipeline_mode<synchronous>, transform_indices = @transform_3, window_bounds = array<i64: 3, 32, 64>}, {pipeline_mode = #tpu.pipeline_mode<synchronous>, transform_indices = @transform_4, window_bounds = array<i64: 1, 64>}, {transform_indices = @transform_5, window_bounds = array<i64: 64, 64>}]} {
    %c0 = arith.constant 0 : index
    %c0_0 = arith.constant 0 : index
    %0 = vector.load %arg1[%c0, %c0_0] : memref<64x256xbf16, #tpu.memory_space<vmem>>, vector<64x256xbf16>
    %cst = arith.constant 0.000000e+00 : bf16
    %1 = vector.broadcast %cst : bf16 to vector<64x256xbf16>
    %2 = arith.maximumf %0, %1 : vector<64x256xbf16>
    %c0_1 = arith.constant 0 : index
    %c0_2 = arith.constant 0 : index
    %3 = vector.load %arg2[%c0_1, %c0_2] : memref<24x32xbf16, #tpu.memory_space<vmem>>, vector<24x32xbf16>
    %c0_3 = arith.constant 0 : index
    %c0_4 = arith.constant 0 : index
    %4 = vector.load %arg3[%c0_3, %c0_4] : memref<1x32xf32, #tpu.memory_space<vmem>>, vector<1x32xf32>
    %5 = vector.extract_strided_slice %2 {offsets = [0, 0], sizes = [64, 24], strides = [1, 1]} : vector<64x256xbf16> to vector<64x24xbf16>
    %cst_5 = arith.constant dense<0.000000e+00> : vector<64x32xf32>
    %6 = tpu.matmul %5, %3, %cst_5 {dimension_numbers = #tpu.dot_dimension_numbers<[1], [0], [0], [1], [0, 0, 1, 1], [], []>} : vector<64x24xbf16>, vector<24x32xbf16>, vector<64x32xf32> -> vector<64x32xf32>
    %7 = vector.extract_strided_slice %2 {offsets = [0, 16], sizes = [64, 24], strides = [1, 1]} : vector<64x256xbf16> to vector<64x24xbf16>
    %cst_6 = arith.constant dense<0.000000e+00> : vector<64x32xf32>
    %8 = tpu.matmul %7, %3, %cst_6 {dimension_numbers = #tpu.dot_dimension_numbers<[1], [0], [0], [1], [0, 0, 1, 1], [], []>} : vector<64x24xbf16>, vector<24x32xbf16>, vector<64x32xf32> -> vector<64x32xf32>
    %9 = arith.maximumf %6, %8 : vector<64x32xf32>
    %10 = vector.broadcast %4 : vector<1x32xf32> to vector<64x32xf32>
    %11 = arith.addf %9, %10 : vector<64x32xf32>
    %cst_7 = arith.constant 0.000000e+00 : f32
    %12 = vector.broadcast %cst_7 : f32 to vector<64x32xf32>
    %13 = arith.maximumf %11, %12 : vector<64x32xf32>
    %14 = arith.truncf %13 : vector<64x32xf32> to vector<64x32xbf16>
    %15 = vector.extract_strided_slice %2 {offsets = [0, 32], sizes = [64, 24], strides = [1, 1]} : vector<64x256xbf16> to vector<64x24xbf16>
    %cst_8 = arith.constant dense<0.000000e+00> : vector<64x32xf32>
    %16 = tpu.matmul %15, %3, %cst_8 {dimension_numbers = #tpu.dot_dimension_numbers<[1], [0], [0], [1], [0, 0, 1, 1], [], []>} : vector<64x24xbf16>, vector<24x32xbf16>, vector<64x32xf32> -> vector<64x32xf32>
    %17 = vector.extract_strided_slice %2 {offsets = [0, 48], sizes = [64, 24], strides = [1, 1]} : vector<64x256xbf16> to vector<64x24xbf16>
    %cst_9 = arith.constant dense<0.000000e+00> : vector<64x32xf32>
    %18 = tpu.matmul %17, %3, %cst_9 {dimension_numbers = #tpu.dot_dimension_numbers<[1], [0], [0], [1], [0, 0, 1, 1], [], []>} : vector<64x24xbf16>, vector<24x32xbf16>, vector<64x32xf32> -> vector<64x32xf32>
    %19 = arith.maximumf %16, %18 : vector<64x32xf32>
    %20 = vector.broadcast %4 : vector<1x32xf32> to vector<64x32xf32>
    %21 = arith.addf %19, %20 : vector<64x32xf32>
    %cst_10 = arith.constant 0.000000e+00 : f32
    %22 = vector.broadcast %cst_10 : f32 to vector<64x32xf32>
    %23 = arith.maximumf %21, %22 : vector<64x32xf32>
    %24 = arith.truncf %23 : vector<64x32xf32> to vector<64x32xbf16>
    %25 = vector.extract_strided_slice %2 {offsets = [0, 64], sizes = [64, 24], strides = [1, 1]} : vector<64x256xbf16> to vector<64x24xbf16>
    %cst_11 = arith.constant dense<0.000000e+00> : vector<64x32xf32>
    %26 = tpu.matmul %25, %3, %cst_11 {dimension_numbers = #tpu.dot_dimension_numbers<[1], [0], [0], [1], [0, 0, 1, 1], [], []>} : vector<64x24xbf16>, vector<24x32xbf16>, vector<64x32xf32> -> vector<64x32xf32>
    %27 = vector.extract_strided_slice %2 {offsets = [0, 80], sizes = [64, 24], strides = [1, 1]} : vector<64x256xbf16> to vector<64x24xbf16>
    %cst_12 = arith.constant dense<0.000000e+00> : vector<64x32xf32>
    %28 = tpu.matmul %27, %3, %cst_12 {dimension_numbers = #tpu.dot_dimension_numbers<[1], [0], [0], [1], [0, 0, 1, 1], [], []>} : vector<64x24xbf16>, vector<24x32xbf16>, vector<64x32xf32> -> vector<64x32xf32>
    %29 = arith.maximumf %26, %28 : vector<64x32xf32>
    %30 = vector.broadcast %4 : vector<1x32xf32> to vector<64x32xf32>
    %31 = arith.addf %29, %30 : vector<64x32xf32>
    %cst_13 = arith.constant 0.000000e+00 : f32
    %32 = vector.broadcast %cst_13 : f32 to vector<64x32xf32>
    %33 = arith.maximumf %31, %32 : vector<64x32xf32>
    %34 = arith.truncf %33 : vector<64x32xf32> to vector<64x32xbf16>
    %35 = vector.extract_strided_slice %2 {offsets = [0, 96], sizes = [64, 24], strides = [1, 1]} : vector<64x256xbf16> to vector<64x24xbf16>
    %cst_14 = arith.constant dense<0.000000e+00> : vector<64x32xf32>
    %36 = tpu.matmul %35, %3, %cst_14 {dimension_numbers = #tpu.dot_dimension_numbers<[1], [0], [0], [1], [0, 0, 1, 1], [], []>} : vector<64x24xbf16>, vector<24x32xbf16>, vector<64x32xf32> -> vector<64x32xf32>
    %37 = vector.extract_strided_slice %2 {offsets = [0, 112], sizes = [64, 24], strides = [1, 1]} : vector<64x256xbf16> to vector<64x24xbf16>
    %cst_15 = arith.constant dense<0.000000e+00> : vector<64x32xf32>
    %38 = tpu.matmul %37, %3, %cst_15 {dimension_numbers = #tpu.dot_dimension_numbers<[1], [0], [0], [1], [0, 0, 1, 1], [], []>} : vector<64x24xbf16>, vector<24x32xbf16>, vector<64x32xf32> -> vector<64x32xf32>
    %39 = arith.maximumf %36, %38 : vector<64x32xf32>
    %40 = vector.broadcast %4 : vector<1x32xf32> to vector<64x32xf32>
    %41 = arith.addf %39, %40 : vector<64x32xf32>
    %cst_16 = arith.constant 0.000000e+00 : f32
    %42 = vector.broadcast %cst_16 : f32 to vector<64x32xf32>
    %43 = arith.maximumf %41, %42 : vector<64x32xf32>
    %44 = arith.truncf %43 : vector<64x32xf32> to vector<64x32xbf16>
    %45 = vector.extract_strided_slice %2 {offsets = [0, 128], sizes = [64, 24], strides = [1, 1]} : vector<64x256xbf16> to vector<64x24xbf16>
    %cst_17 = arith.constant dense<0.000000e+00> : vector<64x32xf32>
    %46 = tpu.matmul %45, %3, %cst_17 {dimension_numbers = #tpu.dot_dimension_numbers<[1], [0], [0], [1], [0, 0, 1, 1], [], []>} : vector<64x24xbf16>, vector<24x32xbf16>, vector<64x32xf32> -> vector<64x32xf32>
    %47 = vector.extract_strided_slice %2 {offsets = [0, 144], sizes = [64, 24], strides = [1, 1]} : vector<64x256xbf16> to vector<64x24xbf16>
    %cst_18 = arith.constant dense<0.000000e+00> : vector<64x32xf32>
    %48 = tpu.matmul %47, %3, %cst_18 {dimension_numbers = #tpu.dot_dimension_numbers<[1], [0], [0], [1], [0, 0, 1, 1], [], []>} : vector<64x24xbf16>, vector<24x32xbf16>, vector<64x32xf32> -> vector<64x32xf32>
    %49 = arith.maximumf %46, %48 : vector<64x32xf32>
    %50 = vector.broadcast %4 : vector<1x32xf32> to vector<64x32xf32>
    %51 = arith.addf %49, %50 : vector<64x32xf32>
    %cst_19 = arith.constant 0.000000e+00 : f32
    %52 = vector.broadcast %cst_19 : f32 to vector<64x32xf32>
    %53 = arith.maximumf %51, %52 : vector<64x32xf32>
    %54 = arith.truncf %53 : vector<64x32xf32> to vector<64x32xbf16>
    %c0_20 = arith.constant 0 : index
    %c0_21 = arith.constant 0 : index
    %c0_22 = arith.constant 0 : index
    %55 = vector.load %arg4[%c0_20, %c0_21, %c0_22] : memref<3x32x64xbf16, #tpu.memory_space<vmem>>, vector<1x32x64xbf16>
    %56 = vector.shape_cast %55 : vector<1x32x64xbf16> to vector<32x64xbf16>
    %cst_23 = arith.constant dense<0.000000e+00> : vector<64x64xf32>
    %57 = tpu.matmul %14, %56, %cst_23 {dimension_numbers = #tpu.dot_dimension_numbers<[1], [0], [0], [1], [0, 0, 1, 1], [], []>} : vector<64x32xbf16>, vector<32x64xbf16>, vector<64x64xf32> -> vector<64x64xf32>
    %c1 = arith.constant 1 : index
    %c0_24 = arith.constant 0 : index
    %c0_25 = arith.constant 0 : index
    %58 = vector.load %arg4[%c1, %c0_24, %c0_25] : memref<3x32x64xbf16, #tpu.memory_space<vmem>>, vector<1x32x64xbf16>
    %59 = vector.shape_cast %58 : vector<1x32x64xbf16> to vector<32x64xbf16>
    %cst_26 = arith.constant dense<0.000000e+00> : vector<64x64xf32>
    %60 = tpu.matmul %24, %59, %cst_26 {dimension_numbers = #tpu.dot_dimension_numbers<[1], [0], [0], [1], [0, 0, 1, 1], [], []>} : vector<64x32xbf16>, vector<32x64xbf16>, vector<64x64xf32> -> vector<64x64xf32>
    %61 = arith.addf %57, %60 : vector<64x64xf32>
    %c2 = arith.constant 2 : index
    %c0_27 = arith.constant 0 : index
    %c0_28 = arith.constant 0 : index
    %62 = vector.load %arg4[%c2, %c0_27, %c0_28] : memref<3x32x64xbf16, #tpu.memory_space<vmem>>, vector<1x32x64xbf16>
    %63 = vector.shape_cast %62 : vector<1x32x64xbf16> to vector<32x64xbf16>
    %cst_29 = arith.constant dense<0.000000e+00> : vector<64x64xf32>
    %64 = tpu.matmul %34, %63, %cst_29 {dimension_numbers = #tpu.dot_dimension_numbers<[1], [0], [0], [1], [0, 0, 1, 1], [], []>} : vector<64x32xbf16>, vector<32x64xbf16>, vector<64x64xf32> -> vector<64x64xf32>
    %65 = arith.addf %61, %64 : vector<64x64xf32>
    %c0_30 = arith.constant 0 : index
    %c0_31 = arith.constant 0 : index
    %c0_32 = arith.constant 0 : index
    %66 = vector.load %arg4[%c0_30, %c0_31, %c0_32] : memref<3x32x64xbf16, #tpu.memory_space<vmem>>, vector<1x32x64xbf16>
    %67 = vector.shape_cast %66 : vector<1x32x64xbf16> to vector<32x64xbf16>
    %cst_33 = arith.constant dense<0.000000e+00> : vector<64x64xf32>
    %68 = tpu.matmul %34, %67, %cst_33 {dimension_numbers = #tpu.dot_dimension_numbers<[1], [0], [0], [1], [0, 0, 1, 1], [], []>} : vector<64x32xbf16>, vector<32x64xbf16>, vector<64x64xf32> -> vector<64x64xf32>
    %c1_34 = arith.constant 1 : index
    %c0_35 = arith.constant 0 : index
    %c0_36 = arith.constant 0 : index
    %69 = vector.load %arg4[%c1_34, %c0_35, %c0_36] : memref<3x32x64xbf16, #tpu.memory_space<vmem>>, vector<1x32x64xbf16>
    %70 = vector.shape_cast %69 : vector<1x32x64xbf16> to vector<32x64xbf16>
    %cst_37 = arith.constant dense<0.000000e+00> : vector<64x64xf32>
    %71 = tpu.matmul %44, %70, %cst_37 {dimension_numbers = #tpu.dot_dimension_numbers<[1], [0], [0], [1], [0, 0, 1, 1], [], []>} : vector<64x32xbf16>, vector<32x64xbf16>, vector<64x64xf32> -> vector<64x64xf32>
    %72 = arith.addf %68, %71 : vector<64x64xf32>
    %c2_38 = arith.constant 2 : index
    %c0_39 = arith.constant 0 : index
    %c0_40 = arith.constant 0 : index
    %73 = vector.load %arg4[%c2_38, %c0_39, %c0_40] : memref<3x32x64xbf16, #tpu.memory_space<vmem>>, vector<1x32x64xbf16>
    %74 = vector.shape_cast %73 : vector<1x32x64xbf16> to vector<32x64xbf16>
    %cst_41 = arith.constant dense<0.000000e+00> : vector<64x64xf32>
    %75 = tpu.matmul %54, %74, %cst_41 {dimension_numbers = #tpu.dot_dimension_numbers<[1], [0], [0], [1], [0, 0, 1, 1], [], []>} : vector<64x32xbf16>, vector<32x64xbf16>, vector<64x64xf32> -> vector<64x64xf32>
    %76 = arith.addf %72, %75 : vector<64x64xf32>
    %77 = arith.maximumf %65, %76 : vector<64x64xf32>
    %c0_42 = arith.constant 0 : index
    %c0_43 = arith.constant 0 : index
    %78 = vector.load %arg5[%c0_42, %c0_43] : memref<1x64xf32, #tpu.memory_space<vmem>>, vector<1x64xf32>
    %79 = vector.broadcast %78 : vector<1x64xf32> to vector<64x64xf32>
    %80 = arith.addf %77, %79 : vector<64x64xf32>
    %81 = arith.truncf %80 : vector<64x64xf32> to vector<64x64xbf16>
    %c0_44 = arith.constant 0 : index
    %c0_45 = arith.constant 0 : index
    %82 = vector.load %arg6[%c0_44, %c0_45] : memref<64x64xbf16, #tpu.memory_space<vmem>>, vector<64x64xbf16>
    tpu.vector_store %arg6[%c0_44, %c0_45], %81 {strides = array<i32>} : memref<64x64xbf16, #tpu.memory_space<vmem>>, vector<64x64xbf16>,
    return
  }
  func.func @transform_0(%arg0: i32) -> (i32, i32) {
    %c0_i32 = arith.constant 0 : i32
    %c0_i32_0 = arith.constant 0 : i32
    return %arg0, %c0_i32 : i32, i32
  }
  func.func @transform_1(%arg0: i32) -> (i32, i32) {
    %c0_i32 = arith.constant 0 : i32
    %c0_i32_0 = arith.constant 0 : i32
    %c0_i32_1 = arith.constant 0 : i32
    return %c0_i32, %c0_i32_0 : i32, i32
  }
  func.func @transform_2(%arg0: i32) -> (i32, i32) {
    %c0_i32 = arith.constant 0 : i32
    %c0_i32_0 = arith.constant 0 : i32
    %c0_i32_1 = arith.constant 0 : i32
    return %c0_i32, %c0_i32_0 : i32, i32
  }
  func.func @transform_3(%arg0: i32) -> (i32, i32, i32) {
    %c0_i32 = arith.constant 0 : i32
    %c0_i32_0 = arith.constant 0 : i32
    %c0_i32_1 = arith.constant 0 : i32
    %c0_i32_2 = arith.constant 0 : i32
    return %c0_i32, %c0_i32_0, %c0_i32_1 : i32, i32, i32
  }
  func.func @transform_4(%arg0: i32) -> (i32, i32) {
    %c0_i32 = arith.constant 0 : i32
    %c0_i32_0 = arith.constant 0 : i32
    %c0_i32_1 = arith.constant 0 : i32
    return %c0_i32, %c0_i32_0 : i32, i32
  }
  func.func @transform_5(%arg0: i32) -> (i32, i32) {
    %c0_i32 = arith.constant 0 : i32
    %c0_i32_0 = arith.constant 0 : i32
    return %arg0, %c0_i32 : i32, i32
  }
}

module attributes {stable_mosaic.version = 11 : i64} {
  func.func @_heads_kernel(%arg0: i32, %arg1: memref<8x960xbf16, #tpu.memory_space<vmem>>, %arg2: memref<8x2560xbf16, #tpu.memory_space<vmem>>, %arg3: memref<8x10xf32, #tpu.memory_space<vmem>>, %arg4: memref<960x256xbf16, #tpu.memory_space<vmem>>, %arg5: memref<1x256xf32, #tpu.memory_space<vmem>>, %arg6: memref<256x256xbf16, #tpu.memory_space<vmem>>, %arg7: memref<1x256xf32, #tpu.memory_space<vmem>>, %arg8: memref<256x256xbf16, #tpu.memory_space<vmem>>, %arg9: memref<1x256xf32, #tpu.memory_space<vmem>>, %arg10: memref<960x256xbf16, #tpu.memory_space<vmem>>, %arg11: memref<1x256xf32, #tpu.memory_space<vmem>>, %arg12: memref<256x256xbf16, #tpu.memory_space<vmem>>, %arg13: memref<1x256xf32, #tpu.memory_space<vmem>>, %arg14: memref<256x256xbf16, #tpu.memory_space<vmem>>, %arg15: memref<1x256xf32, #tpu.memory_space<vmem>>, %arg16: memref<256x1xbf16, #tpu.memory_space<vmem>>, %arg17: memref<1x1xf32, #tpu.memory_space<vmem>>, %arg18: memref<8x10xf32, #tpu.memory_space<vmem>>, %arg19: memref<8x1xf32, #tpu.memory_space<vmem>>, %arg20: memref<8x10xf32, #tpu.memory_space<vmem>>, %arg21: memref<8x10xf32, #tpu.memory_space<vmem>>) attributes {dimension_semantics = [#tpu.dimension_semantics<parallel>], iteration_bounds = array<i64: 1>, scalar_prefetch = 0 : i64, scratch_operands = 0 : i64, tpu.core_type = #tpu.core_type<tc>, window_params = [{transform_indices = @transform_0, window_bounds = array<i64: 8, 960>}, {transform_indices = @transform_1, window_bounds = array<i64: 8, 2560>}, {transform_indices = @transform_2, window_bounds = array<i64: 8, 10>}, {pipeline_mode = #tpu.pipeline_mode<synchronous>, transform_indices = @transform_3, window_bounds = array<i64: 960, 256>}, {pipeline_mode = #tpu.pipeline_mode<synchronous>, transform_indices = @transform_4, window_bounds = array<i64: 1, 256>}, {pipeline_mode = #tpu.pipeline_mode<synchronous>, transform_indices = @transform_5, window_bounds = array<i64: 256, 256>}, {pipeline_mode = #tpu.pipeline_mode<synchronous>, transform_indices = @transform_6, window_bounds = array<i64: 1, 256>}, {pipeline_mode = #tpu.pipeline_mode<synchronous>, transform_indices = @transform_7, window_bounds = array<i64: 256, 256>}, {pipeline_mode = #tpu.pipeline_mode<synchronous>, transform_indices = @transform_8, window_bounds = array<i64: 1, 256>}, {pipeline_mode = #tpu.pipeline_mode<synchronous>, transform_indices = @transform_9, window_bounds = array<i64: 960, 256>}, {pipeline_mode = #tpu.pipeline_mode<synchronous>, transform_indices = @transform_10, window_bounds = array<i64: 1, 256>}, {pipeline_mode = #tpu.pipeline_mode<synchronous>, transform_indices = @transform_11, window_bounds = array<i64: 256, 256>}, {pipeline_mode = #tpu.pipeline_mode<synchronous>, transform_indices = @transform_12, window_bounds = array<i64: 1, 256>}, {pipeline_mode = #tpu.pipeline_mode<synchronous>, transform_indices = @transform_13, window_bounds = array<i64: 256, 256>}, {pipeline_mode = #tpu.pipeline_mode<synchronous>, transform_indices = @transform_14, window_bounds = array<i64: 1, 256>}, {pipeline_mode = #tpu.pipeline_mode<synchronous>, transform_indices = @transform_15, window_bounds = array<i64: 256, 1>}, {pipeline_mode = #tpu.pipeline_mode<synchronous>, transform_indices = @transform_16, window_bounds = array<i64: 1, 1>}, {transform_indices = @transform_17, window_bounds = array<i64: 8, 10>}, {transform_indices = @transform_18, window_bounds = array<i64: 8, 1>}, {transform_indices = @transform_19, window_bounds = array<i64: 8, 10>}, {transform_indices = @transform_20, window_bounds = array<i64: 8, 10>}]} {
    %c0 = arith.constant 0 : index
    %c0_0 = arith.constant 0 : index
    %0 = vector.load %arg1[%c0, %c0_0] : memref<8x960xbf16, #tpu.memory_space<vmem>>, vector<8x960xbf16>
    %c0_1 = arith.constant 0 : index
    %c0_2 = arith.constant 0 : index
    %1 = vector.load %arg2[%c0_1, %c0_2] : memref<8x2560xbf16, #tpu.memory_space<vmem>>, vector<8x2560xbf16>
    %c0_3 = arith.constant 0 : index
    %c0_4 = arith.constant 0 : index
    %2 = vector.load %arg3[%c0_3, %c0_4] : memref<8x10xf32, #tpu.memory_space<vmem>>, vector<8x10xf32>
    %c0_5 = arith.constant 0 : index
    %c0_6 = arith.constant 0 : index
    %3 = vector.load %arg4[%c0_5, %c0_6] : memref<960x256xbf16, #tpu.memory_space<vmem>>, vector<960x256xbf16>
    %cst = arith.constant dense<0.000000e+00> : vector<8x256xf32>
    %4 = tpu.matmul %0, %3, %cst {dimension_numbers = #tpu.dot_dimension_numbers<[1], [0], [0], [1], [0, 0, 1, 1], [], []>} : vector<8x960xbf16>, vector<960x256xbf16>, vector<8x256xf32> -> vector<8x256xf32>
    %c0_7 = arith.constant 0 : index
    %c0_8 = arith.constant 0 : index
    %5 = vector.load %arg5[%c0_7, %c0_8] : memref<1x256xf32, #tpu.memory_space<vmem>>, vector<1x256xf32>
    %6 = vector.broadcast %5 : vector<1x256xf32> to vector<8x256xf32>
    %7 = arith.addf %4, %6 : vector<8x256xf32>
    %8 = tpu.iota {dimensions = array<i32: 1>} : vector<1x10xi32>
    %cst_9 = arith.constant 0.000000e+00 : f32
    %9 = vector.broadcast %cst_9 : f32 to vector<8x10xf32>
    %10 = vector.extract_strided_slice %1 {offsets = [0, 0], sizes = [8, 256], strides = [1, 1]} : vector<8x2560xbf16> to vector<8x256xbf16>
    %c0_10 = arith.constant 0 : index
    %c0_11 = arith.constant 0 : index
    %11 = vector.load %arg6[%c0_10, %c0_11] : memref<256x256xbf16, #tpu.memory_space<vmem>>, vector<256x256xbf16>
    %cst_12 = arith.constant dense<0.000000e+00> : vector<8x256xf32>
    %12 = tpu.matmul %10, %11, %cst_12 {dimension_numbers = #tpu.dot_dimension_numbers<[1], [0], [0], [1], [0, 0, 1, 1], [], []>} : vector<8x256xbf16>, vector<256x256xbf16>, vector<8x256xf32> -> vector<8x256xf32>
    %c0_13 = arith.constant 0 : index
    %c0_14 = arith.constant 0 : index
    %13 = vector.load %arg7[%c0_13, %c0_14] : memref<1x256xf32, #tpu.memory_space<vmem>>, vector<1x256xf32>
    %14 = vector.broadcast %13 : vector<1x256xf32> to vector<8x256xf32>
    %15 = arith.addf %12, %14 : vector<8x256xf32>
    %cst_15 = arith.constant 0.000000e+00 : f32
    %16 = vector.broadcast %cst_15 : f32 to vector<8x256xf32>
    %17 = arith.maximumf %15, %16 : vector<8x256xf32>
    %18 = arith.truncf %17 : vector<8x256xf32> to vector<8x256xbf16>
    %c0_16 = arith.constant 0 : index
    %c0_17 = arith.constant 0 : index
    %19 = vector.load %arg8[%c0_16, %c0_17] : memref<256x256xbf16, #tpu.memory_space<vmem>>, vector<256x256xbf16>
    %cst_18 = arith.constant dense<0.000000e+00> : vector<8x256xf32>
    %20 = tpu.matmul %18, %19, %cst_18 {dimension_numbers = #tpu.dot_dimension_numbers<[1], [0], [0], [1], [0, 0, 1, 1], [], []>} : vector<8x256xbf16>, vector<256x256xbf16>, vector<8x256xf32> -> vector<8x256xf32>
    %c0_19 = arith.constant 0 : index
    %c0_20 = arith.constant 0 : index
    %21 = vector.load %arg9[%c0_19, %c0_20] : memref<1x256xf32, #tpu.memory_space<vmem>>, vector<1x256xf32>
    %22 = vector.broadcast %21 : vector<1x256xf32> to vector<8x256xf32>
    %23 = arith.addf %20, %22 : vector<8x256xf32>
    %24 = arith.mulf %7, %23 : vector<8x256xf32>
    %cst_21 = arith.constant dense<0.000000e+00> : vector<8xf32>
    %25 = vector.multi_reduction <add>, %24, %cst_21 [1] : vector<8x256xf32> to vector<8xf32>
    %26 = vector.shape_cast %25 : vector<8xf32> to vector<8x1xf32>
    %c0_i32 = arith.constant 0 : i32
    %27 = vector.broadcast %c0_i32 : i32 to vector<1x10xi32>
    %28 = arith.cmpi eq, %8, %27 : vector<1x10xi32>
    %29 = arith.extui %28 : vector<1x10xi1> to vector<1x10xi32>
    %30 = arith.sitofp %29 : vector<1x10xi32> to vector<1x10xf32>
    %31 = vector.broadcast %26 : vector<8x1xf32> to vector<8x10xf32>
    %32 = vector.broadcast %30 : vector<1x10xf32> to vector<8x10xf32>
    %33 = arith.mulf %31, %32 : vector<8x10xf32>
    %34 = arith.addf %9, %33 : vector<8x10xf32>
    %35 = vector.extract_strided_slice %1 {offsets = [0, 256], sizes = [8, 256], strides = [1, 1]} : vector<8x2560xbf16> to vector<8x256xbf16>
    %c0_22 = arith.constant 0 : index
    %c0_23 = arith.constant 0 : index
    %36 = vector.load %arg6[%c0_22, %c0_23] : memref<256x256xbf16, #tpu.memory_space<vmem>>, vector<256x256xbf16>
    %cst_24 = arith.constant dense<0.000000e+00> : vector<8x256xf32>
    %37 = tpu.matmul %35, %36, %cst_24 {dimension_numbers = #tpu.dot_dimension_numbers<[1], [0], [0], [1], [0, 0, 1, 1], [], []>} : vector<8x256xbf16>, vector<256x256xbf16>, vector<8x256xf32> -> vector<8x256xf32>
    %c0_25 = arith.constant 0 : index
    %c0_26 = arith.constant 0 : index
    %38 = vector.load %arg7[%c0_25, %c0_26] : memref<1x256xf32, #tpu.memory_space<vmem>>, vector<1x256xf32>
    %39 = vector.broadcast %38 : vector<1x256xf32> to vector<8x256xf32>
    %40 = arith.addf %37, %39 : vector<8x256xf32>
    %cst_27 = arith.constant 0.000000e+00 : f32
    %41 = vector.broadcast %cst_27 : f32 to vector<8x256xf32>
    %42 = arith.maximumf %40, %41 : vector<8x256xf32>
    %43 = arith.truncf %42 : vector<8x256xf32> to vector<8x256xbf16>
    %c0_28 = arith.constant 0 : index
    %c0_29 = arith.constant 0 : index
    %44 = vector.load %arg8[%c0_28, %c0_29] : memref<256x256xbf16, #tpu.memory_space<vmem>>, vector<256x256xbf16>
    %cst_30 = arith.constant dense<0.000000e+00> : vector<8x256xf32>
    %45 = tpu.matmul %43, %44, %cst_30 {dimension_numbers = #tpu.dot_dimension_numbers<[1], [0], [0], [1], [0, 0, 1, 1], [], []>} : vector<8x256xbf16>, vector<256x256xbf16>, vector<8x256xf32> -> vector<8x256xf32>
    %c0_31 = arith.constant 0 : index
    %c0_32 = arith.constant 0 : index
    %46 = vector.load %arg9[%c0_31, %c0_32] : memref<1x256xf32, #tpu.memory_space<vmem>>, vector<1x256xf32>
    %47 = vector.broadcast %46 : vector<1x256xf32> to vector<8x256xf32>
    %48 = arith.addf %45, %47 : vector<8x256xf32>
    %49 = arith.mulf %7, %48 : vector<8x256xf32>
    %cst_33 = arith.constant dense<0.000000e+00> : vector<8xf32>
    %50 = vector.multi_reduction <add>, %49, %cst_33 [1] : vector<8x256xf32> to vector<8xf32>
    %51 = vector.shape_cast %50 : vector<8xf32> to vector<8x1xf32>
    %c1_i32 = arith.constant 1 : i32
    %52 = vector.broadcast %c1_i32 : i32 to vector<1x10xi32>
    %53 = arith.cmpi eq, %8, %52 : vector<1x10xi32>
    %54 = arith.extui %53 : vector<1x10xi1> to vector<1x10xi32>
    %55 = arith.sitofp %54 : vector<1x10xi32> to vector<1x10xf32>
    %56 = vector.broadcast %51 : vector<8x1xf32> to vector<8x10xf32>
    %57 = vector.broadcast %55 : vector<1x10xf32> to vector<8x10xf32>
    %58 = arith.mulf %56, %57 : vector<8x10xf32>
    %59 = arith.addf %34, %58 : vector<8x10xf32>
    %60 = vector.extract_strided_slice %1 {offsets = [0, 512], sizes = [8, 256], strides = [1, 1]} : vector<8x2560xbf16> to vector<8x256xbf16>
    %c0_34 = arith.constant 0 : index
    %c0_35 = arith.constant 0 : index
    %61 = vector.load %arg6[%c0_34, %c0_35] : memref<256x256xbf16, #tpu.memory_space<vmem>>, vector<256x256xbf16>
    %cst_36 = arith.constant dense<0.000000e+00> : vector<8x256xf32>
    %62 = tpu.matmul %60, %61, %cst_36 {dimension_numbers = #tpu.dot_dimension_numbers<[1], [0], [0], [1], [0, 0, 1, 1], [], []>} : vector<8x256xbf16>, vector<256x256xbf16>, vector<8x256xf32> -> vector<8x256xf32>
    %c0_37 = arith.constant 0 : index
    %c0_38 = arith.constant 0 : index
    %63 = vector.load %arg7[%c0_37, %c0_38] : memref<1x256xf32, #tpu.memory_space<vmem>>, vector<1x256xf32>
    %64 = vector.broadcast %63 : vector<1x256xf32> to vector<8x256xf32>
    %65 = arith.addf %62, %64 : vector<8x256xf32>
    %cst_39 = arith.constant 0.000000e+00 : f32
    %66 = vector.broadcast %cst_39 : f32 to vector<8x256xf32>
    %67 = arith.maximumf %65, %66 : vector<8x256xf32>
    %68 = arith.truncf %67 : vector<8x256xf32> to vector<8x256xbf16>
    %c0_40 = arith.constant 0 : index
    %c0_41 = arith.constant 0 : index
    %69 = vector.load %arg8[%c0_40, %c0_41] : memref<256x256xbf16, #tpu.memory_space<vmem>>, vector<256x256xbf16>
    %cst_42 = arith.constant dense<0.000000e+00> : vector<8x256xf32>
    %70 = tpu.matmul %68, %69, %cst_42 {dimension_numbers = #tpu.dot_dimension_numbers<[1], [0], [0], [1], [0, 0, 1, 1], [], []>} : vector<8x256xbf16>, vector<256x256xbf16>, vector<8x256xf32> -> vector<8x256xf32>
    %c0_43 = arith.constant 0 : index
    %c0_44 = arith.constant 0 : index
    %71 = vector.load %arg9[%c0_43, %c0_44] : memref<1x256xf32, #tpu.memory_space<vmem>>, vector<1x256xf32>
    %72 = vector.broadcast %71 : vector<1x256xf32> to vector<8x256xf32>
    %73 = arith.addf %70, %72 : vector<8x256xf32>
    %74 = arith.mulf %7, %73 : vector<8x256xf32>
    %cst_45 = arith.constant dense<0.000000e+00> : vector<8xf32>
    %75 = vector.multi_reduction <add>, %74, %cst_45 [1] : vector<8x256xf32> to vector<8xf32>
    %76 = vector.shape_cast %75 : vector<8xf32> to vector<8x1xf32>
    %c2_i32 = arith.constant 2 : i32
    %77 = vector.broadcast %c2_i32 : i32 to vector<1x10xi32>
    %78 = arith.cmpi eq, %8, %77 : vector<1x10xi32>
    %79 = arith.extui %78 : vector<1x10xi1> to vector<1x10xi32>
    %80 = arith.sitofp %79 : vector<1x10xi32> to vector<1x10xf32>
    %81 = vector.broadcast %76 : vector<8x1xf32> to vector<8x10xf32>
    %82 = vector.broadcast %80 : vector<1x10xf32> to vector<8x10xf32>
    %83 = arith.mulf %81, %82 : vector<8x10xf32>
    %84 = arith.addf %59, %83 : vector<8x10xf32>
    %85 = vector.extract_strided_slice %1 {offsets = [0, 768], sizes = [8, 256], strides = [1, 1]} : vector<8x2560xbf16> to vector<8x256xbf16>
    %c0_46 = arith.constant 0 : index
    %c0_47 = arith.constant 0 : index
    %86 = vector.load %arg6[%c0_46, %c0_47] : memref<256x256xbf16, #tpu.memory_space<vmem>>, vector<256x256xbf16>
    %cst_48 = arith.constant dense<0.000000e+00> : vector<8x256xf32>
    %87 = tpu.matmul %85, %86, %cst_48 {dimension_numbers = #tpu.dot_dimension_numbers<[1], [0], [0], [1], [0, 0, 1, 1], [], []>} : vector<8x256xbf16>, vector<256x256xbf16>, vector<8x256xf32> -> vector<8x256xf32>
    %c0_49 = arith.constant 0 : index
    %c0_50 = arith.constant 0 : index
    %88 = vector.load %arg7[%c0_49, %c0_50] : memref<1x256xf32, #tpu.memory_space<vmem>>, vector<1x256xf32>
    %89 = vector.broadcast %88 : vector<1x256xf32> to vector<8x256xf32>
    %90 = arith.addf %87, %89 : vector<8x256xf32>
    %cst_51 = arith.constant 0.000000e+00 : f32
    %91 = vector.broadcast %cst_51 : f32 to vector<8x256xf32>
    %92 = arith.maximumf %90, %91 : vector<8x256xf32>
    %93 = arith.truncf %92 : vector<8x256xf32> to vector<8x256xbf16>
    %c0_52 = arith.constant 0 : index
    %c0_53 = arith.constant 0 : index
    %94 = vector.load %arg8[%c0_52, %c0_53] : memref<256x256xbf16, #tpu.memory_space<vmem>>, vector<256x256xbf16>
    %cst_54 = arith.constant dense<0.000000e+00> : vector<8x256xf32>
    %95 = tpu.matmul %93, %94, %cst_54 {dimension_numbers = #tpu.dot_dimension_numbers<[1], [0], [0], [1], [0, 0, 1, 1], [], []>} : vector<8x256xbf16>, vector<256x256xbf16>, vector<8x256xf32> -> vector<8x256xf32>
    %c0_55 = arith.constant 0 : index
    %c0_56 = arith.constant 0 : index
    %96 = vector.load %arg9[%c0_55, %c0_56] : memref<1x256xf32, #tpu.memory_space<vmem>>, vector<1x256xf32>
    %97 = vector.broadcast %96 : vector<1x256xf32> to vector<8x256xf32>
    %98 = arith.addf %95, %97 : vector<8x256xf32>
    %99 = arith.mulf %7, %98 : vector<8x256xf32>
    %cst_57 = arith.constant dense<0.000000e+00> : vector<8xf32>
    %100 = vector.multi_reduction <add>, %99, %cst_57 [1] : vector<8x256xf32> to vector<8xf32>
    %101 = vector.shape_cast %100 : vector<8xf32> to vector<8x1xf32>
    %c3_i32 = arith.constant 3 : i32
    %102 = vector.broadcast %c3_i32 : i32 to vector<1x10xi32>
    %103 = arith.cmpi eq, %8, %102 : vector<1x10xi32>
    %104 = arith.extui %103 : vector<1x10xi1> to vector<1x10xi32>
    %105 = arith.sitofp %104 : vector<1x10xi32> to vector<1x10xf32>
    %106 = vector.broadcast %101 : vector<8x1xf32> to vector<8x10xf32>
    %107 = vector.broadcast %105 : vector<1x10xf32> to vector<8x10xf32>
    %108 = arith.mulf %106, %107 : vector<8x10xf32>
    %109 = arith.addf %84, %108 : vector<8x10xf32>
    %110 = vector.extract_strided_slice %1 {offsets = [0, 1024], sizes = [8, 256], strides = [1, 1]} : vector<8x2560xbf16> to vector<8x256xbf16>
    %c0_58 = arith.constant 0 : index
    %c0_59 = arith.constant 0 : index
    %111 = vector.load %arg6[%c0_58, %c0_59] : memref<256x256xbf16, #tpu.memory_space<vmem>>, vector<256x256xbf16>
    %cst_60 = arith.constant dense<0.000000e+00> : vector<8x256xf32>
    %112 = tpu.matmul %110, %111, %cst_60 {dimension_numbers = #tpu.dot_dimension_numbers<[1], [0], [0], [1], [0, 0, 1, 1], [], []>} : vector<8x256xbf16>, vector<256x256xbf16>, vector<8x256xf32> -> vector<8x256xf32>
    %c0_61 = arith.constant 0 : index
    %c0_62 = arith.constant 0 : index
    %113 = vector.load %arg7[%c0_61, %c0_62] : memref<1x256xf32, #tpu.memory_space<vmem>>, vector<1x256xf32>
    %114 = vector.broadcast %113 : vector<1x256xf32> to vector<8x256xf32>
    %115 = arith.addf %112, %114 : vector<8x256xf32>
    %cst_63 = arith.constant 0.000000e+00 : f32
    %116 = vector.broadcast %cst_63 : f32 to vector<8x256xf32>
    %117 = arith.maximumf %115, %116 : vector<8x256xf32>
    %118 = arith.truncf %117 : vector<8x256xf32> to vector<8x256xbf16>
    %c0_64 = arith.constant 0 : index
    %c0_65 = arith.constant 0 : index
    %119 = vector.load %arg8[%c0_64, %c0_65] : memref<256x256xbf16, #tpu.memory_space<vmem>>, vector<256x256xbf16>
    %cst_66 = arith.constant dense<0.000000e+00> : vector<8x256xf32>
    %120 = tpu.matmul %118, %119, %cst_66 {dimension_numbers = #tpu.dot_dimension_numbers<[1], [0], [0], [1], [0, 0, 1, 1], [], []>} : vector<8x256xbf16>, vector<256x256xbf16>, vector<8x256xf32> -> vector<8x256xf32>
    %c0_67 = arith.constant 0 : index
    %c0_68 = arith.constant 0 : index
    %121 = vector.load %arg9[%c0_67, %c0_68] : memref<1x256xf32, #tpu.memory_space<vmem>>, vector<1x256xf32>
    %122 = vector.broadcast %121 : vector<1x256xf32> to vector<8x256xf32>
    %123 = arith.addf %120, %122 : vector<8x256xf32>
    %124 = arith.mulf %7, %123 : vector<8x256xf32>
    %cst_69 = arith.constant dense<0.000000e+00> : vector<8xf32>
    %125 = vector.multi_reduction <add>, %124, %cst_69 [1] : vector<8x256xf32> to vector<8xf32>
    %126 = vector.shape_cast %125 : vector<8xf32> to vector<8x1xf32>
    %c4_i32 = arith.constant 4 : i32
    %127 = vector.broadcast %c4_i32 : i32 to vector<1x10xi32>
    %128 = arith.cmpi eq, %8, %127 : vector<1x10xi32>
    %129 = arith.extui %128 : vector<1x10xi1> to vector<1x10xi32>
    %130 = arith.sitofp %129 : vector<1x10xi32> to vector<1x10xf32>
    %131 = vector.broadcast %126 : vector<8x1xf32> to vector<8x10xf32>
    %132 = vector.broadcast %130 : vector<1x10xf32> to vector<8x10xf32>
    %133 = arith.mulf %131, %132 : vector<8x10xf32>
    %134 = arith.addf %109, %133 : vector<8x10xf32>
    %135 = vector.extract_strided_slice %1 {offsets = [0, 1280], sizes = [8, 256], strides = [1, 1]} : vector<8x2560xbf16> to vector<8x256xbf16>
    %c0_70 = arith.constant 0 : index
    %c0_71 = arith.constant 0 : index
    %136 = vector.load %arg6[%c0_70, %c0_71] : memref<256x256xbf16, #tpu.memory_space<vmem>>, vector<256x256xbf16>
    %cst_72 = arith.constant dense<0.000000e+00> : vector<8x256xf32>
    %137 = tpu.matmul %135, %136, %cst_72 {dimension_numbers = #tpu.dot_dimension_numbers<[1], [0], [0], [1], [0, 0, 1, 1], [], []>} : vector<8x256xbf16>, vector<256x256xbf16>, vector<8x256xf32> -> vector<8x256xf32>
    %c0_73 = arith.constant 0 : index
    %c0_74 = arith.constant 0 : index
    %138 = vector.load %arg7[%c0_73, %c0_74] : memref<1x256xf32, #tpu.memory_space<vmem>>, vector<1x256xf32>
    %139 = vector.broadcast %138 : vector<1x256xf32> to vector<8x256xf32>
    %140 = arith.addf %137, %139 : vector<8x256xf32>
    %cst_75 = arith.constant 0.000000e+00 : f32
    %141 = vector.broadcast %cst_75 : f32 to vector<8x256xf32>
    %142 = arith.maximumf %140, %141 : vector<8x256xf32>
    %143 = arith.truncf %142 : vector<8x256xf32> to vector<8x256xbf16>
    %c0_76 = arith.constant 0 : index
    %c0_77 = arith.constant 0 : index
    %144 = vector.load %arg8[%c0_76, %c0_77] : memref<256x256xbf16, #tpu.memory_space<vmem>>, vector<256x256xbf16>
    %cst_78 = arith.constant dense<0.000000e+00> : vector<8x256xf32>
    %145 = tpu.matmul %143, %144, %cst_78 {dimension_numbers = #tpu.dot_dimension_numbers<[1], [0], [0], [1], [0, 0, 1, 1], [], []>} : vector<8x256xbf16>, vector<256x256xbf16>, vector<8x256xf32> -> vector<8x256xf32>
    %c0_79 = arith.constant 0 : index
    %c0_80 = arith.constant 0 : index
    %146 = vector.load %arg9[%c0_79, %c0_80] : memref<1x256xf32, #tpu.memory_space<vmem>>, vector<1x256xf32>
    %147 = vector.broadcast %146 : vector<1x256xf32> to vector<8x256xf32>
    %148 = arith.addf %145, %147 : vector<8x256xf32>
    %149 = arith.mulf %7, %148 : vector<8x256xf32>
    %cst_81 = arith.constant dense<0.000000e+00> : vector<8xf32>
    %150 = vector.multi_reduction <add>, %149, %cst_81 [1] : vector<8x256xf32> to vector<8xf32>
    %151 = vector.shape_cast %150 : vector<8xf32> to vector<8x1xf32>
    %c5_i32 = arith.constant 5 : i32
    %152 = vector.broadcast %c5_i32 : i32 to vector<1x10xi32>
    %153 = arith.cmpi eq, %8, %152 : vector<1x10xi32>
    %154 = arith.extui %153 : vector<1x10xi1> to vector<1x10xi32>
    %155 = arith.sitofp %154 : vector<1x10xi32> to vector<1x10xf32>
    %156 = vector.broadcast %151 : vector<8x1xf32> to vector<8x10xf32>
    %157 = vector.broadcast %155 : vector<1x10xf32> to vector<8x10xf32>
    %158 = arith.mulf %156, %157 : vector<8x10xf32>
    %159 = arith.addf %134, %158 : vector<8x10xf32>
    %160 = vector.extract_strided_slice %1 {offsets = [0, 1536], sizes = [8, 256], strides = [1, 1]} : vector<8x2560xbf16> to vector<8x256xbf16>
    %c0_82 = arith.constant 0 : index
    %c0_83 = arith.constant 0 : index
    %161 = vector.load %arg6[%c0_82, %c0_83] : memref<256x256xbf16, #tpu.memory_space<vmem>>, vector<256x256xbf16>
    %cst_84 = arith.constant dense<0.000000e+00> : vector<8x256xf32>
    %162 = tpu.matmul %160, %161, %cst_84 {dimension_numbers = #tpu.dot_dimension_numbers<[1], [0], [0], [1], [0, 0, 1, 1], [], []>} : vector<8x256xbf16>, vector<256x256xbf16>, vector<8x256xf32> -> vector<8x256xf32>
    %c0_85 = arith.constant 0 : index
    %c0_86 = arith.constant 0 : index
    %163 = vector.load %arg7[%c0_85, %c0_86] : memref<1x256xf32, #tpu.memory_space<vmem>>, vector<1x256xf32>
    %164 = vector.broadcast %163 : vector<1x256xf32> to vector<8x256xf32>
    %165 = arith.addf %162, %164 : vector<8x256xf32>
    %cst_87 = arith.constant 0.000000e+00 : f32
    %166 = vector.broadcast %cst_87 : f32 to vector<8x256xf32>
    %167 = arith.maximumf %165, %166 : vector<8x256xf32>
    %168 = arith.truncf %167 : vector<8x256xf32> to vector<8x256xbf16>
    %c0_88 = arith.constant 0 : index
    %c0_89 = arith.constant 0 : index
    %169 = vector.load %arg8[%c0_88, %c0_89] : memref<256x256xbf16, #tpu.memory_space<vmem>>, vector<256x256xbf16>
    %cst_90 = arith.constant dense<0.000000e+00> : vector<8x256xf32>
    %170 = tpu.matmul %168, %169, %cst_90 {dimension_numbers = #tpu.dot_dimension_numbers<[1], [0], [0], [1], [0, 0, 1, 1], [], []>} : vector<8x256xbf16>, vector<256x256xbf16>, vector<8x256xf32> -> vector<8x256xf32>
    %c0_91 = arith.constant 0 : index
    %c0_92 = arith.constant 0 : index
    %171 = vector.load %arg9[%c0_91, %c0_92] : memref<1x256xf32, #tpu.memory_space<vmem>>, vector<1x256xf32>
    %172 = vector.broadcast %171 : vector<1x256xf32> to vector<8x256xf32>
    %173 = arith.addf %170, %172 : vector<8x256xf32>
    %174 = arith.mulf %7, %173 : vector<8x256xf32>
    %cst_93 = arith.constant dense<0.000000e+00> : vector<8xf32>
    %175 = vector.multi_reduction <add>, %174, %cst_93 [1] : vector<8x256xf32> to vector<8xf32>
    %176 = vector.shape_cast %175 : vector<8xf32> to vector<8x1xf32>
    %c6_i32 = arith.constant 6 : i32
    %177 = vector.broadcast %c6_i32 : i32 to vector<1x10xi32>
    %178 = arith.cmpi eq, %8, %177 : vector<1x10xi32>
    %179 = arith.extui %178 : vector<1x10xi1> to vector<1x10xi32>
    %180 = arith.sitofp %179 : vector<1x10xi32> to vector<1x10xf32>
    %181 = vector.broadcast %176 : vector<8x1xf32> to vector<8x10xf32>
    %182 = vector.broadcast %180 : vector<1x10xf32> to vector<8x10xf32>
    %183 = arith.mulf %181, %182 : vector<8x10xf32>
    %184 = arith.addf %159, %183 : vector<8x10xf32>
    %185 = vector.extract_strided_slice %1 {offsets = [0, 1792], sizes = [8, 256], strides = [1, 1]} : vector<8x2560xbf16> to vector<8x256xbf16>
    %c0_94 = arith.constant 0 : index
    %c0_95 = arith.constant 0 : index
    %186 = vector.load %arg6[%c0_94, %c0_95] : memref<256x256xbf16, #tpu.memory_space<vmem>>, vector<256x256xbf16>
    %cst_96 = arith.constant dense<0.000000e+00> : vector<8x256xf32>
    %187 = tpu.matmul %185, %186, %cst_96 {dimension_numbers = #tpu.dot_dimension_numbers<[1], [0], [0], [1], [0, 0, 1, 1], [], []>} : vector<8x256xbf16>, vector<256x256xbf16>, vector<8x256xf32> -> vector<8x256xf32>
    %c0_97 = arith.constant 0 : index
    %c0_98 = arith.constant 0 : index
    %188 = vector.load %arg7[%c0_97, %c0_98] : memref<1x256xf32, #tpu.memory_space<vmem>>, vector<1x256xf32>
    %189 = vector.broadcast %188 : vector<1x256xf32> to vector<8x256xf32>
    %190 = arith.addf %187, %189 : vector<8x256xf32>
    %cst_99 = arith.constant 0.000000e+00 : f32
    %191 = vector.broadcast %cst_99 : f32 to vector<8x256xf32>
    %192 = arith.maximumf %190, %191 : vector<8x256xf32>
    %193 = arith.truncf %192 : vector<8x256xf32> to vector<8x256xbf16>
    %c0_100 = arith.constant 0 : index
    %c0_101 = arith.constant 0 : index
    %194 = vector.load %arg8[%c0_100, %c0_101] : memref<256x256xbf16, #tpu.memory_space<vmem>>, vector<256x256xbf16>
    %cst_102 = arith.constant dense<0.000000e+00> : vector<8x256xf32>
    %195 = tpu.matmul %193, %194, %cst_102 {dimension_numbers = #tpu.dot_dimension_numbers<[1], [0], [0], [1], [0, 0, 1, 1], [], []>} : vector<8x256xbf16>, vector<256x256xbf16>, vector<8x256xf32> -> vector<8x256xf32>
    %c0_103 = arith.constant 0 : index
    %c0_104 = arith.constant 0 : index
    %196 = vector.load %arg9[%c0_103, %c0_104] : memref<1x256xf32, #tpu.memory_space<vmem>>, vector<1x256xf32>
    %197 = vector.broadcast %196 : vector<1x256xf32> to vector<8x256xf32>
    %198 = arith.addf %195, %197 : vector<8x256xf32>
    %199 = arith.mulf %7, %198 : vector<8x256xf32>
    %cst_105 = arith.constant dense<0.000000e+00> : vector<8xf32>
    %200 = vector.multi_reduction <add>, %199, %cst_105 [1] : vector<8x256xf32> to vector<8xf32>
    %201 = vector.shape_cast %200 : vector<8xf32> to vector<8x1xf32>
    %c7_i32 = arith.constant 7 : i32
    %202 = vector.broadcast %c7_i32 : i32 to vector<1x10xi32>
    %203 = arith.cmpi eq, %8, %202 : vector<1x10xi32>
    %204 = arith.extui %203 : vector<1x10xi1> to vector<1x10xi32>
    %205 = arith.sitofp %204 : vector<1x10xi32> to vector<1x10xf32>
    %206 = vector.broadcast %201 : vector<8x1xf32> to vector<8x10xf32>
    %207 = vector.broadcast %205 : vector<1x10xf32> to vector<8x10xf32>
    %208 = arith.mulf %206, %207 : vector<8x10xf32>
    %209 = arith.addf %184, %208 : vector<8x10xf32>
    %210 = vector.extract_strided_slice %1 {offsets = [0, 2048], sizes = [8, 256], strides = [1, 1]} : vector<8x2560xbf16> to vector<8x256xbf16>
    %c0_106 = arith.constant 0 : index
    %c0_107 = arith.constant 0 : index
    %211 = vector.load %arg6[%c0_106, %c0_107] : memref<256x256xbf16, #tpu.memory_space<vmem>>, vector<256x256xbf16>
    %cst_108 = arith.constant dense<0.000000e+00> : vector<8x256xf32>
    %212 = tpu.matmul %210, %211, %cst_108 {dimension_numbers = #tpu.dot_dimension_numbers<[1], [0], [0], [1], [0, 0, 1, 1], [], []>} : vector<8x256xbf16>, vector<256x256xbf16>, vector<8x256xf32> -> vector<8x256xf32>
    %c0_109 = arith.constant 0 : index
    %c0_110 = arith.constant 0 : index
    %213 = vector.load %arg7[%c0_109, %c0_110] : memref<1x256xf32, #tpu.memory_space<vmem>>, vector<1x256xf32>
    %214 = vector.broadcast %213 : vector<1x256xf32> to vector<8x256xf32>
    %215 = arith.addf %212, %214 : vector<8x256xf32>
    %cst_111 = arith.constant 0.000000e+00 : f32
    %216 = vector.broadcast %cst_111 : f32 to vector<8x256xf32>
    %217 = arith.maximumf %215, %216 : vector<8x256xf32>
    %218 = arith.truncf %217 : vector<8x256xf32> to vector<8x256xbf16>
    %c0_112 = arith.constant 0 : index
    %c0_113 = arith.constant 0 : index
    %219 = vector.load %arg8[%c0_112, %c0_113] : memref<256x256xbf16, #tpu.memory_space<vmem>>, vector<256x256xbf16>
    %cst_114 = arith.constant dense<0.000000e+00> : vector<8x256xf32>
    %220 = tpu.matmul %218, %219, %cst_114 {dimension_numbers = #tpu.dot_dimension_numbers<[1], [0], [0], [1], [0, 0, 1, 1], [], []>} : vector<8x256xbf16>, vector<256x256xbf16>, vector<8x256xf32> -> vector<8x256xf32>
    %c0_115 = arith.constant 0 : index
    %c0_116 = arith.constant 0 : index
    %221 = vector.load %arg9[%c0_115, %c0_116] : memref<1x256xf32, #tpu.memory_space<vmem>>, vector<1x256xf32>
    %222 = vector.broadcast %221 : vector<1x256xf32> to vector<8x256xf32>
    %223 = arith.addf %220, %222 : vector<8x256xf32>
    %224 = arith.mulf %7, %223 : vector<8x256xf32>
    %cst_117 = arith.constant dense<0.000000e+00> : vector<8xf32>
    %225 = vector.multi_reduction <add>, %224, %cst_117 [1] : vector<8x256xf32> to vector<8xf32>
    %226 = vector.shape_cast %225 : vector<8xf32> to vector<8x1xf32>
    %c8_i32 = arith.constant 8 : i32
    %227 = vector.broadcast %c8_i32 : i32 to vector<1x10xi32>
    %228 = arith.cmpi eq, %8, %227 : vector<1x10xi32>
    %229 = arith.extui %228 : vector<1x10xi1> to vector<1x10xi32>
    %230 = arith.sitofp %229 : vector<1x10xi32> to vector<1x10xf32>
    %231 = vector.broadcast %226 : vector<8x1xf32> to vector<8x10xf32>
    %232 = vector.broadcast %230 : vector<1x10xf32> to vector<8x10xf32>
    %233 = arith.mulf %231, %232 : vector<8x10xf32>
    %234 = arith.addf %209, %233 : vector<8x10xf32>
    %235 = vector.extract_strided_slice %1 {offsets = [0, 2304], sizes = [8, 256], strides = [1, 1]} : vector<8x2560xbf16> to vector<8x256xbf16>
    %c0_118 = arith.constant 0 : index
    %c0_119 = arith.constant 0 : index
    %236 = vector.load %arg6[%c0_118, %c0_119] : memref<256x256xbf16, #tpu.memory_space<vmem>>, vector<256x256xbf16>
    %cst_120 = arith.constant dense<0.000000e+00> : vector<8x256xf32>
    %237 = tpu.matmul %235, %236, %cst_120 {dimension_numbers = #tpu.dot_dimension_numbers<[1], [0], [0], [1], [0, 0, 1, 1], [], []>} : vector<8x256xbf16>, vector<256x256xbf16>, vector<8x256xf32> -> vector<8x256xf32>
    %c0_121 = arith.constant 0 : index
    %c0_122 = arith.constant 0 : index
    %238 = vector.load %arg7[%c0_121, %c0_122] : memref<1x256xf32, #tpu.memory_space<vmem>>, vector<1x256xf32>
    %239 = vector.broadcast %238 : vector<1x256xf32> to vector<8x256xf32>
    %240 = arith.addf %237, %239 : vector<8x256xf32>
    %cst_123 = arith.constant 0.000000e+00 : f32
    %241 = vector.broadcast %cst_123 : f32 to vector<8x256xf32>
    %242 = arith.maximumf %240, %241 : vector<8x256xf32>
    %243 = arith.truncf %242 : vector<8x256xf32> to vector<8x256xbf16>
    %c0_124 = arith.constant 0 : index
    %c0_125 = arith.constant 0 : index
    %244 = vector.load %arg8[%c0_124, %c0_125] : memref<256x256xbf16, #tpu.memory_space<vmem>>, vector<256x256xbf16>
    %cst_126 = arith.constant dense<0.000000e+00> : vector<8x256xf32>
    %245 = tpu.matmul %243, %244, %cst_126 {dimension_numbers = #tpu.dot_dimension_numbers<[1], [0], [0], [1], [0, 0, 1, 1], [], []>} : vector<8x256xbf16>, vector<256x256xbf16>, vector<8x256xf32> -> vector<8x256xf32>
    %c0_127 = arith.constant 0 : index
    %c0_128 = arith.constant 0 : index
    %246 = vector.load %arg9[%c0_127, %c0_128] : memref<1x256xf32, #tpu.memory_space<vmem>>, vector<1x256xf32>
    %247 = vector.broadcast %246 : vector<1x256xf32> to vector<8x256xf32>
    %248 = arith.addf %245, %247 : vector<8x256xf32>
    %249 = arith.mulf %7, %248 : vector<8x256xf32>
    %cst_129 = arith.constant dense<0.000000e+00> : vector<8xf32>
    %250 = vector.multi_reduction <add>, %249, %cst_129 [1] : vector<8x256xf32> to vector<8xf32>
    %251 = vector.shape_cast %250 : vector<8xf32> to vector<8x1xf32>
    %c9_i32 = arith.constant 9 : i32
    %252 = vector.broadcast %c9_i32 : i32 to vector<1x10xi32>
    %253 = arith.cmpi eq, %8, %252 : vector<1x10xi32>
    %254 = arith.extui %253 : vector<1x10xi1> to vector<1x10xi32>
    %255 = arith.sitofp %254 : vector<1x10xi32> to vector<1x10xf32>
    %256 = vector.broadcast %251 : vector<8x1xf32> to vector<8x10xf32>
    %257 = vector.broadcast %255 : vector<1x10xf32> to vector<8x10xf32>
    %258 = arith.mulf %256, %257 : vector<8x10xf32>
    %259 = arith.addf %234, %258 : vector<8x10xf32>
    %cst_130 = arith.constant 0.000000e+00 : bf16
    %260 = vector.broadcast %cst_130 : bf16 to vector<8x960xbf16>
    %261 = arith.maximumf %0, %260 : vector<8x960xbf16>
    %c0_131 = arith.constant 0 : index
    %c0_132 = arith.constant 0 : index
    %262 = vector.load %arg10[%c0_131, %c0_132] : memref<960x256xbf16, #tpu.memory_space<vmem>>, vector<960x256xbf16>
    %cst_133 = arith.constant dense<0.000000e+00> : vector<8x256xf32>
    %263 = tpu.matmul %261, %262, %cst_133 {dimension_numbers = #tpu.dot_dimension_numbers<[1], [0], [0], [1], [0, 0, 1, 1], [], []>} : vector<8x960xbf16>, vector<960x256xbf16>, vector<8x256xf32> -> vector<8x256xf32>
    %c0_134 = arith.constant 0 : index
    %c0_135 = arith.constant 0 : index
    %264 = vector.load %arg11[%c0_134, %c0_135] : memref<1x256xf32, #tpu.memory_space<vmem>>, vector<1x256xf32>
    %265 = vector.broadcast %264 : vector<1x256xf32> to vector<8x256xf32>
    %266 = arith.addf %263, %265 : vector<8x256xf32>
    %cst_136 = arith.constant 0.000000e+00 : f32
    %267 = vector.broadcast %cst_136 : f32 to vector<8x256xf32>
    %268 = arith.maximumf %266, %267 : vector<8x256xf32>
    %269 = arith.truncf %268 : vector<8x256xf32> to vector<8x256xbf16>
    %c0_137 = arith.constant 0 : index
    %c0_138 = arith.constant 0 : index
    %270 = vector.load %arg12[%c0_137, %c0_138] : memref<256x256xbf16, #tpu.memory_space<vmem>>, vector<256x256xbf16>
    %cst_139 = arith.constant dense<0.000000e+00> : vector<8x256xf32>
    %271 = tpu.matmul %269, %270, %cst_139 {dimension_numbers = #tpu.dot_dimension_numbers<[1], [0], [0], [1], [0, 0, 1, 1], [], []>} : vector<8x256xbf16>, vector<256x256xbf16>, vector<8x256xf32> -> vector<8x256xf32>
    %c0_140 = arith.constant 0 : index
    %c0_141 = arith.constant 0 : index
    %272 = vector.load %arg13[%c0_140, %c0_141] : memref<1x256xf32, #tpu.memory_space<vmem>>, vector<1x256xf32>
    %273 = vector.broadcast %272 : vector<1x256xf32> to vector<8x256xf32>
    %274 = arith.addf %271, %273 : vector<8x256xf32>
    %275 = arith.addf %274, %266 : vector<8x256xf32>
    %cst_142 = arith.constant 0.000000e+00 : f32
    %276 = vector.broadcast %cst_142 : f32 to vector<8x256xf32>
    %277 = arith.maximumf %275, %276 : vector<8x256xf32>
    %278 = arith.truncf %277 : vector<8x256xf32> to vector<8x256xbf16>
    %c0_143 = arith.constant 0 : index
    %c0_144 = arith.constant 0 : index
    %279 = vector.load %arg14[%c0_143, %c0_144] : memref<256x256xbf16, #tpu.memory_space<vmem>>, vector<256x256xbf16>
    %cst_145 = arith.constant dense<0.000000e+00> : vector<8x256xf32>
    %280 = tpu.matmul %278, %279, %cst_145 {dimension_numbers = #tpu.dot_dimension_numbers<[1], [0], [0], [1], [0, 0, 1, 1], [], []>} : vector<8x256xbf16>, vector<256x256xbf16>, vector<8x256xf32> -> vector<8x256xf32>
    %c0_146 = arith.constant 0 : index
    %c0_147 = arith.constant 0 : index
    %281 = vector.load %arg15[%c0_146, %c0_147] : memref<1x256xf32, #tpu.memory_space<vmem>>, vector<1x256xf32>
    %282 = vector.broadcast %281 : vector<1x256xf32> to vector<8x256xf32>
    %283 = arith.addf %280, %282 : vector<8x256xf32>
    %284 = arith.addf %283, %275 : vector<8x256xf32>
    %cst_148 = arith.constant 0.000000e+00 : f32
    %285 = vector.broadcast %cst_148 : f32 to vector<8x256xf32>
    %286 = arith.maximumf %284, %285 : vector<8x256xf32>
    %287 = arith.truncf %286 : vector<8x256xf32> to vector<8x256xbf16>
    %c0_149 = arith.constant 0 : index
    %c0_150 = arith.constant 0 : index
    %288 = vector.load %arg16[%c0_149, %c0_150] : memref<256x1xbf16, #tpu.memory_space<vmem>>, vector<256x1xbf16>
    %cst_151 = arith.constant dense<0.000000e+00> : vector<8x1xf32>
    %289 = tpu.matmul %287, %288, %cst_151 {dimension_numbers = #tpu.dot_dimension_numbers<[1], [0], [0], [1], [0, 0, 1, 1], [], []>} : vector<8x256xbf16>, vector<256x1xbf16>, vector<8x1xf32> -> vector<8x1xf32>
    %c0_152 = arith.constant 0 : index
    %c0_153 = arith.constant 0 : index
    %290 = vector.load %arg17[%c0_152, %c0_153] : memref<1x1xf32, #tpu.memory_space<vmem>>, vector<1x1xf32>
    %291 = vector.broadcast %290 : vector<1x1xf32> to vector<8x1xf32>
    %292 = arith.addf %289, %291 : vector<8x1xf32>
    %cst_154 = arith.constant 0.000000e+00 : f32
    %293 = vector.broadcast %cst_154 : f32 to vector<8x10xf32>
    %294 = arith.cmpf ogt, %2, %293 : vector<8x10xf32>
    %cst_155 = arith.constant dense<0x7F800000> : vector<8xf32>
    %295 = vector.multi_reduction <minimumf>, %259, %cst_155 [1] : vector<8x10xf32> to vector<8xf32>
    %296 = vector.shape_cast %295 : vector<8xf32> to vector<8x1xf32>
    %297 = vector.shape_cast %296 : vector<8x1xf32> to vector<8x1xf32>
    %298 = vector.broadcast %297 : vector<8x1xf32> to vector<8x10xf32>
    %299 = arith.select %294, %259, %298 : vector<8x10xi1>, vector<8x10xf32>
    %cst_156 = arith.constant dense<0xFF800000> : vector<8xf32>
    %300 = vector.multi_reduction <maximumf>, %299, %cst_156 [1] : vector<8x10xf32> to vector<8xf32>
    %301 = vector.shape_cast %300 : vector<8xf32> to vector<8x1xf32>
    %302 = vector.broadcast %301 : vector<8x1xf32> to vector<8x10xf32>
    %303 = arith.subf %299, %302 : vector<8x10xf32>
    %cst_157 = arith.constant 0.000000e+00 : f32
    %304 = vector.broadcast %cst_157 : f32 to vector<8x10xf32>
    %305 = arith.select %294, %303, %304 : vector<8x10xi1>, vector<8x10xf32>
    %306 = math.exp %305 : vector<8x10xf32>
    %cst_158 = arith.constant 0.000000e+00 : f32
    %307 = vector.broadcast %cst_158 : f32 to vector<8x10xf32>
    %308 = arith.select %294, %306, %307 : vector<8x10xi1>, vector<8x10xf32>
    %cst_159 = arith.constant dense<0.000000e+00> : vector<8xf32>
    %309 = vector.multi_reduction <add>, %308, %cst_159 [1] : vector<8x10xf32> to vector<8xf32>
    %310 = vector.shape_cast %309 : vector<8xf32> to vector<8x1xf32>
    %cst_160 = arith.constant 1.000000e-30 : f32
    %311 = vector.broadcast %cst_160 : f32 to vector<8x1xf32>
    %312 = arith.maximumf %310, %311 : vector<8x1xf32>
    %313 = vector.broadcast %312 : vector<8x1xf32> to vector<8x10xf32>
    %314 = arith.divf %308, %313 : vector<8x10xf32>
    %cst_161 = arith.constant -1.000000e+30 : f32
    %315 = vector.broadcast %cst_161 : f32 to vector<8x10xf32>
    %316 = arith.select %294, %259, %315 : vector<8x10xi1>, vector<8x10xf32>
    %cst_162 = arith.constant dense<0xFF800000> : vector<8xf32>
    %317 = vector.multi_reduction <maximumf>, %316, %cst_162 [1] : vector<8x10xf32> to vector<8xf32>
    %318 = vector.shape_cast %317 : vector<8xf32> to vector<8x1xf32>
    %319 = vector.broadcast %318 : vector<8x1xf32> to vector<8x10xf32>
    %320 = arith.subf %316, %319 : vector<8x10xf32>
    %321 = math.exp %320 : vector<8x10xf32>
    %cst_163 = arith.constant dense<0.000000e+00> : vector<8xf32>
    %322 = vector.multi_reduction <add>, %321, %cst_163 [1] : vector<8x10xf32> to vector<8xf32>
    %323 = vector.shape_cast %322 : vector<8xf32> to vector<8x1xf32>
    %324 = vector.broadcast %318 : vector<8x1xf32> to vector<8x10xf32>
    %325 = arith.subf %259, %324 : vector<8x10xf32>
    %326 = math.log %323 : vector<8x1xf32>
    %327 = vector.broadcast %326 : vector<8x1xf32> to vector<8x10xf32>
    %328 = arith.subf %325, %327 : vector<8x10xf32>
    %329 = arith.mulf %2, %328 : vector<8x10xf32>
    %c0_164 = arith.constant 0 : index
    %c0_165 = arith.constant 0 : index
    %330 = vector.load %arg18[%c0_164, %c0_165] : memref<8x10xf32, #tpu.memory_space<vmem>>, vector<8x10xf32>
    tpu.vector_store %arg18[%c0_164, %c0_165], %259 {strides = array<i32>} : memref<8x10xf32, #tpu.memory_space<vmem>>, vector<8x10xf32>,
    %c0_166 = arith.constant 0 : index
    %c0_167 = arith.constant 0 : index
    %331 = vector.load %arg19[%c0_166, %c0_167] : memref<8x1xf32, #tpu.memory_space<vmem>>, vector<8x1xf32>
    tpu.vector_store %arg19[%c0_166, %c0_167], %292 {strides = array<i32>} : memref<8x1xf32, #tpu.memory_space<vmem>>, vector<8x1xf32>,
    %c0_168 = arith.constant 0 : index
    %c0_169 = arith.constant 0 : index
    %332 = vector.load %arg20[%c0_168, %c0_169] : memref<8x10xf32, #tpu.memory_space<vmem>>, vector<8x10xf32>
    tpu.vector_store %arg20[%c0_168, %c0_169], %314 {strides = array<i32>} : memref<8x10xf32, #tpu.memory_space<vmem>>, vector<8x10xf32>,
    %c0_170 = arith.constant 0 : index
    %c0_171 = arith.constant 0 : index
    %333 = vector.load %arg21[%c0_170, %c0_171] : memref<8x10xf32, #tpu.memory_space<vmem>>, vector<8x10xf32>
    tpu.vector_store %arg21[%c0_170, %c0_171], %329 {strides = array<i32>} : memref<8x10xf32, #tpu.memory_space<vmem>>, vector<8x10xf32>,
    return
  }
  func.func @transform_0(%arg0: i32) -> (i32, i32) {
    %c0_i32 = arith.constant 0 : i32
    %c0_i32_0 = arith.constant 0 : i32
    return %arg0, %c0_i32 : i32, i32
  }
  func.func @transform_1(%arg0: i32) -> (i32, i32) {
    %c0_i32 = arith.constant 0 : i32
    %c0_i32_0 = arith.constant 0 : i32
    return %arg0, %c0_i32 : i32, i32
  }
  func.func @transform_2(%arg0: i32) -> (i32, i32) {
    %c0_i32 = arith.constant 0 : i32
    %c0_i32_0 = arith.constant 0 : i32
    return %arg0, %c0_i32 : i32, i32
  }
  func.func @transform_3(%arg0: i32) -> (i32, i32) {
    %c0_i32 = arith.constant 0 : i32
    %c0_i32_0 = arith.constant 0 : i32
    %c0_i32_1 = arith.constant 0 : i32
    return %c0_i32, %c0_i32_0 : i32, i32
  }
  func.func @transform_4(%arg0: i32) -> (i32, i32) {
    %c0_i32 = arith.constant 0 : i32
    %c0_i32_0 = arith.constant 0 : i32
    %c0_i32_1 = arith.constant 0 : i32
    return %c0_i32, %c0_i32_0 : i32, i32
  }
  func.func @transform_5(%arg0: i32) -> (i32, i32) {
    %c0_i32 = arith.constant 0 : i32
    %c0_i32_0 = arith.constant 0 : i32
    %c0_i32_1 = arith.constant 0 : i32
    return %c0_i32, %c0_i32_0 : i32, i32
  }
  func.func @transform_6(%arg0: i32) -> (i32, i32) {
    %c0_i32 = arith.constant 0 : i32
    %c0_i32_0 = arith.constant 0 : i32
    %c0_i32_1 = arith.constant 0 : i32
    return %c0_i32, %c0_i32_0 : i32, i32
  }
  func.func @transform_7(%arg0: i32) -> (i32, i32) {
    %c0_i32 = arith.constant 0 : i32
    %c0_i32_0 = arith.constant 0 : i32
    %c0_i32_1 = arith.constant 0 : i32
    return %c0_i32, %c0_i32_0 : i32, i32
  }
  func.func @transform_8(%arg0: i32) -> (i32, i32) {
    %c0_i32 = arith.constant 0 : i32
    %c0_i32_0 = arith.constant 0 : i32
    %c0_i32_1 = arith.constant 0 : i32
    return %c0_i32, %c0_i32_0 : i32, i32
  }
  func.func @transform_9(%arg0: i32) -> (i32, i32) {
    %c0_i32 = arith.constant 0 : i32
    %c0_i32_0 = arith.constant 0 : i32
    %c0_i32_1 = arith.constant 0 : i32
    return %c0_i32, %c0_i32_0 : i32, i32
  }
  func.func @transform_10(%arg0: i32) -> (i32, i32) {
    %c0_i32 = arith.constant 0 : i32
    %c0_i32_0 = arith.constant 0 : i32
    %c0_i32_1 = arith.constant 0 : i32
    return %c0_i32, %c0_i32_0 : i32, i32
  }
  func.func @transform_11(%arg0: i32) -> (i32, i32) {
    %c0_i32 = arith.constant 0 : i32
    %c0_i32_0 = arith.constant 0 : i32
    %c0_i32_1 = arith.constant 0 : i32
    return %c0_i32, %c0_i32_0 : i32, i32
  }
  func.func @transform_12(%arg0: i32) -> (i32, i32) {
    %c0_i32 = arith.constant 0 : i32
    %c0_i32_0 = arith.constant 0 : i32
    %c0_i32_1 = arith.constant 0 : i32
    return %c0_i32, %c0_i32_0 : i32, i32
  }
  func.func @transform_13(%arg0: i32) -> (i32, i32) {
    %c0_i32 = arith.constant 0 : i32
    %c0_i32_0 = arith.constant 0 : i32
    %c0_i32_1 = arith.constant 0 : i32
    return %c0_i32, %c0_i32_0 : i32, i32
  }
  func.func @transform_14(%arg0: i32) -> (i32, i32) {
    %c0_i32 = arith.constant 0 : i32
    %c0_i32_0 = arith.constant 0 : i32
    %c0_i32_1 = arith.constant 0 : i32
    return %c0_i32, %c0_i32_0 : i32, i32
  }
  func.func @transform_15(%arg0: i32) -> (i32, i32) {
    %c0_i32 = arith.constant 0 : i32
    %c0_i32_0 = arith.constant 0 : i32
    %c0_i32_1 = arith.constant 0 : i32
    return %c0_i32, %c0_i32_0 : i32, i32
  }
  func.func @transform_16(%arg0: i32) -> (i32, i32) {
    %c0_i32 = arith.constant 0 : i32
    %c0_i32_0 = arith.constant 0 : i32
    %c0_i32_1 = arith.constant 0 : i32
    return %c0_i32, %c0_i32_0 : i32, i32
  }
  func.func @transform_17(%arg0: i32) -> (i32, i32) {
    %c0_i32 = arith.constant 0 : i32
    %c0_i32_0 = arith.constant 0 : i32
    return %arg0, %c0_i32 : i32, i32
  }
  func.func @transform_18(%arg0: i32) -> (i32, i32) {
    %c0_i32 = arith.constant 0 : i32
    %c0_i32_0 = arith.constant 0 : i32
    return %arg0, %c0_i32 : i32, i32
  }
  func.func @transform_19(%arg0: i32) -> (i32, i32) {
    %c0_i32 = arith.constant 0 : i32
    %c0_i32_0 = arith.constant 0 : i32
    return %arg0, %c0_i32 : i32, i32
  }
  func.func @transform_20(%arg0: i32) -> (i32, i32) {
    %c0_i32 = arith.constant 0 : i32
    %c0_i32_0 = arith.constant 0 : i32
    return %arg0, %c0_i32 : i32, i32
  }
}

</mosaic_0001>

<bundles_post_ra>
// kernel: forward.4
= control target key start
LH: loop header
LB: loop body
LE: loop exit
PB: predicated region body
PF: predicated region fallthrough
CT: control target
= control target key end

     0   :  { %s6415_s12 = smov 0   ;;  %s7704_s0 = inlined_call_operand.vmem [shape: bf16[1024,896], index: 0, kind: input, shape index: {}]   ;;  %s7705_s1 = inlined_call_operand.vmem [shape: bf16[896,256], index: 1, kind: input, shape index: {}]   ;;  %s7706_s2 = inlined_call_operand.vmem [shape: bf16[256,256], index: 2, kind: input, shape index: {}]   ;;  %s7707_s3 = inlined_call_operand.vmem [shape: bf16[1024,256], index: 3, kind: output, shape index: {}]  }
   0x1 LB: > { %s4915_s13 = sadd.s32 4294967295, %s6392_s12   ;;  %p4919_p0 = scmp.ge.s32.totalorder %s6392_s12, 1  ;;  %s6392_s12 = sphi %s6415_s12, %s13_s12  }
   0x2   : > { %p139_p1 = scmp.lt.s32.totalorder %s6392_s12, 3 }
   0x4   : > { %p140_p2 = pnand %p4919_p0, %p139_p1 }
   0x6   : > { %143 = sbr.rel (%p140_p2) target bundleno = 1150 (0x47e), region = 32 }
   0xd   : > { %v6426_v0 = vld [vmem:[%s7705_s1 + $0x104] ss:$8 sps:$4 sm:$0xff]   ;;  %v6431_v1 = vld [vmem:[%s7705_s1 + $0x100] ss:$8 sps:$4 sm:$0xff]   ;;  %v6437_v2 = vld [vmem:[%s7705_s1 + $0x114] ss:$8 sps:$4 sm:$0xff]  }
   0xe   : > { %2613 = vmatprep.subr.bf16.mxu0 %v6426_v0  ;;  %v6443_v3 = vld [vmem:[%s7705_s1 + $0x110] ss:$8 sps:$4 sm:$0xff]   ;;  %v6449_v4 = vld [vmem:[%s7705_s1 + $0x124] ss:$8 sps:$4 sm:$0xff]   ;;  %s4920_s24 = sshll.u32 %s4915_s13, 6 }
   0xf   : > { %2614 = vmatpush1.bf16.msra.mxu0 %v6431_v1  ;;  %v6455_v5 = vld [vmem:[%s7705_s1 + $0x120] ss:$8 sps:$4 sm:$0xff]   ;;  %p166_p3 = scmp.lt.s32.totalorder %s4920_s24, 127  ;;  %v6461_v6 = vld [vmem:[%s7705_s1 + $0x134] ss:$8 sps:$4 sm:$0xff]  }
  0x10   : > { %2615 = vmatprep.subr.bf16.mxu0 %v6437_v2  ;;  %v6467_v7 = vld [vmem:[%s7705_s1 + $0x130] ss:$8 sps:$4 sm:$0xff]   ;;  %v6475_v8 = vld [vmem:[%s7705_s1 + $0x144] ss:$8 sps:$4 sm:$0xff]   ;;  %v6481_v9 = vld [vmem:[%s7705_s1 + $0x140] ss:$8 sps:$4 sm:$0xff]  }
  0x11   : > { %s7844_s24 = smov (!%p166_p3, %s4920_s24), 127  ;;  %v6488_v10 = vld [vmem:[%s7705_s1 + $0x154] ss:$8 sps:$4 sm:$0xff]   ;;  %v6494_v11 = vld [vmem:[%s7705_s1 + $0x150] ss:$8 sps:$4 sm:$0xff]  }
  0x12   : > { %s5840_s8 = smul.u32 28, %s7844_s24  ;;  %v6505_v12 = vld [vmem:[%s7705_s1 + $0x164] ss:$8 sps:$4 sm:$0xff]   ;;  %v6512_v14 = vld [vmem:[%s7705_s1 + $0x160] ss:$8 sps:$4 sm:$0xff]  }
  0x13   : > { %2616 = vmatpush1.bf16.msra.mxu0 %v6443_v3  ;;  %v6518_v15 = vld [vmem:[%s7705_s1 + $0x174] ss:$8 sps:$4 sm:$0xff]   ;;  %v6524_v16 = vld [vmem:[%s7705_s1 + $0x170] ss:$8 sps:$4 sm:$0xff]   ;;  %v6530_v17 = vld [vmem:[%s7705_s1 + $0x184] ss:$8 sps:$4 sm:$0xff]  }
  0x14   : > { %2617 = vmatprep.subr.bf16.mxu0 %v6449_v4  ;;  %s6499_s16 = scalar_lea.vmem %s7704_s0, %s5840_s8  ;;  %v6536_v18 = vld [vmem:[%s7705_s1 + $0x180] ss:$8 sps:$4 sm:$0xff]   ;;  %v6541_v19 = vld [vmem:[%s7705_s1 + $0x194] ss:$8 sps:$4 sm:$0xff]   ;;  %v5922_v20 = vld [vmem:[%s7705_s1 + $0x4] ss:$8 sps:$4 sm:$0xff]  }
  0x15   : > { %v5900_v13 = vld [vmem:[%s6499_s16 + $0xc] ss:$28 sps:$4 sm:$0xff]   ;;  %2260 = vmatprep.subr.bf16.mxu1 %v5922_v20  ;;  %v6554_v22 = vld [vmem:[%s7705_s1 + $0x190] ss:$8 sps:$4 sm:$0xff]   ;;  %v5927_v23 = vld [vmem:[%s7705_s1 + $0x14] ss:$8 sps:$4 sm:$0xff]  }
  0x16   : > { %2645 = vmatprep.mubr.bf16.mxu0 %v5900_v13  ;;  %v5924_v21 = vld [vmem:[%s7705_s1] ss:$8 sps:$4 sm:$0xff]   ;;  %v6563_v24 = vld [vmem:[%s7705_s1 + $0x1a4] ss:$8 sps:$4 sm:$0xff]   ;;  %v5933_v25 = vld [vmem:[%s7705_s1 + $0x10] ss:$8 sps:$4 sm:$0xff]  }
  0x17   : > { %2618 = vmatpush1.bf16.msra.mxu0 %v6455_v5  ;;  %2261 = vmatpush1.bf16.msra.mxu1 %v5924_v21  ;;  %v6571_v26 = vld [vmem:[%s7705_s1 + $0x1a0] ss:$8 sps:$4 sm:$0xff]   ;;  %v5934_v27 = vld [vmem:[%s7705_s1 + $0x24] ss:$8 sps:$4 sm:$0xff]   ;;  %v6584_v29 = vld [vmem:[%s7705_s1 + $0x1b4] ss:$8 sps:$4 sm:$0xff]  }
  0x18   : > { %2619 = vmatprep.subr.bf16.mxu0 %v6461_v6  ;;  %2262 = vmatprep.subr.bf16.mxu1 %v5927_v23  ;;  %v5936_v28 = vld [vmem:[%s7705_s1 + $0x20] ss:$8 sps:$4 sm:$0xff]   ;;  %v5939_v30 = vld [vmem:[%s7705_s1 + $0x34] ss:$8 sps:$4 sm:$0xff]   ;;  %v6592_v31 = vld [vmem:[%s7705_s1 + $0x1b0] ss:$8 sps:$4 sm:$0xff]  }
  0x19   : > { %v6598_v32 = vld [vmem:[%s7705_s1 + $0x1c4] ss:$8 sps:$4 sm:$0xff]   ;;  %v5945_v33 = vld [vmem:[%s7705_s1 + $0x30] ss:$8 sps:$4 sm:$0xff]   ;;  %v6611_v35 = vld [vmem:[%s7705_s1 + $0x1c0] ss:$8 sps:$4 sm:$0xff]  }
  0x1a   : > { %v5946_v34 = vld [vmem:[%s7705_s1 + $0x44] ss:$8 sps:$4 sm:$0xff]   ;;  %v6616_v36 = vld [vmem:[%s7705_s1 + $0x1d4] ss:$8 sps:$4 sm:$0xff]   ;;  %v5948_v37 = vld [vmem:[%s7705_s1 + $0x40] ss:$8 sps:$4 sm:$0xff]  }
  0x1b   : > { %2620 = vmatpush1.bf16.msra.mxu0 %v6467_v7  ;;  %2263 = vmatpush1.bf16.msra.mxu1 %v5933_v25  ;;  %v5951_v38 = vld [vmem:[%s7705_s1 + $0x54] ss:$8 sps:$4 sm:$0xff]   ;;  %v6629_v39 = vld [vmem:[%s7705_s1 + $0x1d0] ss:$8 sps:$4 sm:$0xff]   ;;  %v6638_v41 = vld [vmem:[%s7705_s1 + $0x1e4] ss:$8 sps:$4 sm:$0xff]  }
  0x1c   : > { %2621 = vmatprep.subr.bf16.mxu0 %v6475_v8  ;;  %2264 = vmatprep.subr.bf16.mxu1 %v5934_v27  ;;  %v5957_v40 = vld [vmem:[%s7705_s1 + $0x50] ss:$8 sps:$4 sm:$0xff]   ;;  %v5958_v42 = vld [vmem:[%s7705_s1 + $0x64] ss:$8 sps:$4 sm:$0xff]   ;;  %v6646_v43 = vld [vmem:[%s7705_s1 + $0x1e0] ss:$8 sps:$4 sm:$0xff]  }
  0x1d   : > { %v5960_v44 = vld [vmem:[%s7705_s1 + $0x60] ss:$8 sps:$4 sm:$0xff]   ;;  %v6656_v45 = vld [vmem:[%s7705_s1 + $0x1f4] ss:$8 sps:$4 sm:$0xff]   ;;  %v6664_v47 = vld [vmem:[%s7705_s1 + $0x1f0] ss:$8 sps:$4 sm:$0xff]  }
  0x1e   : > { %v5963_v46 = vld [vmem:[%s7705_s1 + $0x74] ss:$8 sps:$4 sm:$0xff]   ;;  %v5903_v48 = vld [vmem:[%s7705_s1 + $0x204] ss:$8 sps:$4 sm:$0xff]   ;;  %v5969_v49 = vld [vmem:[%s7705_s1 + $0x70] ss:$8 sps:$4 sm:$0xff]  }
  0x1f   : > { %2622 = vmatpush1.bf16.msra.mxu0 %v6481_v9  ;;  %2265 = vmatpush1.bf16.msra.mxu1 %v5936_v28  ;;  %v5970_v50 = vld [vmem:[%s7705_s1 + $0x84] ss:$8 sps:$4 sm:$0xff]   ;;  %v5901_v52 = vld [vmem:[%s7705_s1 + $0x200] ss:$8 sps:$4 sm:$0xff]   ;;  %v5909_v54 = vld [vmem:[%s7705_s1 + $0x214] ss:$8 sps:$4 sm:$0xff]  }
  0x20   : > { %2623 = vmatprep.subr.bf16.mxu0 %v6488_v10  ;;  %2266 = vmatprep.subr.bf16.mxu1 %v5939_v30  ;;  %v5898_v51 = vld [vmem:[%s6499_s16 + $0x8] ss:$28 sps:$4 sm:$0xff]   ;;  %v5975_v56 = vld [vmem:[%s7705_s1 + $0x94] ss:$8 sps:$4 sm:$0xff]   ;;  %v5907_v57 = vld [vmem:[%s7705_s1 + $0x210] ss:$8 sps:$4 sm:$0xff]  }
  0x21   : > { %v5904_v53 = vld [vmem:[%s6499_s16 + $0x44] ss:$28 sps:$4 sm:$0xff]   ;;  %v5981_v59 = vld [vmem:[%s7705_s1 + $0x90] ss:$8 sps:$4 sm:$0xff]   ;;  %v5921_v13 = vld [vmem:[%s7705_s1 + $0x234] ss:$8 sps:$4 sm:$0xff]  }
  0x22   : > { %v5972_v55 = vld [vmem:[%s7705_s1 + $0x80] ss:$8 sps:$4 sm:$0xff]   ;;  %v5915_v58 = vld [vmem:[%s7705_s1 + $0x224] ss:$8 sps:$4 sm:$0xff]   ;;  %v5910_v62 = vld [vmem:[%s6499_s16 + $0x7c] ss:$28 sps:$4 sm:$0xff]  }
  0x23   : > { %2624 = vmatpush1.bf16.msra.mxu0 %v6494_v11  ;;  %2267 = vmatpush1.bf16.msra.mxu1 %v5945_v33  ;;  %v5982_v60 = vld [vmem:[%s7705_s1 + $0xa4] ss:$8 sps:$4 sm:$0xff]   ;;  %v5906_v61 = vld [vmem:[%s6499_s16 + $0x40] ss:$28 sps:$4 sm:$0xff]   ;;  %v5919_v23 = vld [vmem:[%s7705_s1 + $0x230] ss:$8 sps:$4 sm:$0xff]  }
  0x24   : > { %2625 = vmatprep.subr.bf16.mxu0 %v6505_v12  ;;  %2268 = vmatprep.subr.bf16.mxu1 %v5946_v34  ;;  %v5913_v63 = vld [vmem:[%s7705_s1 + $0x220] ss:$8 sps:$4 sm:$0xff]   ;;  %v5987_v21 = vld [vmem:[%s7705_s1 + $0xb4] ss:$8 sps:$4 sm:$0xff]   ;;  %v5932_v25 = vld [vmem:[%s7705_s1 + $0x244] ss:$8 sps:$4 sm:$0xff]  }
  0x25   : > { %v5984_v20 = vld [vmem:[%s7705_s1 + $0xa0] ss:$8 sps:$4 sm:$0xff]   ;;  %v5993_v28 = vld [vmem:[%s7705_s1 + $0xb0] ss:$8 sps:$4 sm:$0xff]   ;;  %v5994_v30 = vld [vmem:[%s7705_s1 + $0xc4] ss:$8 sps:$4 sm:$0xff]  }
  0x26   : > { %v6020_v27 = vld [vmem:[%s6499_s16 + $0x4] ss:$28 sps:$4 sm:$0xff]   ;;  %v5912_v33 = vld [vmem:[%s6499_s16 + $0x78] ss:$28 sps:$4 sm:$0xff]  }
  0x27   : > { %2626 = vmatpush1.bf16.msra.mxu0 %v6512_v14  ;;  %2269 = vmatpush1.bf16.msra.mxu1 %v5948_v37  ;;  %v5916_v34 = vld [vmem:[%s6499_s16 + $0xb4] ss:$28 sps:$4 sm:$0xff]   ;;  %v5930_v37 = vld [vmem:[%s7705_s1 + $0x240] ss:$8 sps:$4 sm:$0xff]  }
  0x28   : > { %2627 = vmatprep.subr.bf16.mxu0 %v6518_v15  ;;  %2270 = vmatprep.subr.bf16.mxu1 %v5951_v38  ;;  %v5944_v38 = vld [vmem:[%s7705_s1 + $0x254] ss:$8 sps:$4 sm:$0xff]  }
  0x29   : > { %2292 = vmatprep.mubr.bf16.mxu1 %v6020_v27  ;;  %v6016_v27 = vld [vmem:[%s7705_s1 + $0x2b4] ss:$8 sps:$4 sm:$0xff]  }
  0x2b   : > { %2628 = vmatpush1.bf16.msra.mxu0 %v6524_v16  ;;  %2271 = vmatpush1.bf16.msra.mxu1 %v5957_v40  ;;  %v5996_v40 = vld [vmem:[%s7705_s1 + $0xc0] ss:$8 sps:$4 sm:$0xff]  }
  0x2c   : > { %2629 = vmatprep.subr.bf16.mxu0 %v6530_v17  ;;  %2272 = vmatprep.subr.bf16.mxu1 %v5958_v42  ;;  %v5999_v42 = vld [vmem:[%s7705_s1 + $0xd4] ss:$8 sps:$4 sm:$0xff]  }
  0x2f   : > { %2630 = vmatpush1.bf16.msra.mxu0 %v6536_v18  ;;  %2273 = vmatpush1.bf16.msra.mxu1 %v5960_v44  ;;  %v5942_v44 = vld [vmem:[%s7705_s1 + $0x250] ss:$8 sps:$4 sm:$0xff]  }
  0x30   : > { %2631 = vmatprep.subr.bf16.mxu0 %v6541_v19  ;;  %2274 = vmatprep.subr.bf16.mxu1 %v5963_v46  ;;  %v5956_v46 = vld [vmem:[%s7705_s1 + $0x264] ss:$8 sps:$4 sm:$0xff]  }
  0x33   : > { %2632 = vmatpush1.bf16.msra.mxu0 %v6554_v22  ;;  %2275 = vmatpush1.bf16.msra.mxu1 %v5969_v49  ;;  %v6006_v49 = vld [vmem:[%s7705_s1 + $0xe4] ss:$8 sps:$4 sm:$0xff]  }
  0x34   : > { %2633 = vmatprep.subr.bf16.mxu0 %v6563_v24  ;;  %2276 = vmatprep.subr.bf16.mxu1 %v5970_v50  ;;  %v5918_v50 = vld [vmem:[%s6499_s16 + $0xb0] ss:$28 sps:$4 sm:$0xff]  }
  0x37   : > { %2634 = vmatpush1.bf16.msra.mxu0 %v6571_v26  ;;  %2277 = vmatpush1.bf16.msra.mxu1 %v5972_v55  ;;  %v6011_v55 = vld [vmem:[%s7705_s1 + $0xf4] ss:$8 sps:$4 sm:$0xff]  }
  0x38   : > { %2635 = vmatprep.subr.bf16.mxu0 %v6584_v29  ;;  %2278 = vmatprep.subr.bf16.mxu1 %v5975_v56  ;;  %v5966_v56 = vld [vmem:[%s7705_s1 + $0x270] ss:$8 sps:$4 sm:$0xff]  }
  0x3b   : > { %2636 = vmatpush1.bf16.msra.mxu0 %v6592_v31  ;;  %2279 = vmatpush1.bf16.msra.mxu1 %v5981_v59  ;;  %v5929_v59 = vld [vmem:[%s6499_s16 + $0xe8] ss:$28 sps:$4 sm:$0xff]  }
  0x3c   : > { %2637 = vmatprep.subr.bf16.mxu0 %v6598_v32  ;;  %2280 = vmatprep.subr.bf16.mxu1 %v5982_v60  ;;  %v5937_v60 = vld [vmem:[%s6499_s16 + $0x124] ss:$28 sps:$4 sm:$0xff]  }
  0x3f   : > { %2638 = vmatpush1.bf16.msra.mxu0 %v6611_v35  ;;  %2281 = vmatpush1.bf16.msra.mxu1 %v5984_v20  ;;  %v5990_v20 = vld [vmem:[%s7705_s1 + $0x290] ss:$8 sps:$4 sm:$0xff]  }
  0x40   : > { %2639 = vmatprep.subr.bf16.mxu0 %v6616_v36  ;;  %2282 = vmatprep.subr.bf16.mxu1 %v5987_v21  ;;  %v6004_v21 = vld [vmem:[%s7705_s1 + $0x2a4] ss:$8 sps:$4 sm:$0xff]  }
  0x43   : > { %2640 = vmatpush1.bf16.msra.mxu0 %v6629_v39  ;;  %2283 = vmatpush1.bf16.msra.mxu1 %v5993_v28  ;;  %v6029_v28 = vld [vmem:[%s6499_s16 + $0x38] ss:$28 sps:$4 sm:$0xff]  }
  0x44   : > { %2641 = vmatprep.subr.bf16.mxu0 %v6638_v41  ;;  %2284 = vmatprep.subr.bf16.mxu1 %v5994_v30  ;;  %v6036_v30 = vld [vmem:[%s6499_s16 + $0x74] ss:$28 sps:$4 sm:$0xff]  }
  0x47   : > { %2642 = vmatpush1.bf16.msra.mxu0 %v6646_v43  ;;  %2285 = vmatpush1.bf16.msra.mxu1 %v5996_v40  ;;  %v5965_v40 = vld [vmem:[%s6499_s16 + $0x190] ss:$28 sps:$4 sm:$0xff]  }
  0x48   : > { %2643 = vmatprep.subr.bf16.mxu0 %v6656_v45  ;;  %2286 = vmatprep.subr.bf16.mxu1 %v5999_v42  ;;  %v5973_v42 = vld [vmem:[%s6499_s16 + $0x1cc] ss:$28 sps:$4 sm:$0xff]  }
  0x4b   : > { %2644 = vmatpush1.bf16.msra.mxu0 %v6664_v47 }
  0x4c   : > { %2966 = vmatprep.subr.bf16.mxu0 %v5903_v48  ;;  %v6005_v48 = vld [vmem:[%s7705_s1 + $0xd0] ss:$8 sps:$4 sm:$0xff]  }
  0x4d   : > { %2287 = vmatpush1.bf16.msra.mxu1 %v6005_v48  ;;  %v5977_v48 = vld [vmem:[%s6499_s16 + $0x1c8] ss:$28 sps:$4 sm:$0xff]  }
  0x4e   : > { %2646 = vmatmul.mubr.bf16.vlgmr.msra.gmra.mrb[0].mxu0 %v5898_v51  ;;  %v5925_v51 = vld [vmem:[%s6499_s16 + $0xec] ss:$28 sps:$4 sm:$0xff]   ;;  %2288 = vmatprep.subr.bf16.mxu1 %v6006_v49  ;;  %v6056_v49 = vld [vmem:[%s6499_s16 + $0xe0] ss:$28 sps:$4 sm:$0xff]  }
  0x4f   : > { %2967 = vmatpush1.bf16.msra.mxu0 %v5901_v52  ;;  %2655 = vmatprep.mubr.bf16.mxu0 %v5904_v53  ;;  %v5954_v52 = vld [vmem:[%s7705_s1 + $0x260] ss:$8 sps:$4 sm:$0xff]   ;;  %v5968_v53 = vld [vmem:[%s7705_s1 + $0x274] ss:$8 sps:$4 sm:$0xff]  }
  0x50   : > { %2968 = vmatprep.subr.bf16.mxu0 %v5909_v54  ;;  %v6008_v54 = vld [vmem:[%s7705_s1 + $0xe0] ss:$8 sps:$4 sm:$0xff]  }
  0x51   : > { %2289 = vmatpush1.bf16.msra.mxu1 %v6008_v54  ;;  %v6102_v54 = vld [vmem:[%s6499_s16 + $0x26c] ss:$28 sps:$4 sm:$0xff]  }
  0x52   : > { %2290 = vmatprep.subr.bf16.mxu1 %v6011_v55  ;;  %v6050_v55 = vld [vmem:[%s6499_s16 + $0x350] ss:$28 sps:$4 sm:$0xff]  }
  0x53   : > { %2969 = vmatpush1.bf16.msra.mxu0 %v5907_v57  ;;  %v5980_v57 = vld [vmem:[%s7705_s1 + $0x284] ss:$8 sps:$4 sm:$0xff]  }
  0x54   : > { %2970 = vmatprep.subr.bf16.mxu0 %v5915_v58  ;;  %v6017_v58 = vld [vmem:[%s7705_s1 + $0xf0] ss:$8 sps:$4 sm:$0xff]  }
  0x55   : > { %2291 = vmatpush1.bf16.msra.mxu1 %v6017_v58  ;;  %v6108_v58 = vld [vmem:[%s6499_s16 + $0x2a4] ss:$28 sps:$4 sm:$0xff]  }
  0x56   : > { %2656 = vmatmul.mubr.bf16.gmra.mrb[4].mxu0 %v5906_v61  ;;  %v5978_v61 = vld [vmem:[%s7705_s1 + $0x280] ss:$8 sps:$4 sm:$0xff]   ;;  %5424 = vmatprep.subr.bf16.mxu1 %v6426_v0 }
  0x57   : > { %2665 = vmatprep.mubr.bf16.mxu0 %v5910_v62  ;;  %2971 = vmatpush1.bf16.msra.mxu0 %v5913_v63  ;;  %v5992_v62 = vld [vmem:[%s7705_s1 + $0x294] ss:$8 sps:$4 sm:$0xff]  }
  0x58   : > { %2972 = vmatprep.subr.bf16.mxu0 %v5921_v13  ;;  %v6018_v63 = vld [vmem:[%s6499_s16] ss:$28 sps:$4 sm:$0xff]  }
  0x59   : > { %v6027_v13 = vld [vmem:[%s6499_s16 + $0x3c] ss:$28 sps:$4 sm:$0xff]   ;;  %2293 = vmatmul.mubr.bf16.vlgmr.msra.gmra.mrb[0].mxu1 %v6018_v63 }
  0x5a   : > { %2302 = vmatprep.mubr.bf16.mxu1 %v6027_v13  ;;  %5440 = vmatpush1.bf16.msra.mxu1 %v6431_v1  ;;  %v5941_v0 = vld [vmem:[%s6499_s16 + $0x120] ss:$28 sps:$4 sm:$0xff]   ;;  %v6014_v1 = vld [vmem:[%s7705_s1 + $0x2b0] ss:$8 sps:$4 sm:$0xff]  }
  0x5b   : > { %2973 = vmatpush1.bf16.msra.mxu0 %v5919_v23  ;;  %v5949_v23 = vld [vmem:[%s6499_s16 + $0x15c] ss:$28 sps:$4 sm:$0xff]   ;;  %5425 = vmatprep.subr.bf16.mxu1 %v6437_v2 }
  0x5c   : > { %2974 = vmatprep.subr.bf16.mxu0 %v5932_v25  ;;  %v6002_v25 = vld [vmem:[%s7705_s1 + $0x2a0] ss:$8 sps:$4 sm:$0xff]   ;;  %v5953_v2 = vld [vmem:[%s6499_s16 + $0x158] ss:$28 sps:$4 sm:$0xff]  }
  0x5d   : > { %v6110_v63 = vld [vmem:[%s6499_s16 + $0x2a0] ss:$28 sps:$4 sm:$0xff]  }
  0x5e   : > { %2666 = vmatmul.mubr.bf16.gmra.mrb[8].mxu0 %v5912_v33  ;;  %5441 = vmatpush1.bf16.msra.mxu1 %v6443_v3  ;;  %v6026_v33 = vld [vmem:[%s7705_s1 + $0x2c4] ss:$8 sps:$4 sm:$0xff]   ;;  %v6024_v3 = vld [vmem:[%s7705_s1 + $0x2c0] ss:$8 sps:$4 sm:$0xff]   ;;  %v6117_v13 = vld [vmem:[%s6499_s16 + $0x2dc] ss:$28 sps:$4 sm:$0xff]  }
  0x5f   : > { %2675 = vmatprep.mubr.bf16.mxu0 %v5916_v34  ;;  %2975 = vmatpush1.bf16.msra.mxu0 %v5930_v37  ;;  %v5961_v34 = vld [vmem:[%s6499_s16 + $0x194] ss:$28 sps:$4 sm:$0xff]  }
  0x60   : > { %2976 = vmatprep.subr.bf16.mxu0 %v5944_v38  ;;  %5426 = vmatprep.subr.bf16.mxu1 %v6449_v4  ;;  %v6035_v4 = vld [vmem:[%s7705_s1 + $0x2d4] ss:$8 sps:$4 sm:$0xff]   ;;  %v6038_v37 = vld [vmem:[%s6499_s16 + $0x70] ss:$28 sps:$4 sm:$0xff]  }
  0x61   : > { %2303 = vmatmul.mubr.bf16.gmra.mrb[4].mxu1 %v6029_v28  ;;  %v6045_v38 = vld [vmem:[%s6499_s16 + $0xac] ss:$28 sps:$4 sm:$0xff]   ;;  %v6143_v28 = vld [vmem:[%s7705_s1 + $0x334] ss:$8 sps:$4 sm:$0xff]  }
  0x62   : > { %2312 = vmatprep.mubr.bf16.mxu1 %v6036_v30  ;;  %5442 = vmatpush1.bf16.msra.mxu1 %v6455_v5  ;;  %v6033_v5 = vld [vmem:[%s7705_s1 + $0x2d0] ss:$8 sps:$4 sm:$0xff]  }
  0x63   : > { %2977 = vmatpush1.bf16.msra.mxu0 %v5942_v44  ;;  %5427 = vmatprep.subr.bf16.mxu1 %v6461_v6  ;;  %v6044_v6 = vld [vmem:[%s7705_s1 + $0x2e4] ss:$8 sps:$4 sm:$0xff]   ;;  %v6123_v30 = vld [vmem:[%s6499_s16 + $0x314] ss:$28 sps:$4 sm:$0xff]  }
  0x64   : > { %2978 = vmatprep.subr.bf16.mxu0 %v5956_v46  ;;  %v6047_v44 = vld [vmem:[%s6499_s16 + $0xa8] ss:$28 sps:$4 sm:$0xff]  }
  0x65   : > { %v6054_v46 = vld [vmem:[%s6499_s16 + $0xe4] ss:$28 sps:$4 sm:$0xff]  }
  0x66   : > { %2676 = vmatmul.mubr.bf16.gmra.mrb[12].mxu0 %v5918_v50  ;;  %5443 = vmatpush1.bf16.msra.mxu1 %v6467_v7  ;;  %v6042_v7 = vld [vmem:[%s7705_s1 + $0x2e0] ss:$8 sps:$4 sm:$0xff]  }
  0x67   : > { %2685 = vmatprep.mubr.bf16.mxu0 %v5925_v51  ;;  %2979 = vmatpush1.bf16.msra.mxu0 %v5954_v52  ;;  %v5989_v50 = vld [vmem:[%s6499_s16 + $0x200] ss:$28 sps:$4 sm:$0xff]   ;;  %v6092_v52 = vld [vmem:[%s6499_s16 + $0x1f8] ss:$28 sps:$4 sm:$0xff]  }
  0x68   : > { %2980 = vmatprep.subr.bf16.mxu0 %v5968_v53  ;;  %5428 = vmatprep.subr.bf16.mxu1 %v6475_v8  ;;  %v6053_v8 = vld [vmem:[%s7705_s1 + $0x2f4] ss:$8 sps:$4 sm:$0xff]  }
  0x69   : > { %2313 = vmatmul.mubr.bf16.gmra.mrb[8].mxu1 %v6038_v37  ;;  %v5997_v51 = vld [vmem:[%s6499_s16 + $0x23c] ss:$28 sps:$4 sm:$0xff]   ;;  %v6048_v53 = vld [vmem:[%s6499_s16 + $0x354] ss:$28 sps:$4 sm:$0xff]   ;;  %v6129_v37 = vld [vmem:[%s6499_s16 + $0x34c] ss:$28 sps:$4 sm:$0xff]  }
  0x6a   : > { %2322 = vmatprep.mubr.bf16.mxu1 %v6045_v38  ;;  %5444 = vmatpush1.bf16.msra.mxu1 %v6481_v9  ;;  %v6051_v9 = vld [vmem:[%s7705_s1 + $0x2f0] ss:$8 sps:$4 sm:$0xff]  }
  0x6b   : > { %2981 = vmatpush1.bf16.msra.mxu0 %v5966_v56  ;;  %5429 = vmatprep.subr.bf16.mxu1 %v6488_v10  ;;  %v6062_v10 = vld [vmem:[%s7705_s1 + $0x304] ss:$8 sps:$4 sm:$0xff]   ;;  %v6059_v56 = vld [vmem:[%s6499_s16 + $0x14] ss:$28 sps:$4 sm:$0xff]  }
  0x6c   : > { %2982 = vmatprep.subr.bf16.mxu0 %v5980_v57  ;;  %v6104_v57 = vld [vmem:[%s6499_s16 + $0x268] ss:$28 sps:$4 sm:$0xff]   ;;  %v6080_v38 = vld [vmem:[%s6499_s16 + $0xb8] ss:$28 sps:$4 sm:$0xff]  }
  0x6e   : > { %2686 = vmatmul.mubr.bf16.gmra.mrb[16].mxu0 %v5929_v59  ;;  %5445 = vmatpush1.bf16.msra.mxu1 %v6494_v11  ;;  %v5985_v11 = vld [vmem:[%s6499_s16 + $0x204] ss:$28 sps:$4 sm:$0xff]   ;;  %v6057_v59 = vld [vmem:[%s6499_s16 + $0x10] ss:$28 sps:$4 sm:$0xff]  }
  0x6f   : > { %2695 = vmatprep.mubr.bf16.mxu0 %v5937_v60  ;;  %2983 = vmatpush1.bf16.msra.mxu0 %v5978_v61  ;;  %v6060_v60 = vld [vmem:[%s7705_s1 + $0x300] ss:$8 sps:$4 sm:$0xff]  }
  0x70   : > { %2984 = vmatprep.subr.bf16.mxu0 %v5992_v62  ;;  %5430 = vmatprep.subr.bf16.mxu1 %v6505_v12  ;;  %v6063_v12 = vld [vmem:[%s6499_s16 + $0x11c] ss:$28 sps:$4 sm:$0xff]   ;;  %v6066_v61 = vld [vmem:[%s6499_s16 + $0x4c] ss:$28 sps:$4 sm:$0xff]  }
  0x71   : > { %2323 = vmatmul.mubr.bf16.gmra.mrb[12].mxu1 %v6047_v44  ;;  %v6089_v62 = vld [vmem:[%s7705_s1 + $0x314] ss:$8 sps:$4 sm:$0xff]  }
  0x72   : > { %2332 = vmatprep.mubr.bf16.mxu1 %v6054_v46  ;;  %5446 = vmatpush1.bf16.msra.mxu1 %v6512_v14  ;;  %v6065_v14 = vld [vmem:[%s6499_s16 + $0x118] ss:$28 sps:$4 sm:$0xff]   ;;  %v6137_v44 = vld [vmem:[%s6499_s16 + $0x380] ss:$28 sps:$4 sm:$0xff]  }
  0x73   : > { %2985 = vmatpush1.bf16.msra.mxu0 %v5990_v20  ;;  %5431 = vmatprep.subr.bf16.mxu1 %v6518_v15  ;;  %v6069_v15 = vld [vmem:[%s6499_s16 + $0x154] ss:$28 sps:$4 sm:$0xff]  }
  0x74   : > { %2986 = vmatprep.subr.bf16.mxu0 %v6004_v21  ;;  %v6087_v20 = vld [vmem:[%s7705_s1 + $0x310] ss:$8 sps:$4 sm:$0xff]   ;;  %v6116_v21 = vld [vmem:[%s7705_s1 + $0x324] ss:$8 sps:$4 sm:$0xff]  }
  0x75   : > { %v6195_v46 = vld [vmem:[%s7705_s1 + $0x350] ss:$8 sps:$4 sm:$0xff]  }
  0x76   : > { %2696 = vmatmul.mubr.bf16.gmra.mrb[20].mxu0 %v5941_v0  ;;  %5447 = vmatpush1.bf16.msra.mxu1 %v6524_v16  ;;  %v6001_v16 = vld [vmem:[%s6499_s16 + $0x238] ss:$28 sps:$4 sm:$0xff]   ;;  %v6068_v0 = vld [vmem:[%s6499_s16 + $0x48] ss:$28 sps:$4 sm:$0xff]  }
  0x77   : > { %2705 = vmatprep.mubr.bf16.mxu0 %v5949_v23  ;;  %2987 = vmatpush1.bf16.msra.mxu0 %v6002_v25  ;;  %v6072_v23 = vld [vmem:[%s6499_s16 + $0x84] ss:$28 sps:$4 sm:$0xff]  }
  0x78   : > { %2988 = vmatprep.subr.bf16.mxu0 %v6016_v27  ;;  %5432 = vmatprep.subr.bf16.mxu1 %v6530_v17  ;;  %v6009_v17 = vld [vmem:[%s6499_s16 + $0x274] ss:$28 sps:$4 sm:$0xff]   ;;  %v6114_v25 = vld [vmem:[%s7705_s1 + $0x320] ss:$8 sps:$4 sm:$0xff]  }
  0x79   : > { %2333 = vmatmul.mubr.bf16.gmra.mrb[16].mxu1 %v6056_v49  ;;  %v6119_v27 = vld [vmem:[%s6499_s16 + $0x2d8] ss:$28 sps:$4 sm:$0xff]  }
  0x7a   : > { %2342 = vmatprep.mubr.bf16.mxu1 %v6063_v12  ;;  %5448 = vmatpush1.bf16.msra.mxu1 %v6536_v18  ;;  %v6071_v18 = vld [vmem:[%s6499_s16 + $0x150] ss:$28 sps:$4 sm:$0xff]   ;;  %v6101_v12 = vld [vmem:[%s6499_s16 + $0x160] ss:$28 sps:$4 sm:$0xff]  }
  0x7b   : > { %2989 = vmatpush1.bf16.msra.mxu0 %v6014_v1  ;;  %5433 = vmatprep.subr.bf16.mxu1 %v6541_v19  ;;  %v6075_v19 = vld [vmem:[%s6499_s16 + $0x18c] ss:$28 sps:$4 sm:$0xff]   ;;  %v6141_v1 = vld [vmem:[%s7705_s1 + $0x330] ss:$8 sps:$4 sm:$0xff]  }
  0x7c   : > { %2990 = vmatprep.subr.bf16.mxu0 %v6026_v33  ;;  %v6074_v33 = vld [vmem:[%s6499_s16 + $0x80] ss:$28 sps:$4 sm:$0xff]   ;;  %v6150_v49 = vld [vmem:[%s6499_s16 + $0x3f4] ss:$28 sps:$4 sm:$0xff]  }
  0x7e   : > { %2706 = vmatmul.mubr.bf16.gmra.mrb[24].mxu0 %v5953_v2  ;;  %5449 = vmatpush1.bf16.msra.mxu1 %v6554_v22  ;;  %v6013_v22 = vld [vmem:[%s6499_s16 + $0x270] ss:$28 sps:$4 sm:$0xff]  }
  0x7f   : > { %2715 = vmatprep.mubr.bf16.mxu0 %v5961_v34  ;;  %2991 = vmatpush1.bf16.msra.mxu0 %v6024_v3  ;;  %v6170_v2 = vld [vmem:[%s7705_s1 + $0x344] ss:$8 sps:$4 sm:$0xff]   ;;  %v6078_v34 = vld [vmem:[%s6499_s16 + $0xbc] ss:$28 sps:$4 sm:$0xff]   ;;  %v6168_v3 = vld [vmem:[%s7705_s1 + $0x340] ss:$8 sps:$4 sm:$0xff]  }
  0x80   : > { %2992 = vmatprep.subr.bf16.mxu0 %v6035_v4  ;;  %5434 = vmatprep.subr.bf16.mxu1 %v6563_v24  ;;  %v6021_v24 = vld [vmem:[%s6499_s16 + $0x2ac] ss:$28 sps:$4 sm:$0xff]  }
  0x81   : > { %2343 = vmatmul.mubr.bf16.gmra.mrb[20].mxu1 %v6065_v14  ;;  %v6125_v4 = vld [vmem:[%s6499_s16 + $0x310] ss:$28 sps:$4 sm:$0xff]  }
  0x82   : > { %2352 = vmatprep.mubr.bf16.mxu1 %v6069_v15  ;;  %5450 = vmatpush1.bf16.msra.mxu1 %v6571_v26  ;;  %v6077_v26 = vld [vmem:[%s6499_s16 + $0x188] ss:$28 sps:$4 sm:$0xff]   ;;  %v6107_v15 = vld [vmem:[%s6499_s16 + $0x198] ss:$28 sps:$4 sm:$0xff]  }
  0x83   : > { %2993 = vmatpush1.bf16.msra.mxu0 %v6033_v5  ;;  %5435 = vmatprep.subr.bf16.mxu1 %v6584_v29  ;;  %v6081_v29 = vld [vmem:[%s6499_s16 + $0x1c4] ss:$28 sps:$4 sm:$0xff]   ;;  %v6084_v5 = vld [vmem:[%s6499_s16 + $0xf4] ss:$28 sps:$4 sm:$0xff]   ;;  %v6156_v14 = vld [vmem:[%s6499_s16 + $0x42c] ss:$28 sps:$4 sm:$0xff]  }
  0x84   : > { %2994 = vmatprep.subr.bf16.mxu0 %v6044_v6  ;;  %v6131_v6 = vld [vmem:[%s6499_s16 + $0x348] ss:$28 sps:$4 sm:$0xff]  }
  0x86   : > { %2716 = vmatmul.mubr.bf16.gmra.mrb[28].mxu0 %v5965_v40  ;;  %5451 = vmatpush1.bf16.msra.mxu1 %v6592_v31  ;;  %v6023_v31 = vld [vmem:[%s6499_s16 + $0x2a8] ss:$28 sps:$4 sm:$0xff]  }
  0x87   : > { %2725 = vmatprep.mubr.bf16.mxu0 %v5973_v42  ;;  %2995 = vmatpush1.bf16.msra.mxu0 %v6042_v7  ;;  %v6135_v40 = vld [vmem:[%s6499_s16 + $0x384] ss:$28 sps:$4 sm:$0xff]   ;;  %v6086_v42 = vld [vmem:[%s6499_s16 + $0xf0] ss:$28 sps:$4 sm:$0xff]  }
  0x88   : > { %2996 = vmatprep.subr.bf16.mxu0 %v6053_v8  ;;  %5436 = vmatprep.subr.bf16.mxu1 %v6598_v32  ;;  %v6030_v32 = vld [vmem:[%s6499_s16 + $0x2e4] ss:$28 sps:$4 sm:$0xff]   ;;  %v6093_v7 = vld [vmem:[%s6499_s16 + $0x12c] ss:$28 sps:$4 sm:$0xff]   ;;  %v6144_v8 = vld [vmem:[%s6499_s16 + $0x3bc] ss:$28 sps:$4 sm:$0xff]  }
  0x89   : > { %2353 = vmatmul.mubr.bf16.gmra.mrb[24].mxu1 %v6071_v18  ;;  %v6162_v18 = vld [vmem:[%s6499_s16 + $0x464] ss:$28 sps:$4 sm:$0xff]  }
  0x8a   : > { %2362 = vmatprep.mubr.bf16.mxu1 %v6075_v19  ;;  %5452 = vmatpush1.bf16.msra.mxu1 %v6611_v35  ;;  %v6083_v35 = vld [vmem:[%s6499_s16 + $0x1c0] ss:$28 sps:$4 sm:$0xff]   ;;  %v6113_v19 = vld [vmem:[%s6499_s16 + $0x1d0] ss:$28 sps:$4 sm:$0xff]  }
  0x8b   : > { %2997 = vmatpush1.bf16.msra.mxu0 %v6051_v9  ;;  %5437 = vmatprep.subr.bf16.mxu1 %v6616_v36  ;;  %v6090_v36 = vld [vmem:[%s6499_s16 + $0x1fc] ss:$28 sps:$4 sm:$0xff]  }
  0x8c   : > { %3319 = vmatprep.subr.bf16.mxu0 %v6062_v10  ;;  %v6197_v9 = vld [vmem:[%s7705_s1 + $0x354] ss:$8 sps:$4 sm:$0xff]   ;;  %v6095_v10 = vld [vmem:[%s6499_s16 + $0x128] ss:$28 sps:$4 sm:$0xff]  }
  0x8e   : > { %2726 = vmatmul.mubr.bf16.gmra.mrb[32].mxu0 %v5977_v48  ;;  %5453 = vmatpush1.bf16.msra.mxu1 %v6629_v39  ;;  %v6032_v39 = vld [vmem:[%s6499_s16 + $0x2e0] ss:$28 sps:$4 sm:$0xff]  }
  0x8f   : > { %2735 = vmatprep.mubr.bf16.mxu0 %v5985_v11  ;;  %5438 = vmatprep.subr.bf16.mxu1 %v6638_v41  ;;  %v6039_v41 = vld [vmem:[%s6499_s16 + $0x31c] ss:$28 sps:$4 sm:$0xff]   ;;  %v6099_v48 = vld [vmem:[%s6499_s16 + $0x164] ss:$28 sps:$4 sm:$0xff]  }
  0x90   : > { %v6146_v11 = vld [vmem:[%s6499_s16 + $0x3b8] ss:$28 sps:$4 sm:$0xff]  }
  0x91   : > { %2363 = vmatmul.mubr.bf16.gmra.mrb[28].mxu1 %v6077_v26  ;;  %v6171_v26 = vld [vmem:[%s6499_s16 + $0x49c] ss:$28 sps:$4 sm:$0xff]  }
  0x92   : > { %2372 = vmatprep.mubr.bf16.mxu1 %v6081_v29  ;;  %5454 = vmatpush1.bf16.msra.mxu1 %v6646_v43  ;;  %v6096_v43 = vld [vmem:[%s6499_s16 + $0x234] ss:$28 sps:$4 sm:$0xff]   ;;  %v6222_v29 = vld [vmem:[%s7705_s1 + $0x360] ss:$8 sps:$4 sm:$0xff]  }
  0x93   : > { %5439 = vmatprep.subr.bf16.mxu1 %v6656_v45  ;;  %v6041_v45 = vld [vmem:[%s6499_s16 + $0x318] ss:$28 sps:$4 sm:$0xff]  }
  0x96   : > { %2736 = vmatmul.mubr.bf16.gmra.mrb[36].mxu0 %v5989_v50  ;;  %5455 = vmatpush1.bf16.msra.mxu1 %v6664_v47  ;;  %v6098_v47 = vld [vmem:[%s6499_s16 + $0x230] ss:$28 sps:$4 sm:$0xff]   ;;  %v6105_v50 = vld [vmem:[%s6499_s16 + $0x19c] ss:$28 sps:$4 sm:$0xff]  }
  0x97   : > { %2745 = vmatprep.mubr.bf16.mxu0 %v5997_v51  ;;  %v6152_v51 = vld [vmem:[%s6499_s16 + $0x3f0] ss:$28 sps:$4 sm:$0xff]  }
  0x99   : > { %2373 = vmatmul.mubr.bf16.gmra.mrb[32].mxu1 %v6083_v35  ;;  %v6126_v35 = vld [vmem:[%s6499_s16 + $0x244] ss:$28 sps:$4 sm:$0xff]  }
  0x9a   : > { %2382 = vmatprep.mubr.bf16.mxu1 %v6090_v36  ;;  %v6173_v36 = vld [vmem:[%s6499_s16 + $0x498] ss:$28 sps:$4 sm:$0xff]  }
  0x9e   : > { %2746 = vmatmul.mubr.bf16.gmra.mrb[40].mxu0 %v6001_v16  ;;  %v6111_v16 = vld [vmem:[%s6499_s16 + $0x1d4] ss:$28 sps:$4 sm:$0xff]  }
  0x9f   : > { %2755 = vmatprep.mubr.bf16.mxu0 %v6009_v17  ;;  %v6158_v17 = vld [vmem:[%s6499_s16 + $0x428] ss:$28 sps:$4 sm:$0xff]  }
  0xa1   : > { %2383 = vmatmul.mubr.bf16.gmra.mrb[36].mxu1 %v6092_v52  ;;  %v6132_v52 = vld [vmem:[%s6499_s16 + $0x27c] ss:$28 sps:$4 sm:$0xff]  }
  0xa2   : > { %2392 = vmatprep.mubr.bf16.mxu1 %v6096_v43  ;;  %v6179_v43 = vld [vmem:[%s6499_s16 + $0x4d0] ss:$28 sps:$4 sm:$0xff]  }
  0xa6   : > { %2756 = vmatmul.mubr.bf16.gmra.mrb[44].mxu0 %v6013_v22  ;;  %v6120_v22 = vld [vmem:[%s6499_s16 + $0x20c] ss:$28 sps:$4 sm:$0xff]  }
  0xa7   : > { %2765 = vmatprep.mubr.bf16.mxu0 %v6021_v24  ;;  %v6164_v24 = vld [vmem:[%s6499_s16 + $0x460] ss:$28 sps:$4 sm:$0xff]  }
  0xa9   : > { %2393 = vmatmul.mubr.bf16.gmra.mrb[40].mxu1 %v6098_v47  ;;  %v6138_v47 = vld [vmem:[%s6499_s16 + $0x2b4] ss:$28 sps:$4 sm:$0xff]  }
  0xaa   : > { %2402 = vmatprep.mubr.bf16.mxu1 %v6102_v54  ;;  %v6185_v54 = vld [vmem:[%s6499_s16 + $0x508] ss:$28 sps:$4 sm:$0xff]  }
  0xae   : > { %2766 = vmatmul.mubr.bf16.gmra.mrb[48].mxu0 %v6023_v31  ;;  %v6224_v31 = vld [vmem:[%s7705_s1 + $0x364] ss:$8 sps:$4 sm:$0xff]  }
  0xaf   : > { %2775 = vmatprep.mubr.bf16.mxu0 %v6030_v32  ;;  %v6122_v32 = vld [vmem:[%s6499_s16 + $0x208] ss:$28 sps:$4 sm:$0xff]  }
  0xb1   : > { %2403 = vmatmul.mubr.bf16.gmra.mrb[44].mxu1 %v6104_v57  ;;  %v6147_v57 = vld [vmem:[%s6499_s16 + $0x2ec] ss:$28 sps:$4 sm:$0xff]  }
  0xb2   : > { %2412 = vmatprep.mubr.bf16.mxu1 %v6108_v58  ;;  %v6191_v58 = vld [vmem:[%s6499_s16 + $0x540] ss:$28 sps:$4 sm:$0xff]  }
  0xb6   : > { %2776 = vmatmul.mubr.bf16.gmra.mrb[52].mxu0 %v6032_v39  ;;  %v6177_v39 = vld [vmem:[%s6499_s16 + $0x4d4] ss:$28 sps:$4 sm:$0xff]  }
  0xb7   : > { %2785 = vmatprep.mubr.bf16.mxu0 %v6039_v41  ;;  %v6128_v41 = vld [vmem:[%s6499_s16 + $0x240] ss:$28 sps:$4 sm:$0xff]  }
  0xb9   : > { %2413 = vmatmul.mubr.bf16.gmra.mrb[48].mxu1 %v6110_v63  ;;  %v6153_v63 = vld [vmem:[%s6499_s16 + $0x324] ss:$28 sps:$4 sm:$0xff]  }
  0xba   : > { %2422 = vmatprep.mubr.bf16.mxu1 %v6117_v13  ;;  %v6200_v13 = vld [vmem:[%s6499_s16 + $0x578] ss:$28 sps:$4 sm:$0xff]  }
  0xbe   : > { %2786 = vmatmul.mubr.bf16.gmra.mrb[56].mxu0 %v6041_v45  ;;  %v6183_v45 = vld [vmem:[%s6499_s16 + $0x50c] ss:$28 sps:$4 sm:$0xff]  }
  0xbf   : > { %2795 = vmatprep.mubr.bf16.mxu0 %v6048_v53  ;;  %v6134_v53 = vld [vmem:[%s6499_s16 + $0x278] ss:$28 sps:$4 sm:$0xff]  }
  0xc1   : > { %2423 = vmatmul.mubr.bf16.gmra.mrb[52].mxu1 %v6119_v27  ;;  %v6161_v27 = vld [vmem:[%s6499_s16 + $0x358] ss:$28 sps:$4 sm:$0xff]  }
  0xc2   : > { %2432 = vmatprep.mubr.bf16.mxu1 %v6123_v30  ;;  %v6212_v30 = vld [vmem:[%s6499_s16 + $0x5e8] ss:$28 sps:$4 sm:$0xff]  }
  0xc6   : > { %2796 = vmatmul.mubr.bf16.gmra.mrb[60].mxu0 %v6050_v55  ;;  %v6189_v55 = vld [vmem:[%s6499_s16 + $0x544] ss:$28 sps:$4 sm:$0xff]  }
  0xc7   : > { %2998 = vmatprep.mubr.bf16.mxu0 %v6059_v56  ;;  %v6140_v56 = vld [vmem:[%s6499_s16 + $0x2b0] ss:$28 sps:$4 sm:$0xff]  }
  0xc9   : > { %2433 = vmatmul.mubr.bf16.gmra.mrb[56].mxu1 %v6125_v4  ;;  %v6176_v4 = vld [vmem:[%s6499_s16 + $0x3c8] ss:$28 sps:$4 sm:$0xff]  }
  0xca   : > { %2442 = vmatprep.mubr.bf16.mxu1 %v6129_v37  ;;  %v6180_v37 = vld [vmem:[%s6499_s16 + $0x404] ss:$28 sps:$4 sm:$0xff]  }
  0xce   : > { %2999 = vmatmul.mubr.bf16.vlgmr.msra.gmra.mrb[0].mxu0 %v6057_v59  ;;  %v6198_v59 = vld [vmem:[%s6499_s16 + $0x57c] ss:$28 sps:$4 sm:$0xff]  }
  0xcf   : > { %3320 = vmatpush1.bf16.msra.mxu0 %v6060_v60  ;;  %3008 = vmatprep.mubr.bf16.mxu0 %v6066_v61  ;;  %v6249_v60 = vld [vmem:[%s7705_s1 + $0x370] ss:$8 sps:$4 sm:$0xff]   ;;  %v6251_v61 = vld [vmem:[%s7705_s1 + $0x374] ss:$8 sps:$4 sm:$0xff]  }
  0xd0   : > { %3321 = vmatprep.subr.bf16.mxu0 %v6089_v62  ;;  %v6149_v62 = vld [vmem:[%s6499_s16 + $0x2e8] ss:$28 sps:$4 sm:$0xff]  }
  0xd1   : > { %2443 = vmatmul.mubr.bf16.gmra.mrb[60].mxu1 %v6131_v6  ;;  %v6182_v6 = vld [vmem:[%s6499_s16 + $0x400] ss:$28 sps:$4 sm:$0xff]  }
  0xd2   : > { %2452 = vmatprep.mubr.bf16.mxu1 %v6135_v40  ;;  %v6186_v40 = vld [vmem:[%s6499_s16 + $0x43c] ss:$28 sps:$4 sm:$0xff]  }
  0xd3   : > { %3322 = vmatpush1.bf16.msra.mxu0 %v6087_v20  ;;  %v6204_v20 = vld [vmem:[%s6499_s16 + $0x5b4] ss:$28 sps:$4 sm:$0xff]  }
  0xd4   : > { %3323 = vmatprep.subr.bf16.mxu0 %v6116_v21  ;;  %v6155_v21 = vld [vmem:[%s6499_s16 + $0x320] ss:$28 sps:$4 sm:$0xff]  }
  0xd6   : > { %3009 = vmatmul.mubr.bf16.gmra.mrb[4].mxu0 %v6068_v0  ;;  %v6159_v0 = vld [vmem:[%s6499_s16 + $0x35c] ss:$28 sps:$4 sm:$0xff]  }
  0xd7   : > { %3018 = vmatprep.mubr.bf16.mxu0 %v6072_v23  ;;  %3324 = vmatpush1.bf16.msra.mxu0 %v6114_v25  ;;  %v6206_v23 = vld [vmem:[%s6499_s16 + $0x5b0] ss:$28 sps:$4 sm:$0xff]  }
  0xd8   : > { %3325 = vmatprep.subr.bf16.mxu0 %v6143_v28  ;;  %v6210_v25 = vld [vmem:[%s6499_s16 + $0x5ec] ss:$28 sps:$4 sm:$0xff]   ;;  %v6165_v28 = vld [vmem:[%s6499_s16 + $0x394] ss:$28 sps:$4 sm:$0xff]  }
  0xd9   : > { %2453 = vmatmul.mubr.bf16.gmra.mrb[64].mxu1 %v6137_v44  ;;  %v6188_v44 = vld [vmem:[%s6499_s16 + $0x438] ss:$28 sps:$4 sm:$0xff]  }
  0xda   : > { %2462 = vmatprep.mubr.bf16.mxu1 %v6144_v8  ;;  %v6192_v8 = vld [vmem:[%s6499_s16 + $0x474] ss:$28 sps:$4 sm:$0xff]  }
  0xdb   : > { %3326 = vmatpush1.bf16.msra.mxu0 %v6141_v1  ;;  %v6216_v1 = vld [vmem:[%s6499_s16 + $0x624] ss:$28 sps:$4 sm:$0xff]  }
  0xdc   : > { %3327 = vmatprep.subr.bf16.mxu0 %v6170_v2  ;;  %v6167_v2 = vld [vmem:[%s6499_s16 + $0x390] ss:$28 sps:$4 sm:$0xff]  }
  0xde   : > { %3019 = vmatmul.mubr.bf16.gmra.mrb[8].mxu0 %v6074_v33  ;;  %v6174_v33 = vld [vmem:[%s6499_s16 + $0x3cc] ss:$28 sps:$4 sm:$0xff]  }
  0xdf   : > { %3028 = vmatprep.mubr.bf16.mxu0 %v6078_v34  ;;  %3328 = vmatpush1.bf16.msra.mxu0 %v6168_v3  ;;  %v6218_v34 = vld [vmem:[%s6499_s16 + $0x620] ss:$28 sps:$4 sm:$0xff]  }
  0xe0   : > { %3329 = vmatprep.subr.bf16.mxu0 %v6197_v9  ;;  %v6225_v3 = vld [vmem:[%s6499_s16 + $0x65c] ss:$28 sps:$4 sm:$0xff]   ;;  %v6245_v9 = vld [vmem:[%s6499_s16 + $0x38c] ss:$28 sps:$4 sm:$0xff]  }
  0xe1   : > { %2463 = vmatmul.mubr.bf16.gmra.mrb[68].mxu1 %v6146_v11  ;;  %v6243_v11 = vld [vmem:[%s6499_s16 + $0x388] ss:$28 sps:$4 sm:$0xff]  }
  0xe2   : > { %2472 = vmatprep.mubr.bf16.mxu1 %v6150_v49  ;;  %v6252_v49 = vld [vmem:[%s6499_s16 + $0x3c4] ss:$28 sps:$4 sm:$0xff]  }
  0xe3   : > { %3330 = vmatpush1.bf16.msra.mxu0 %v6195_v46  ;;  %v6239_v46 = vld [vmem:[%s6499_s16 + $0x6c8] ss:$28 sps:$4 sm:$0xff]  }
  0xe4   : > { %3331 = vmatprep.subr.bf16.mxu0 %v6224_v31 }
  0xe6   : > { %3029 = vmatmul.mubr.bf16.gmra.mrb[12].mxu0 %v6080_v38  ;;  %v6227_v38 = vld [vmem:[%s6499_s16 + $0x658] ss:$28 sps:$4 sm:$0xff]  }
  0xe7   : > { %3038 = vmatprep.mubr.bf16.mxu0 %v6084_v5  ;;  %3332 = vmatpush1.bf16.msra.mxu0 %v6222_v29  ;;  %v6231_v5 = vld [vmem:[%s6499_s16 + $0x694] ss:$28 sps:$4 sm:$0xff]  }
  0xe8   : > { %3333 = vmatprep.subr.bf16.mxu0 %v6251_v61  ;;  %v6234_v61 = vld [vmem:[%s6499_s16 + $0x5c4] ss:$28 sps:$4 sm:$0xff]  }
  0xe9   : > { %2473 = vmatmul.mubr.bf16.gmra.mrb[72].mxu1 %v6152_v51  ;;  %v6254_v51 = vld [vmem:[%s6499_s16 + $0x3c0] ss:$28 sps:$4 sm:$0xff]  }
  0xea   : > { %2482 = vmatprep.mubr.bf16.mxu1 %v6156_v14  ;;  %v6258_v14 = vld [vmem:[%s6499_s16 + $0x3fc] ss:$28 sps:$4 sm:$0xff]  }
  0xeb   : > { %3334 = vmatpush1.bf16.msra.mxu0 %v6249_v60  ;;  %v6230_v60 = vld [vmem:[%s6499_s16 + $0x588] ss:$28 sps:$4 sm:$0xff]  }
  0xee   : > { %3039 = vmatmul.mubr.bf16.gmra.mrb[16].mxu0 %v6086_v42  ;;  %v6233_v42 = vld [vmem:[%s6499_s16 + $0x690] ss:$28 sps:$4 sm:$0xff]  }
  0xef   : > { %3048 = vmatprep.mubr.bf16.mxu0 %v6093_v7  ;;  %v6237_v7 = vld [vmem:[%s6499_s16 + $0x6cc] ss:$28 sps:$4 sm:$0xff]  }
  0xf1   : > { %2483 = vmatmul.mubr.bf16.gmra.mrb[76].mxu1 %v6158_v17  ;;  %v6209_v17 = vld [vmem:[%s6499_s16 + $0x4e0] ss:$28 sps:$4 sm:$0xff]  }
  0xf2   : > { %2492 = vmatprep.mubr.bf16.mxu1 %v6162_v18  ;;  %v6213_v18 = vld [vmem:[%s6499_s16 + $0x51c] ss:$28 sps:$4 sm:$0xff]  }
  0xf6   : > { %3049 = vmatmul.mubr.bf16.gmra.mrb[20].mxu0 %v6095_v10  ;;  %v6194_v10 = vld [vmem:[%s6499_s16 + $0x470] ss:$28 sps:$4 sm:$0xff]  }
  0xf7   : > { %3058 = vmatprep.mubr.bf16.mxu0 %v6099_v48  ;;  %v6201_v48 = vld [vmem:[%s6499_s16 + $0x4ac] ss:$28 sps:$4 sm:$0xff]  }
  0xf9   : > { %2493 = vmatmul.mubr.bf16.gmra.mrb[80].mxu1 %v6164_v24 }
  0xfa   : > { %2502 = vmatprep.mubr.bf16.mxu1 %v6171_v26 }
  0xfe   : > { %3059 = vmatmul.mubr.bf16.gmra.mrb[24].mxu0 %v6101_v12  ;;  %v6203_v12 = vld [vmem:[%s6499_s16 + $0x4a8] ss:$28 sps:$4 sm:$0xff]  }
  0xff   : > { %3068 = vmatprep.mubr.bf16.mxu0 %v6105_v50  ;;  %v6207_v50 = vld [vmem:[%s6499_s16 + $0x4e4] ss:$28 sps:$4 sm:$0xff]  }
 0x101   : > { %2503 = vmatmul.mubr.bf16.gmra.mrb[84].mxu1 %v6173_v36  ;;  %v6266_v36 = vld [vmem:[%s6499_s16 + $0x430] ss:$28 sps:$4 sm:$0xff]  }
 0x102   : > { %2512 = vmatprep.mubr.bf16.mxu1 %v6177_v39  ;;  %v6270_v39 = vld [vmem:[%s6499_s16 + $0x46c] ss:$28 sps:$4 sm:$0xff]  }
 0x106   : > { %3069 = vmatmul.mubr.bf16.gmra.mrb[28].mxu0 %v6107_v15 }
 0x107   : > { %3078 = vmatprep.mubr.bf16.mxu0 %v6111_v16 }
 0x109   : > { %2513 = vmatmul.mubr.bf16.gmra.mrb[88].mxu1 %v6179_v43 }
 0x10a   : > { %2522 = vmatprep.mubr.bf16.mxu1 %v6183_v45 }
 0x10e   : > { %3079 = vmatmul.mubr.bf16.gmra.mrb[32].mxu0 %v6113_v19  ;;  %v6260_v19 = vld [vmem:[%s6499_s16 + $0x3f8] ss:$28 sps:$4 sm:$0xff]  }
 0x10f   : > { %3088 = vmatprep.mubr.bf16.mxu0 %v6120_v22  ;;  %v6264_v22 = vld [vmem:[%s6499_s16 + $0x434] ss:$28 sps:$4 sm:$0xff]  }
 0x111   : > { %2523 = vmatmul.mubr.bf16.gmra.mrb[92].mxu1 %v6185_v54  ;;  %v6272_v54 = vld [vmem:[%s6499_s16 + $0x468] ss:$28 sps:$4 sm:$0xff]  }
 0x112   : > { %2532 = vmatprep.mubr.bf16.mxu1 %v6189_v55  ;;  %v6274_v55 = vld [vmem:[%s6499_s16 + $0x4a4] ss:$28 sps:$4 sm:$0xff]  }
 0x116   : > { %3089 = vmatmul.mubr.bf16.gmra.mrb[36].mxu0 %v6122_v32  ;;  %v6215_v32 = vld [vmem:[%s6499_s16 + $0x518] ss:$28 sps:$4 sm:$0xff]  }
 0x117   : > { %3098 = vmatprep.mubr.bf16.mxu0 %v6126_v35  ;;  %v6219_v35 = vld [vmem:[%s6499_s16 + $0x554] ss:$28 sps:$4 sm:$0xff]  }
 0x119   : > { %2533 = vmatmul.mubr.bf16.gmra.mrb[96].mxu1 %v6191_v58 }
 0x11a   : > { %2542 = vmatprep.mubr.bf16.mxu1 %v6198_v59 }
 0x11e   : > { %3099 = vmatmul.mubr.bf16.gmra.mrb[40].mxu0 %v6128_v41 }
 0x11f   : > { %3108 = vmatprep.mubr.bf16.mxu0 %v6132_v52 }
 0x121   : > { %2543 = vmatmul.mubr.bf16.gmra.mrb[100].mxu1 %v6200_v13 }
 0x122   : > { %2552 = vmatprep.mubr.bf16.mxu1 %v6204_v20 }
 0x126   : > { %3109 = vmatmul.mubr.bf16.gmra.mrb[44].mxu0 %v6134_v53  ;;  %v6221_v53 = vld [vmem:[%s6499_s16 + $0x550] ss:$28 sps:$4 sm:$0xff]  }
 0x127   : > { %3118 = vmatprep.mubr.bf16.mxu0 %v6138_v47  ;;  %v6228_v47 = vld [vmem:[%s6499_s16 + $0x58c] ss:$28 sps:$4 sm:$0xff]  }
 0x129   : > { %2553 = vmatmul.mubr.bf16.gmra.mrb[104].mxu1 %v6206_v23  ;;  %v6236_v23 = vld [vmem:[%s6499_s16 + $0x5c0] ss:$28 sps:$4 sm:$0xff]  }
 0x12a   : > { %2562 = vmatprep.mubr.bf16.mxu1 %v6210_v25  ;;  %v6240_v25 = vld [vmem:[%s6499_s16 + $0x5fc] ss:$28 sps:$4 sm:$0xff]  }
 0x12c   : > { %v7041_v15 = vpop.f32.mrb[0].mxu1 }
 0x12d   : > { %v7043_v16 = vpop.f32.mrb[1].mxu1 }
 0x12e   : > { %3119 = vmatmul.mubr.bf16.gmra.mrb[48].mxu0 %v6140_v56  ;;  %v7049_v24 = vpop.f32.mrb[2].mxu1 }
 0x12f   : > { %3128 = vmatprep.mubr.bf16.mxu0 %v6147_v57  ;;  %v7051_v26 = vpop.f32.mrb[3].mxu1 }
 0x131   : > { %2563 = vmatmul.mubr.bf16.gmra.mrb[108].mxu1 %v6212_v30 }
 0x132   : > { %2572 = vmatprep.mubr.bf16.mxu1 %v6216_v1 }
 0x134   : > { %v7053_v29 = vpop.f32.mrb[4].mxu1 }
 0x135   : > { %v7055_v31 = vpop.f32.mrb[5].mxu1 }
 0x136   : > { %3129 = vmatmul.mubr.bf16.gmra.mrb[52].mxu0 %v6149_v62  ;;  %v7061_v41 = vpop.f32.mrb[6].mxu1  ;;  %v6276_v62 = vld [vmem:[%s6499_s16 + $0x4a0] ss:$28 sps:$4 sm:$0xff]  }
 0x137   : > { %3138 = vmatprep.mubr.bf16.mxu0 %v6153_v63  ;;  %v7063_v52 = vpop.f32.mrb[7].mxu1  ;;  %v6278_v63 = vld [vmem:[%s6499_s16 + $0x4dc] ss:$28 sps:$4 sm:$0xff]  }
 0x139   : > { %2573 = vmatmul.mubr.bf16.gmra.mrb[112].mxu1 %v6218_v34  ;;  %v6242_v34 = vld [vmem:[%s6499_s16 + $0x5f8] ss:$28 sps:$4 sm:$0xff]  }
 0x13a   : > { %2582 = vmatprep.mubr.bf16.mxu1 %v6225_v3  ;;  %v6246_v3 = vld [vmem:[%s6499_s16 + $0x634] ss:$28 sps:$4 sm:$0xff]  }
 0x13c   : > { %v7065_v43 = vpop.f32.mrb[8].mxu1 }
 0x13d   : > { %v7067_v45 = vpop.f32.mrb[9].mxu1 }
 0x13e   : > { %3139 = vmatmul.mubr.bf16.gmra.mrb[56].mxu0 %v6155_v21  ;;  %v7073_v56 = vpop.f32.mrb[10].mxu1 }
 0x13f   : > { %3148 = vmatprep.mubr.bf16.mxu0 %v6159_v0  ;;  %v7075_v57 = vpop.f32.mrb[11].mxu1 }
 0x141   : > { %2583 = vmatmul.mubr.bf16.gmra.mrb[116].mxu1 %v6227_v38 }
 0x142   : > { %2592 = vmatprep.mubr.bf16.mxu1 %v6231_v5  ;;  %v6318_v5 = vld [vmem:[%s7706_s2] ss:$8 sps:$4 sm:$0xff]  }
 0x144   : > { %v7077_v58 = vpop.f32.mrb[12].mxu1 }
 0x145   : > { %v7079_v59 = vpop.f32.mrb[13].mxu1 }
 0x146   : > { %3149 = vmatmul.mubr.bf16.gmra.mrb[60].mxu0 %v6161_v27  ;;  %v7085_v13 = vpop.f32.mrb[14].mxu1  ;;  %v6280_v27 = vld [vmem:[%s6499_s16 + $0x4d8] ss:$28 sps:$4 sm:$0xff]  }
 0x147   : > { %3158 = vmatprep.mubr.bf16.mxu0 %v6165_v28  ;;  %v7087_v20 = vpop.f32.mrb[15].mxu1  ;;  %v6282_v28 = vld [vmem:[%s6499_s16 + $0x514] ss:$28 sps:$4 sm:$0xff]  }
 0x149   : > { %2593 = vmatmul.mubr.bf16.gmra.mrb[120].mxu1 %v6233_v42 }
 0x14a   : > { %2602 = vmatprep.mubr.bf16.mxu1 %v6237_v7 }
 0x14c   : > { %v7089_v21 = vpop.f32.mrb[16].mxu1 }
 0x14d   : > { %v7091_v0 = vpop.f32.mrb[17].mxu1 }
 0x14e   : > { %3159 = vmatmul.mubr.bf16.gmra.mrb[64].mxu0 %v6167_v2  ;;  %v7097_v30 = vpop.f32.mrb[18].mxu1 }
 0x14f   : > { %3168 = vmatprep.mubr.bf16.mxu0 %v6174_v33  ;;  %v7099_v1 = vpop.f32.mrb[19].mxu1 }
 0x151   : > { %2603 = vmatmul.mubr.bf16.gmra.mrb[124].mxu1 %v6239_v46  ;;  %v6288_v46 = vld [vmem:[%s6499_s16 + $0x548] ss:$28 sps:$4 sm:$0xff]  }
 0x152   : > { %2805 = vmatprep.mubr.bf16.mxu1 %v6245_v9  ;;  %v6290_v9 = vld [vmem:[%s6499_s16 + $0x584] ss:$28 sps:$4 sm:$0xff]  }
 0x154   : > { %v7101_v2 = vpop.f32.mrb[20].mxu1 }
 0x155   : > { %v7103_v33 = vpop.f32.mrb[21].mxu1 }
 0x156   : > { %3169 = vmatmul.mubr.bf16.gmra.mrb[68].mxu0 %v6176_v4  ;;  %v6284_v4 = vld [vmem:[%s6499_s16 + $0x510] ss:$28 sps:$4 sm:$0xff]   ;;  %v7109_v38 = vpop.f32.mrb[22].mxu1 }
 0x157   : > { %3178 = vmatprep.mubr.bf16.mxu0 %v6180_v37  ;;  %v6286_v37 = vld [vmem:[%s6499_s16 + $0x54c] ss:$28 sps:$4 sm:$0xff]  }
 0x159   : > { %2806 = vmatmul.mubr.bf16.vlgmr.msra.gmra.mrb[64].mxu1 %v6243_v11  ;;  %v6324_v11 = vld [vmem:[%s7706_s2 + $0x14] ss:$8 sps:$4 sm:$0xff]  }
 0x15a   : > { %2815 = vmatprep.mubr.bf16.mxu1 %v6252_v49 }
 0x15e   : > { %3179 = vmatmul.mubr.bf16.gmra.mrb[72].mxu0 %v6182_v6  ;;  %v6320_v6 = vld [vmem:[%s7706_s2 + $0x4] ss:$8 sps:$4 sm:$0xff]  }
 0x15f   : > { %3188 = vmatprep.mubr.bf16.mxu0 %v6186_v40  ;;  %v7117_v40 = vpop.f32.mrb[23].mxu1  ;;  %4056 = vmatprep.subr.bf16.mxu1 %v6320_v6 }
 0x160   : > { %v7119_v42 = vpop.f32.mrb[24].mxu1  ;;  %4057 = vmatpush1.bf16.msra.mxu1 %v6318_v5  ;;  %v7708_v5 = vmov 0  }
 0x161   : > { %2816 = vmatmul.mubr.bf16.gmra.mrb[68].mxu1 %v6254_v51  ;;  %v7121_v7 = vpop.f32.mrb[25].mxu1  ;;  %4058 = vmatprep.subr.bf16.mxu1 %v6324_v11  ;;  %v6257_v51 = vld [vmem:[%s6499_s16 + $0x668] ss:$28 sps:$4 sm:$0xff]  }
 0x162   : > { %2825 = vmatprep.mubr.bf16.mxu1 %v6258_v14  ;;  %v6261_v14 = vld [vmem:[%s6499_s16 + $0x6a4] ss:$28 sps:$4 sm:$0xff]  }
 0x166   : > { %3189 = vmatmul.mubr.bf16.gmra.mrb[76].mxu0 %v6188_v44  ;;  %v6248_v44 = vld [vmem:[%s6499_s16 + $0x630] ss:$28 sps:$4 sm:$0xff]  }
 0x167   : > { %3198 = vmatprep.mubr.bf16.mxu0 %v6192_v8  ;;  %v6255_v8 = vld [vmem:[%s6499_s16 + $0x66c] ss:$28 sps:$4 sm:$0xff]  }
 0x169   : > { %2826 = vmatmul.mubr.bf16.gmra.mrb[72].mxu1 %v6260_v19 }
 0x16a   : > { %2835 = vmatprep.mubr.bf16.mxu1 %v6264_v22  ;;  %v6326_v22 = vld [vmem:[%s7706_s2 + $0x20] ss:$8 sps:$4 sm:$0xff]  }
 0x16e   : > { %3199 = vmatmul.mubr.bf16.gmra.mrb[80].mxu0 %v6194_v10  ;;  %v7127_v10 = vpop.f32.mrb[26].mxu1 }
 0x16f   : > { %3208 = vmatprep.mubr.bf16.mxu0 %v6201_v48  ;;  %v6322_v48 = vld [vmem:[%s7706_s2 + $0x10] ss:$8 sps:$4 sm:$0xff]   ;;  %v7135_v49 = vpop.f32.mrb[27].mxu1 }
 0x170   : > { %4059 = vmatpush1.bf16.msra.mxu1 %v6322_v48  ;;  %v6306_v48 = vld [vmem:[%s6499_s16 + $0x664] ss:$28 sps:$4 sm:$0xff]  }
 0x171   : > { %2836 = vmatmul.mubr.bf16.gmra.mrb[76].mxu1 %v6266_v36 }
 0x172   : > { %2845 = vmatprep.mubr.bf16.mxu1 %v6270_v39 }
 0x176   : > { %3209 = vmatmul.mubr.bf16.gmra.mrb[84].mxu0 %v6203_v12  ;;  %v7137_v12 = vpop.f32.mrb[28].mxu1 }
 0x177   : > { %3218 = vmatprep.mubr.bf16.mxu0 %v6207_v50  ;;  %v7139_v50 = vpop.f32.mrb[29].mxu1 }
 0x178   : > { %v7145_v19 = vpop.f32.mrb[30].mxu1 }
 0x179   : > { %2846 = vmatmul.mubr.bf16.gmra.mrb[80].mxu1 %v6272_v54  ;;  %v6296_v54 = vld [vmem:[%s6499_s16 + $0x5b8] ss:$28 sps:$4 sm:$0xff]  }
 0x17a   : > { %2855 = vmatprep.mubr.bf16.mxu1 %v6274_v55  ;;  %v6298_v55 = vld [vmem:[%s6499_s16 + $0x5f4] ss:$28 sps:$4 sm:$0xff]  }
 0x17e   : > { %3219 = vmatmul.mubr.bf16.gmra.mrb[88].mxu0 %v6209_v17  ;;  %v6292_v17 = vld [vmem:[%s6499_s16 + $0x580] ss:$28 sps:$4 sm:$0xff]  }
 0x17f   : > { %3228 = vmatprep.mubr.bf16.mxu0 %v6213_v18  ;;  %v6294_v18 = vld [vmem:[%s6499_s16 + $0x5bc] ss:$28 sps:$4 sm:$0xff]  }
 0x181   : > { %2856 = vmatmul.mubr.bf16.gmra.mrb[84].mxu1 %v6276_v62  ;;  %v6332_v62 = vld [vmem:[%s7706_s2 + $0x34] ss:$8 sps:$4 sm:$0xff]  }
 0x182   : > { %2865 = vmatprep.mubr.bf16.mxu1 %v6278_v63 }
 0x186   : > { %3229 = vmatmul.mubr.bf16.gmra.mrb[92].mxu0 %v6215_v32  ;;  %v6328_v32 = vld [vmem:[%s7706_s2 + $0x24] ss:$8 sps:$4 sm:$0xff]  }
 0x187   : > { %3238 = vmatprep.mubr.bf16.mxu0 %v6219_v35  ;;  %v7153_v35 = vpop.f32.mrb[31].mxu1  ;;  %4060 = vmatprep.subr.bf16.mxu1 %v6328_v32  ;;  %v6277_v32 = vld [vmem:[%s6499_s16 + $0x50] ss:$28 sps:$4 sm:$0xff]  }
 0x188   : > { %v7155_v36 = vpop.f32.mrb[32].mxu1  ;;  %4061 = vmatpush1.bf16.msra.mxu1 %v6326_v22 }
 0x189   : > { %2866 = vmatmul.mubr.bf16.gmra.mrb[88].mxu1 %v6280_v27  ;;  %v7157_v39 = vpop.f32.mrb[33].mxu1  ;;  %4062 = vmatprep.subr.bf16.mxu1 %v6332_v62  ;;  %v6269_v27 = vld [vmem:[%s6499_s16 + $0x6d8] ss:$28 sps:$4 sm:$0xff]  }
 0x18a   : > { %2875 = vmatprep.mubr.bf16.mxu1 %v6282_v28  ;;  %v6300_v28 = vld [vmem:[%s6499_s16 + $0x5f0] ss:$28 sps:$4 sm:$0xff]  }
 0x18e   : > { %3239 = vmatmul.mubr.bf16.gmra.mrb[96].mxu0 %v6221_v53  ;;  %v6263_v53 = vld [vmem:[%s6499_s16 + $0x6a0] ss:$28 sps:$4 sm:$0xff]  }
 0x18f   : > { %3248 = vmatprep.mubr.bf16.mxu0 %v6228_v47  ;;  %v6267_v47 = vld [vmem:[%s6499_s16 + $0x6dc] ss:$28 sps:$4 sm:$0xff]  }
 0x191   : > { %2876 = vmatmul.mubr.bf16.gmra.mrb[92].mxu1 %v6284_v4  ;;  %v6334_v4 = vld [vmem:[%s7706_s2 + $0x40] ss:$8 sps:$4 sm:$0xff]  }
 0x192   : > { %2885 = vmatprep.mubr.bf16.mxu1 %v6286_v37  ;;  %v6336_v37 = vld [vmem:[%s7706_s2 + $0x44] ss:$8 sps:$4 sm:$0xff]  }
 0x196   : > { %3249 = vmatmul.mubr.bf16.gmra.mrb[100].mxu0 %v6230_v60  ;;  %v7163_v60 = vpop.f32.mrb[34].mxu1 }
 0x197   : > { %3258 = vmatprep.mubr.bf16.mxu0 %v6234_v61  ;;  %v6330_v61 = vld [vmem:[%s7706_s2 + $0x30] ss:$8 sps:$4 sm:$0xff]   ;;  %v7171_v63 = vpop.f32.mrb[35].mxu1 }
 0x198   : > { %4063 = vmatpush1.bf16.msra.mxu1 %v6330_v61  ;;  %v6344_v61 = vld [vmem:[%s7706_s2 + $0x64] ss:$8 sps:$4 sm:$0xff]  }
 0x199   : > { %2886 = vmatmul.mubr.bf16.gmra.mrb[96].mxu1 %v6288_v46  ;;  %4064 = vmatprep.subr.bf16.mxu1 %v6336_v37  ;;  %v6273_v46 = vld [vmem:[%s6499_s16 + $0x18] ss:$28 sps:$4 sm:$0xff]  }
 0x19a   : > { %2895 = vmatprep.mubr.bf16.mxu1 %v6290_v9  ;;  %v6304_v9 = vld [vmem:[%s6499_s16 + $0x628] ss:$28 sps:$4 sm:$0xff]   ;;  %v6314_v37 = vld [vmem:[%s6499_s16 + $0x6d4] ss:$28 sps:$4 sm:$0xff]  }
 0x19c   : > { %4065 = vmatpush1.bf16.msra.mxu1 %v6334_v4  ;;  %v6312_v4 = vld [vmem:[%s6499_s16 + $0x698] ss:$28 sps:$4 sm:$0xff]  }
 0x19e   : > { %3259 = vmatmul.mubr.bf16.gmra.mrb[104].mxu0 %v6236_v23  ;;  %v7173_v23 = vpop.f32.mrb[36].mxu1 }
 0x19f   : > { %3268 = vmatprep.mubr.bf16.mxu0 %v6240_v25  ;;  %v7175_v25 = vpop.f32.mrb[37].mxu1 }
 0x1a1   : > { %2896 = vmatmul.mubr.bf16.gmra.mrb[100].mxu1 %v6292_v17 }
 0x1a2   : > { %2905 = vmatprep.mubr.bf16.mxu1 %v6294_v18 }
 0x1a6   : > { %3269 = vmatmul.mubr.bf16.gmra.mrb[108].mxu0 %v6242_v34  ;;  %v6302_v34 = vld [vmem:[%s6499_s16 + $0x62c] ss:$28 sps:$4 sm:$0xff]  }
 0x1a7   : > { %3278 = vmatprep.mubr.bf16.mxu0 %v6246_v3  ;;  %v7180_v3 = vpop.f32.mrb[38].mxu1 }
 0x1a8   : > { %v7189_v6 = vpop.f32.mrb[39].mxu1 }
 0x1a9   : > { %2906 = vmatmul.mubr.bf16.gmra.mrb[104].mxu1 %v6296_v54 }
 0x1aa   : > { %2915 = vmatprep.mubr.bf16.mxu1 %v6298_v55  ;;  %v6342_v55 = vld [vmem:[%s7706_s2 + $0x60] ss:$8 sps:$4 sm:$0xff]  }
 0x1ae   : > { %3279 = vmatmul.mubr.bf16.gmra.mrb[112].mxu0 %v6248_v44  ;;  %v7191_v44 = vpop.f32.mrb[40].mxu1 }
 0x1af   : > { %3288 = vmatprep.mubr.bf16.mxu0 %v6255_v8  ;;  %v7193_v8 = vpop.f32.mrb[41].mxu1 }
 0x1b0   : > { %v7198_v11 = vpop.f32.mrb[42].mxu1 }
 0x1b1   : > { %2916 = vmatmul.mubr.bf16.gmra.mrb[108].mxu1 %v6300_v28  ;;  %v7207_v17 = vpop.f32.mrb[43].mxu1 }
 0x1b2   : > { %2925 = vmatprep.mubr.bf16.mxu1 %v6302_v34  ;;  %v7209_v18 = vpop.f32.mrb[44].mxu1  ;;  %v6281_v34 = vld [vmem:[%s6499_s16 + $0x88] ss:$28 sps:$4 sm:$0xff]  }
 0x1b3   : > { %v7211_v22 = vpop.f32.mrb[45].mxu1 }
 0x1b4   : > { %v7216_v54 = vpop.f32.mrb[46].mxu1 }
 0x1b5   : > { %v7225_v62 = vpop.f32.mrb[47].mxu1 }
 0x1b6   : > { %3289 = vmatmul.mubr.bf16.gmra.mrb[116].mxu0 %v6257_v51  ;;  %v6338_v51 = vld [vmem:[%s7706_s2 + $0x50] ss:$8 sps:$4 sm:$0xff]  }
 0x1b7   : > { %3298 = vmatprep.mubr.bf16.mxu0 %v6261_v14  ;;  %v6340_v14 = vld [vmem:[%s7706_s2 + $0x54] ss:$8 sps:$4 sm:$0xff]  }
 0x1b8   : > { %4066 = vmatprep.subr.bf16.mxu1 %v6340_v14 }
 0x1b9   : > { %2926 = vmatmul.mubr.bf16.gmra.mrb[112].mxu1 %v6304_v9  ;;  %v6346_v9 = vld [vmem:[%s7706_s2 + $0x70] ss:$8 sps:$4 sm:$0xff]  }
 0x1ba   : > { %2935 = vmatprep.mubr.bf16.mxu1 %v6306_v48  ;;  %4067 = vmatpush1.bf16.msra.mxu1 %v6338_v51  ;;  %v6348_v48 = vld [vmem:[%s7706_s2 + $0x74] ss:$8 sps:$4 sm:$0xff]  }
 0x1bb   : > { %4068 = vmatprep.subr.bf16.mxu1 %v6344_v61  ;;  %v6350_v61 = vld [vmem:[%s7706_s2 + $0x80] ss:$8 sps:$4 sm:$0xff]  }
 0x1be   : > { %3299 = vmatmul.mubr.bf16.gmra.mrb[120].mxu0 %v6263_v53  ;;  %v6308_v53 = vld [vmem:[%s6499_s16 + $0x660] ss:$28 sps:$4 sm:$0xff]   ;;  %4069 = vmatpush1.bf16.msra.mxu1 %v6342_v55 }
 0x1bf   : > { %3308 = vmatprep.mubr.bf16.mxu0 %v6267_v47  ;;  %v6310_v47 = vld [vmem:[%s6499_s16 + $0x69c] ss:$28 sps:$4 sm:$0xff]   ;;  %4070 = vmatprep.subr.bf16.mxu1 %v6348_v48 }
 0x1c0   : > { %v6289_v48 = vld [vmem:[%s6499_s16 + $0xf8] ss:$28 sps:$4 sm:$0xff]  }
 0x1c1   : > { %2936 = vmatmul.mubr.bf16.gmra.mrb[116].mxu1 %v6308_v53  ;;  %v6285_v53 = vld [vmem:[%s6499_s16 + $0xc0] ss:$28 sps:$4 sm:$0xff]  }
 0x1c2   : > { %2945 = vmatprep.mubr.bf16.mxu1 %v6310_v47  ;;  %4071 = vmatpush1.bf16.msra.mxu1 %v6346_v9  ;;  %v6316_v47 = vld [vmem:[%s6499_s16 + $0x6d0] ss:$28 sps:$4 sm:$0xff]  }
 0x1c6   : > { %3309 = vmatmul.mubr.bf16.gmra.mrb[124].mxu0 %v6269_v27  ;;  %v7227_v27 = vpop.f32.mrb[48].mxu1 }
 0x1c7   : > { %3351 = vmatprep.mubr.bf16.mxu0 %v7708_v5  ;;  %7710 = vst [vmem:[#allocation2_spill] sm:$0xff] %v7227_v27  ;;  %v7229_v28 = vpop.f32.mrb[49].mxu1 }
 0x1c8   : > { %7711 = vst [vmem:[#allocation3_spill] sm:$0xff] %v7229_v28 }
 0x1c9   : > { %2946 = vmatmul.mubr.bf16.gmra.mrb[120].mxu1 %v6312_v4 }
 0x1ca   : > { %2955 = vmatprep.mubr.bf16.mxu1 %v6314_v37 }
 0x1ce   : > { %3352 = vmatmul.mubr.bf16.vlgmr.msra.gmra.mrb[0].mxu0 %v6273_v46  ;;  %v7234_v46 = vpop.f32.mrb[50].mxu1 }
 0x1cf   : > { %3361 = vmatprep.mubr.bf16.mxu0 %v7708_v5  ;;  %7712 = vst [vmem:[#allocation4_spill] sm:$0xff] %v7234_v46  ;;  %v7243_v51 = vpop.f32.mrb[51].mxu1 }
 0x1d0   : > { %7713 = vst [vmem:[#allocation5_spill] sm:$0xff] %v7243_v51  ;;  %v7245_v14 = vpop.f32.mrb[52].mxu1 }
 0x1d1   : > { %7714 = vst [vmem:[#allocation6_spill] sm:$0xff] %v7245_v14  ;;  %2956 = vmatmul.mubr.bf16.gmra.mrb[124].mxu1 %v6316_v47  ;;  %v7721_v47 = vmov 0  }
 0x1d6   : > { %3362 = vmatmul.mubr.bf16.gmra.mrb[4].mxu0 %v6277_v32  ;;  %v7247_v32 = vpop.f32.mrb[53].mxu1 }
 0x1d7   : > { %3371 = vmatprep.mubr.bf16.mxu0 %v7708_v5  ;;  %7715 = vst [vmem:[#allocation7_spill] sm:$0xff] %v7247_v32  ;;  %v7251_v55 = vpop.f32.mrb[54].mxu1 }
 0x1d8   : > { %7716 = vst [vmem:[#allocation8_spill] sm:$0xff] %v7251_v55  ;;  %v7260_v4 = vpop.f32.mrb[55].mxu1  ;;  %v6354_v55 = vld [vmem:[%s7706_s2 + $0x90] ss:$8 sps:$4 sm:$0xff]  }
 0x1d9   : > { %7717 = vst [vmem:[#allocation9_spill] sm:$0xff] %v7260_v4  ;;  %v7262_v37 = vpop.f32.mrb[56].mxu1  ;;  %v6360_v4 = vld [vmem:[%s7706_s2 + $0xa4] ss:$8 sps:$4 sm:$0xff]  }
 0x1da   : > { %7718 = vst [vmem:[#allocation10_spill] sm:$0xff] %v7262_v37  ;;  %v7264_v9 = vpop.f32.mrb[57].mxu1  ;;  %v6358_v37 = vld [vmem:[%s7706_s2 + $0xa0] ss:$8 sps:$4 sm:$0xff]  }
 0x1db   : > { %7719 = vst [vmem:[#allocation11_spill] sm:$0xff] %v7264_v9 }
 0x1de   : > { %3372 = vmatmul.mubr.bf16.gmra.mrb[8].mxu0 %v6281_v34  ;;  %v6352_v34 = vld [vmem:[%s7706_s2 + $0x84] ss:$8 sps:$4 sm:$0xff]  }
 0x1df   : > { %3381 = vmatprep.mubr.bf16.mxu0 %v7708_v5  ;;  %4072 = vmatprep.subr.bf16.mxu1 %v6352_v34 }
 0x1e0   : > { %4073 = vmatpush1.bf16.msra.mxu1 %v6350_v61 }
 0x1e6   : > { %3382 = vmatmul.mubr.bf16.gmra.mrb[12].mxu0 %v6285_v53  ;;  %v7267_v53 = vpop.f32.mrb[58].mxu1 }
 0x1e7   : > { %3391 = vmatprep.mubr.bf16.mxu0 %v7708_v5  ;;  %7720 = vst [vmem:[#allocation12_spill] sm:$0xff] %v7267_v53  ;;  %v6356_v5 = vld [vmem:[%s7706_s2 + $0x94] ss:$8 sps:$4 sm:$0xff]   ;;  %v7276_v34 = vpop.f32.mrb[59].mxu1  ;;  %v6293_v53 = vld [vmem:[%s6499_s16 + $0x130] ss:$28 sps:$4 sm:$0xff]  }
 0x1e8   : > { %7722 = vst [vmem:[#allocation13_spill] sm:$0xff] %v7276_v34  ;;  %4074 = vmatprep.subr.bf16.mxu1 %v6356_v5  ;;  %v7278_v61 = vpop.f32.mrb[60].mxu1 }
 0x1e9   : > { %7723 = vst [vmem:[#allocation14_spill] sm:$0xff] %v7278_v61  ;;  %4075 = vmatpush1.bf16.msra.mxu1 %v6354_v55  ;;  %v6297_v55 = vld [vmem:[%s6499_s16 + $0x168] ss:$28 sps:$4 sm:$0xff]  }
 0x1ea   : > { %4076 = vmatprep.subr.bf16.mxu1 %v6360_v4  ;;  %v6366_v4 = vld [vmem:[%s7706_s2 + $0xc0] ss:$8 sps:$4 sm:$0xff]  }
 0x1ed   : > { %4077 = vmatpush1.bf16.msra.mxu1 %v6358_v37  ;;  %v6368_v37 = vld [vmem:[%s7706_s2 + $0xc4] ss:$8 sps:$4 sm:$0xff]  }
 0x1ee   : > { %3392 = vmatmul.mubr.bf16.gmra.mrb[16].mxu0 %v6289_v48  ;;  %v7280_v48 = vpop.f32.mrb[61].mxu1 }
 0x1ef   : > { %3401 = vmatprep.mubr.bf16.mxu0 %v7721_v47  ;;  %7724 = vst [vmem:[#allocation15_spill] sm:$0xff] %v7280_v48  ;;  %v7283_v9 = vpop.f32.mrb[62].mxu1  ;;  %v6301_v48 = vld [vmem:[%s6499_s16 + $0x1a0] ss:$28 sps:$4 sm:$0xff]  }
 0x1f0   : > { %7725 = vst [vmem:[#allocation16_spill] sm:$0xff] %v7283_v9  ;;  %v7292_v5 = vpop.f32.mrb[63].mxu1  ;;  %v6364_v9 = vld [vmem:[%s7706_s2 + $0xb4] ss:$8 sps:$4 sm:$0xff]  }
 0x1f1   : > { %7726 = vst [vmem:[#allocation17_spill] sm:$0xff] %v7292_v5  ;;  %4078 = vmatprep.subr.bf16.mxu1 %v6364_v9  ;;  %v6370_v9 = vld [vmem:[%s7706_s2 + $0xd0] ss:$8 sps:$4 sm:$0xff]  }
 0x1f6   : > { %3402 = vmatmul.mubr.bf16.gmra.mrb[20].mxu0 %v6293_v53  ;;  %v6362_v53 = vld [vmem:[%s7706_s2 + $0xb0] ss:$8 sps:$4 sm:$0xff]  }
 0x1f7   : > { %3411 = vmatprep.mubr.bf16.mxu0 %v7721_v47  ;;  %4079 = vmatpush1.bf16.msra.mxu1 %v6362_v53  ;;  %v6309_v53 = vld [vmem:[%s6499_s16 + $0x210] ss:$28 sps:$4 sm:$0xff]  }
 0x1f8   : > { %4080 = vmatprep.subr.bf16.mxu1 %v6368_v37  ;;  %v6376_v37 = vld [vmem:[%s7706_s2 + $0xe4] ss:$8 sps:$4 sm:$0xff]  }
 0x1fb   : > { %4081 = vmatpush1.bf16.msra.mxu1 %v6366_v4  ;;  %v6374_v4 = vld [vmem:[%s7706_s2 + $0xe0] ss:$8 sps:$4 sm:$0xff]  }
 0x1fe   : > { %3412 = vmatmul.mubr.bf16.gmra.mrb[24].mxu0 %v6297_v55  ;;  %v6305_v55 = vld [vmem:[%s6499_s16 + $0x1d8] ss:$28 sps:$4 sm:$0xff]  }
 0x1ff   : > { %3421 = vmatprep.mubr.bf16.mxu0 %v7721_v47 }
 0x206   : > { %3422 = vmatmul.mubr.bf16.gmra.mrb[28].mxu0 %v6301_v48  ;;  %v6372_v48 = vld [vmem:[%s7706_s2 + $0xd4] ss:$8 sps:$4 sm:$0xff]  }
 0x207   : > { %3431 = vmatprep.mubr.bf16.mxu0 %v7721_v47  ;;  %4082 = vmatprep.subr.bf16.mxu1 %v6372_v48  ;;  %v6380_v48 = vld [vmem:[%s7706_s2 + $0xf4] ss:$8 sps:$4 sm:$0xff]  }
 0x208   : > { %4083 = vmatpush1.bf16.msra.mxu1 %v6370_v9  ;;  %v6317_v9 = vld [vmem:[%s6499_s16 + $0x280] ss:$28 sps:$4 sm:$0xff]  }
 0x209   : > { %4084 = vmatprep.subr.bf16.mxu1 %v6376_v37  ;;  %v6325_v37 = vld [vmem:[%s6499_s16 + $0x2f0] ss:$28 sps:$4 sm:$0xff]  }
 0x20c   : > { %4085 = vmatpush1.bf16.msra.mxu1 %v6374_v4  ;;  %v6321_v4 = vld [vmem:[%s6499_s16 + $0x2b8] ss:$28 sps:$4 sm:$0xff]  }
 0x20d   : > { %4086 = vmatprep.subr.bf16.mxu1 %v6380_v48 }
 0x20e   : > { %3432 = vmatmul.mubr.bf16.gmra.mrb[32].mxu0 %v6305_v55  ;;  %v6313_v55 = vld [vmem:[%s6499_s16 + $0x248] ss:$28 sps:$4 sm:$0xff]  }
 0x20f   : > { %3441 = vmatprep.mubr.bf16.mxu0 %v7721_v47 }
 0x216   : > { %3442 = vmatmul.mubr.bf16.gmra.mrb[36].mxu0 %v6309_v53  ;;  %v6378_v53 = vld [vmem:[%s7706_s2 + $0xf0] ss:$8 sps:$4 sm:$0xff]  }
 0x217   : > { %3451 = vmatprep.mubr.bf16.mxu0 %v7721_v47  ;;  %4087 = vmatpush1.bf16.msra.mxu1 %v6378_v53 }
 0x21e   : > { %3452 = vmatmul.mubr.bf16.gmra.mrb[40].mxu0 %v6313_v55  ;;  %v6329_v55 = vld [vmem:[%s6499_s16 + $0x328] ss:$28 sps:$4 sm:$0xff]  }
 0x21f   : > { %3461 = vmatprep.mubr.bf16.mxu0 %v7721_v47 }
 0x226   : > { %3462 = vmatmul.mubr.bf16.gmra.mrb[44].mxu0 %v6317_v9  ;;  %v6333_v9 = vld [vmem:[%s6499_s16 + $0x360] ss:$28 sps:$4 sm:$0xff]  }
 0x227   : > { %3471 = vmatprep.mubr.bf16.mxu0 %v7721_v47 }
 0x22c   : > { %v7343_v5 = vpop.f32.mrb[64].mxu1 }
 0x22d   : > { %7727 = vst [vmem:[#allocation18_spill] sm:$0xff] %v7343_v5  ;;  %v7345_v61 = vpop.f32.mrb[65].mxu1 }
 0x22e   : > { %3472 = vmatmul.mubr.bf16.gmra.mrb[48].mxu0 %v6321_v4  ;;  %7728 = vst [vmem:[#allocation19_spill] sm:$0xff] %v7345_v61  ;;  %v7347_v48 = vpop.f32.mrb[66].mxu1  ;;  %v6337_v4 = vld [vmem:[%s6499_s16 + $0x398] ss:$28 sps:$4 sm:$0xff]  }
 0x22f   : > { %3481 = vmatprep.mubr.bf16.mxu0 %v7721_v47  ;;  %7729 = vst [vmem:[#allocation20_spill] sm:$0xff] %v7347_v48  ;;  %v7349_v53 = vpop.f32.mrb[67].mxu1  ;;  %v6341_v48 = vld [vmem:[%s6499_s16 + $0x3d0] ss:$28 sps:$4 sm:$0xff]  }
 0x230   : > { %7730 = vst [vmem:[#allocation21_spill] sm:$0xff] %v7349_v53 }
 0x236   : > { %3482 = vmatmul.mubr.bf16.gmra.mrb[52].mxu0 %v6325_v37  ;;  %v7353_v37 = vpop.f32.mrb[68].mxu1 }
 0x237   : > { %3491 = vmatprep.mubr.bf16.mxu0 %v7721_v47  ;;  %7731 = vst [vmem:[#allocation22_spill] sm:$0xff] %v7353_v37 }
 0x23e   : > { %3492 = vmatmul.mubr.bf16.gmra.mrb[56].mxu0 %v6329_v55  ;;  %v7355_v55 = vpop.f32.mrb[69].mxu1 }
 0x23f   : > { %3501 = vmatprep.mubr.bf16.mxu0 %v7721_v47  ;;  %7732 = vst [vmem:[#allocation23_spill] sm:$0xff] %v7355_v55  ;;  %v7357_v34 = vpop.f32.mrb[70].mxu1 }
 0x240   : > { %7733 = vst [vmem:[#allocation24_spill] sm:$0xff] %v7357_v34  ;;  %v7359_v32 = vpop.f32.mrb[71].mxu1  ;;  %v6345_v34 = vld [vmem:[%s6499_s16 + $0x408] ss:$28 sps:$4 sm:$0xff]  }
 0x241   : > { %7734 = vst [vmem:[#allocation25_spill] sm:$0xff] %v7359_v32 }
 0x246   : > { %3502 = vmatmul.mubr.bf16.gmra.mrb[60].mxu0 %v6333_v9  ;;  %v7363_v9 = vpop.f32.mrb[72].mxu1 }
 0x247   : > { %3511 = vmatprep.mubr.bf16.mxu0 %v7721_v47  ;;  %7735 = vst [vmem:[#allocation26_spill] sm:$0xff] %v7363_v9  ;;  %v7365_v53 = vpop.f32.mrb[73].mxu1 }
 0x248   : > { %7736 = vst [vmem:[#allocation27_spill] sm:$0xff] %v7365_v53  ;;  %v7367_v61 = vpop.f32.mrb[74].mxu1 }
 0x249   : > { %7737 = vst [vmem:[#allocation28_spill] sm:$0xff] %v7367_v61  ;;  %v7369_v5 = vpop.f32.mrb[75].mxu1  ;;  %v6349_v61 = vld [vmem:[%s6499_s16 + $0x440] ss:$28 sps:$4 sm:$0xff]  }
 0x24a   : > { %7738 = vst [vmem:[#allocation29_spill] sm:$0xff] %v7369_v5 }
 0x24e   : > { %3512 = vmatmul.mubr.bf16.gmra.mrb[64].mxu0 %v6337_v4  ;;  %v7373_v4 = vpop.f32.mrb[76].mxu1 }
 0x24f   : > { %3521 = vmatprep.mubr.bf16.mxu0 %v7721_v47  ;;  %7739 = vst [vmem:[#allocation30_spill] sm:$0xff] %v7373_v4  ;;  %v7375_v32 = vpop.f32.mrb[77].mxu1 }
 0x250   : > { %7740 = vst [vmem:[#allocation31_spill] sm:$0xff] %v7375_v32  ;;  %v7377_v55 = vpop.f32.mrb[78].mxu1 }
 0x251   : > { %7741 = vst [vmem:[#allocation32_spill] sm:$0xff] %v7377_v55  ;;  %v7379_v37 = vpop.f32.mrb[79].mxu1  ;;  %v6353_v55 = vld [vmem:[%s6499_s16 + $0x478] ss:$28 sps:$4 sm:$0xff]  }
 0x252   : > { %7742 = vst [vmem:[#allocation33_spill] sm:$0xff] %v7379_v37 }
 0x256   : > { %3522 = vmatmul.mubr.bf16.gmra.mrb[68].mxu0 %v6341_v48  ;;  %v7383_v48 = vpop.f32.mrb[80].mxu1 }
 0x257   : > { %3531 = vmatprep.mubr.bf16.mxu0 %v7721_v47  ;;  %7743 = vst [vmem:[#allocation34_spill] sm:$0xff] %v7383_v48  ;;  %v7385_v5 = vpop.f32.mrb[81].mxu1 }
 0x258   : > { %7744 = vst [vmem:[#allocation35_spill] sm:$0xff] %v7385_v5  ;;  %v7387_v53 = vpop.f32.mrb[82].mxu1 }
 0x259   : > { %7745 = vst [vmem:[#allocation36_spill] sm:$0xff] %v7387_v53  ;;  %v7389_v9 = vpop.f32.mrb[83].mxu1  ;;  %v6357_v53 = vld [vmem:[%s6499_s16 + $0x4b0] ss:$28 sps:$4 sm:$0xff]  }
 0x25a   : > { %7746 = vst [vmem:[#allocation37_spill] sm:$0xff] %v7389_v9 }
 0x25e   : > { %3532 = vmatmul.mubr.bf16.gmra.mrb[72].mxu0 %v6345_v34  ;;  %v7393_v34 = vpop.f32.mrb[84].mxu1 }
 0x25f   : > { %3541 = vmatprep.mubr.bf16.mxu0 %v7721_v47  ;;  %7747 = vst [vmem:[#allocation38_spill] sm:$0xff] %v7393_v34  ;;  %v7395_v37 = vpop.f32.mrb[85].mxu1 }
 0x260   : > { %7748 = vst [vmem:[#allocation39_spill] sm:$0xff] %v7395_v37  ;;  %v7397_v32 = vpop.f32.mrb[86].mxu1 }
 0x261   : > { %7749 = vst [vmem:[#allocation40_spill] sm:$0xff] %v7397_v32  ;;  %v7399_v4 = vpop.f32.mrb[87].mxu1  ;;  %v6361_v32 = vld [vmem:[%s6499_s16 + $0x4e8] ss:$28 sps:$4 sm:$0xff]  }
 0x262   : > { %7750 = vst [vmem:[#allocation41_spill] sm:$0xff] %v7399_v4 }
 0x266   : > { %3542 = vmatmul.mubr.bf16.gmra.mrb[76].mxu0 %v6349_v61  ;;  %v7403_v61 = vpop.f32.mrb[88].mxu1 }
 0x267   : > { %3551 = vmatprep.mubr.bf16.mxu0 %v7721_v47  ;;  %7751 = vst [vmem:[#allocation42_spill] sm:$0xff] %v7403_v61  ;;  %v7405_v9 = vpop.f32.mrb[89].mxu1 }
 0x268   : > { %7752 = vst [vmem:[#allocation43_spill] sm:$0xff] %v7405_v9  ;;  %v7407_v5 = vpop.f32.mrb[90].mxu1 }
 0x269   : > { %7753 = vst [vmem:[#allocation44_spill] sm:$0xff] %v7407_v5  ;;  %v7409_v48 = vpop.f32.mrb[91].mxu1  ;;  %v6365_v5 = vld [vmem:[%s6499_s16 + $0x520] ss:$28 sps:$4 sm:$0xff]  }
 0x26a   : > { %7754 = vst [vmem:[#allocation45_spill] sm:$0xff] %v7409_v48 }
 0x26e   : > { %3552 = vmatmul.mubr.bf16.gmra.mrb[80].mxu0 %v6353_v55  ;;  %v7413_v55 = vpop.f32.mrb[92].mxu1 }
 0x26f   : > { %3561 = vmatprep.mubr.bf16.mxu0 %v7721_v47  ;;  %7755 = vst [vmem:[#allocation46_spill] sm:$0xff] %v7413_v55  ;;  %v7415_v4 = vpop.f32.mrb[93].mxu1 }
 0x270   : > { %7756 = vst [vmem:[#allocation47_spill] sm:$0xff] %v7415_v4  ;;  %v7417_v37 = vpop.f32.mrb[94].mxu1 }
 0x271   : > { %7757 = vst [vmem:[#allocation48_spill] sm:$0xff] %v7417_v37  ;;  %v7419_v34 = vpop.f32.mrb[95].mxu1  ;;  %v6369_v37 = vld [vmem:[%s6499_s16 + $0x558] ss:$28 sps:$4 sm:$0xff]  }
 0x272   : > { %7758 = vst [vmem:[#allocation49_spill] sm:$0xff] %v7419_v34 }
 0x276   : > { %3562 = vmatmul.mubr.bf16.gmra.mrb[84].mxu0 %v6357_v53  ;;  %v7423_v53 = vpop.f32.mrb[96].mxu1 }
 0x277   : > { %3571 = vmatprep.mubr.bf16.mxu0 %v7721_v47  ;;  %7759 = vst [vmem:[#allocation50_spill] sm:$0xff] %v7423_v53  ;;  %v7425_v48 = vpop.f32.mrb[97].mxu1 }
 0x278   : > { %7760 = vst [vmem:[#allocation51_spill] sm:$0xff] %v7425_v48  ;;  %v7427_v9 = vpop.f32.mrb[98].mxu1  ;;  %v6373_v48 = vld [vmem:[%s6499_s16 + $0x590] ss:$28 sps:$4 sm:$0xff]  }
 0x279   : > { %7761 = vst [vmem:[#allocation52_spill] sm:$0xff] %v7427_v9  ;;  %v7429_v61 = vpop.f32.mrb[99].mxu1 }
 0x27a   : > { %7762 = vst [vmem:[#allocation53_spill] sm:$0xff] %v7429_v61 }
 0x27e   : > { %3572 = vmatmul.mubr.bf16.gmra.mrb[88].mxu0 %v6361_v32  ;;  %v7433_v32 = vpop.f32.mrb[100].mxu1 }
 0x27f   : > { %3581 = vmatprep.mubr.bf16.mxu0 %v7721_v47  ;;  %7763 = vst [vmem:[#allocation54_spill] sm:$0xff] %v7433_v32  ;;  %v7435_v34 = vpop.f32.mrb[101].mxu1 }
 0x280   : > { %7764 = vst [vmem:[#allocation55_spill] sm:$0xff] %v7435_v34  ;;  %v7437_v4 = vpop.f32.mrb[102].mxu1  ;;  %v6377_v34 = vld [vmem:[%s6499_s16 + $0x5c8] ss:$28 sps:$4 sm:$0xff]  }
 0x281   : > { %7765 = vst [vmem:[#allocation56_spill] sm:$0xff] %v7437_v4  ;;  %v7439_v55 = vpop.f32.mrb[103].mxu1 }
 0x282   : > { %7766 = vst [vmem:[#allocation57_spill] sm:$0xff] %v7439_v55  ;;  %v7443_v9 = vpop.f32.mrb[104].mxu1 }
 0x283   : > { %7767 = vst [vmem:[#allocation58_spill] sm:$0xff] %v7443_v9  ;;  %v6381_v9 = vld [vmem:[%s6499_s16 + $0x600] ss:$28 sps:$4 sm:$0xff]  }
 0x286   : > { %3582 = vmatmul.mubr.bf16.gmra.mrb[92].mxu0 %v6365_v5  ;;  %v7445_v5 = vpop.f32.mrb[105].mxu1 }
 0x287   : > { %3591 = vmatprep.mubr.bf16.mxu0 %v7721_v47  ;;  %7768 = vst [vmem:[#allocation59_spill] sm:$0xff] %v7445_v5  ;;  %v7447_v61 = vpop.f32.mrb[106].mxu1 }
 0x288   : > { %7769 = vst [vmem:[#allocation60_spill] sm:$0xff] %v7447_v61  ;;  %v7449_v53 = vpop.f32.mrb[107].mxu1 }
 0x289   : > { %7770 = vst [vmem:[#allocation61_spill] sm:$0xff] %v7449_v53  ;;  %v7453_v4 = vpop.f32.mrb[108].mxu1 }
 0x28a   : > { %7771 = vst [vmem:[#allocation62_spill] sm:$0xff] %v7453_v4 }
 0x28e   : > { %3592 = vmatmul.mubr.bf16.gmra.mrb[96].mxu0 %v6369_v37  ;;  %v7455_v37 = vpop.f32.mrb[109].mxu1 }
 0x28f   : > { %3601 = vmatprep.mubr.bf16.mxu0 %v7721_v47  ;;  %7772 = vst [vmem:[#allocation63_spill] sm:$0xff] %v7455_v37  ;;  %v7457_v55 = vpop.f32.mrb[110].mxu1 }
 0x290   : > { %7773 = vst [vmem:[#allocation64_spill] sm:$0xff] %v7457_v55  ;;  %v7459_v32 = vpop.f32.mrb[111].mxu1 }
 0x291   : > { %7774 = vst [vmem:[#allocation65_spill] sm:$0xff] %v7459_v32  ;;  %v7465_v51 = vpop.f32.mrb[112].mxu1 }
 0x292   : > { %7775 = vst [vmem:[#allocation66_spill] sm:$0xff] %v7465_v51  ;;  %v7468_v55 = vpop.f32.mrb[113].mxu1 }
 0x293   : > { %7776 = vst [vmem:[#allocation67_spill] sm:$0xff] %v7468_v55  ;;  %v7471_v32 = vpop.f32.mrb[114].mxu1  ;;  %v6382_v55 = vld [vmem:[%s6499_s16 + $0x638] ss:$28 sps:$4 sm:$0xff]  }
 0x296   : > { %3602 = vmatmul.mubr.bf16.gmra.mrb[100].mxu0 %v6373_v48 }
 0x297   : > { %3611 = vmatprep.mubr.bf16.mxu0 %v7721_v47 }
 0x29e   : > { %3612 = vmatmul.mubr.bf16.gmra.mrb[104].mxu0 %v6377_v34 }
 0x29f   : > { %3621 = vmatprep.mubr.bf16.mxu0 %v7721_v47 }
 0x2a1   : > { %v3353_v5 = vpop.f32.mrb[0].mxu0 }
 0x2a2   : > { %v5456_v61 = vadd.f32 %v3353_v5, %v7041_v15  ;;  %v3355_v48 = vpop.f32.mrb[1].mxu0  ;;  %v7473_v15 = vpop.f32.mrb[115].mxu1 }
 0x2a3   : > { %v5457_v53 = vadd.f32 %v3355_v48, %v7043_v16  ;;  %v3357_v14 = vpop.f32.mrb[2].mxu0 }
 0x2a4   : > { %v5458_v4 = vadd.f32 %v3357_v14, %v7049_v24  ;;  %v3359_v37 = vpop.f32.mrb[3].mxu0  ;;  %v3672_v46 = vmax.f32 %v5456_v61, 0.0  ;;  %v7479_v61 = vpop.f32.mrb[116].mxu1 }
 0x2a5   : > { %v5459_v34 = vadd.f32 %v3359_v37, %v7051_v26  ;;  %v3673_v5 = vmax.f32 %v5457_v53, 0.0  ;;  %v7482_v53 = vpop.f32.mrb[117].mxu1 }
 0x2a6   : > { %v3674_v28 = vmax.f32 %v5458_v4, 0.0  ;;  %3622 = vmatmul.mubr.bf16.gmra.mrb[108].mxu0 %v6381_v9 }
 0x2a7   : > { %v3675_v16 = vmax.f32 %v5459_v34, 0.0  ;;  %3631 = vmatprep.mubr.bf16.mxu0 %v7721_v47 }
 0x2a8   : > { %v3800_v48 = vpack.c.bf16 %v3674_v28, %v3672_v46  ;;  %v7485_v46 = vpop.f32.mrb[118].mxu1 }
 0x2a9   : > { %v3801_v51 = vpack.c.bf16 %v3675_v16, %v3673_v5  ;;  %v3363_v24 = vpop.f32.mrb[4].mxu0  ;;  %v7487_v5 = vpop.f32.mrb[119].mxu1 }
 0x2aa   : > { %v5460_v14 = vadd.f32 %v3363_v24, %v7053_v29  ;;  %v3365_v27 = vpop.f32.mrb[5].mxu0 }
 0x2ab   : > { %v5461_v26 = vadd.f32 %v3365_v27, %v7055_v31  ;;  %v3367_v37 = vpop.f32.mrb[6].mxu0  ;;  %4088 = vmatprep.mubr.bf16.mxu1 %v3801_v51 }
 0x2ac   : > { %v5462_v9 = vadd.f32 %v3367_v37, %v7061_v41  ;;  %v3369_v4 = vpop.f32.mrb[7].mxu0  ;;  %4089 = vmatmul.mubr.bf16.vlgmr.msra.gmra.mrb[128].mxu1 %v3800_v48  ;;  %v3676_v29 = vmax.f32 %v5460_v14, 0.0  ;;  %v6383_v37 = vld [vmem:[%s6499_s16 + $0x670] ss:$28 sps:$4 sm:$0xff]   ;;  %v7493_v14 = vpop.f32.mrb[120].mxu1 }
 0x2ad   : > { %v5463_v28 = vadd.f32 %v3369_v4, %v7063_v52  ;;  %v3677_v31 = vmax.f32 %v5461_v26, 0.0  ;;  %v7496_v26 = vpop.f32.mrb[121].mxu1 }
 0x2ae   : > { %v3678_v34 = vmax.f32 %v5462_v9, 0.0  ;;  %3632 = vmatmul.mubr.bf16.gmra.mrb[112].mxu0 %v6382_v55 }
 0x2af   : > { %v3679_v27 = vmax.f32 %v5463_v28, 0.0  ;;  %3641 = vmatprep.mubr.bf16.mxu0 %v7721_v47 }
 0x2b0   : > { %v3802_v51 = vpack.c.bf16 %v3678_v34, %v3676_v29  ;;  %v7499_v29 = vpop.f32.mrb[122].mxu1 }
 0x2b1   : > { %v3803_v41 = vpack.c.bf16 %v3679_v27, %v3677_v31  ;;  %v3373_v16 = vpop.f32.mrb[8].mxu0  ;;  %v7501_v31 = vpop.f32.mrb[123].mxu1 }
 0x2b2   : > { %v5464_v48 = vadd.f32 %v3373_v16, %v7065_v43  ;;  %v3375_v24 = vpop.f32.mrb[9].mxu0 }
 0x2b3   : > { %v5465_v52 = vadd.f32 %v3375_v24, %v7067_v45  ;;  %v3377_v4 = vpop.f32.mrb[10].mxu0  ;;  %4098 = vmatprep.mubr.bf16.mxu1 %v3803_v41 }
 0x2b4   : > { %v5466_v55 = vadd.f32 %v3377_v4, %v7073_v56  ;;  %v3379_v9 = vpop.f32.mrb[11].mxu0  ;;  %4099 = vmatmul.mubr.bf16.gmra.mrb[132].mxu1 %v3802_v51  ;;  %v3680_v43 = vmax.f32 %v5464_v48, 0.0  ;;  %v6384_v4 = vld [vmem:[%s6499_s16 + $0x6a8] ss:$28 sps:$4 sm:$0xff]   ;;  %v7507_v48 = vpop.f32.mrb[124].mxu1 }
 0x2b5   : > { %v5467_v28 = vadd.f32 %v3379_v9, %v7075_v57  ;;  %v3681_v45 = vmax.f32 %v5465_v52, 0.0  ;;  %v7510_v52 = vpop.f32.mrb[125].mxu1 }
 0x2b6   : > { %v3682_v34 = vmax.f32 %v5466_v55, 0.0  ;;  %3642 = vmatmul.mubr.bf16.gmra.mrb[116].mxu0 %v6383_v37 }
 0x2b7   : > { %v3683_v27 = vmax.f32 %v5467_v28, 0.0  ;;  %3651 = vmatprep.mubr.bf16.mxu0 %v7721_v47 }
 0x2b8   : > { %v3804_v41 = vpack.c.bf16 %v3682_v34, %v3680_v43  ;;  %v7513_v43 = vpop.f32.mrb[126].mxu1 }
 0x2b9   : > { %v3805_v56 = vpack.c.bf16 %v3683_v27, %v3681_v45  ;;  %v3383_v16 = vpop.f32.mrb[12].mxu0  ;;  %v7515_v45 = vpop.f32.mrb[127].mxu1 }
 0x2ba   : > { %v5468_v51 = vadd.f32 %v3383_v16, %v7077_v58  ;;  %v3385_v24 = vpop.f32.mrb[13].mxu0 }
 0x2bb   : > { %v5469_v57 = vadd.f32 %v3385_v24, %v7079_v59  ;;  %v3387_v9 = vpop.f32.mrb[14].mxu0  ;;  %4108 = vmatprep.mubr.bf16.mxu1 %v3805_v56 }
 0x2bc   : > { %v5470_v37 = vadd.f32 %v3387_v9, %v7085_v13  ;;  %v3389_v55 = vpop.f32.mrb[15].mxu0  ;;  %4109 = vmatmul.mubr.bf16.gmra.mrb[136].mxu1 %v3804_v41  ;;  %v3684_v58 = vmax.f32 %v5468_v51, 0.0  ;;  %v6385_v9 = vld [vmem:[%s6499_s16 + $0x6e0] ss:$28 sps:$4 sm:$0xff]   ;;  %s5359_s16 = sshll.u32 %s7844_s24, 3 }
 0x2bd   : > { %v5471_v28 = vadd.f32 %v3389_v55, %v7087_v20  ;;  %v3685_v59 = vmax.f32 %v5469_v57, 0.0  ;;  %s7619_s19 = scalar_lea.vmem %s7707_s3, %s5359_s16 }
 0x2be   : > { %v3686_v34 = vmax.f32 %v5470_v37, 0.0  ;;  %3652 = vmatmul.mubr.bf16.gmra.mrb[120].mxu0 %v6384_v4 }
 0x2bf   : > { %v3687_v27 = vmax.f32 %v5471_v28, 0.0  ;;  %3661 = vmatprep.mubr.bf16.mxu0 %v7721_v47 }
 0x2c0   : > { %v3806_v56 = vpack.c.bf16 %v3686_v34, %v3684_v58 }
 0x2c1   : > { %v3807_v13 = vpack.c.bf16 %v3687_v27, %v3685_v59  ;;  %v3393_v16 = vpop.f32.mrb[16].mxu0 }
 0x2c2   : > { %v5472_v41 = vadd.f32 %v3393_v16, %v7089_v21  ;;  %v3395_v24 = vpop.f32.mrb[17].mxu0 }
 0x2c3   : > { %v5473_v20 = vadd.f32 %v3395_v24, %v7091_v0  ;;  %v3397_v55 = vpop.f32.mrb[18].mxu0  ;;  %4118 = vmatprep.mubr.bf16.mxu1 %v3807_v13 }
 0x2c4   : > { %v5474_v51 = vadd.f32 %v3397_v55, %v7097_v30  ;;  %v3399_v4 = vpop.f32.mrb[19].mxu0  ;;  %4119 = vmatmul.mubr.bf16.gmra.mrb[140].mxu1 %v3806_v56  ;;  %v3688_v37 = vmax.f32 %v5472_v41, 0.0 }
 0x2c5   : > { %v5475_v57 = vadd.f32 %v3399_v4, %v7099_v1  ;;  %v3689_v47 = vmax.f32 %v5473_v20, 0.0 }
 0x2c6   : > { %v3690_v28 = vmax.f32 %v5474_v51, 0.0  ;;  %3662 = vmatmul.mubr.bf16.gmra.mrb[124].mxu0 %v6385_v9 }
 0x2c7   : > { %v3691_v58 = vmax.f32 %v5475_v57, 0.0 }
 0x2c8   : > { %v3808_v34 = vpack.c.bf16 %v3690_v28, %v3688_v37 }
 0x2c9   : > { %v3809_v59 = vpack.c.bf16 %v3691_v58, %v3689_v47  ;;  %v3403_v21 = vpop.f32.mrb[20].mxu0 }
 0x2ca   : > { %v5476_v27 = vadd.f32 %v3403_v21, %v7101_v2  ;;  %v3405_v16 = vpop.f32.mrb[21].mxu0 }
 0x2cb   : > { %v5477_v0 = vadd.f32 %v3405_v16, %v7103_v33  ;;  %v3407_v13 = vpop.f32.mrb[22].mxu0  ;;  %4128 = vmatprep.mubr.bf16.mxu1 %v3809_v59 }
 0x2cc   : > { %v5478_v30 = vadd.f32 %v3407_v13, %v7109_v38  ;;  %v3409_v56 = vpop.f32.mrb[23].mxu0  ;;  %4129 = vmatmul.mubr.bf16.gmra.mrb[144].mxu1 %v3808_v34  ;;  %v3692_v41 = vmax.f32 %v5476_v27, 0.0 }
 0x2cd   : > { %v5479_v1 = vadd.f32 %v3409_v56, %v7117_v40  ;;  %v3693_v9 = vmax.f32 %v5477_v0, 0.0 }
 0x2ce   : > { %v3694_v24 = vmax.f32 %v5478_v30, 0.0 }
 0x2cf   : > { %v3695_v20 = vmax.f32 %v5479_v1, 0.0 }
 0x2d0   : > { %v3810_v55 = vpack.c.bf16 %v3694_v24, %v3692_v41 }
 0x2d1   : > { %v3811_v51 = vpack.c.bf16 %v3695_v20, %v3693_v9  ;;  %v3413_v4 = vpop.f32.mrb[24].mxu0 }
 0x2d2   : > { %v5480_v2 = vadd.f32 %v3413_v4, %v7119_v42  ;;  %v3415_v57 = vpop.f32.mrb[25].mxu0 }
 0x2d3   : > { %v5481_v33 = vadd.f32 %v3415_v57, %v7121_v7  ;;  %v3417_v37 = vpop.f32.mrb[26].mxu0  ;;  %4138 = vmatprep.mubr.bf16.mxu1 %v3811_v51 }
 0x2d4   : > { %v5482_v38 = vadd.f32 %v3417_v37, %v7127_v10  ;;  %v3419_v28 = vpop.f32.mrb[27].mxu0  ;;  %4139 = vmatmul.mubr.bf16.gmra.mrb[148].mxu1 %v3810_v55  ;;  %v3696_v47 = vmax.f32 %v5480_v2, 0.0 }
 0x2d5   : > { %v5483_v40 = vadd.f32 %v3419_v28, %v7135_v49  ;;  %v3697_v34 = vmax.f32 %v5481_v33, 0.0 }
 0x2d6   : > { %v3698_v58 = vmax.f32 %v5482_v38, 0.0 }
 0x2d7   : > { %v3699_v59 = vmax.f32 %v5483_v40, 0.0 }
 0x2d8   : > { %v3812_v21 = vpack.c.bf16 %v3698_v58, %v3696_v47 }
 0x2d9   : > { %v3813_v27 = vpack.c.bf16 %v3699_v59, %v3697_v34  ;;  %v3423_v16 = vpop.f32.mrb[28].mxu0 }
 0x2da   : > { %v5484_v42 = vadd.f32 %v3423_v16, %v7137_v12  ;;  %v3425_v0 = vpop.f32.mrb[29].mxu0 }
 0x2db   : > { %v5485_v7 = vadd.f32 %v3425_v0, %v7139_v50  ;;  %v3427_v13 = vpop.f32.mrb[30].mxu0  ;;  %4148 = vmatprep.mubr.bf16.mxu1 %v3813_v27 }
 0x2dc   : > { %v5486_v10 = vadd.f32 %v3427_v13, %v7145_v19  ;;  %v3429_v30 = vpop.f32.mrb[31].mxu0  ;;  %4149 = vmatmul.mubr.bf16.gmra.mrb[152].mxu1 %v3812_v21  ;;  %v3700_v56 = vmax.f32 %v5484_v42, 0.0 }
 0x2dd   : > { %v5487_v49 = vadd.f32 %v3429_v30, %v7153_v35  ;;  %v3701_v41 = vmax.f32 %v5485_v7, 0.0 }
 0x2de   : > { %v3702_v1 = vmax.f32 %v5486_v10, 0.0 }
 0x2df   : > { %v3703_v24 = vmax.f32 %v5487_v49, 0.0 }
 0x2e0   : > { %v3814_v9 = vpack.c.bf16 %v3702_v1, %v3700_v56 }
 0x2e1   : > { %v3815_v20 = vpack.c.bf16 %v3703_v24, %v3701_v41  ;;  %v3433_v55 = vpop.f32.mrb[32].mxu0 }
 0x2e2   : > { %v5488_v12 = vadd.f32 %v3433_v55, %v7155_v36  ;;  %v3435_v51 = vpop.f32.mrb[33].mxu0 }
 0x2e3   : > { %v5489_v50 = vadd.f32 %v3435_v51, %v7157_v39  ;;  %v3437_v4 = vpop.f32.mrb[34].mxu0  ;;  %4158 = vmatprep.mubr.bf16.mxu1 %v3815_v20 }
 0x2e4   : > { %v5490_v19 = vadd.f32 %v3437_v4, %v7163_v60  ;;  %v3439_v2 = vpop.f32.mrb[35].mxu0  ;;  %4159 = vmatmul.mubr.bf16.gmra.mrb[156].mxu1 %v3814_v9  ;;  %v3704_v57 = vmax.f32 %v5488_v12, 0.0 }
 0x2e5   : > { %v5491_v35 = vadd.f32 %v3439_v2, %v7171_v63  ;;  %v3705_v37 = vmax.f32 %v5489_v50, 0.0 }
 0x2e6   : > { %v3706_v33 = vmax.f32 %v5490_v19, 0.0 }
 0x2e7   : > { %v3707_v38 = vmax.f32 %v5491_v35, 0.0 }
 0x2e8   : > { %v3816_v28 = vpack.c.bf16 %v3706_v33, %v3704_v57 }
 0x2e9   : > { %v3817_v40 = vpack.c.bf16 %v3707_v38, %v3705_v37  ;;  %v3443_v47 = vpop.f32.mrb[36].mxu0  ;;  %v7777_v38 = vld [vmem:[#allocation2_spill] sm:$0xff] }
 0x2ea   : > { %v5492_v36 = vadd.f32 %v3443_v47, %v7173_v23  ;;  %v3445_v58 = vpop.f32.mrb[37].mxu0 }
 0x2eb   : > { %v5493_v39 = vadd.f32 %v3445_v58, %v7175_v25  ;;  %v3447_v34 = vpop.f32.mrb[38].mxu0  ;;  %4168 = vmatprep.mubr.bf16.mxu1 %v3817_v40  ;;  %v7778_v40 = vld [vmem:[#allocation3_spill] sm:$0xff] }
 0x2ec   : > { %v5494_v60 = vadd.f32 %v3447_v34, %v7180_v3  ;;  %v3449_v59 = vpop.f32.mrb[39].mxu0  ;;  %4169 = vmatmul.mubr.bf16.gmra.mrb[160].mxu1 %v3816_v28  ;;  %v3708_v21 = vmax.f32 %v5492_v36, 0.0  ;;  %v7779_v36 = vld [vmem:[#allocation4_spill] sm:$0xff] }
 0x2ed   : > { %v5495_v63 = vadd.f32 %v3449_v59, %v7189_v6  ;;  %v3709_v16 = vmax.f32 %v5493_v39, 0.0  ;;  %v7780_v39 = vld [vmem:[#allocation5_spill] sm:$0xff] }
 0x2ee   : > { %v3710_v27 = vmax.f32 %v5494_v60, 0.0 }
 0x2ef   : > { %v3711_v42 = vmax.f32 %v5495_v63, 0.0 }
 0x2f0   : > { %v3818_v0 = vpack.c.bf16 %v3710_v27, %v3708_v21 }
 0x2f1   : > { %v3819_v7 = vpack.c.bf16 %v3711_v42, %v3709_v16  ;;  %v3453_v13 = vpop.f32.mrb[40].mxu0  ;;  %v7781_v42 = vld [vmem:[#allocation6_spill] sm:$0xff] }
 0x2f2   : > { %v5496_v23 = vadd.f32 %v3453_v13, %v7191_v44  ;;  %v3455_v10 = vpop.f32.mrb[41].mxu0  ;;  %v7782_v13 = vld [vmem:[#allocation7_spill] sm:$0xff] }
 0x2f3   : > { %v5497_v25 = vadd.f32 %v3455_v10, %v7193_v8  ;;  %v3457_v30 = vpop.f32.mrb[42].mxu0  ;;  %4178 = vmatprep.mubr.bf16.mxu1 %v3819_v7 }
 0x2f4   : > { %v5498_v3 = vadd.f32 %v3457_v30, %v7198_v11  ;;  %v3459_v49 = vpop.f32.mrb[43].mxu0  ;;  %4179 = vmatmul.mubr.bf16.gmra.mrb[164].mxu1 %v3818_v0  ;;  %v3712_v56 = vmax.f32 %v5496_v23, 0.0 }
 0x2f5   : > { %v5499_v6 = vadd.f32 %v3459_v49, %v7207_v17  ;;  %v3713_v41 = vmax.f32 %v5497_v25, 0.0  ;;  %v7783_v25 = vld [vmem:[#allocation8_spill] sm:$0xff]  ;;  %v7784_v49 = vld [vmem:[#allocation9_spill] sm:$0xff] }
 0x2f6   : > { %v3714_v1 = vmax.f32 %v5498_v3, 0.0 }
 0x2f7   : > { %v3715_v24 = vmax.f32 %v5499_v6, 0.0 }
 0x2f8   : > { %v3820_v9 = vpack.c.bf16 %v3714_v1, %v3712_v56 }
 0x2f9   : > { %v3821_v20 = vpack.c.bf16 %v3715_v24, %v3713_v41  ;;  %v3463_v55 = vpop.f32.mrb[44].mxu0 }
 0x2fa   : > { %v5500_v44 = vadd.f32 %v3463_v55, %v7209_v18  ;;  %v3465_v12 = vpop.f32.mrb[45].mxu0 }
 0x2fb   : > { %v5501_v8 = vadd.f32 %v3465_v12, %v7211_v22  ;;  %v3467_v51 = vpop.f32.mrb[46].mxu0  ;;  %4188 = vmatprep.mubr.bf16.mxu1 %v3821_v20 }
 0x2fc   : > { %v5502_v11 = vadd.f32 %v3467_v51, %v7216_v54  ;;  %v3469_v50 = vpop.f32.mrb[47].mxu0  ;;  %4189 = vmatmul.mubr.bf16.gmra.mrb[168].mxu1 %v3820_v9  ;;  %v3716_v4 = vmax.f32 %v5500_v44, 0.0  ;;  %v7785_v44 = vld [vmem:[#allocation10_spill] sm:$0xff]  ;;  %v7786_v51 = vld [vmem:[#allocation11_spill] sm:$0xff] }
 0x2fd   : > { %v5503_v17 = vadd.f32 %v3469_v50, %v7225_v62  ;;  %v3717_v2 = vmax.f32 %v5501_v8, 0.0 }
 0x2fe   : > { %v3718_v19 = vmax.f32 %v5502_v11, 0.0 }
 0x2ff   : > { %v3719_v35 = vmax.f32 %v5503_v17, 0.0  ;;  %v7787_v17 = vld [vmem:[#allocation12_spill] sm:$0xff] }
 0x300   : > { %v3822_v57 = vpack.c.bf16 %v3718_v19, %v3716_v4 }
 0x301   : > { %v3823_v33 = vpack.c.bf16 %v3719_v35, %v3717_v2  ;;  %v3473_v37 = vpop.f32.mrb[48].mxu0  ;;  %v7788_v2 = vld [vmem:[#allocation13_spill] sm:$0xff] }
 0x302   : > { %v5504_v18 = vadd.f32 %v3473_v37, %v7777_v38  ;;  %v3475_v28 = vpop.f32.mrb[49].mxu0 }
 0x303   : > { %v5505_v22 = vadd.f32 %v3475_v28, %v7778_v40  ;;  %v3477_v47 = vpop.f32.mrb[50].mxu0  ;;  %4198 = vmatprep.mubr.bf16.mxu1 %v3823_v33 }
 0x304   : > { %v5506_v54 = vadd.f32 %v3477_v47, %v7779_v36  ;;  %v3479_v58 = vpop.f32.mrb[51].mxu0  ;;  %4199 = vmatmul.mubr.bf16.gmra.mrb[172].mxu1 %v3822_v57  ;;  %v3720_v34 = vmax.f32 %v5504_v18, 0.0 }
 0x305   : > { %v5507_v62 = vadd.f32 %v3479_v58, %v7780_v39  ;;  %v3721_v59 = vmax.f32 %v5505_v22, 0.0  ;;  %v7789_v22 = vld [vmem:[#allocation14_spill] sm:$0xff] }
 0x306   : > { %v3722_v60 = vmax.f32 %v5506_v54, 0.0  ;;  %v7790_v54 = vld [vmem:[#allocation15_spill] sm:$0xff] }
 0x307   : > { %v3723_v63 = vmax.f32 %v5507_v62, 0.0  ;;  %v7791_v62 = vld [vmem:[#allocation16_spill] sm:$0xff] }
 0x308   : > { %v3824_v21 = vpack.c.bf16 %v3722_v60, %v3720_v34 }
 0x309   : > { %v3825_v27 = vpack.c.bf16 %v3723_v63, %v3721_v59  ;;  %v3483_v16 = vpop.f32.mrb[52].mxu0  ;;  %v7792_v59 = vld [vmem:[#allocation17_spill] sm:$0xff] }
 0x30a   : > { %v5508_v0 = vadd.f32 %v3483_v16, %v7781_v42  ;;  %v3485_v7 = vpop.f32.mrb[53].mxu0 }
 0x30b   : > { %v5509_v23 = vadd.f32 %v3485_v7, %v7782_v13  ;;  %v3487_v10 = vpop.f32.mrb[54].mxu0  ;;  %4208 = vmatprep.mubr.bf16.mxu1 %v3825_v27 }
 0x30c   : > { %v5510_v30 = vadd.f32 %v3487_v10, %v7783_v25  ;;  %v3489_v3 = vpop.f32.mrb[55].mxu0  ;;  %4209 = vmatmul.mubr.bf16.gmra.mrb[176].mxu1 %v3824_v21  ;;  %v3724_v56 = vmax.f32 %v5508_v0, 0.0 }
 0x30d   : > { %v5511_v6 = vadd.f32 %v3489_v3, %v7784_v49  ;;  %v3725_v41 = vmax.f32 %v5509_v23, 0.0  ;;  %v7793_v23 = vld [vmem:[#allocation18_spill] sm:$0xff] }
 0x30e   : > { %v3726_v1 = vmax.f32 %v5510_v30, 0.0  ;;  %v7794_v30 = vld [vmem:[#allocation19_spill] sm:$0xff] }
 0x30f   : > { %v3727_v24 = vmax.f32 %v5511_v6, 0.0  ;;  %v7795_v6 = vld [vmem:[#allocation20_spill] sm:$0xff] }
 0x310   : > { %v3826_v9 = vpack.c.bf16 %v3726_v1, %v3724_v56 }
 0x311   : > { %v3827_v20 = vpack.c.bf16 %v3727_v24, %v3725_v41  ;;  %v3493_v55 = vpop.f32.mrb[56].mxu0  ;;  %v7796_v41 = vld [vmem:[#allocation21_spill] sm:$0xff] }
 0x312   : > { %v5512_v12 = vadd.f32 %v3493_v55, %v7785_v44  ;;  %v3495_v8 = vpop.f32.mrb[57].mxu0 }
 0x313   : > { %v5513_v11 = vadd.f32 %v3495_v8, %v7786_v51  ;;  %v3497_v50 = vpop.f32.mrb[58].mxu0  ;;  %4218 = vmatprep.mubr.bf16.mxu1 %v3827_v20 }
 0x314   : > { %v5514_v4 = vadd.f32 %v3497_v50, %v7787_v17  ;;  %v3499_v19 = vpop.f32.mrb[59].mxu0  ;;  %4219 = vmatmul.mubr.bf16.gmra.mrb[180].mxu1 %v3826_v9  ;;  %v3728_v57 = vmax.f32 %v5512_v12, 0.0 }
 0x315   : > { %v5515_v35 = vadd.f32 %v3499_v19, %v7788_v2  ;;  %v3729_v37 = vmax.f32 %v5513_v11, 0.0  ;;  %v7797_v11 = vld [vmem:[#allocation22_spill] sm:$0xff] }
 0x316   : > { %v3730_v33 = vmax.f32 %v5514_v4, 0.0  ;;  %v7798_v4 = vld [vmem:[#allocation23_spill] sm:$0xff] }
 0x317   : > { %v3731_v38 = vmax.f32 %v5515_v35, 0.0  ;;  %v7799_v35 = vld [vmem:[#allocation24_spill] sm:$0xff] }
 0x318   : > { %v3828_v18 = vpack.c.bf16 %v3730_v33, %v3728_v57 }
 0x319   : > { %v3829_v28 = vpack.c.bf16 %v3731_v38, %v3729_v37  ;;  %v3503_v40 = vpop.f32.mrb[60].mxu0  ;;  %v7800_v37 = vld [vmem:[#allocation25_spill] sm:$0xff] }
 0x31a   : > { %v5516_v47 = vadd.f32 %v3503_v40, %v7789_v22  ;;  %v3505_v36 = vpop.f32.mrb[61].mxu0 }
 0x31b   : > { %v5517_v58 = vadd.f32 %v3505_v36, %v7790_v54  ;;  %v3507_v39 = vpop.f32.mrb[62].mxu0  ;;  %4228 = vmatprep.mubr.bf16.mxu1 %v3829_v28 }
 0x31c   : > { %v5518_v34 = vadd.f32 %v3507_v39, %v7791_v62  ;;  %v3509_v60 = vpop.f32.mrb[63].mxu0  ;;  %4229 = vmatmul.mubr.bf16.gmra.mrb[184].mxu1 %v3828_v18  ;;  %v3732_v21 = vmax.f32 %v5516_v47, 0.0 }
 0x31d   : > { %v5519_v63 = vadd.f32 %v3509_v60, %v7792_v59  ;;  %v3733_v16 = vmax.f32 %v5517_v58, 0.0  ;;  %v7801_v58 = vld [vmem:[#allocation26_spill] sm:$0xff] }
 0x31e   : > { %v3734_v27 = vmax.f32 %v5518_v34, 0.0  ;;  %v7802_v34 = vld [vmem:[#allocation27_spill] sm:$0xff] }
 0x31f   : > { %v3735_v42 = vmax.f32 %v5519_v63, 0.0  ;;  %v7803_v63 = vld [vmem:[#allocation28_spill] sm:$0xff] }
 0x320   : > { %v3830_v0 = vpack.c.bf16 %v3734_v27, %v3732_v21 }
 0x321   : > { %v3831_v7 = vpack.c.bf16 %v3735_v42, %v3733_v16  ;;  %v3513_v13 = vpop.f32.mrb[64].mxu0  ;;  %v7804_v16 = vld [vmem:[#allocation29_spill] sm:$0xff] }
 0x322   : > { %v5520_v10 = vadd.f32 %v3513_v13, %v7793_v23  ;;  %v3515_v25 = vpop.f32.mrb[65].mxu0 }
 0x323   : > { %v5521_v3 = vadd.f32 %v3515_v25, %v7794_v30  ;;  %v3517_v49 = vpop.f32.mrb[66].mxu0  ;;  %4238 = vmatprep.mubr.bf16.mxu1 %v3831_v7 }
 0x324   : > { %v5522_v56 = vadd.f32 %v3517_v49, %v7795_v6  ;;  %v3519_v1 = vpop.f32.mrb[67].mxu0  ;;  %4239 = vmatmul.mubr.bf16.gmra.mrb[188].mxu1 %v3830_v0  ;;  %v3736_v9 = vmax.f32 %v5520_v10, 0.0 }
 0x325   : > { %v5523_v24 = vadd.f32 %v3519_v1, %v7796_v41  ;;  %v3737_v55 = vmax.f32 %v5521_v3, 0.0  ;;  %v7805_v3 = vld [vmem:[#allocation30_spill] sm:$0xff] }
 0x326   : > { %v3738_v20 = vmax.f32 %v5522_v56, 0.0  ;;  %v7806_v56 = vld [vmem:[#allocation31_spill] sm:$0xff] }
 0x327   : > { %v3739_v44 = vmax.f32 %v5523_v24, 0.0  ;;  %v7807_v24 = vld [vmem:[#allocation32_spill] sm:$0xff] }
 0x328   : > { %v3832_v12 = vpack.c.bf16 %v3738_v20, %v3736_v9 }
 0x329   : > { %v3833_v8 = vpack.c.bf16 %v3739_v44, %v3737_v55  ;;  %v3523_v51 = vpop.f32.mrb[68].mxu0  ;;  %v7808_v55 = vld [vmem:[#allocation33_spill] sm:$0xff] }
 0x32a   : > { %v5524_v50 = vadd.f32 %v3523_v51, %v7797_v11  ;;  %v3525_v17 = vpop.f32.mrb[69].mxu0 }
 0x32b   : > { %v5525_v19 = vadd.f32 %v3525_v17, %v7798_v4  ;;  %v3527_v2 = vpop.f32.mrb[70].mxu0  ;;  %4248 = vmatprep.mubr.bf16.mxu1 %v3833_v8 }
 0x32c   : > { %v5526_v57 = vadd.f32 %v3527_v2, %v7799_v35  ;;  %v3529_v33 = vpop.f32.mrb[71].mxu0  ;;  %4249 = vmatmul.mubr.bf16.gmra.mrb[192].mxu1 %v3832_v12  ;;  %v3740_v18 = vmax.f32 %v5524_v50, 0.0 }
 0x32d   : > { %v5527_v38 = vadd.f32 %v3529_v33, %v7800_v37  ;;  %v3741_v40 = vmax.f32 %v5525_v19, 0.0  ;;  %v7809_v19 = vld [vmem:[#allocation34_spill] sm:$0xff] }
 0x32e   : > { %v3742_v28 = vmax.f32 %v5526_v57, 0.0  ;;  %v7810_v57 = vld [vmem:[#allocation35_spill] sm:$0xff] }
 0x32f   : > { %v3743_v22 = vmax.f32 %v5527_v38, 0.0  ;;  %v7811_v38 = vld [vmem:[#allocation36_spill] sm:$0xff] }
 0x330   : > { %v3834_v47 = vpack.c.bf16 %v3742_v28, %v3740_v18 }
 0x331   : > { %v3835_v36 = vpack.c.bf16 %v3743_v22, %v3741_v40  ;;  %v3533_v54 = vpop.f32.mrb[72].mxu0  ;;  %v7812_v40 = vld [vmem:[#allocation37_spill] sm:$0xff] }
 0x332   : > { %v5528_v39 = vadd.f32 %v3533_v54, %v7801_v58  ;;  %v3535_v62 = vpop.f32.mrb[73].mxu0 }
 0x333   : > { %v5529_v60 = vadd.f32 %v3535_v62, %v7802_v34  ;;  %v3537_v59 = vpop.f32.mrb[74].mxu0  ;;  %4258 = vmatprep.mubr.bf16.mxu1 %v3835_v36 }
 0x334   : > { %v5530_v21 = vadd.f32 %v3537_v59, %v7803_v63  ;;  %v3539_v27 = vpop.f32.mrb[75].mxu0  ;;  %4259 = vmatmul.mubr.bf16.gmra.mrb[196].mxu1 %v3834_v47  ;;  %v3744_v0 = vmax.f32 %v5528_v39, 0.0 }
 0x335   : > { %v5531_v42 = vadd.f32 %v3539_v27, %v7804_v16  ;;  %v3745_v13 = vmax.f32 %v5529_v60, 0.0  ;;  %v7813_v60 = vld [vmem:[#allocation38_spill] sm:$0xff] }
 0x336   : > { %v3746_v7 = vmax.f32 %v5530_v21, 0.0  ;;  %v7814_v21 = vld [vmem:[#allocation39_spill] sm:$0xff] }
 0x337   : > { %v3747_v23 = vmax.f32 %v5531_v42, 0.0  ;;  %v7815_v42 = vld [vmem:[#allocation40_spill] sm:$0xff] }
 0x338   : > { %v3836_v10 = vpack.c.bf16 %v3746_v7, %v3744_v0 }
 0x339   : > { %v3837_v25 = vpack.c.bf16 %v3747_v23, %v3745_v13  ;;  %v3543_v30 = vpop.f32.mrb[76].mxu0  ;;  %v7816_v13 = vld [vmem:[#allocation41_spill] sm:$0xff] }
 0x33a   : > { %v5532_v49 = vadd.f32 %v3543_v30, %v7805_v3  ;;  %v3545_v6 = vpop.f32.mrb[77].mxu0 }
 0x33b   : > { %v5533_v1 = vadd.f32 %v3545_v6, %v7806_v56  ;;  %v3547_v41 = vpop.f32.mrb[78].mxu0  ;;  %4268 = vmatprep.mubr.bf16.mxu1 %v3837_v25 }
 0x33c   : > { %v5534_v9 = vadd.f32 %v3547_v41, %v7807_v24  ;;  %v3549_v20 = vpop.f32.mrb[79].mxu0  ;;  %4269 = vmatmul.mubr.bf16.gmra.mrb[200].mxu1 %v3836_v10  ;;  %v3748_v12 = vmax.f32 %v5532_v49, 0.0 }
 0x33d   : > { %v5535_v44 = vadd.f32 %v3549_v20, %v7808_v55  ;;  %v3749_v51 = vmax.f32 %v5533_v1, 0.0  ;;  %v7817_v1 = vld [vmem:[#allocation42_spill] sm:$0xff] }
 0x33e   : > { %v3750_v8 = vmax.f32 %v5534_v9, 0.0  ;;  %v7818_v9 = vld [vmem:[#allocation43_spill] sm:$0xff] }
 0x33f   : > { %v3751_v11 = vmax.f32 %v5535_v44, 0.0  ;;  %v7819_v44 = vld [vmem:[#allocation44_spill] sm:$0xff] }
 0x340   : > { %v3838_v50 = vpack.c.bf16 %v3750_v8, %v3748_v12 }
 0x341   : > { %v3839_v17 = vpack.c.bf16 %v3751_v11, %v3749_v51  ;;  %v3553_v4 = vpop.f32.mrb[80].mxu0  ;;  %v7820_v51 = vld [vmem:[#allocation45_spill] sm:$0xff] }
 0x342   : > { %v5536_v2 = vadd.f32 %v3553_v4, %v7809_v19  ;;  %v3555_v35 = vpop.f32.mrb[81].mxu0 }
 0x343   : > { %v5537_v33 = vadd.f32 %v3555_v35, %v7810_v57  ;;  %v3557_v37 = vpop.f32.mrb[82].mxu0  ;;  %4278 = vmatprep.mubr.bf16.mxu1 %v3839_v17 }
 0x344   : > { %v5538_v18 = vadd.f32 %v3557_v37, %v7811_v38  ;;  %v3559_v28 = vpop.f32.mrb[83].mxu0  ;;  %4279 = vmatmul.mubr.bf16.gmra.mrb[204].mxu1 %v3838_v50  ;;  %v3752_v47 = vmax.f32 %v5536_v2, 0.0 }
 0x345   : > { %v5539_v22 = vadd.f32 %v3559_v28, %v7812_v40  ;;  %v3753_v54 = vmax.f32 %v5537_v33, 0.0  ;;  %v7821_v33 = vld [vmem:[#allocation46_spill] sm:$0xff] }
 0x346   : > { %v3754_v36 = vmax.f32 %v5538_v18, 0.0  ;;  %v7822_v18 = vld [vmem:[#allocation47_spill] sm:$0xff] }
 0x347   : > { %v3755_v58 = vmax.f32 %v5539_v22, 0.0  ;;  %v7823_v22 = vld [vmem:[#allocation48_spill] sm:$0xff] }
 0x348   : > { %v3840_v39 = vpack.c.bf16 %v3754_v36, %v3752_v47 }
 0x349   : > { %v3841_v62 = vpack.c.bf16 %v3755_v58, %v3753_v54  ;;  %v3563_v34 = vpop.f32.mrb[84].mxu0  ;;  %v7824_v54 = vld [vmem:[#allocation49_spill] sm:$0xff] }
 0x34a   : > { %v5540_v59 = vadd.f32 %v3563_v34, %v7813_v60  ;;  %v3565_v63 = vpop.f32.mrb[85].mxu0 }
 0x34b   : > { %v5541_v27 = vadd.f32 %v3565_v63, %v7814_v21  ;;  %v3567_v16 = vpop.f32.mrb[86].mxu0  ;;  %4288 = vmatprep.mubr.bf16.mxu1 %v3841_v62 }
 0x34c   : > { %v5542_v0 = vadd.f32 %v3567_v16, %v7815_v42  ;;  %v3569_v7 = vpop.f32.mrb[87].mxu0  ;;  %4289 = vmatmul.mubr.bf16.gmra.mrb[208].mxu1 %v3840_v39  ;;  %v3756_v10 = vmax.f32 %v5540_v59, 0.0 }
 0x34d   : > { %v5543_v23 = vadd.f32 %v3569_v7, %v7816_v13  ;;  %v3757_v30 = vmax.f32 %v5541_v27, 0.0  ;;  %v7825_v27 = vld [vmem:[#allocation50_spill] sm:$0xff] }
 0x34e   : > { %v3758_v25 = vmax.f32 %v5542_v0, 0.0  ;;  %v7826_v0 = vld [vmem:[#allocation51_spill] sm:$0xff] }
 0x34f   : > { %v3759_v3 = vmax.f32 %v5543_v23, 0.0  ;;  %v7827_v23 = vld [vmem:[#allocation52_spill] sm:$0xff] }
 0x350   : > { %v3842_v49 = vpack.c.bf16 %v3758_v25, %v3756_v10 }
 0x351   : > { %v3843_v6 = vpack.c.bf16 %v3759_v3, %v3757_v30  ;;  %v3573_v56 = vpop.f32.mrb[88].mxu0  ;;  %v7828_v30 = vld [vmem:[#allocation53_spill] sm:$0xff] }
 0x352   : > { %v5544_v41 = vadd.f32 %v3573_v56, %v7817_v1  ;;  %v3575_v24 = vpop.f32.mrb[89].mxu0 }
 0x353   : > { %v5545_v20 = vadd.f32 %v3575_v24, %v7818_v9  ;;  %v3577_v55 = vpop.f32.mrb[90].mxu0  ;;  %4298 = vmatprep.mubr.bf16.mxu1 %v3843_v6 }
 0x354   : > { %v5546_v12 = vadd.f32 %v3577_v55, %v7819_v44  ;;  %v3579_v8 = vpop.f32.mrb[91].mxu0  ;;  %4299 = vmatmul.mubr.bf16.gmra.mrb[212].mxu1 %v3842_v49  ;;  %v3760_v50 = vmax.f32 %v5544_v41, 0.0 }
 0x355   : > { %v5547_v11 = vadd.f32 %v3579_v8, %v7820_v51  ;;  %v3761_v4 = vmax.f32 %v5545_v20, 0.0  ;;  %v7829_v20 = vld [vmem:[#allocation54_spill] sm:$0xff] }
 0x356   : > { %v3762_v17 = vmax.f32 %v5546_v12, 0.0  ;;  %v7830_v12 = vld [vmem:[#allocation55_spill] sm:$0xff] }
 0x357   : > { %v3763_v19 = vmax.f32 %v5547_v11, 0.0  ;;  %v7831_v11 = vld [vmem:[#allocation56_spill] sm:$0xff] }
 0x358   : > { %v3844_v2 = vpack.c.bf16 %v3762_v17, %v3760_v50 }
 0x359   : > { %v3845_v35 = vpack.c.bf16 %v3763_v19, %v3761_v4  ;;  %v3583_v57 = vpop.f32.mrb[92].mxu0  ;;  %v7832_v4 = vld [vmem:[#allocation57_spill] sm:$0xff] }
 0x35a   : > { %v5548_v37 = vadd.f32 %v3583_v57, %v7821_v33  ;;  %v3585_v38 = vpop.f32.mrb[93].mxu0 }
 0x35b   : > { %v5549_v28 = vadd.f32 %v3585_v38, %v7822_v18  ;;  %v3587_v40 = vpop.f32.mrb[94].mxu0  ;;  %4308 = vmatprep.mubr.bf16.mxu1 %v3845_v35 }
 0x35c   : > { %v5550_v47 = vadd.f32 %v3587_v40, %v7823_v22  ;;  %v3589_v36 = vpop.f32.mrb[95].mxu0  ;;  %4309 = vmatmul.mubr.bf16.gmra.mrb[216].mxu1 %v3844_v2  ;;  %v3764_v39 = vmax.f32 %v5548_v37, 0.0 }
 0x35d   : > { %v5551_v58 = vadd.f32 %v3589_v36, %v7824_v54  ;;  %v3765_v34 = vmax.f32 %v5549_v28, 0.0  ;;  %v7833_v28 = vld [vmem:[#allocation58_spill] sm:$0xff] }
 0x35e   : > { %v3766_v62 = vmax.f32 %v5550_v47, 0.0  ;;  %v7834_v47 = vld [vmem:[#allocation59_spill] sm:$0xff] }
 0x35f   : > { %v3767_v60 = vmax.f32 %v5551_v58, 0.0  ;;  %v7835_v58 = vld [vmem:[#allocation60_spill] sm:$0xff] }
 0x360   : > { %v3846_v59 = vpack.c.bf16 %v3766_v62, %v3764_v39 }
 0x361   : > { %v3847_v63 = vpack.c.bf16 %v3767_v60, %v3765_v34  ;;  %v3593_v21 = vpop.f32.mrb[96].mxu0  ;;  %v7836_v34 = vld [vmem:[#allocation61_spill] sm:$0xff] }
 0x362   : > { %v5552_v16 = vadd.f32 %v3593_v21, %v7825_v27  ;;  %v3595_v42 = vpop.f32.mrb[97].mxu0 }
 0x363   : > { %v5553_v7 = vadd.f32 %v3595_v42, %v7826_v0  ;;  %v3597_v13 = vpop.f32.mrb[98].mxu0  ;;  %4318 = vmatprep.mubr.bf16.mxu1 %v3847_v63 }
 0x364   : > { %v5554_v10 = vadd.f32 %v3597_v13, %v7827_v23  ;;  %v3599_v25 = vpop.f32.mrb[99].mxu0  ;;  %4319 = vmatmul.mubr.bf16.gmra.mrb[220].mxu1 %v3846_v59  ;;  %v3768_v49 = vmax.f32 %v5552_v16, 0.0 }
 0x365   : > { %v5555_v3 = vadd.f32 %v3599_v25, %v7828_v30  ;;  %v3769_v56 = vmax.f32 %v5553_v7, 0.0  ;;  %v7837_v7 = vld [vmem:[#allocation62_spill] sm:$0xff] }
 0x366   : > { %v3770_v6 = vmax.f32 %v5554_v10, 0.0  ;;  %v7838_v10 = vld [vmem:[#allocation63_spill] sm:$0xff] }
 0x367   : > { %v3771_v1 = vmax.f32 %v5555_v3, 0.0  ;;  %v7839_v3 = vld [vmem:[#allocation64_spill] sm:$0xff] }
 0x368   : > { %v3848_v41 = vpack.c.bf16 %v3770_v6, %v3768_v49 }
 0x369   : > { %v3849_v24 = vpack.c.bf16 %v3771_v1, %v3769_v56  ;;  %v3603_v9 = vpop.f32.mrb[100].mxu0  ;;  %v7840_v56 = vld [vmem:[#allocation65_spill] sm:$0xff] }
 0x36a   : > { %v5556_v55 = vadd.f32 %v3603_v9, %v7829_v20  ;;  %v3605_v44 = vpop.f32.mrb[101].mxu0 }
 0x36b   : > { %v5557_v8 = vadd.f32 %v3605_v44, %v7830_v12  ;;  %v3607_v51 = vpop.f32.mrb[102].mxu0  ;;  %4328 = vmatprep.mubr.bf16.mxu1 %v3849_v24 }
 0x36c   : > { %v5558_v50 = vadd.f32 %v3607_v51, %v7831_v11  ;;  %v3609_v17 = vpop.f32.mrb[103].mxu0  ;;  %4329 = vmatmul.mubr.bf16.gmra.mrb[224].mxu1 %v3848_v41  ;;  %v3772_v2 = vmax.f32 %v5556_v55, 0.0 }
 0x36d   : > { %v5559_v19 = vadd.f32 %v3609_v17, %v7832_v4  ;;  %v3773_v57 = vmax.f32 %v5557_v8, 0.0  ;;  %v7841_v17 = vld [vmem:[#allocation66_spill] sm:$0xff] }
 0x36e   : > { %v3774_v35 = vmax.f32 %v5558_v50, 0.0 }
 0x36f   : > { %v3775_v33 = vmax.f32 %v5559_v19, 0.0 }
 0x370   : > { %v3850_v37 = vpack.c.bf16 %v3774_v35, %v3772_v2  ;;  %v7842_v35 = vld [vmem:[#allocation67_spill] sm:$0xff] }
 0x371   : > { %v3851_v38 = vpack.c.bf16 %v3775_v33, %v3773_v57  ;;  %v3613_v18 = vpop.f32.mrb[104].mxu0 }
 0x372   : > { %v5560_v40 = vadd.f32 %v3613_v18, %v7833_v28  ;;  %v3615_v22 = vpop.f32.mrb[105].mxu0 }
 0x373   : > { %v5561_v36 = vadd.f32 %v3615_v22, %v7834_v47  ;;  %v3617_v54 = vpop.f32.mrb[106].mxu0  ;;  %4338 = vmatprep.mubr.bf16.mxu1 %v3851_v38 }
 0x374   : > { %v5562_v39 = vadd.f32 %v3617_v54, %v7835_v58  ;;  %v3619_v62 = vpop.f32.mrb[107].mxu0  ;;  %4339 = vmatmul.mubr.bf16.gmra.mrb[228].mxu1 %v3850_v37  ;;  %v3776_v59 = vmax.f32 %v5560_v40, 0.0 }
 0x375   : > { %v5563_v60 = vadd.f32 %v3619_v62, %v7836_v34  ;;  %v3777_v21 = vmax.f32 %v5561_v36, 0.0 }
 0x376   : > { %v3778_v63 = vmax.f32 %v5562_v39, 0.0 }
 0x377   : > { %v3779_v27 = vmax.f32 %v5563_v60, 0.0 }
 0x378   : > { %v3852_v16 = vpack.c.bf16 %v3778_v63, %v3776_v59 }
 0x379   : > { %v3853_v42 = vpack.c.bf16 %v3779_v27, %v3777_v21  ;;  %v3623_v0 = vpop.f32.mrb[108].mxu0 }
 0x37a   : > { %v5564_v13 = vadd.f32 %v3623_v0, %v7837_v7  ;;  %v3625_v23 = vpop.f32.mrb[109].mxu0 }
 0x37b   : > { %v5565_v25 = vadd.f32 %v3625_v23, %v7838_v10  ;;  %v3627_v30 = vpop.f32.mrb[110].mxu0  ;;  %4348 = vmatprep.mubr.bf16.mxu1 %v3853_v42 }
 0x37c   : > { %v5566_v49 = vadd.f32 %v3627_v30, %v7839_v3  ;;  %v3629_v6 = vpop.f32.mrb[111].mxu0  ;;  %4349 = vmatmul.mubr.bf16.gmra.mrb[232].mxu1 %v3852_v16  ;;  %v3780_v41 = vmax.f32 %v5564_v13, 0.0 }
 0x37d   : > { %v5567_v1 = vadd.f32 %v3629_v6, %v7840_v56  ;;  %v3781_v9 = vmax.f32 %v5565_v25, 0.0 }
 0x37e   : > { %v3782_v24 = vmax.f32 %v5566_v49, 0.0 }
 0x37f   : > { %v3783_v20 = vmax.f32 %v5567_v1, 0.0  ;;  %v4090_v55 = vpop.f32.mrb[128].mxu1 }
 0x380   : > { %v3854_v44 = vpack.c.bf16 %v3782_v24, %v3780_v41  ;;  %v4092_v12 = vpop.f32.mrb[129].mxu1 }
 0x381   : > { %v3855_v8 = vpack.c.bf16 %v3783_v20, %v3781_v9  ;;  %v5360_v51 = vpack.c.bf16 %v4092_v12, %v4090_v55  ;;  %v3633_v11 = vpop.f32.mrb[112].mxu0  ;;  %v4094_v50 = vpop.f32.mrb[130].mxu1 }
 0x382   : > { %v5568_v4 = vadd.f32 %v3633_v11, %v7841_v17  ;;  %v3635_v19 = vpop.f32.mrb[113].mxu0  ;;  %v4096_v2 = vpop.f32.mrb[131].mxu1 }
 0x383   : > { %4793 = vst [vmem:[%s7619_s19] sm:$0xff] %v5360_v51  ;;  %v5569_v57 = vadd.f32 %v3635_v19, %v7842_v35  ;;  %v5361_v33 = vpack.c.bf16 %v4096_v2, %v4094_v50  ;;  %v3637_v37 = vpop.f32.mrb[114].mxu0  ;;  %4358 = vmatprep.mubr.bf16.mxu1 %v3855_v8 }
 0x384   : > { %v5570_v38 = vadd.f32 %v3637_v37, %v7471_v32  ;;  %v3639_v18 = vpop.f32.mrb[115].mxu0  ;;  %4359 = vmatmul.mubr.bf16.gmra.mrb[236].mxu1 %v3854_v44  ;;  %v3784_v40 = vmax.f32 %v5568_v4, 0.0 }
 0x385   : > { %4794 = vst [vmem:[%s7619_s19 + $0x8] sm:$0xff] %v5361_v33  ;;  %v5571_v28 = vadd.f32 %v3639_v18, %v7473_v15  ;;  %v3785_v47 = vmax.f32 %v5569_v57, 0.0 }
 0x386   : > { %v3786_v22 = vmax.f32 %v5570_v38, 0.0 }
 0x387   : > { %v3787_v36 = vmax.f32 %v5571_v28, 0.0  ;;  %v4100_v54 = vpop.f32.mrb[132].mxu1 }
 0x388   : > { %v3856_v58 = vpack.c.bf16 %v3786_v22, %v3784_v40  ;;  %v4102_v39 = vpop.f32.mrb[133].mxu1 }
 0x389   : > { %v3857_v62 = vpack.c.bf16 %v3787_v36, %v3785_v47  ;;  %v5362_v34 = vpack.c.bf16 %v4102_v39, %v4100_v54  ;;  %v3643_v60 = vpop.f32.mrb[116].mxu0  ;;  %v4104_v59 = vpop.f32.mrb[134].mxu1 }
 0x38a   : > { %v5572_v32 = vadd.f32 %v3643_v60, %v7479_v61  ;;  %v3645_v63 = vpop.f32.mrb[117].mxu0  ;;  %v4106_v21 = vpop.f32.mrb[135].mxu1 }
 0x38b   : > { %4795 = vst [vmem:[%s7619_s19 + $0x10] sm:$0xff] %v5362_v34  ;;  %v5573_v27 = vadd.f32 %v3645_v63, %v7482_v53  ;;  %v5363_v15 = vpack.c.bf16 %v4106_v21, %v4104_v59  ;;  %v3647_v16 = vpop.f32.mrb[118].mxu0  ;;  %4368 = vmatprep.mubr.bf16.mxu1 %v3857_v62 }
 0x38c   : > { %v5574_v42 = vadd.f32 %v3647_v16, %v7485_v46  ;;  %v3649_v0 = vpop.f32.mrb[119].mxu0  ;;  %4369 = vmatmul.mubr.bf16.gmra.mrb[240].mxu1 %v3856_v58  ;;  %v3788_v13 = vmax.f32 %v5572_v32, 0.0 }
 0x38d   : > { %4796 = vst [vmem:[%s7619_s19 + $0x18] sm:$0xff] %v5363_v15  ;;  %v5575_v7 = vadd.f32 %v3649_v0, %v7487_v5  ;;  %v3789_v10 = vmax.f32 %v5573_v27, 0.0 }
 0x38e   : > { %v3790_v23 = vmax.f32 %v5574_v42, 0.0 }
 0x38f   : > { %v3791_v61 = vmax.f32 %v5575_v7, 0.0  ;;  %v4110_v25 = vpop.f32.mrb[136].mxu1 }
 0x390   : > { %v3858_v30 = vpack.c.bf16 %v3790_v23, %v3788_v13  ;;  %v4112_v3 = vpop.f32.mrb[137].mxu1 }
 0x391   : > { %v3859_v53 = vpack.c.bf16 %v3791_v61, %v3789_v10  ;;  %v5364_v49 = vpack.c.bf16 %v4112_v3, %v4110_v25  ;;  %v3653_v6 = vpop.f32.mrb[120].mxu0  ;;  %v4114_v56 = vpop.f32.mrb[138].mxu1 }
 0x392   : > { %v5576_v46 = vadd.f32 %v3653_v6, %v7493_v14  ;;  %v3655_v1 = vpop.f32.mrb[121].mxu0  ;;  %v4116_v41 = vpop.f32.mrb[139].mxu1 }
 0x393   : > { %4797 = vst [vmem:[%s7619_s19 + $0x20] sm:$0xff] %v5364_v49  ;;  %v5577_v24 = vadd.f32 %v3655_v1, %v7496_v26  ;;  %v5365_v5 = vpack.c.bf16 %v4116_v41, %v4114_v56  ;;  %v3657_v9 = vpop.f32.mrb[122].mxu0  ;;  %4378 = vmatprep.mubr.bf16.mxu1 %v3859_v53 }
 0x394   : > { %v5578_v20 = vadd.f32 %v3657_v9, %v7499_v29  ;;  %v3659_v55 = vpop.f32.mrb[123].mxu0  ;;  %4379 = vmatmul.mubr.bf16.gmra.mrb[244].mxu1 %v3858_v30  ;;  %v3792_v12 = vmax.f32 %v5576_v46, 0.0 }
 0x395   : > { %4798 = vst [vmem:[%s7619_s19 + $0x28] sm:$0xff] %v5365_v5  ;;  %v5579_v44 = vadd.f32 %v3659_v55, %v7501_v31  ;;  %v3793_v51 = vmax.f32 %v5577_v24, 0.0 }
 0x396   : > { %v3794_v8 = vmax.f32 %v5578_v20, 0.0 }
 0x397   : > { %v3795_v14 = vmax.f32 %v5579_v44, 0.0  ;;  %v4120_v11 = vpop.f32.mrb[140].mxu1 }
 0x398   : > { %v3860_v50 = vpack.c.bf16 %v3794_v8, %v3792_v12  ;;  %v4122_v17 = vpop.f32.mrb[141].mxu1 }
 0x399   : > { %v3861_v26 = vpack.c.bf16 %v3795_v14, %v3793_v51  ;;  %v5366_v4 = vpack.c.bf16 %v4122_v17, %v4120_v11  ;;  %v3663_v19 = vpop.f32.mrb[124].mxu0  ;;  %v4124_v2 = vpop.f32.mrb[142].mxu1 }
 0x39a   : > { %v5580_v29 = vadd.f32 %v3663_v19, %v7507_v48  ;;  %v3665_v35 = vpop.f32.mrb[125].mxu0  ;;  %v4126_v57 = vpop.f32.mrb[143].mxu1 }
 0x39b   : > { %4799 = vst [vmem:[%s7619_s19 + $0x30] sm:$0xff] %v5366_v4  ;;  %v5581_v33 = vadd.f32 %v3665_v35, %v7510_v52  ;;  %v5367_v31 = vpack.c.bf16 %v4126_v57, %v4124_v2  ;;  %v3667_v37 = vpop.f32.mrb[126].mxu0  ;;  %4388 = vmatprep.mubr.bf16.mxu1 %v3861_v26 }
 0x39c   : > { %v5582_v38 = vadd.f32 %v3667_v37, %v7513_v43  ;;  %v3669_v18 = vpop.f32.mrb[127].mxu0  ;;  %4389 = vmatmul.mubr.bf16.gmra.mrb[248].mxu1 %v3860_v50  ;;  %v3796_v40 = vmax.f32 %v5580_v29, 0.0 }
 0x39d   : > { %4800 = vst [vmem:[%s7619_s19 + $0x38] sm:$0xff] %v5367_v31  ;;  %v5583_v28 = vadd.f32 %v3669_v18, %v7515_v45  ;;  %v3797_v48 = vmax.f32 %v5581_v33, 0.0 }
 0x39e   : > { %v3798_v22 = vmax.f32 %v5582_v38, 0.0 }
 0x39f   : > { %v3799_v47 = vmax.f32 %v5583_v28, 0.0  ;;  %v4130_v36 = vpop.f32.mrb[144].mxu1 }
 0x3a0   : > { %v3862_v54 = vpack.c.bf16 %v3798_v22, %v3796_v40  ;;  %v4132_v52 = vpop.f32.mrb[145].mxu1 }
 0x3a1   : > { %v3863_v58 = vpack.c.bf16 %v3799_v47, %v3797_v48  ;;  %v5368_v39 = vpack.c.bf16 %v4132_v52, %v4130_v36  ;;  %v4134_v62 = vpop.f32.mrb[146].mxu1 }
 0x3a2   : > { %v4136_v43 = vpop.f32.mrb[147].mxu1 }
 0x3a3   : > { %4801 = vst [vmem:[%s7619_s19 + $0x40] sm:$0xff] %v5368_v39  ;;  %v5369_v34 = vpack.c.bf16 %v4136_v43, %v4134_v62  ;;  %4398 = vmatprep.mubr.bf16.mxu1 %v3863_v58 }
 0x3a4   : > { %4399 = vmatmul.mubr.bf16.gmra.mrb[252].mxu1 %v3862_v54 }
 0x3a5   : > { %4802 = vst [vmem:[%s7619_s19 + $0x48] sm:$0xff] %v5369_v34 }
 0x3a7   : > { %v4140_v45 = vpop.f32.mrb[148].mxu1 }
 0x3a8   : > { %v4142_v60 = vpop.f32.mrb[149].mxu1 }
 0x3a9   : > { %v5370_v59 = vpack.c.bf16 %v4142_v60, %v4140_v45  ;;  %v4144_v32 = vpop.f32.mrb[150].mxu1 }
 0x3aa   : > { %v4146_v63 = vpop.f32.mrb[151].mxu1 }
 0x3ab   : > { %4803 = vst [vmem:[%s7619_s19 + $0x50] sm:$0xff] %v5370_v59  ;;  %v5371_v21 = vpack.c.bf16 %v4146_v63, %v4144_v32 }
 0x3ad   : > { %4804 = vst [vmem:[%s7619_s19 + $0x58] sm:$0xff] %v5371_v21 }
 0x3af   : > { %v4150_v27 = vpop.f32.mrb[152].mxu1 }
 0x3b0   : > { %v4152_v15 = vpop.f32.mrb[153].mxu1 }
 0x3b1   : > { %v5372_v16 = vpack.c.bf16 %v4152_v15, %v4150_v27  ;;  %v4154_v42 = vpop.f32.mrb[154].mxu1 }
 0x3b2   : > { %v4156_v0 = vpop.f32.mrb[155].mxu1 }
 0x3b3   : > { %4805 = vst [vmem:[%s7619_s19 + $0x60] sm:$0xff] %v5372_v16  ;;  %v5373_v7 = vpack.c.bf16 %v4156_v0, %v4154_v42 }
 0x3b5   : > { %4806 = vst [vmem:[%s7619_s19 + $0x68] sm:$0xff] %v5373_v7 }
 0x3b7   : > { %v4160_v13 = vpop.f32.mrb[156].mxu1 }
 0x3b8   : > { %v4162_v23 = vpop.f32.mrb[157].mxu1 }
 0x3b9   : > { %v5374_v10 = vpack.c.bf16 %v4162_v23, %v4160_v13  ;;  %v4164_v61 = vpop.f32.mrb[158].mxu1 }
 0x3ba   : > { %v4166_v25 = vpop.f32.mrb[159].mxu1 }
 0x3bb   : > { %4807 = vst [vmem:[%s7619_s19 + $0x70] sm:$0xff] %v5374_v10  ;;  %v5375_v30 = vpack.c.bf16 %v4166_v25, %v4164_v61 }
 0x3bd   : > { %4808 = vst [vmem:[%s7619_s19 + $0x78] sm:$0xff] %v5375_v30 }
 0x3bf   : > { %v4170_v3 = vpop.f32.mrb[160].mxu1 }
 0x3c0   : > { %v4172_v53 = vpop.f32.mrb[161].mxu1 }
 0x3c1   : > { %v5376_v49 = vpack.c.bf16 %v4172_v53, %v4170_v3  ;;  %v4174_v6 = vpop.f32.mrb[162].mxu1 }
 0x3c2   : > { %v4176_v56 = vpop.f32.mrb[163].mxu1 }
 0x3c3   : > { %4809 = vst [vmem:[%s7619_s19 + $0x80] sm:$0xff] %v5376_v49  ;;  %v5377_v46 = vpack.c.bf16 %v4176_v56, %v4174_v6 }
 0x3c5   : > { %4810 = vst [vmem:[%s7619_s19 + $0x88] sm:$0xff] %v5377_v46 }
 0x3c7   : > { %v4180_v1 = vpop.f32.mrb[164].mxu1 }
 0x3c8   : > { %v4182_v41 = vpop.f32.mrb[165].mxu1 }
 0x3c9   : > { %v5378_v24 = vpack.c.bf16 %v4182_v41, %v4180_v1  ;;  %v4184_v5 = vpop.f32.mrb[166].mxu1 }
 0x3ca   : > { %v4186_v9 = vpop.f32.mrb[167].mxu1 }
 0x3cb   : > { %4811 = vst [vmem:[%s7619_s19 + $0x90] sm:$0xff] %v5378_v24  ;;  %v5379_v20 = vpack.c.bf16 %v4186_v9, %v4184_v5 }
 0x3cd   : > { %4812 = vst [vmem:[%s7619_s19 + $0x98] sm:$0xff] %v5379_v20 }
 0x3cf   : > { %v4190_v55 = vpop.f32.mrb[168].mxu1 }
 0x3d0   : > { %v4192_v44 = vpop.f32.mrb[169].mxu1 }
 0x3d1   : > { %v5380_v12 = vpack.c.bf16 %v4192_v44, %v4190_v55  ;;  %v4194_v8 = vpop.f32.mrb[170].mxu1 }
 0x3d2   : > { %v4196_v51 = vpop.f32.mrb[171].mxu1 }
 0x3d3   : > { %4813 = vst [vmem:[%s7619_s19 + $0xa0] sm:$0xff] %v5380_v12  ;;  %v5381_v14 = vpack.c.bf16 %v4196_v51, %v4194_v8 }
 0x3d5   : > { %4814 = vst [vmem:[%s7619_s19 + $0xa8] sm:$0xff] %v5381_v14 }
 0x3d7   : > { %v4200_v11 = vpop.f32.mrb[172].mxu1 }
 0x3d8   : > { %v4202_v50 = vpop.f32.mrb[173].mxu1 }
 0x3d9   : > { %v5382_v17 = vpack.c.bf16 %v4202_v50, %v4200_v11  ;;  %v4204_v26 = vpop.f32.mrb[174].mxu1 }
 0x3da   : > { %v4206_v4 = vpop.f32.mrb[175].mxu1 }
 0x3db   : > { %4815 = vst [vmem:[%s7619_s19 + $0xb0] sm:$0xff] %v5382_v17  ;;  %v5383_v19 = vpack.c.bf16 %v4206_v4, %v4204_v26 }
 0x3dd   : > { %4816 = vst [vmem:[%s7619_s19 + $0xb8] sm:$0xff] %v5383_v19 }
 0x3df   : > { %v4210_v2 = vpop.f32.mrb[176].mxu1 }
 0x3e0   : > { %v4212_v29 = vpop.f32.mrb[177].mxu1 }
 0x3e1   : > { %v5384_v35 = vpack.c.bf16 %v4212_v29, %v4210_v2  ;;  %v4214_v57 = vpop.f32.mrb[178].mxu1 }
 0x3e2   : > { %v4216_v33 = vpop.f32.mrb[179].mxu1 }
 0x3e3   : > { %4817 = vst [vmem:[%s7619_s19 + $0xc0] sm:$0xff] %v5384_v35  ;;  %v5385_v31 = vpack.c.bf16 %v4216_v33, %v4214_v57 }
 0x3e5   : > { %4818 = vst [vmem:[%s7619_s19 + $0xc8] sm:$0xff] %v5385_v31 }
 0x3e7   : > { %v4220_v37 = vpop.f32.mrb[180].mxu1 }
 0x3e8   : > { %v4222_v38 = vpop.f32.mrb[181].mxu1 }
 0x3e9   : > { %v5386_v18 = vpack.c.bf16 %v4222_v38, %v4220_v37  ;;  %v4224_v28 = vpop.f32.mrb[182].mxu1 }
 0x3ea   : > { %v4226_v40 = vpop.f32.mrb[183].mxu1 }
 0x3eb   : > { %4819 = vst [vmem:[%s7619_s19 + $0xd0] sm:$0xff] %v5386_v18  ;;  %v5387_v22 = vpack.c.bf16 %v4226_v40, %v4224_v28 }
 0x3ed   : > { %4820 = vst [vmem:[%s7619_s19 + $0xd8] sm:$0xff] %v5387_v22 }
 0x3ef   : > { %v4230_v48 = vpop.f32.mrb[184].mxu1 }
 0x3f0   : > { %v4232_v47 = vpop.f32.mrb[185].mxu1 }
 0x3f1   : > { %v5388_v36 = vpack.c.bf16 %v4232_v47, %v4230_v48  ;;  %v4234_v54 = vpop.f32.mrb[186].mxu1 }
 0x3f2   : > { %v4236_v52 = vpop.f32.mrb[187].mxu1 }
 0x3f3   : > { %4821 = vst [vmem:[%s7619_s19 + $0xe0] sm:$0xff] %v5388_v36  ;;  %v5389_v58 = vpack.c.bf16 %v4236_v52, %v4234_v54 }
 0x3f5   : > { %4822 = vst [vmem:[%s7619_s19 + $0xe8] sm:$0xff] %v5389_v58 }
 0x3f7   : > { %v4240_v39 = vpop.f32.mrb[188].mxu1 }
 0x3f8   : > { %v4242_v62 = vpop.f32.mrb[189].mxu1 }
 0x3f9   : > { %v5390_v43 = vpack.c.bf16 %v4242_v62, %v4240_v39  ;;  %v4244_v34 = vpop.f32.mrb[190].mxu1 }
 0x3fa   : > { %v4246_v45 = vpop.f32.mrb[191].mxu1 }
 0x3fb   : > { %4823 = vst [vmem:[%s7619_s19 + $0xf0] sm:$0xff] %v5390_v43  ;;  %v5391_v60 = vpack.c.bf16 %v4246_v45, %v4244_v34 }
 0x3fd   : > { %4824 = vst [vmem:[%s7619_s19 + $0xf8] sm:$0xff] %v5391_v60 }
 0x3ff   : > { %v4250_v59 = vpop.f32.mrb[192].mxu1 }
 0x400   : > { %v4252_v32 = vpop.f32.mrb[193].mxu1 }
 0x401   : > { %v5392_v63 = vpack.c.bf16 %v4252_v32, %v4250_v59  ;;  %v4254_v21 = vpop.f32.mrb[194].mxu1 }
 0x402   : > { %v4256_v27 = vpop.f32.mrb[195].mxu1 }
 0x403   : > { %4825 = vst [vmem:[%s7619_s19 + $0x100] sm:$0xff] %v5392_v63  ;;  %v5393_v15 = vpack.c.bf16 %v4256_v27, %v4254_v21 }
 0x405   : > { %4826 = vst [vmem:[%s7619_s19 + $0x108] sm:$0xff] %v5393_v15 }
 0x407   : > { %v4260_v16 = vpop.f32.mrb[196].mxu1 }
 0x408   : > { %v4262_v42 = vpop.f32.mrb[197].mxu1 }
 0x409   : > { %v5394_v0 = vpack.c.bf16 %v4262_v42, %v4260_v16  ;;  %v4264_v7 = vpop.f32.mrb[198].mxu1 }
 0x40a   : > { %v4266_v13 = vpop.f32.mrb[199].mxu1 }
 0x40b   : > { %4827 = vst [vmem:[%s7619_s19 + $0x110] sm:$0xff] %v5394_v0  ;;  %v5395_v23 = vpack.c.bf16 %v4266_v13, %v4264_v7 }
 0x40d   : > { %4828 = vst [vmem:[%s7619_s19 + $0x118] sm:$0xff] %v5395_v23 }
 0x40f   : > { %v4270_v10 = vpop.f32.mrb[200].mxu1 }
 0x410   : > { %v4272_v61 = vpop.f32.mrb[201].mxu1 }
 0x411   : > { %v5396_v25 = vpack.c.bf16 %v4272_v61, %v4270_v10  ;;  %v4274_v30 = vpop.f32.mrb[202].mxu1 }
 0x412   : > { %v4276_v3 = vpop.f32.mrb[203].mxu1 }
 0x413   : > { %4829 = vst [vmem:[%s7619_s19 + $0x120] sm:$0xff] %v5396_v25  ;;  %v5397_v53 = vpack.c.bf16 %v4276_v3, %v4274_v30 }
 0x415   : > { %4830 = vst [vmem:[%s7619_s19 + $0x128] sm:$0xff] %v5397_v53 }
 0x417   : > { %v4280_v49 = vpop.f32.mrb[204].mxu1 }
 0x418   : > { %v4282_v6 = vpop.f32.mrb[205].mxu1 }
 0x419   : > { %v5398_v56 = vpack.c.bf16 %v4282_v6, %v4280_v49  ;;  %v4284_v46 = vpop.f32.mrb[206].mxu1 }
 0x41a   : > { %v4286_v1 = vpop.f32.mrb[207].mxu1 }
 0x41b   : > { %4831 = vst [vmem:[%s7619_s19 + $0x130] sm:$0xff] %v5398_v56  ;;  %v5399_v41 = vpack.c.bf16 %v4286_v1, %v4284_v46 }
 0x41d   : > { %4832 = vst [vmem:[%s7619_s19 + $0x138] sm:$0xff] %v5399_v41 }
 0x41f   : > { %v4290_v24 = vpop.f32.mrb[208].mxu1 }
 0x420   : > { %v4292_v5 = vpop.f32.mrb[209].mxu1 }
 0x421   : > { %v5400_v9 = vpack.c.bf16 %v4292_v5, %v4290_v24  ;;  %v4294_v20 = vpop.f32.mrb[210].mxu1 }
 0x422   : > { %v4296_v55 = vpop.f32.mrb[211].mxu1 }
 0x423   : > { %4833 = vst [vmem:[%s7619_s19 + $0x140] sm:$0xff] %v5400_v9  ;;  %v5401_v44 = vpack.c.bf16 %v4296_v55, %v4294_v20 }
 0x425   : > { %4834 = vst [vmem:[%s7619_s19 + $0x148] sm:$0xff] %v5401_v44 }
 0x427   : > { %v4300_v12 = vpop.f32.mrb[212].mxu1 }
 0x428   : > { %v4302_v8 = vpop.f32.mrb[213].mxu1 }
 0x429   : > { %v5402_v51 = vpack.c.bf16 %v4302_v8, %v4300_v12  ;;  %v4304_v14 = vpop.f32.mrb[214].mxu1 }
 0x42a   : > { %v4306_v11 = vpop.f32.mrb[215].mxu1 }
 0x42b   : > { %4835 = vst [vmem:[%s7619_s19 + $0x150] sm:$0xff] %v5402_v51  ;;  %v5403_v50 = vpack.c.bf16 %v4306_v11, %v4304_v14 }
 0x42d   : > { %4836 = vst [vmem:[%s7619_s19 + $0x158] sm:$0xff] %v5403_v50 }
 0x42f   : > { %v4310_v17 = vpop.f32.mrb[216].mxu1 }
 0x430   : > { %v4312_v26 = vpop.f32.mrb[217].mxu1 }
 0x431   : > { %v5404_v4 = vpack.c.bf16 %v4312_v26, %v4310_v17  ;;  %v4314_v19 = vpop.f32.mrb[218].mxu1 }
 0x432   : > { %v4316_v2 = vpop.f32.mrb[219].mxu1 }
 0x433   : > { %4837 = vst [vmem:[%s7619_s19 + $0x160] sm:$0xff] %v5404_v4  ;;  %v5405_v29 = vpack.c.bf16 %v4316_v2, %v4314_v19 }
 0x435   : > { %4838 = vst [vmem:[%s7619_s19 + $0x168] sm:$0xff] %v5405_v29 }
 0x437   : > { %v4320_v35 = vpop.f32.mrb[220].mxu1 }
 0x438   : > { %v4322_v57 = vpop.f32.mrb[221].mxu1 }
 0x439   : > { %v5406_v33 = vpack.c.bf16 %v4322_v57, %v4320_v35  ;;  %v4324_v31 = vpop.f32.mrb[222].mxu1 }
 0x43a   : > { %v4326_v37 = vpop.f32.mrb[223].mxu1 }
 0x43b   : > { %4839 = vst [vmem:[%s7619_s19 + $0x170] sm:$0xff] %v5406_v33  ;;  %v5407_v38 = vpack.c.bf16 %v4326_v37, %v4324_v31 }
 0x43d   : > { %4840 = vst [vmem:[%s7619_s19 + $0x178] sm:$0xff] %v5407_v38 }
 0x43f   : > { %v4330_v18 = vpop.f32.mrb[224].mxu1 }
 0x440   : > { %v4332_v28 = vpop.f32.mrb[225].mxu1 }
 0x441   : > { %v5408_v40 = vpack.c.bf16 %v4332_v28, %v4330_v18  ;;  %v4334_v22 = vpop.f32.mrb[226].mxu1 }
 0x442   : > { %v4336_v48 = vpop.f32.mrb[227].mxu1 }
 0x443   : > { %4841 = vst [vmem:[%s7619_s19 + $0x180] sm:$0xff] %v5408_v40  ;;  %v5409_v47 = vpack.c.bf16 %v4336_v48, %v4334_v22 }
 0x445   : > { %4842 = vst [vmem:[%s7619_s19 + $0x188] sm:$0xff] %v5409_v47 }
 0x447   : > { %v4340_v36 = vpop.f32.mrb[228].mxu1 }
 0x448   : > { %v4342_v54 = vpop.f32.mrb[229].mxu1 }
 0x449   : > { %v5410_v52 = vpack.c.bf16 %v4342_v54, %v4340_v36  ;;  %v4344_v58 = vpop.f32.mrb[230].mxu1 }
 0x44a   : > { %v4346_v39 = vpop.f32.mrb[231].mxu1 }
 0x44b   : > { %4843 = vst [vmem:[%s7619_s19 + $0x190] sm:$0xff] %v5410_v52  ;;  %v5411_v62 = vpack.c.bf16 %v4346_v39, %v4344_v58 }
 0x44d   : > { %4844 = vst [vmem:[%s7619_s19 + $0x198] sm:$0xff] %v5411_v62 }
 0x44f   : > { %v4350_v43 = vpop.f32.mrb[232].mxu1 }
 0x450   : > { %v4352_v34 = vpop.f32.mrb[233].mxu1 }
 0x451   : > { %v5412_v45 = vpack.c.bf16 %v4352_v34, %v4350_v43  ;;  %v4354_v60 = vpop.f32.mrb[234].mxu1 }
 0x452   : > { %v4356_v59 = vpop.f32.mrb[235].mxu1 }
 0x453   : > { %4845 = vst [vmem:[%s7619_s19 + $0x1a0] sm:$0xff] %v5412_v45  ;;  %v5413_v32 = vpack.c.bf16 %v4356_v59, %v4354_v60 }
 0x455   : > { %4846 = vst [vmem:[%s7619_s19 + $0x1a8] sm:$0xff] %v5413_v32 }
 0x457   : > { %v4360_v63 = vpop.f32.mrb[236].mxu1 }
 0x458   : > { %v4362_v21 = vpop.f32.mrb[237].mxu1 }
 0x459   : > { %v5414_v27 = vpack.c.bf16 %v4362_v21, %v4360_v63  ;;  %v4364_v15 = vpop.f32.mrb[238].mxu1 }
 0x45a   : > { %v4366_v16 = vpop.f32.mrb[239].mxu1 }
 0x45b   : > { %4847 = vst [vmem:[%s7619_s19 + $0x1b0] sm:$0xff] %v5414_v27  ;;  %v5415_v42 = vpack.c.bf16 %v4366_v16, %v4364_v15 }
 0x45d   : > { %4848 = vst [vmem:[%s7619_s19 + $0x1b8] sm:$0xff] %v5415_v42 }
 0x45f   : > { %v4370_v0 = vpop.f32.mrb[240].mxu1 }
 0x460   : > { %v4372_v7 = vpop.f32.mrb[241].mxu1 }
 0x461   : > { %v5416_v13 = vpack.c.bf16 %v4372_v7, %v4370_v0  ;;  %v4374_v23 = vpop.f32.mrb[242].mxu1 }
 0x462   : > { %v4376_v10 = vpop.f32.mrb[243].mxu1 }
 0x463   : > { %4849 = vst [vmem:[%s7619_s19 + $0x1c0] sm:$0xff] %v5416_v13  ;;  %v5417_v61 = vpack.c.bf16 %v4376_v10, %v4374_v23 }
 0x465   : > { %4850 = vst [vmem:[%s7619_s19 + $0x1c8] sm:$0xff] %v5417_v61 }
 0x467   : > { %v4380_v25 = vpop.f32.mrb[244].mxu1 }
 0x468   : > { %v4382_v30 = vpop.f32.mrb[245].mxu1 }
 0x469   : > { %v5418_v3 = vpack.c.bf16 %v4382_v30, %v4380_v25  ;;  %v4384_v53 = vpop.f32.mrb[246].mxu1 }
 0x46a   : > { %v4386_v49 = vpop.f32.mrb[247].mxu1 }
 0x46b   : > { %4851 = vst [vmem:[%s7619_s19 + $0x1d0] sm:$0xff] %v5418_v3  ;;  %v5419_v6 = vpack.c.bf16 %v4386_v49, %v4384_v53 }
 0x46d   : > { %4852 = vst [vmem:[%s7619_s19 + $0x1d8] sm:$0xff] %v5419_v6 }
 0x46f   : > { %v4390_v56 = vpop.f32.mrb[248].mxu1 }
 0x470   : > { %v4392_v46 = vpop.f32.mrb[249].mxu1 }
 0x471   : > { %v5420_v1 = vpack.c.bf16 %v4392_v46, %v4390_v56  ;;  %v4394_v41 = vpop.f32.mrb[250].mxu1 }
 0x472   : > { %v4396_v24 = vpop.f32.mrb[251].mxu1 }
 0x473   : > { %4853 = vst [vmem:[%s7619_s19 + $0x1e0] sm:$0xff] %v5420_v1  ;;  %v5421_v5 = vpack.c.bf16 %v4396_v24, %v4394_v41 }
 0x475   : > { %4854 = vst [vmem:[%s7619_s19 + $0x1e8] sm:$0xff] %v5421_v5 }
 0x477   : > { %v4400_v9 = vpop.f32.mrb[252].mxu1 }
 0x478   : > { %v4402_v20 = vpop.f32.mrb[253].mxu1 }
 0x479   : > { %v5422_v55 = vpack.c.bf16 %v4402_v20, %v4400_v9  ;;  %v4404_v44 = vpop.f32.mrb[254].mxu1 }
 0x47a   : > { %v4406_v12 = vpop.f32.mrb[255].mxu1 }
 0x47b   : > { %4855 = vst [vmem:[%s7619_s19 + $0x1f0] sm:$0xff] %v5422_v55  ;;  %v5423_v8 = vpack.c.bf16 %v4406_v12, %v4404_v44 }
 0x47d   : > { %4856 = vst [vmem:[%s7619_s19 + $0x1f8] sm:$0xff] %v5423_v8 }
 0x47e PF: > { %s13_s12 = sadd.s32 1, %s6392_s12  }
 0x47f   : > { %p10_p4 = scmp.ge.s32.totalorder %s13_s12, 4  }
 0x481   :  { %12 = sbr.rel (!%p10_p4) target bundleno = 1 (0x1), region = 62 }

// kernel: forward.5
= control target key start
LH: loop header
LB: loop body
LE: loop exit
PB: predicated region body
PF: predicated region fallthrough
CT: control target
= control target key end

     0   :  { %v1915_v1 = vmov 0   ;;  %s2645_s3 = inlined_call_operand.vmem [shape: bf16[384,256], index: 3, kind: input, shape index: {}]   ;;  %s2646_s1 = inlined_call_operand.vmem [shape: bf16[32,384], index: 1, kind: input, shape index: {}]   ;;  %s2647_s2 = inlined_call_operand.vmem [shape: bf16[768,256], index: 2, kind: input, shape index: {}]   ;;  %s2648_s0 = inlined_call_operand.vmem [shape: bf16[6,32,768], index: 0, kind: input, shape index: {}]   ;;  %s2649_s4 = inlined_call_operand.vmem [shape: bf16[32,256], index: 4, kind: output, shape index: {}]  }
   0x1   :  { %v1691_v0 = vld [vmem:[%s2645_s3 + $0x4] ss:$8 sps:$4 sm:$0xff]   ;;  %676 = vmatprep.mubr.bf16.mxu0 %v1915_v1  ;;  %v1695_v3 = vld [vmem:[%s2645_s3] ss:$8 sps:$4 sm:$0xff]   ;;  %v1697_v5 = vld [vmem:[%s2645_s3 + $0x14] ss:$8 sps:$4 sm:$0xff]  }
   0x2   :  { %v1693_v2 = vld [vmem:[%s2645_s3 + $0x104] ss:$8 sps:$4 sm:$0xff]   ;;  %591 = vmatprep.subr.bf16.mxu1 %v1691_v0  ;;  %v1696_v4 = vld [vmem:[%s2645_s3 + $0x100] ss:$8 sps:$4 sm:$0xff]   ;;  %v1699_v6 = vld [vmem:[%s2645_s3 + $0x114] ss:$8 sps:$4 sm:$0xff]  }
   0x3   :  { %644 = vmatprep.subr.bf16.mxu0 %v1693_v2  ;;  %592 = vmatpush1.bf16.msra.mxu1 %v1695_v3  ;;  %v1701_v7 = vld [vmem:[%s2645_s3 + $0x10] ss:$8 sps:$4 sm:$0xff]   ;;  %v1703_v9 = vld [vmem:[%s2645_s3 + $0x24] ss:$8 sps:$4 sm:$0xff]   ;;  %v1707_v11 = vld [vmem:[%s2645_s3 + $0x20] ss:$8 sps:$4 sm:$0xff]  }
   0x4   :  { %645 = vmatpush1.bf16.msra.mxu0 %v1696_v4  ;;  %593 = vmatprep.subr.bf16.mxu1 %v1697_v5  ;;  %v1702_v8 = vld [vmem:[%s2645_s3 + $0x110] ss:$8 sps:$4 sm:$0xff]   ;;  %v1705_v10 = vld [vmem:[%s2645_s3 + $0x124] ss:$8 sps:$4 sm:$0xff]   ;;  %v1708_v12 = vld [vmem:[%s2645_s3 + $0x120] ss:$8 sps:$4 sm:$0xff]  }
   0x5   :  { %646 = vmatprep.subr.bf16.mxu0 %v1699_v6  ;;  %v1709_v13 = vld [vmem:[%s2645_s3 + $0x34] ss:$8 sps:$4 sm:$0xff]   ;;  %v1713_v15 = vld [vmem:[%s2645_s3 + $0x30] ss:$8 sps:$4 sm:$0xff]   ;;  %v1715_v17 = vld [vmem:[%s2645_s3 + $0x44] ss:$8 sps:$4 sm:$0xff]  }
   0x6   :  { %v1711_v14 = vld [vmem:[%s2645_s3 + $0x134] ss:$8 sps:$4 sm:$0xff]   ;;  %v1714_v16 = vld [vmem:[%s2645_s3 + $0x130] ss:$8 sps:$4 sm:$0xff]   ;;  %v1717_v18 = vld [vmem:[%s2645_s3 + $0x144] ss:$8 sps:$4 sm:$0xff]  }
   0x7   :  { %594 = vmatpush1.bf16.msra.mxu1 %v1701_v7  ;;  %v1719_v19 = vld [vmem:[%s2645_s3 + $0x40] ss:$8 sps:$4 sm:$0xff]   ;;  %v1721_v21 = vld [vmem:[%s2645_s3 + $0x54] ss:$8 sps:$4 sm:$0xff]   ;;  %v1725_v23 = vld [vmem:[%s2645_s3 + $0x50] ss:$8 sps:$4 sm:$0xff]  }
   0x8   :  { %647 = vmatpush1.bf16.msra.mxu0 %v1702_v8  ;;  %595 = vmatprep.subr.bf16.mxu1 %v1703_v9  ;;  %v1720_v20 = vld [vmem:[%s2645_s3 + $0x140] ss:$8 sps:$4 sm:$0xff]   ;;  %v1723_v22 = vld [vmem:[%s2645_s3 + $0x154] ss:$8 sps:$4 sm:$0xff]   ;;  %v1726_v24 = vld [vmem:[%s2645_s3 + $0x150] ss:$8 sps:$4 sm:$0xff]  }
   0x9   :  { %648 = vmatprep.subr.bf16.mxu0 %v1705_v10  ;;  %v1727_v25 = vld [vmem:[%s2645_s3 + $0x64] ss:$8 sps:$4 sm:$0xff]   ;;  %v1731_v27 = vld [vmem:[%s2645_s3 + $0x60] ss:$8 sps:$4 sm:$0xff]   ;;  %v1733_v29 = vld [vmem:[%s2645_s3 + $0x74] ss:$8 sps:$4 sm:$0xff]  }
   0xa   :  { %v1729_v26 = vld [vmem:[%s2645_s3 + $0x164] ss:$8 sps:$4 sm:$0xff]   ;;  %v1732_v28 = vld [vmem:[%s2645_s3 + $0x160] ss:$8 sps:$4 sm:$0xff]   ;;  %v1735_v30 = vld [vmem:[%s2645_s3 + $0x174] ss:$8 sps:$4 sm:$0xff]  }
   0xb   :  { %596 = vmatpush1.bf16.msra.mxu1 %v1707_v11  ;;  %v1737_v31 = vld [vmem:[%s2645_s3 + $0x70] ss:$8 sps:$4 sm:$0xff]   ;;  %v1739_v33 = vld [vmem:[%s2645_s3 + $0x84] ss:$8 sps:$4 sm:$0xff]   ;;  %v1741_v35 = vld [vmem:[%s2646_s1 + $0x8] ss:$12 sps:$4 sm:$0xff]  }
   0xc   :  { %649 = vmatpush1.bf16.msra.mxu0 %v1708_v12  ;;  %597 = vmatprep.subr.bf16.mxu1 %v1709_v13  ;;  %v1738_v32 = vld [vmem:[%s2645_s3 + $0x170] ss:$8 sps:$4 sm:$0xff]   ;;  %v1744_v34 = vld [vmem:[%s2647_s2 + $0x104] ss:$8 sps:$4 sm:$0xff]   ;;  %v1742_v36 = vld [vmem:[%s2647_s2 + $0x100] ss:$8 sps:$4 sm:$0xff]  }
   0xd   :  { %650 = vmatprep.subr.bf16.mxu0 %v1711_v14  ;;  %v1745_v37 = vld [vmem:[%s2645_s3 + $0x80] ss:$8 sps:$4 sm:$0xff]   ;;  %v1746_v38 = vld [vmem:[%s2645_s3 + $0x94] ss:$8 sps:$4 sm:$0xff]   ;;  %v1748_v40 = vld [vmem:[%s2647_s2 + $0x110] ss:$8 sps:$4 sm:$0xff]  }
   0xe   :  { %v1750_v39 = vld [vmem:[%s2647_s2 + $0x114] ss:$8 sps:$4 sm:$0xff]   ;;  %v1751_v41 = vld [vmem:[%s2645_s3 + $0x90] ss:$8 sps:$4 sm:$0xff]   ;;  %v1752_v42 = vld [vmem:[%s2645_s3 + $0xa4] ss:$8 sps:$4 sm:$0xff]  }
   0xf   :  { %598 = vmatpush1.bf16.msra.mxu1 %v1713_v15  ;;  %v1756_v43 = vld [vmem:[%s2647_s2 + $0x124] ss:$8 sps:$4 sm:$0xff]   ;;  %v1754_v44 = vld [vmem:[%s2647_s2 + $0x120] ss:$8 sps:$4 sm:$0xff]   ;;  %v1758_v46 = vld [vmem:[%s2645_s3 + $0xb4] ss:$8 sps:$4 sm:$0xff]  }
  0x10   :  { %651 = vmatpush1.bf16.msra.mxu0 %v1714_v16  ;;  %599 = vmatprep.subr.bf16.mxu1 %v1715_v17  ;;  %v1757_v45 = vld [vmem:[%s2645_s3 + $0xa0] ss:$8 sps:$4 sm:$0xff]   ;;  %v1762_v47 = vld [vmem:[%s2647_s2 + $0x134] ss:$8 sps:$4 sm:$0xff]   ;;  %v1760_v48 = vld [vmem:[%s2647_s2 + $0x130] ss:$8 sps:$4 sm:$0xff]  }
  0x11   :  { %652 = vmatprep.subr.bf16.mxu0 %v1717_v18  ;;  %v1763_v49 = vld [vmem:[%s2645_s3 + $0xb0] ss:$8 sps:$4 sm:$0xff]   ;;  %v1764_v50 = vld [vmem:[%s2645_s3 + $0xc4] ss:$8 sps:$4 sm:$0xff]   ;;  %v1766_v53 = vld [vmem:[%s2647_s2 + $0x140] ss:$8 sps:$4 sm:$0xff]  }
  0x12   :  { %v1790_v51 = vld [vmem:[%s2646_s1 + $0x4] ss:$12 sps:$4 sm:$0xff]   ;;  %v1769_v54 = vld [vmem:[%s2645_s3 + $0xc0] ss:$8 sps:$4 sm:$0xff]   ;;  %v1770_v55 = vld [vmem:[%s2645_s3 + $0xd4] ss:$8 sps:$4 sm:$0xff]  }
  0x13   :  { %600 = vmatpush1.bf16.msra.mxu1 %v1719_v19  ;;  %v1768_v52 = vld [vmem:[%s2647_s2 + $0x144] ss:$8 sps:$4 sm:$0xff]   ;;  %623 = vmatprep.mubr.bf16.mxu1 %v1790_v51  ;;  %v1774_v56 = vld [vmem:[%s2647_s2 + $0x154] ss:$8 sps:$4 sm:$0xff]   ;;  %v1772_v57 = vld [vmem:[%s2647_s2 + $0x150] ss:$8 sps:$4 sm:$0xff]  }
  0x14   :  { %653 = vmatpush1.bf16.msra.mxu0 %v1720_v20  ;;  %601 = vmatprep.subr.bf16.mxu1 %v1721_v21  ;;  %v1775_v58 = vld [vmem:[%s2645_s3 + $0xd0] ss:$8 sps:$4 sm:$0xff]   ;;  %v1776_v59 = vld [vmem:[%s2645_s3 + $0xe4] ss:$8 sps:$4 sm:$0xff]   ;;  %v1778_v61 = vld [vmem:[%s2647_s2 + $0x160] ss:$8 sps:$4 sm:$0xff]  }
  0x15   :  { %654 = vmatprep.subr.bf16.mxu0 %v1723_v22  ;;  %v1780_v60 = vld [vmem:[%s2647_s2 + $0x164] ss:$8 sps:$4 sm:$0xff]   ;;  %v1781_v62 = vld [vmem:[%s2645_s3 + $0xe0] ss:$8 sps:$4 sm:$0xff]   ;;  %v1782_v63 = vld [vmem:[%s2645_s3 + $0xf4] ss:$8 sps:$4 sm:$0xff]  }
  0x16   :  { %v1786_v0 = vld [vmem:[%s2647_s2 + $0x174] ss:$8 sps:$4 sm:$0xff]   ;;  %v1784_v2 = vld [vmem:[%s2647_s2 + $0x170] ss:$8 sps:$4 sm:$0xff]   ;;  %v1793_v4 = vld [vmem:[%s2647_s2 + $0x4] ss:$8 sps:$4 sm:$0xff]  }
  0x17   :  { %602 = vmatpush1.bf16.msra.mxu1 %v1725_v23  ;;  %v1787_v3 = vld [vmem:[%s2645_s3 + $0xf0] ss:$8 sps:$4 sm:$0xff]   ;;  %v1796_v5 = vld [vmem:[%s2647_s2 + $0x184] ss:$8 sps:$4 sm:$0xff]   ;;  %v1791_v8 = vld [vmem:[%s2647_s2] ss:$8 sps:$4 sm:$0xff]  }
  0x18   :  { %655 = vmatpush1.bf16.msra.mxu0 %v1726_v24  ;;  %603 = vmatprep.subr.bf16.mxu1 %v1727_v25  ;;  %v1788_v6 = vld [vmem:[%s2646_s1] ss:$12 sps:$4 sm:$0xff]   ;;  %v1799_v10 = vld [vmem:[%s2647_s2 + $0x14] ss:$8 sps:$4 sm:$0xff]   ;;  %v1797_v13 = vld [vmem:[%s2647_s2 + $0x10] ss:$8 sps:$4 sm:$0xff]  }
  0x19   :  { %656 = vmatprep.subr.bf16.mxu0 %v1729_v26  ;;  %v1830_v7 = vld [vmem:[%s2646_s1 + $0x20] ss:$12 sps:$4 sm:$0xff]   ;;  %v1802_v11 = vld [vmem:[%s2647_s2 + $0x194] ss:$8 sps:$4 sm:$0xff]   ;;  %v1800_v14 = vld [vmem:[%s2647_s2 + $0x190] ss:$8 sps:$4 sm:$0xff]  }
  0x1a   :  { %v1794_v9 = vld [vmem:[%s2647_s2 + $0x180] ss:$8 sps:$4 sm:$0xff]   ;;  %v1805_v15 = vld [vmem:[%s2647_s2 + $0x24] ss:$8 sps:$4 sm:$0xff]   ;;  %v1826_v51 = vld [vmem:[%s2647_s2 + $0x1d4] ss:$8 sps:$4 sm:$0xff]  }
  0x1b   :  { %604 = vmatpush1.bf16.msra.mxu1 %v1731_v27  ;;  %v1827_v12 = vld [vmem:[%s2646_s1 + $0x1c] ss:$12 sps:$4 sm:$0xff]   ;;  %v1808_v16 = vld [vmem:[%s2647_s2 + $0x1a4] ss:$8 sps:$4 sm:$0xff]  }
  0x1c   :  { %657 = vmatpush1.bf16.msra.mxu0 %v1732_v28  ;;  %605 = vmatprep.subr.bf16.mxu1 %v1733_v29  ;;  %v1829_v17 = vld [vmem:[%s2646_s1 + $0x18] ss:$12 sps:$4 sm:$0xff]   ;;  %v19_v18 = vld [vmem:[%s2648_s0 + $0x8] sm:$0xff]  ;;  %v1811_v29 = vld [vmem:[%s2647_s2 + $0x34] ss:$8 sps:$4 sm:$0xff]  }
  0x1d   :  { %658 = vmatprep.subr.bf16.mxu0 %v1735_v30  ;;  %v22_v19 = vld [vmem:[%s2648_s0 + $0x20] sm:$0xff]  ;;  %v1429_v20 = vld [vmem:[%s2648_s0 + $0x68] sm:$0xff]  ;;  %v1814_v30 = vld [vmem:[%s2647_s2 + $0x1b4] ss:$8 sps:$4 sm:$0xff]  }
  0x1e   :  { %v1432_v21 = vld [vmem:[%s2648_s0 + $0x80] sm:$0xff]  ;;  %v44_v22 = vmax.bf16 %v1429_v20, %v19_v18  ;;  %v1441_v23 = vld [vmem:[%s2648_s0 + $0xc8] sm:$0xff]  ;;  %v1849_v20 = vld [vmem:[%s2647_s2 + $0x90] ss:$8 sps:$4 sm:$0xff]  }
  0x1f   :  { %606 = vmatpush1.bf16.msra.mxu1 %v1737_v31  ;;  %v1444_v24 = vld [vmem:[%s2648_s0 + $0xe0] sm:$0xff]  ;;  %v47_v27 = vmax.bf16 %v1432_v21, %v22_v19  ;;  %v1453_v28 = vld [vmem:[%s2648_s0 + $0x128] sm:$0xff]  ;;  %v1455_v19 = vld [vmem:[%s2648_s0 + $0x138] sm:$0xff] }
  0x20   :  { %659 = vmatpush1.bf16.msra.mxu0 %v1738_v32  ;;  %607 = vmatprep.subr.bf16.mxu1 %v1739_v33  ;;  %v1803_v25 = vld [vmem:[%s2647_s2 + $0x20] ss:$8 sps:$4 sm:$0xff]   ;;  %v69_v31 = vmax.bf16 %v1441_v23, %v44_v22  ;;  %v1809_v33 = vld [vmem:[%s2647_s2 + $0x30] ss:$8 sps:$4 sm:$0xff]  }
  0x21   :  { %1290 = vmatprep.subr.bf16.mxu0 %v1744_v34  ;;  %v1806_v26 = vld [vmem:[%s2647_s2 + $0x1a0] ss:$8 sps:$4 sm:$0xff]   ;;  %v1812_v34 = vld [vmem:[%s2647_s2 + $0x1b0] ss:$8 sps:$4 sm:$0xff]  }
  0x22   :  { %v1456_v32 = vld [vmem:[%s2648_s0 + $0x140] sm:$0xff]  ;;  %v1852_v21 = vld [vmem:[%s2647_s2 + $0x210] ss:$8 sps:$4 sm:$0xff]  }
  0x23   :  { %677 = vmatmul.mubr.bf16.vlgmr.msra.gmra.mrb[0].mxu0 %v1741_v35  ;;  %608 = vmatpush1.bf16.msra.mxu1 %v1745_v37  ;;  %v72_v35 = vmax.bf16 %v1444_v24, %v47_v27  ;;  %v94_v37 = vmax.bf16 %v1453_v28, %v69_v31  ;;  %v1464_v23 = vld [vmem:[%s2648_s0 + $0x180] sm:$0xff]  ;;  %v1467_v27 = vld [vmem:[%s2648_s0 + $0x198] sm:$0xff]  ;;  %v24_v31 = vld [vmem:[%s2648_s0 + $0x30] sm:$0xff] }
  0x24   :  { %1291 = vmatpush1.bf16.msra.mxu0 %v1742_v36  ;;  %609 = vmatprep.subr.bf16.mxu1 %v1746_v38  ;;  %v1465_v36 = vld [vmem:[%s2648_s0 + $0x188] sm:$0xff]  ;;  %v1468_v38 = vld [vmem:[%s2648_s0 + $0x1a0] sm:$0xff] }
  0x25   :  { %1292 = vmatprep.subr.bf16.mxu0 %v1750_v39  ;;  %686 = vmatprep.mubr.bf16.mxu0 %v1915_v1  ;;  %v1817_v39 = vld [vmem:[%s2647_s2 + $0x44] ss:$8 sps:$4 sm:$0xff]  }
  0x26   :  { %v1857_v24 = vld [vmem:[%s2647_s2 + $0xa4] ss:$8 sps:$4 sm:$0xff]  }
  0x27   :  { %610 = vmatpush1.bf16.msra.mxu1 %v1751_v41  ;;  %v1477_v41 = vld [vmem:[%s2648_s0 + $0x1e8] sm:$0xff] }
  0x28   :  { %1293 = vmatpush1.bf16.msra.mxu0 %v1748_v40  ;;  %611 = vmatprep.subr.bf16.mxu1 %v1752_v42  ;;  %v97_v40 = vmax.bf16 %v1456_v32, %v72_v35  ;;  %v1820_v42 = vld [vmem:[%s2647_s2 + $0x1c4] ss:$8 sps:$4 sm:$0xff]  }
  0x29   :  { %1294 = vmatprep.subr.bf16.mxu0 %v1756_v43  ;;  %v119_v43 = vmax.bf16 %v1465_v36, %v94_v37  ;;  %v1437_v35 = vld [vmem:[%s2648_s0 + $0xa8] sm:$0xff] }
  0x2a   :  { %v1855_v37 = vld [vmem:[%s2647_s2 + $0xa0] ss:$8 sps:$4 sm:$0xff]  }
  0x2b   :  { %612 = vmatpush1.bf16.msra.mxu1 %v1757_v45  ;;  %687 = vmatmul.mubr.bf16.gmra.mrb[4].mxu0 %v1830_v7  ;;  %v122_v45 = vmax.bf16 %v1468_v38, %v97_v40  ;;  %v1858_v38 = vld [vmem:[%s2647_s2 + $0x220] ss:$8 sps:$4 sm:$0xff]  }
  0x2c   :  { %1295 = vmatpush1.bf16.msra.mxu0 %v1754_v44  ;;  %613 = vmatprep.subr.bf16.mxu1 %v1758_v46  ;;  %v1480_v44 = vld [vmem:[%s2648_s0 + $0x200] sm:$0xff]  ;;  %v144_v46 = vmax.bf16 %v1477_v41, %v119_v43  ;;  %v1446_v43 = vld [vmem:[%s2648_s0 + $0xf0] sm:$0xff] }
  0x2d   :  { %1296 = vmatprep.subr.bf16.mxu0 %v1762_v47  ;;  %v1815_v47 = vld [vmem:[%s2647_s2 + $0x40] ss:$8 sps:$4 sm:$0xff]  }
  0x2f   :  { %614 = vmatpush1.bf16.msra.mxu1 %v1763_v49  ;;  %v147_v49 = vmax.bf16 %v1480_v44, %v122_v45  ;;  %v1449_v44 = vld [vmem:[%s2648_s0 + $0x108] sm:$0xff]  ;;  %v1863_v45 = vld [vmem:[%s2647_s2 + $0xb4] ss:$8 sps:$4 sm:$0xff]  }
  0x30   :  { %1297 = vmatpush1.bf16.msra.mxu0 %v1760_v48  ;;  %615 = vmatprep.subr.bf16.mxu1 %v1764_v50  ;;  %v1818_v48 = vld [vmem:[%s2647_s2 + $0x1c0] ss:$8 sps:$4 sm:$0xff]   ;;  %v1823_v50 = vld [vmem:[%s2647_s2 + $0x54] ss:$8 sps:$4 sm:$0xff]  }
  0x31   :  { %1298 = vmatprep.subr.bf16.mxu0 %v1768_v52  ;;  %v156_v52 = vmax.bf16 %v1915_v1, %v144_v46  ;;  %v1866_v46 = vld [vmem:[%s2647_s2 + $0x234] ss:$8 sps:$4 sm:$0xff]  }
  0x33   :  { %616 = vmatpush1.bf16.msra.mxu1 %v1769_v54  ;;  %v1821_v54 = vld [vmem:[%s2647_s2 + $0x50] ss:$8 sps:$4 sm:$0xff]  }
  0x34   :  { %1299 = vmatpush1.bf16.msra.mxu0 %v1766_v53  ;;  %617 = vmatprep.subr.bf16.mxu1 %v1770_v55  ;;  %v159_v53 = vmax.bf16 %v1915_v1, %v147_v49  ;;  %v1824_v55 = vld [vmem:[%s2647_s2 + $0x1d0] ss:$8 sps:$4 sm:$0xff]  }
  0x35   :  { %1300 = vmatprep.subr.bf16.mxu0 %v1774_v56 }
  0x36   :  { %v1545_v56 = vcombine.high %v156_v52, %v159_v53  ;;  %v1544_v7 = vcombine.low %v156_v52, %v159_v53 }
  0x37   :  { %618 = vmatpush1.bf16.msra.mxu1 %v1775_v58  ;;  %v1836_v58 = vld [vmem:[%s2647_s2 + $0x1e4] ss:$8 sps:$4 sm:$0xff]  }
  0x38   :  { %1301 = vmatpush1.bf16.msra.mxu0 %v1772_v57  ;;  %619 = vmatprep.subr.bf16.mxu1 %v1776_v59  ;;  %v1833_v57 = vld [vmem:[%s2647_s2 + $0x64] ss:$8 sps:$4 sm:$0xff]   ;;  %v1831_v59 = vld [vmem:[%s2647_s2 + $0x60] ss:$8 sps:$4 sm:$0xff]  }
  0x39   :  { %1302 = vmatprep.subr.bf16.mxu0 %v1780_v60  ;;  %1322 = vmatprep.mubr.bf16.mxu0 %v1545_v56  ;;  %v1834_v60 = vld [vmem:[%s2647_s2 + $0x1e0] ss:$8 sps:$4 sm:$0xff]   ;;  %v1869_v56 = vld [vmem:[%s2647_s2 + $0xc4] ss:$8 sps:$4 sm:$0xff]  }
  0x3b   :  { %620 = vmatpush1.bf16.msra.mxu1 %v1781_v62  ;;  %v1842_v62 = vld [vmem:[%s2647_s2 + $0x1f4] ss:$8 sps:$4 sm:$0xff]  }
  0x3c   :  { %1303 = vmatpush1.bf16.msra.mxu0 %v1778_v61  ;;  %621 = vmatprep.subr.bf16.mxu1 %v1782_v63  ;;  %v1839_v61 = vld [vmem:[%s2647_s2 + $0x74] ss:$8 sps:$4 sm:$0xff]   ;;  %v1837_v63 = vld [vmem:[%s2647_s2 + $0x70] ss:$8 sps:$4 sm:$0xff]  }
  0x3d   :  { %1304 = vmatprep.subr.bf16.mxu0 %v1786_v0  ;;  %v1840_v0 = vld [vmem:[%s2647_s2 + $0x1f0] ss:$8 sps:$4 sm:$0xff]  }
  0x3f   :  { %622 = vmatpush1.bf16.msra.mxu1 %v1787_v3  ;;  %v1848_v3 = vld [vmem:[%s2647_s2 + $0x204] ss:$8 sps:$4 sm:$0xff]  }
  0x40   :  { %1305 = vmatpush1.bf16.msra.mxu0 %v1784_v2  ;;  %1237 = vmatprep.subr.bf16.mxu1 %v1793_v4  ;;  %v1845_v2 = vld [vmem:[%s2647_s2 + $0x84] ss:$8 sps:$4 sm:$0xff]  }
  0x41   :  { %1306 = vmatprep.subr.bf16.mxu0 %v1796_v5  ;;  %v18_v4 = vld [vmem:[%s2648_s0] sm:$0xff]  ;;  %v21_v5 = vld [vmem:[%s2648_s0 + $0x18] sm:$0xff] }
  0x42   :  { %624 = vmatmul.mubr.bf16.vlgmr.msra.gmra.mrb[0].mxu1 %v1788_v6  ;;  %v1428_v6 = vld [vmem:[%s2648_s0 + $0x60] sm:$0xff] }
  0x43   :  { %1238 = vmatpush1.bf16.msra.mxu1 %v1791_v8  ;;  %633 = vmatprep.mubr.bf16.mxu1 %v1827_v12  ;;  %v1431_v8 = vld [vmem:[%s2648_s0 + $0x78] sm:$0xff]  ;;  %v1843_v12 = vld [vmem:[%s2647_s2 + $0x80] ss:$8 sps:$4 sm:$0xff]  }
  0x44   :  { %1307 = vmatpush1.bf16.msra.mxu0 %v1794_v9  ;;  %1239 = vmatprep.subr.bf16.mxu1 %v1799_v10  ;;  %v43_v9 = vmax.bf16 %v1428_v6, %v18_v4  ;;  %v1440_v10 = vld [vmem:[%s2648_s0 + $0xc0] sm:$0xff]  ;;  %v1447_v4 = vld [vmem:[%s2648_s0 + $0xf8] sm:$0xff]  ;;  %v1470_v6 = vld [vmem:[%s2648_s0 + $0x1b0] sm:$0xff] }
  0x45   :  { %1308 = vmatprep.subr.bf16.mxu0 %v1802_v11  ;;  %v1443_v11 = vld [vmem:[%s2648_s0 + $0xd8] sm:$0xff] }
  0x46   :  { %v68_v18 = vmax.bf16 %v1440_v10, %v43_v9  ;;  %v1459_v9 = vld [vmem:[%s2648_s0 + $0x158] sm:$0xff] }
  0x47   :  { %1240 = vmatpush1.bf16.msra.mxu1 %v1797_v13  ;;  %v1846_v13 = vld [vmem:[%s2647_s2 + $0x200] ss:$8 sps:$4 sm:$0xff]   ;;  %v1875_v10 = vld [vmem:[%s2647_s2 + $0xd4] ss:$8 sps:$4 sm:$0xff]  }
  0x48   :  { %1309 = vmatpush1.bf16.msra.mxu0 %v1800_v14  ;;  %1241 = vmatprep.subr.bf16.mxu1 %v1805_v15  ;;  %v46_v14 = vmax.bf16 %v1431_v8, %v21_v5  ;;  %v1452_v15 = vld [vmem:[%s2648_s0 + $0x120] sm:$0xff]  ;;  %v1450_v5 = vld [vmem:[%s2648_s0 + $0x110] sm:$0xff] }
  0x49   :  { %1310 = vmatprep.subr.bf16.mxu0 %v1808_v16  ;;  %v1851_v16 = vld [vmem:[%s2647_s2 + $0x94] ss:$8 sps:$4 sm:$0xff]  }
  0x4a   :  { %634 = vmatmul.mubr.bf16.gmra.mrb[4].mxu1 %v1829_v17  ;;  %v1854_v17 = vld [vmem:[%s2647_s2 + $0x214] ss:$8 sps:$4 sm:$0xff]   ;;  %v71_v22 = vmax.bf16 %v1443_v11, %v46_v14  ;;  %v1873_v14 = vld [vmem:[%s2647_s2 + $0xd0] ss:$8 sps:$4 sm:$0xff]  }
  0x4b   :  { %1242 = vmatpush1.bf16.msra.mxu1 %v1803_v25  ;;  %v1860_v25 = vld [vmem:[%s2647_s2 + $0x224] ss:$8 sps:$4 sm:$0xff]   ;;  %v1878_v11 = vld [vmem:[%s2647_s2 + $0x254] ss:$8 sps:$4 sm:$0xff]  }
  0x4c   :  { %1311 = vmatpush1.bf16.msra.mxu0 %v1806_v26  ;;  %1243 = vmatprep.subr.bf16.mxu1 %v1811_v29  ;;  %v93_v26 = vmax.bf16 %v1452_v15, %v68_v18  ;;  %v96_v28 = vmax.bf16 %v1455_v19, %v71_v22  ;;  %v1476_v29 = vld [vmem:[%s2648_s0 + $0x1e0] sm:$0xff]  ;;  %v1876_v15 = vld [vmem:[%s2647_s2 + $0x250] ss:$8 sps:$4 sm:$0xff]  }
  0x4d   :  { %1312 = vmatprep.subr.bf16.mxu0 %v1814_v30  ;;  %v1479_v30 = vld [vmem:[%s2648_s0 + $0x1f8] sm:$0xff] }
  0x4e   :  { %v118_v32 = vmax.bf16 %v1464_v23, %v93_v26  ;;  %v121_v36 = vmax.bf16 %v1467_v27, %v96_v28  ;;  %v1471_v19 = vld [vmem:[%s2648_s0 + $0x1b8] sm:$0xff]  ;;  %v1486_v28 = vld [vmem:[%s2648_s0 + $0x230] sm:$0xff] }
  0x4f   :  { %1244 = vmatpush1.bf16.msra.mxu1 %v1809_v33  ;;  %v27_v33 = vld [vmem:[%s2648_s0 + $0x48] sm:$0xff]  ;;  %v1483_v27 = vld [vmem:[%s2648_s0 + $0x218] sm:$0xff] }
  0x50   :  { %1313 = vmatpush1.bf16.msra.mxu0 %v1812_v34  ;;  %1245 = vmatprep.subr.bf16.mxu1 %v1817_v39  ;;  %v1434_v34 = vld [vmem:[%s2648_s0 + $0x90] sm:$0xff]  ;;  %v143_v39 = vmax.bf16 %v1476_v29, %v118_v32  ;;  %v52_v41 = vmax.bf16 %v1437_v35, %v27_v33  ;;  %v1433_v33 = vld [vmem:[%s2648_s0 + $0x88] sm:$0xff] }
  0x51   :  { %1314 = vmatprep.subr.bf16.mxu0 %v1820_v42  ;;  %v49_v40 = vmax.bf16 %v1434_v34, %v24_v31  ;;  %v146_v42 = vmax.bf16 %v1479_v30, %v121_v36  ;;  %v20_v29 = vld [vmem:[%s2648_s0 + $0x10] sm:$0xff]  ;;  %v23_v31 = vld [vmem:[%s2648_s0 + $0x28] sm:$0xff] }
  0x52   :  { %v77_v52 = vmax.bf16 %v1449_v44, %v52_v41  ;;  %v1430_v32 = vld [vmem:[%s2648_s0 + $0x70] sm:$0xff]  ;;  %v48_v36 = vmax.bf16 %v1433_v33, %v23_v31  ;;  %v1879_v44 = vld [vmem:[%s2647_s2 + $0xe0] ss:$8 sps:$4 sm:$0xff]  }
  0x53   :  { %1246 = vmatpush1.bf16.msra.mxu1 %v1815_v47  ;;  %v2384_v47 = vmax.bf16 %v1915_v1, %v143_v39  ;;  %v2390_v49 = vmax.bf16 %v1915_v1, %v146_v42  ;;  %v45_v35 = vmax.bf16 %v1430_v32, %v20_v29  ;;  %v1454_v42 = vld [vmem:[%s2648_s0 + $0x130] sm:$0xff]  ;;  %v1460_v31 = vld [vmem:[%s2648_s0 + $0x160] sm:$0xff]  ;;  %v1463_v32 = vld [vmem:[%s2648_s0 + $0x178] sm:$0xff] }
  0x54   :  { %1315 = vmatpush1.bf16.msra.mxu0 %v1818_v48  ;;  %1247 = vmatprep.subr.bf16.mxu1 %v1823_v50  ;;  %v1861_v48 = vld [vmem:[%s2647_s2 + $0xb0] ss:$8 sps:$4 sm:$0xff]   ;;  %v1903_v33 = vld [vmem:[%s2647_s2 + $0x2c0] ss:$8 sps:$4 sm:$0xff]  }
  0x55   :  { %1316 = vmatprep.subr.bf16.mxu0 %v1826_v51  ;;  %v1864_v50 = vld [vmem:[%s2647_s2 + $0x230] ss:$8 sps:$4 sm:$0xff]   ;;  %v74_v51 = vmax.bf16 %v1446_v43, %v49_v40  ;;  %v1543_v53 = vcombine.high %v2384_v47, %v2390_v49  ;;  %v1457_v43 = vld [vmem:[%s2648_s0 + $0x148] sm:$0xff] }
  0x57   :  { %1248 = vmatpush1.bf16.msra.mxu1 %v1821_v54  ;;  %v1458_v54 = vld [vmem:[%s2648_s0 + $0x150] sm:$0xff]  ;;  %1269 = vmatprep.mubr.bf16.mxu1 %v1543_v53 }
  0x58   :  { %1317 = vmatpush1.bf16.msra.mxu0 %v1824_v55  ;;  %1249 = vmatprep.subr.bf16.mxu1 %v1833_v57  ;;  %v1461_v55 = vld [vmem:[%s2648_s0 + $0x168] sm:$0xff] }
  0x59   :  { %1318 = vmatprep.subr.bf16.mxu0 %v1836_v58  ;;  %v1872_v57 = vld [vmem:[%s2647_s2 + $0x244] ss:$8 sps:$4 sm:$0xff]   ;;  %v1867_v58 = vld [vmem:[%s2647_s2 + $0xc0] ss:$8 sps:$4 sm:$0xff]  }
  0x5b   :  { %1250 = vmatpush1.bf16.msra.mxu1 %v1831_v59  ;;  %v1870_v59 = vld [vmem:[%s2647_s2 + $0x240] ss:$8 sps:$4 sm:$0xff]  }
  0x5c   :  { %1319 = vmatpush1.bf16.msra.mxu0 %v1834_v60  ;;  %1251 = vmatprep.subr.bf16.mxu1 %v1839_v61  ;;  %v25_v60 = vld [vmem:[%s2648_s0 + $0x38] sm:$0xff]  ;;  %v28_v61 = vld [vmem:[%s2648_s0 + $0x50] sm:$0xff] }
  0x5d   :  { %1320 = vmatprep.subr.bf16.mxu0 %v1842_v62  ;;  %v1435_v62 = vld [vmem:[%s2648_s0 + $0x98] sm:$0xff] }
  0x5f   :  { %1252 = vmatpush1.bf16.msra.mxu1 %v1837_v63  ;;  %v99_v63 = vmax.bf16 %v1458_v54, %v74_v51  ;;  %v1887_v51 = vld [vmem:[%s2647_s2 + $0xf4] ss:$8 sps:$4 sm:$0xff]  }
  0x60   :  { %1321 = vmatpush1.bf16.msra.mxu0 %v1840_v0  ;;  %1253 = vmatprep.subr.bf16.mxu1 %v1845_v2  ;;  %v102_v0 = vmax.bf16 %v1461_v55, %v77_v52  ;;  %v1438_v2 = vld [vmem:[%s2648_s0 + $0xb0] sm:$0xff] }
  0x61   :  { %1343 = vmatprep.subr.bf16.mxu0 %v1848_v3  ;;  %v50_v3 = vmax.bf16 %v1435_v62, %v25_v60  ;;  %v53_v8 = vmax.bf16 %v1438_v2, %v28_v61  ;;  %v124_v22 = vmax.bf16 %v1470_v6, %v99_v63  ;;  %v1890_v52 = vld [vmem:[%s2647_s2 + $0x274] ss:$8 sps:$4 sm:$0xff]   ;;  %v1885_v62 = vld [vmem:[%s2647_s2 + $0xf0] ss:$8 sps:$4 sm:$0xff]  }
  0x62   :  { %v1466_v54 = vld [vmem:[%s2648_s0 + $0x190] sm:$0xff] }
  0x63   :  { %1323 = vmatmul.mubr.bf16.vlgmr.msra.gmra.mrb[8].mxu0 %v1544_v7  ;;  %1254 = vmatpush1.bf16.msra.mxu1 %v1843_v12  ;;  %v1473_v7 = vld [vmem:[%s2648_s0 + $0x1c8] sm:$0xff]  ;;  %v75_v12 = vmax.bf16 %v1447_v4, %v50_v3  ;;  %v78_v18 = vmax.bf16 %v1450_v5, %v53_v8  ;;  %v1478_v61 = vld [vmem:[%s2648_s0 + $0x1f0] sm:$0xff]  ;;  %v1542_v8 = vcombine.low %v2384_v47, %v2390_v49 }
  0x64   :  { %1344 = vmatpush1.bf16.msra.mxu0 %v1846_v13  ;;  %1255 = vmatprep.subr.bf16.mxu1 %v1851_v16  ;;  %v1462_v13 = vld [vmem:[%s2648_s0 + $0x170] sm:$0xff]  ;;  %v127_v23 = vmax.bf16 %v1473_v7, %v102_v0  ;;  %v1481_v4 = vld [vmem:[%s2648_s0 + $0x208] sm:$0xff] }
  0x65   :  { %1345 = vmatprep.subr.bf16.mxu0 %v1854_v17  ;;  %v1482_v16 = vld [vmem:[%s2648_s0 + $0x210] sm:$0xff]  ;;  %v1485_v17 = vld [vmem:[%s2648_s0 + $0x228] sm:$0xff]  ;;  %v103_v26 = vmax.bf16 %v1462_v13, %v78_v18  ;;  %v1436_v18 = vld [vmem:[%s2648_s0 + $0xa0] sm:$0xff] }
  0x66   :  { %v149_v39 = vmax.bf16 %v1482_v16, %v124_v22  ;;  %v152_v40 = vmax.bf16 %v1485_v17, %v127_v23  ;;  %v1888_v63 = vld [vmem:[%s2647_s2 + $0x270] ss:$8 sps:$4 sm:$0xff]   ;;  %v1893_v5 = vld [vmem:[%s2647_s2 + $0x284] ss:$8 sps:$4 sm:$0xff]   ;;  %v1896_v13 = vld [vmem:[%s2647_s2 + $0x294] ss:$8 sps:$4 sm:$0xff]  }
  0x67   :  { %1256 = vmatpush1.bf16.msra.mxu1 %v1849_v20  ;;  %v1881_v20 = vld [vmem:[%s2647_s2 + $0xe4] ss:$8 sps:$4 sm:$0xff]   ;;  %v1894_v49 = vld [vmem:[%s2647_s2 + $0x290] ss:$8 sps:$4 sm:$0xff]  }
  0x68   :  { %1346 = vmatpush1.bf16.msra.mxu0 %v1852_v21  ;;  %1257 = vmatprep.subr.bf16.mxu1 %v1857_v24  ;;  %v1884_v21 = vld [vmem:[%s2647_s2 + $0x264] ss:$8 sps:$4 sm:$0xff]   ;;  %v100_v24 = vmax.bf16 %v1459_v9, %v75_v12  ;;  %v164_v60 = vmax.bf16 %v1915_v1, %v152_v40  ;;  %v29_v17 = vld [vmem:[%s2648_s0 + $0x58] sm:$0xff] }
  0x69   :  { %1347 = vmatprep.subr.bf16.mxu0 %v1860_v25  ;;  %v1474_v25 = vld [vmem:[%s2648_s0 + $0x1d0] sm:$0xff]  ;;  %v26_v16 = vld [vmem:[%s2648_s0 + $0x40] sm:$0xff] }
  0x6a   :  { %v125_v30 = vmax.bf16 %v1471_v19, %v100_v24  ;;  %v128_v34 = vmax.bf16 %v1474_v25, %v103_v26  ;;  %v1439_v19 = vld [vmem:[%s2648_s0 + $0xb8] sm:$0xff]  ;;  %v51_v22 = vmax.bf16 %v1436_v18, %v26_v16  ;;  %v1448_v25 = vld [vmem:[%s2648_s0 + $0x100] sm:$0xff] }
  0x6b   :  { %1258 = vmatpush1.bf16.msra.mxu1 %v1855_v37  ;;  %v1442_v37 = vld [vmem:[%s2648_s0 + $0xd0] sm:$0xff]  ;;  %v54_v23 = vmax.bf16 %v1439_v19, %v29_v17  ;;  %v1451_v26 = vld [vmem:[%s2648_s0 + $0x118] sm:$0xff] }
  0x6c   :  { %1348 = vmatpush1.bf16.msra.mxu0 %v1858_v38  ;;  %1259 = vmatprep.subr.bf16.mxu1 %v1863_v45  ;;  %v1445_v38 = vld [vmem:[%s2648_s0 + $0xe8] sm:$0xff]  ;;  %v150_v41 = vmax.bf16 %v1483_v27, %v125_v30  ;;  %v1902_v24 = vld [vmem:[%s2647_s2 + $0x2b4] ss:$8 sps:$4 sm:$0xff]   ;;  %v1900_v27 = vld [vmem:[%s2647_s2 + $0x2b0] ss:$8 sps:$4 sm:$0xff]  }
  0x6d   :  { %1349 = vmatprep.subr.bf16.mxu0 %v1866_v46  ;;  %v1882_v45 = vld [vmem:[%s2647_s2 + $0x260] ss:$8 sps:$4 sm:$0xff]   ;;  %v153_v46 = vmax.bf16 %v1486_v28, %v128_v34  ;;  %v76_v28 = vmax.bf16 %v1448_v25, %v51_v22  ;;  %v79_v29 = vmax.bf16 %v1451_v26, %v54_v23  ;;  %v1905_v30 = vld [vmem:[%s2647_s2 + $0x2c4] ss:$8 sps:$4 sm:$0xff]  }
  0x6e   :  { %v162_v53 = vmax.bf16 %v1915_v1, %v150_v41 }
  0x6f   :  { %1260 = vmatpush1.bf16.msra.mxu1 %v1861_v48  ;;  %v70_v48 = vmax.bf16 %v1442_v37, %v45_v35  ;;  %v165_v55 = vmax.bf16 %v1915_v1, %v153_v46  ;;  %v101_v34 = vmax.bf16 %v1460_v31, %v76_v28  ;;  %v104_v35 = vmax.bf16 %v1463_v32, %v79_v29  ;;  %v1472_v37 = vld [vmem:[%s2648_s0 + $0x1c0] sm:$0xff] }
  0x70   :  { %1350 = vmatpush1.bf16.msra.mxu0 %v1864_v50  ;;  %1261 = vmatprep.subr.bf16.mxu1 %v1869_v56  ;;  %v73_v50 = vmax.bf16 %v1445_v38, %v48_v36  ;;  %v1908_v36 = vld [vmem:[%s2647_s2 + $0x2d4] ss:$8 sps:$4 sm:$0xff]  }
  0x71   :  { %1351 = vmatprep.subr.bf16.mxu0 %v1872_v57  ;;  %v95_v56 = vmax.bf16 %v1454_v42, %v70_v48  ;;  %v1551_v0 = vcombine.high %v162_v53, %v165_v55  ;;  %v1550_v2 = vcombine.low %v162_v53, %v165_v55  ;;  %v1475_v38 = vld [vmem:[%s2648_s0 + $0x1d8] sm:$0xff]  ;;  %v126_v40 = vmax.bf16 %v1472_v37, %v101_v34  ;;  %v1911_v42 = vld [vmem:[%s2647_s2 + $0x2e4] ss:$8 sps:$4 sm:$0xff]  }
  0x72   :  { %v98_v57 = vmax.bf16 %v1457_v43, %v73_v50  ;;  %v129_v41 = vmax.bf16 %v1475_v38, %v104_v35  ;;  %v1484_v43 = vld [vmem:[%s2648_s0 + $0x220] sm:$0xff]  ;;  %v1914_v50 = vld [vmem:[%s2647_s2 + $0x2f4] ss:$8 sps:$4 sm:$0xff]  }
  0x73   :  { %1262 = vmatpush1.bf16.msra.mxu1 %v1867_v58  ;;  %v1469_v58 = vld [vmem:[%s2648_s0 + $0x1a8] sm:$0xff]  ;;  %v120_v3 = vmax.bf16 %v1466_v54, %v95_v56  ;;  %1332 = vmatprep.mubr.bf16.mxu0 %v1551_v0  ;;  %v151_v46 = vmax.bf16 %v1484_v43, %v126_v40 }
  0x74   :  { %1352 = vmatpush1.bf16.msra.mxu0 %v1870_v59  ;;  %1263 = vmatprep.subr.bf16.mxu1 %v1875_v10  ;;  %v161_v59 = vmax.bf16 %v1915_v1, %v149_v39  ;;  %v123_v6 = vmax.bf16 %v1469_v58, %v98_v57  ;;  %v1891_v10 = vld [vmem:[%s2647_s2 + $0x280] ss:$8 sps:$4 sm:$0xff]   ;;  %v1906_v39 = vld [vmem:[%s2647_s2 + $0x2d0] ss:$8 sps:$4 sm:$0xff]  }
  0x75   :  { %1353 = vmatprep.subr.bf16.mxu0 %v1878_v11  ;;  %v145_v7 = vmax.bf16 %v1478_v61, %v120_v3  ;;  %1333 = vmatmul.mubr.bf16.gmra.mrb[12].mxu0 %v1550_v2 }
  0x76   :  { %v148_v9 = vmax.bf16 %v1481_v4, %v123_v6  ;;  %v1549_v11 = vcombine.high %v161_v59, %v164_v60 }
  0x77   :  { %1264 = vmatpush1.bf16.msra.mxu1 %v1873_v14  ;;  %v2548_v12 = vmax.bf16 %v1915_v1, %v145_v7 }
  0x78   :  { %1354 = vmatpush1.bf16.msra.mxu0 %v1876_v15  ;;  %1265 = vmatprep.subr.bf16.mxu1 %v1881_v20  ;;  %v160_v14 = vmax.bf16 %v1915_v1, %v148_v9  ;;  %v1899_v15 = vld [vmem:[%s2647_s2 + $0x2a4] ss:$8 sps:$4 sm:$0xff]   ;;  %v1548_v20 = vcombine.low %v161_v59, %v164_v60 }
  0x79   :  { %1355 = vmatprep.subr.bf16.mxu0 %v1884_v21  ;;  %v1897_v21 = vld [vmem:[%s2647_s2 + $0x2a0] ss:$8 sps:$4 sm:$0xff]  }
  0x7a   :  { %v1547_v47 = vcombine.high %v2548_v12, %v160_v14  ;;  %v1546_v54 = vcombine.low %v2548_v12, %v160_v14 }
  0x7b   :  { %1266 = vmatpush1.bf16.msra.mxu1 %v1879_v44  ;;  %v1487_v44 = vld [vmem:[%s2648_s0 + $0x238] sm:$0xff] }
  0x7c   :  { %1356 = vmatpush1.bf16.msra.mxu0 %v1882_v45  ;;  %1267 = vmatprep.subr.bf16.mxu1 %v1887_v51  ;;  %v1909_v45 = vld [vmem:[%s2647_s2 + $0x2e0] ss:$8 sps:$4 sm:$0xff]   ;;  %v154_v48 = vmax.bf16 %v1487_v44, %v129_v41  ;;  %v1912_v51 = vld [vmem:[%s2647_s2 + $0x2f0] ss:$8 sps:$4 sm:$0xff]  }
  0x7d   :  { %1357 = vmatprep.subr.bf16.mxu0 %v1890_v52  ;;  %1375 = vmatprep.mubr.bf16.mxu0 %v1547_v47  ;;  %v163_v52 = vmax.bf16 %v1915_v1, %v151_v46 }
  0x7e   :  { %v166_v53 = vmax.bf16 %v1915_v1, %v154_v48 }
  0x7f   :  { %1268 = vmatpush1.bf16.msra.mxu1 %v1885_v62 }
  0x80   :  { %1358 = vmatpush1.bf16.msra.mxu0 %v1888_v63  ;;  %v1553_v55 = vcombine.high %v163_v52, %v166_v53  ;;  %v1552_v56 = vcombine.low %v163_v52, %v166_v53 }
  0x81   :  { %1359 = vmatprep.subr.bf16.mxu0 %v1893_v5 }
  0x82   :  { %1270 = vmatmul.mubr.bf16.vlgmr.msra.gmra.mrb[8].mxu1 %v1542_v8 }
  0x83   :  { %1279 = vmatprep.mubr.bf16.mxu1 %v1549_v11 }
  0x84   :  { %1360 = vmatpush1.bf16.msra.mxu0 %v1891_v10 }
  0x85   :  { %1361 = vmatprep.subr.bf16.mxu0 %v1896_v13 }
  0x88   :  { %1362 = vmatpush1.bf16.msra.mxu0 %v1894_v49 }
  0x89   :  { %1363 = vmatprep.subr.bf16.mxu0 %v1899_v15 }
  0x8a   :  { %1280 = vmatmul.mubr.bf16.gmra.mrb[12].mxu1 %v1548_v20 }
  0x8c   :  { %1364 = vmatpush1.bf16.msra.mxu0 %v1897_v21 }
  0x8d   :  { %1365 = vmatprep.subr.bf16.mxu0 %v1902_v24 }
  0x90   :  { %1366 = vmatpush1.bf16.msra.mxu0 %v1900_v27 }
  0x91   :  { %1367 = vmatprep.subr.bf16.mxu0 %v1905_v30 }
  0x94   :  { %1368 = vmatpush1.bf16.msra.mxu0 %v1903_v33 }
  0x95   :  { %1369 = vmatprep.subr.bf16.mxu0 %v1908_v36 }
  0x98   :  { %1370 = vmatpush1.bf16.msra.mxu0 %v1906_v39 }
  0x99   :  { %1371 = vmatprep.subr.bf16.mxu0 %v1911_v42 }
  0x9c   :  { %1372 = vmatpush1.bf16.msra.mxu0 %v1909_v45 }
  0x9d   :  { %1373 = vmatprep.subr.bf16.mxu0 %v1914_v50 }
  0xa0   :  { %1374 = vmatpush1.bf16.msra.mxu0 %v1912_v51 }
  0xa3   :  { %1376 = vmatmul.mubr.bf16.vlgmr.msra.gmra.mrb[8].mxu0 %v1546_v54 }
  0xa4   :  { %1385 = vmatprep.mubr.bf16.mxu0 %v1553_v55 }
  0xab   :  { %1386 = vmatmul.mubr.bf16.gmra.mrb[12].mxu0 %v1552_v56 }
  0xf6   :  { %v678_v57 = vpop.f32.mrb[0].mxu0 }
  0xf7   :  { %v680_v58 = vpop.f32.mrb[1].mxu0 }
  0xf8   :  { %v682_v59 = vpop.f32.mrb[2].mxu0 }
  0xf9   :  { %v684_v60 = vpop.f32.mrb[3].mxu0 }
  0xfe   :  { %v688_v61 = vpop.f32.mrb[4].mxu0 }
  0xff   :  { %v690_v63 = vpop.f32.mrb[5].mxu0 }
 0x100   :  { %v692_v3 = vpop.f32.mrb[6].mxu0 }
 0x101   :  { %v694_v5 = vpop.f32.mrb[7].mxu0 }
 0x115   :  { %v625_v62 = vpop.f32.mrb[0].mxu1 }
 0x116   :  { %v679_v0 = vadd.f32 %v678_v57, %v625_v62  ;;  %v627_v2 = vpop.f32.mrb[1].mxu1 }
 0x117   :  { %v681_v1 = vadd.f32 %v680_v58, %v627_v2  ;;  %v629_v4 = vpop.f32.mrb[2].mxu1 }
 0x118   :  { %v683_v6 = vadd.f32 %v682_v59, %v629_v4  ;;  %v631_v7 = vpop.f32.mrb[3].mxu1 }
 0x119   :  { %v685_v8 = vadd.f32 %v684_v60, %v631_v7 }
 0x11d   :  { %v635_v9 = vpop.f32.mrb[4].mxu1 }
 0x11e   :  { %v689_v10 = vadd.f32 %v688_v61, %v635_v9  ;;  %v637_v11 = vpop.f32.mrb[5].mxu1 }
 0x11f   :  { %v691_v12 = vadd.f32 %v690_v63, %v637_v11  ;;  %v639_v13 = vpop.f32.mrb[6].mxu1 }
 0x120   :  { %v693_v14 = vadd.f32 %v692_v3, %v639_v13  ;;  %v641_v47 = vpop.f32.mrb[7].mxu1 }
 0x121   :  { %v695_v49 = vadd.f32 %v694_v5, %v641_v47 }
 0x155   :  { %v1271_v15 = vpop.f32.mrb[8].mxu1 }
 0x156   :  { %v1272_v16 = vadd.f32 %v1271_v15, %v679_v0  ;;  %v1273_v17 = vpop.f32.mrb[9].mxu1 }
 0x157   :  { %v1274_v18 = vadd.f32 %v1273_v17, %v681_v1  ;;  %v1275_v19 = vpop.f32.mrb[10].mxu1 }
 0x158   :  { %v1276_v20 = vadd.f32 %v1275_v19, %v683_v6  ;;  %v1277_v21 = vpop.f32.mrb[11].mxu1 }
 0x159   :  { %v1278_v22 = vadd.f32 %v1277_v21, %v685_v8 }
 0x15d   :  { %v1281_v23 = vpop.f32.mrb[12].mxu1 }
 0x15e   :  { %v1282_v24 = vadd.f32 %v1281_v23, %v689_v10  ;;  %v1283_v25 = vpop.f32.mrb[13].mxu1 }
 0x15f   :  { %v1284_v26 = vadd.f32 %v1283_v25, %v691_v12  ;;  %v1285_v27 = vpop.f32.mrb[14].mxu1 }
 0x160   :  { %v1286_v28 = vadd.f32 %v1285_v27, %v693_v14  ;;  %v1287_v29 = vpop.f32.mrb[15].mxu1 }
 0x161   :  { %v1288_v30 = vadd.f32 %v1287_v29, %v695_v49 }
 0x176   :  { %v1377_v31 = vpop.f32.mrb[8].mxu0 }
 0x177   :  { %v1660_v32 = vadd.f32 %v1377_v31, %v1272_v16  ;;  %v1379_v33 = vpop.f32.mrb[9].mxu0 }
 0x178   :  { %v1663_v34 = vadd.f32 %v1379_v33, %v1274_v18  ;;  %v1381_v35 = vpop.f32.mrb[10].mxu0 }
 0x179   :  { %v1666_v36 = vadd.f32 %v1381_v35, %v1276_v20  ;;  %v1383_v37 = vpop.f32.mrb[11].mxu0 }
 0x17a   :  { %v1654_v38 = vpack.c.bf16 %v1663_v34, %v1660_v32  ;;  %v1669_v39 = vadd.f32 %v1383_v37, %v1278_v22 }
 0x17c   :  { %1420 = vst [vmem:[%s2649_s4] sm:$0xff] %v1654_v38  ;;  %v1655_v40 = vpack.c.bf16 %v1669_v39, %v1666_v36 }
 0x17e   :  { %1421 = vst [vmem:[%s2649_s4 + $0x8] sm:$0xff] %v1655_v40  ;;  %v1387_v41 = vpop.f32.mrb[12].mxu0 }
 0x17f   :  { %v1672_v42 = vadd.f32 %v1387_v41, %v1282_v24  ;;  %v1389_v43 = vpop.f32.mrb[13].mxu0 }
 0x180   :  { %v1675_v44 = vadd.f32 %v1389_v43, %v1284_v26  ;;  %v1391_v45 = vpop.f32.mrb[14].mxu0 }
 0x181   :  { %v1678_v46 = vadd.f32 %v1391_v45, %v1286_v28  ;;  %v1393_v48 = vpop.f32.mrb[15].mxu0 }
 0x182   :  { %v1656_v50 = vpack.c.bf16 %v1675_v44, %v1672_v42  ;;  %v1681_v51 = vadd.f32 %v1393_v48, %v1288_v30 }
 0x184   :  { %1422 = vst [vmem:[%s2649_s4 + $0x10] sm:$0xff] %v1656_v50  ;;  %v1657_v52 = vpack.c.bf16 %v1681_v51, %v1678_v46 }
 0x186   :  { %1423 = vst [vmem:[%s2649_s4 + $0x18] sm:$0xff] %v1657_v52 }

// kernel: forward.6
= control target key start
LH: loop header
LB: loop body
LE: loop exit
PB: predicated region body
PF: predicated region fallthrough
CT: control target
= control target key end

     0   :  { %v2117_v3 = vmov 0   ;;  %vm83_vm0 = vcmask 1043456   ;;  %vm70_vm1 = vcmask 195584   ;;  %s2120_s13 = smov 96   ;;  %s2121_s14 = smov 48   ;;  %vm780_vm2 = vcmask 130048   ;;  %s2515_s0 = inlined_call_operand.vmem [shape: bf16[64,256], index: 0, kind: input, shape index: {}]   ;;  %s2516_s1 = inlined_call_operand.vmem [shape: bf16[24,32], index: 1, kind: input, shape index: {}]   ;;  %s2517_s3 = inlined_call_operand.vmem [shape: bf16[3,32,64], index: 3, kind: input, shape index: {}]   ;;  %s2518_s2 = inlined_call_operand.vmem [shape: f32[1,32], index: 2, kind: input, shape index: {}]   ;;  %s2519_s4 = inlined_call_operand.vmem [shape: f32[1,64], index: 4, kind: input, shape index: {}]   ;;  %s2520_s5 = inlined_call_operand.vmem [shape: bf16[64,64], index: 5, kind: output, shape index: {}]  }
   0x1   :  { %v25_v0 = vld [vmem:[%s2515_s0 + $0x20] sm:$0xff]  ;;  %v26_v1 = vld [vmem:[%s2515_s0 + $0x28] sm:$0xff]  ;;  %v27_v8 = vld [vmem:[%s2515_s0 + $0x30] sm:$0xff]  ;;  %s2122_s15 = smov 64   ;;  %s2123_s16 = smov 16   ;;  %vm1101_vm3 = vcmask 261120  }
   0x2   :  { %v21_v2 = vld [vmem:[%s2515_s0] sm:$0xff]  ;;  %v2164_v4 = vmax.bf16 %v2117_v3, %v25_v0  ;;  %v2166_v5 = vmax.bf16 %v2117_v3, %v26_v1  ;;  %v22_v6 = vld [vmem:[%s2515_s0 + $0x8] sm:$0xff]  ;;  %v28_v9 = vld [vmem:[%s2515_s0 + $0x38] sm:$0xff]  ;;  %v2177_v11 = vmax.bf16 %v2117_v3, %v27_v8  ;;  %s2124_s17 = smov 32   ;;  %vm1652_vm4 = vcmask 519168  }
   0x3   :  { %v29_v7 = vmax.bf16 %v2117_v3, %v21_v2  ;;  %v30_v10 = vmax.bf16 %v2117_v3, %v22_v6  ;;  %v2179_v12 = vmax.bf16 %v2117_v3, %v28_v9  ;;  %v23_v13 = vld [vmem:[%s2515_s0 + $0x10] sm:$0xff]  ;;  %v24_v14 = vld [vmem:[%s2515_s0 + $0x18] sm:$0xff]  ;;  %v2194_v18 = vld [vmem:[%s2516_s1] sm:$0xff]   ;;  %s2118_s0 = smov 112  }
   0x4   :  { %v2189_v15 = vcombine.low %v2164_v4, %v2166_v5  ;;  %v31_v16 = vmax.bf16 %v2117_v3, %v23_v13  ;;  %v32_v17 = vmax.bf16 %v2117_v3, %v24_v14  ;;  %v2199_v20 = vld [vmem:[%s2516_s1 + $0x8] ss:$0 sps:$4 sm:$0xff]   ;;  %1867 = vmatprep.subr.bf16.mxu0 %v2194_v18  ;;  %1879 = vmatprep.subr.bf16.mxu1 %v2194_v18  ;;  %s2119_s1 = smov 80   ;;  %v2111_v8 = vld [vmem:[%s2517_s3 + $0x10] sm:$0xff]   ;;  %v2112_v9 = vld [vmem:[%s2517_s3 + $0x18] sm:$0xff]  }
   0x5   :  { %v1665_v19 = vcombine.low %v29_v7, %v30_v10  ;;  %v1668_v21 = vcombine.low %v2177_v11, %v2179_v12  ;;  %1868 = vmatpush3.bf16.msra.mxu0 %v2194_v18  ;;  %v2212_v23 = vsel %vm83_vm0, %v2199_v20, 0  ;;  %1880 = vmatpush3.bf16.msra.mxu1 %v2194_v18  ;;  %v2238_v24 = vcombine.high %v29_v7, %v30_v10  ;;  %v2350_v14 = vld [vmem:[%s2517_s3] sm:$0xff]  }
   0x6   :  { %156 = vrot.lane.b32.xlu1 %v2189_v15, %s2118_s0  ;;  %v1666_v22 = vcombine.low %v31_v16, %v32_v17  ;;  %2091 = vmatprep.subr.msk.bf16.mxu0 %vm83_vm0, %v2199_v20  ;;  %v2241_v25 = vcombine.high %v31_v16, %v32_v17  ;;  %v2245_v26 = vcombine.high %v2164_v4, %v2166_v5 }
   0x7   :  { %152 = vrot.lane.b32.xlu0 %v1665_v19, %s2118_s0  ;;  %1871 = vmatprep.mubr.msk.bf16.mxu0 %vm70_vm1, %v1665_v19  ;;  %v2253_v27 = vcombine.high %v2177_v11, %v2179_v12 }
   0x8   :  { %2092 = vmatprep.subr.msk.bf16.mxu1 %vm83_vm0, %v2199_v20 }
   0x9   :  { %1870 = vmatpush3.bf16.msra.mxu0 %v2212_v23  ;;  %1882 = vmatpush3.bf16.msra.mxu1 %v2212_v23 }
   0xa   :  { %158 = vrot.lane.b32.xlu1 %v1668_v21, %s2118_s0  ;;  %1891 = vmatprep.subr.bf16.mxu0 %v2194_v18 }
   0xb   :  { %154 = vrot.lane.b32.xlu0 %v1666_v22, %s2118_s0  ;;  %1903 = vmatprep.subr.bf16.mxu1 %v2194_v18 }
   0xc   :  { %1872 = vmatmul.mubr.msk.bf16.vlgmr.msra.gmra.mrb[0].mxu0 %vm70_vm1, %v1666_v22 }
   0xd   :  { %1875 = vmatprep.mubr.msk.bf16.mxu0 %vm70_vm1, %v2189_v15  ;;  %1892 = vmatpush3.bf16.msra.mxu0 %v2194_v18 }
   0xe   :  { %356 = vrot.lane.b32.xlu1 %v1665_v19, %s2119_s1  ;;  %2093 = vmatprep.subr.msk.bf16.mxu0 %vm83_vm0, %v2199_v20 }
   0xf   :  { %271 = vrot.lane.b32.xlu0 %v1665_v19, %s2120_s13 }
  0x11   :  { %1894 = vmatpush3.bf16.msra.mxu0 %v2212_v23 }
  0x12   :  { %358 = vrot.lane.b32.xlu1 %v1666_v22, %s2119_s1  ;;  %1915 = vmatprep.subr.bf16.mxu0 %v2194_v18 }
  0x13   :  { %273 = vrot.lane.b32.xlu0 %v1666_v22, %s2120_s13 }
  0x14   :  { %1876 = vmatmul.mubr.msk.bf16.gmra.mrb[4].mxu0 %vm70_vm1, %v1668_v21 }
  0x16   :  { %360 = vrot.lane.b32.xlu1 %v2189_v15, %s2119_s1 }
  0x17   :  { %275 = vrot.lane.b32.xlu0 %v2189_v15, %s2120_s13 }
  0x1a   :  { %362 = vrot.lane.b32.xlu1 %v1668_v21, %s2119_s1 }
  0x1b   :  { %277 = vrot.lane.b32.xlu0 %v1668_v21, %s2120_s13 }
  0x1e   :  { %554 = vrot.lane.b32.xlu1 %v1665_v19, %s2121_s14 }
  0x1f   :  { %469 = vrot.lane.b32.xlu0 %v1665_v19, %s2122_s15 }
  0x22   :  { %556 = vrot.lane.b32.xlu1 %v1666_v22, %s2121_s14 }
  0x23   :  { %471 = vrot.lane.b32.xlu0 %v1666_v22, %s2122_s15 }
  0x26   :  { %558 = vrot.lane.b32.xlu1 %v2189_v15, %s2121_s14 }
  0x27   :  { %473 = vrot.lane.b32.xlu0 %v2189_v15, %s2122_s15 }
  0x2a   :  { %560 = vrot.lane.b32.xlu1 %v1668_v21, %s2121_s14 }
  0x2b   :  { %475 = vrot.lane.b32.xlu0 %v1668_v21, %s2122_s15 }
  0x2e   :  { %766 = vrot.lane.b32.xlu1 %v2238_v24, %s2123_s16 }
  0x2f   :  { %764 = vrot.lane.b32.xlu0 %v1665_v19, %s2123_s16 }
  0x32   :  { %768 = vrot.lane.b32.xlu1 %v1666_v22, %s2123_s16 }
  0x33   :  { %667 = vrot.lane.b32.xlu0 %v1665_v19, %s2124_s17 }
  0x36   :  { %669 = vrot.lane.b32.xlu1 %v1666_v22, %s2124_s17 }
  0x37   :  { %770 = vrot.lane.b32.xlu0 %v2241_v25, %s2123_s16 }
  0x3a   :  { %774 = vrot.lane.b32.xlu1 %v2245_v26, %s2123_s16 }
  0x3b   :  { %772 = vrot.lane.b32.xlu0 %v2189_v15, %s2123_s16 }
  0x3e   :  { %776 = vrot.lane.b32.xlu1 %v1668_v21, %s2123_s16 }
  0x3f   :  { %671 = vrot.lane.b32.xlu0 %v2189_v15, %s2124_s17  ;;  %v2357_v15 = vld [vmem:[%s2518_s2] ss:$0 sm:$0xff] }
  0x42   :  { %673 = vrot.lane.b32.xlu1 %v1668_v21, %s2124_s17 }
  0x43   :  { %778 = vrot.lane.b32.xlu0 %v2253_v27, %s2123_s16 }
  0x46   :  { %969 = vrot.lane.b32.xlu1 %v2241_v25, %s2118_s0 }
  0x47   :  { %967 = vrot.lane.b32.xlu0 %v2238_v24, %s2118_s0 }
  0x4a   :  { %973 = vrot.lane.b32.xlu1 %v2253_v27, %s2118_s0 }
  0x4b   :  { %971 = vrot.lane.b32.xlu0 %v2245_v26, %s2118_s0 }
  0x78   :  { %v157_v28 = vpop.permute.xlu1 %156 }
  0x79   :  { %v153_v29 = vpop.permute.xlu0 %152 }
  0x7a   :  { %1883 = vmatprep.mubr.msk.bf16.mxu1 %vm70_vm1, %v153_v29 }
  0x7c   :  { %v159_v30 = vpop.permute.xlu1 %158 }
  0x7d   :  { %v155_v31 = vpop.permute.xlu0 %154 }
  0x7e   :  { %1884 = vmatmul.mubr.msk.bf16.vlgmr.msra.gmra.mrb[0].mxu1 %vm70_vm1, %v155_v31 }
  0x7f   :  { %1887 = vmatprep.mubr.msk.bf16.mxu1 %vm70_vm1, %v157_v28  ;;  %1904 = vmatpush3.bf16.msra.mxu1 %v2194_v18 }
  0x80   :  { %v357_v32 = vpop.permute.xlu1 %356  ;;  %2094 = vmatprep.subr.msk.bf16.mxu1 %vm83_vm0, %v2199_v20 }
  0x81   :  { %v272_v33 = vpop.permute.xlu0 %271 }
  0x82   :  { %1895 = vmatprep.mubr.msk.bf16.mxu0 %vm70_vm1, %v272_v33 }
  0x83   :  { %1906 = vmatpush3.bf16.msra.mxu1 %v2212_v23 }
  0x84   :  { %v359_v34 = vpop.permute.xlu1 %358  ;;  %1927 = vmatprep.subr.bf16.mxu1 %v2194_v18 }
  0x85   :  { %v274_v35 = vpop.permute.xlu0 %273 }
  0x86   :  { %1888 = vmatmul.mubr.msk.bf16.gmra.mrb[4].mxu1 %vm70_vm1, %v159_v30  ;;  %1896 = vmatmul.mubr.msk.bf16.vlgmr.msra.gmra.mrb[8].mxu0 %vm70_vm1, %v274_v35 }
  0x87   :  { %1907 = vmatprep.mubr.msk.bf16.mxu1 %vm70_vm1, %v357_v32  ;;  %1916 = vmatpush3.bf16.msra.mxu0 %v2194_v18 }
  0x88   :  { %v361_v36 = vpop.permute.xlu1 %360  ;;  %2095 = vmatprep.subr.msk.bf16.mxu0 %vm83_vm0, %v2199_v20 }
  0x89   :  { %v276_v37 = vpop.permute.xlu0 %275 }
  0x8a   :  { %1899 = vmatprep.mubr.msk.bf16.mxu0 %vm70_vm1, %v276_v37 }
  0x8b   :  { %1918 = vmatpush3.bf16.msra.mxu0 %v2212_v23 }
  0x8c   :  { %v363_v38 = vpop.permute.xlu1 %362  ;;  %1939 = vmatprep.subr.bf16.mxu0 %v2194_v18 }
  0x8d   :  { %v278_v39 = vpop.permute.xlu0 %277 }
  0x8e   :  { %1900 = vmatmul.mubr.msk.bf16.gmra.mrb[12].mxu0 %vm70_vm1, %v278_v39  ;;  %1908 = vmatmul.mubr.msk.bf16.vlgmr.msra.gmra.mrb[8].mxu1 %vm70_vm1, %v359_v34 }
  0x8f   :  { %1911 = vmatprep.mubr.msk.bf16.mxu1 %vm70_vm1, %v361_v36  ;;  %1928 = vmatpush3.bf16.msra.mxu1 %v2194_v18 }
  0x90   :  { %v555_v40 = vpop.permute.xlu1 %554  ;;  %2096 = vmatprep.subr.msk.bf16.mxu1 %vm83_vm0, %v2199_v20 }
  0x91   :  { %v470_v41 = vpop.permute.xlu0 %469 }
  0x92   :  { %1919 = vmatprep.mubr.msk.bf16.mxu0 %vm70_vm1, %v470_v41 }
  0x93   :  { %1930 = vmatpush3.bf16.msra.mxu1 %v2212_v23 }
  0x94   :  { %v557_v42 = vpop.permute.xlu1 %556  ;;  %1951 = vmatprep.subr.bf16.mxu1 %v2194_v18 }
  0x95   :  { %v472_v43 = vpop.permute.xlu0 %471 }
  0x96   :  { %1912 = vmatmul.mubr.msk.bf16.gmra.mrb[12].mxu1 %vm70_vm1, %v363_v38  ;;  %1920 = vmatmul.mubr.msk.bf16.vlgmr.msra.gmra.mrb[16].mxu0 %vm70_vm1, %v472_v43 }
  0x97   :  { %1931 = vmatprep.mubr.msk.bf16.mxu1 %vm70_vm1, %v555_v40  ;;  %1940 = vmatpush3.bf16.msra.mxu0 %v2194_v18 }
  0x98   :  { %v559_v44 = vpop.permute.xlu1 %558  ;;  %2097 = vmatprep.subr.msk.bf16.mxu0 %vm83_vm0, %v2199_v20 }
  0x99   :  { %v474_v45 = vpop.permute.xlu0 %473 }
  0x9a   :  { %1923 = vmatprep.mubr.msk.bf16.mxu0 %vm70_vm1, %v474_v45 }
  0x9b   :  { %1942 = vmatpush3.bf16.msra.mxu0 %v2212_v23 }
  0x9c   :  { %v561_v46 = vpop.permute.xlu1 %560  ;;  %1963 = vmatprep.subr.bf16.mxu0 %v2194_v18 }
  0x9d   :  { %v476_v47 = vpop.permute.xlu0 %475 }
  0x9e   :  { %1924 = vmatmul.mubr.msk.bf16.gmra.mrb[20].mxu0 %vm70_vm1, %v476_v47  ;;  %1932 = vmatmul.mubr.msk.bf16.vlgmr.msra.gmra.mrb[16].mxu1 %vm70_vm1, %v557_v42 }
  0x9f   :  { %1935 = vmatprep.mubr.msk.bf16.mxu1 %vm70_vm1, %v559_v44  ;;  %1952 = vmatpush3.bf16.msra.mxu1 %v2194_v18 }
  0xa0   :  { %v767_v48 = vpop.permute.xlu1 %766  ;;  %2098 = vmatprep.subr.msk.bf16.mxu1 %vm83_vm0, %v2199_v20 }
  0xa1   :  { %v765_v49 = vpop.permute.xlu0 %764 }
  0xa2   :  { %v781_v52 = vsel %vm780_vm2, %v765_v49, %v767_v48 }
  0xa3   :  { %1954 = vmatpush3.bf16.msra.mxu1 %v2212_v23 }
  0xa4   :  { %v769_v50 = vpop.permute.xlu1 %768  ;;  %1975 = vmatprep.subr.bf16.mxu1 %v2194_v18 }
  0xa5   :  { %v668_v51 = vpop.permute.xlu0 %667 }
  0xa6   :  { %1936 = vmatmul.mubr.msk.bf16.gmra.mrb[20].mxu1 %vm70_vm1, %v561_v46  ;;  %1943 = vmatprep.mubr.msk.bf16.mxu0 %vm70_vm1, %v668_v51 }
  0xa7   :  { %1955 = vmatprep.mubr.msk.bf16.mxu1 %vm70_vm1, %v781_v52 }
  0xa8   :  { %v670_v53 = vpop.permute.xlu1 %669 }
  0xa9   :  { %v771_v54 = vpop.permute.xlu0 %770  ;;  %1944 = vmatmul.mubr.msk.bf16.vlgmr.msra.gmra.mrb[24].mxu0 %vm70_vm1, %v670_v53 }
  0xaa   :  { %1964 = vmatpush3.bf16.msra.mxu0 %v2194_v18  ;;  %v782_v56 = vsel %vm780_vm2, %v769_v50, %v771_v54 }
  0xab   :  { %2099 = vmatprep.subr.msk.bf16.mxu0 %vm83_vm0, %v2199_v20 }
  0xac   :  { %v775_v55 = vpop.permute.xlu1 %774 }
  0xad   :  { %v773_v57 = vpop.permute.xlu0 %772 }
  0xae   :  { %v783_v58 = vsel %vm780_vm2, %v773_v57, %v775_v55  ;;  %1956 = vmatmul.mubr.msk.bf16.vlgmr.msra.gmra.mrb[24].mxu1 %vm70_vm1, %v782_v56  ;;  %1966 = vmatpush3.bf16.msra.mxu0 %v2212_v23 }
  0xaf   :  { %1959 = vmatprep.mubr.msk.bf16.mxu1 %vm70_vm1, %v783_v58  ;;  %1976 = vmatpush3.bf16.msra.mxu1 %v2194_v18 }
  0xb0   :  { %v777_v59 = vpop.permute.xlu1 %776  ;;  %2100 = vmatprep.subr.msk.bf16.mxu1 %vm83_vm0, %v2199_v20  ;;  %1987 = vmatprep.subr.bf16.mxu0 %v2111_v8 }
  0xb1   :  { %v672_v60 = vpop.permute.xlu0 %671 }
  0xb2   :  { %1947 = vmatprep.mubr.msk.bf16.mxu0 %vm70_vm1, %v672_v60 }
  0xb3   :  { %1978 = vmatpush3.bf16.msra.mxu1 %v2212_v23 }
  0xb4   :  { %v674_v61 = vpop.permute.xlu1 %673  ;;  %2023 = vmatprep.subr.bf16.mxu1 %v2111_v8 }
  0xb5   :  { %v779_v62 = vpop.permute.xlu0 %778  ;;  %1948 = vmatmul.mubr.msk.bf16.gmra.mrb[28].mxu0 %vm70_vm1, %v674_v61 }
  0xb6   :  { %v784_v63 = vsel %vm780_vm2, %v777_v59, %v779_v62  ;;  %1967 = vmatprep.mubr.msk.bf16.mxu0 %vm70_vm1, %v2238_v24 }
  0xb7   :  { %1960 = vmatmul.mubr.msk.bf16.gmra.mrb[28].mxu1 %vm70_vm1, %v784_v63 }
  0xb8   :  { %v970_v1 = vpop.permute.xlu1 %969 }
  0xb9   :  { %v968_v0 = vpop.permute.xlu0 %967 }
  0xba   :  { %1979 = vmatprep.mubr.msk.bf16.mxu1 %vm70_vm1, %v968_v0 }
  0xbc   :  { %v974_v3 = vpop.permute.xlu1 %973 }
  0xbd   :  { %1968 = vmatmul.mubr.msk.bf16.vlgmr.msra.gmra.mrb[32].mxu0 %vm70_vm1, %v2241_v25  ;;  %v972_v2 = vpop.permute.xlu0 %971 }
  0xbe   :  { %1971 = vmatprep.mubr.msk.bf16.mxu0 %vm70_vm1, %v2245_v26  ;;  %1988 = vmatpush3.bf16.msra.mxu0 %v2111_v8 }
  0xbf   :  { %1980 = vmatmul.mubr.msk.bf16.vlgmr.msra.gmra.mrb[32].mxu1 %vm70_vm1, %v970_v1  ;;  %1989 = vmatprep.subr.bf16.mxu0 %v2112_v9 }
  0xc0   :  { %1983 = vmatprep.mubr.msk.bf16.mxu1 %vm70_vm1, %v972_v2  ;;  %2024 = vmatpush3.bf16.msra.mxu1 %v2111_v8 }
  0xc1   :  { %2025 = vmatprep.subr.bf16.mxu1 %v2112_v9 }
  0xc2   :  { %1990 = vmatpush3.bf16.msra.mxu0 %v2112_v9 }
  0xc3   :  { %1999 = vmatprep.subr.bf16.mxu0 %v2350_v14 }
  0xc4   :  { %2026 = vmatpush3.bf16.msra.mxu1 %v2112_v9 }
  0xc5   :  { %1972 = vmatmul.mubr.msk.bf16.gmra.mrb[36].mxu0 %vm70_vm1, %v2253_v27  ;;  %2035 = vmatprep.subr.bf16.mxu1 %v2350_v14 }
  0xc7   :  { %1984 = vmatmul.mubr.msk.bf16.gmra.mrb[36].mxu1 %vm70_vm1, %v974_v3 }
  0xdf   :  { %v1873_v4 = vpop.f32.mrb[0].mxu0 }
  0xe0   :  { %v121_v5 = vpop.f32.mrb[1].mxu0 }
  0xe1   :  { %v1874_v6 = vpop.f32.mrb[2].mxu0 }
  0xe2   :  { %v124_v7 = vpop.f32.mrb[3].mxu0 }
  0xe7   :  { %v1877_v10 = vpop.f32.mrb[4].mxu0 }
  0xe8   :  { %v137_v11 = vpop.f32.mrb[5].mxu0 }
  0xe9   :  { %v1878_v12 = vpop.f32.mrb[6].mxu0 }
  0xea   :  { %v140_v13 = vpop.f32.mrb[7].mxu0 }
 0x151   :  { %v1885_v16 = vpop.f32.mrb[0].mxu1 }
 0x152   :  { %v239_v17 = vmax.f32 %v1873_v4, %v1885_v16  ;;  %v206_v18 = vpop.f32.mrb[1].mxu1 }
 0x153   :  { %v237_v19 = vmax.f32 %v121_v5, %v206_v18  ;;  %v1886_v20 = vpop.f32.mrb[2].mxu1 }
 0x154   :  { %v253_v21 = vadd.f32 %v2357_v15, %v239_v17  ;;  %v240_v22 = vmax.f32 %v1874_v6, %v1886_v20  ;;  %v209_v23 = vpop.f32.mrb[3].mxu1 }
 0x155   :  { %v251_v24 = vadd.f32 %v2357_v15, %v237_v19  ;;  %v238_v25 = vmax.f32 %v124_v7, %v209_v23 }
 0x156   :  { %v254_v26 = vadd.f32 %v2357_v15, %v240_v22  ;;  %v261_v28 = vmax.f32 %v253_v21, 0.0 }
 0x157   :  { %v252_v27 = vadd.f32 %v2357_v15, %v238_v25  ;;  %v259_v30 = vmax.f32 %v251_v24, 0.0 }
 0x158   :  { %v262_v29 = vmax.f32 %v254_v26, 0.0 }
 0x159   :  { %v260_v31 = vmax.f32 %v252_v27, 0.0  ;;  %v1889_v32 = vpop.f32.mrb[4].mxu1  ;;  %v1897_v33 = vpop.f32.mrb[8].mxu0 }
 0x15a   :  { %v2363_v34 = vpack.c.bf16 %v262_v29, %v261_v28  ;;  %v243_v35 = vmax.f32 %v1877_v10, %v1889_v32  ;;  %v222_v36 = vpop.f32.mrb[5].mxu1  ;;  %v325_v37 = vpop.f32.mrb[9].mxu0  ;;  %v2383_v28 = vld [vmem:[%s2517_s3 + $0x8] sm:$0xff]  }
 0x15b   :  { %v2365_v38 = vpack.c.bf16 %v260_v31, %v259_v30  ;;  %v241_v39 = vmax.f32 %v137_v11, %v222_v36  ;;  %v1890_v40 = vpop.f32.mrb[6].mxu1  ;;  %v1898_v41 = vpop.f32.mrb[10].mxu0  ;;  %v2395_v36 = vld [vmem:[%s2517_s3 + $0x20] sm:$0xff]  }
 0x15c   :  { %v257_v42 = vadd.f32 %v2357_v15, %v243_v35  ;;  %v244_v43 = vmax.f32 %v1878_v12, %v1890_v40  ;;  %v225_v44 = vpop.f32.mrb[7].mxu1  ;;  %v328_v45 = vpop.f32.mrb[11].mxu0 }
 0x15d   :  { %v255_v46 = vadd.f32 %v2357_v15, %v241_v39  ;;  %v242_v47 = vmax.f32 %v140_v13, %v225_v44 }
 0x15e   :  { %v258_v48 = vadd.f32 %v2357_v15, %v244_v43  ;;  %v265_v50 = vmax.f32 %v257_v42, 0.0 }
 0x15f   :  { %v256_v49 = vadd.f32 %v2357_v15, %v242_v47  ;;  %v263_v52 = vmax.f32 %v255_v46, 0.0 }
 0x160   :  { %v266_v51 = vmax.f32 %v258_v48, 0.0 }
 0x161   :  { %v264_v53 = vmax.f32 %v256_v49, 0.0  ;;  %v1901_v54 = vpop.f32.mrb[12].mxu0  ;;  %v1909_v55 = vpop.f32.mrb[8].mxu1 }
 0x162   :  { %v2371_v56 = vpack.c.bf16 %v266_v51, %v265_v50  ;;  %v443_v57 = vmax.f32 %v1897_v33, %v1909_v55  ;;  %v341_v58 = vpop.f32.mrb[13].mxu0  ;;  %v410_v59 = vpop.f32.mrb[9].mxu1 }
 0x163   :  { %v2373_v60 = vpack.c.bf16 %v264_v53, %v263_v52  ;;  %v441_v61 = vmax.f32 %v325_v37, %v410_v59  ;;  %v1902_v62 = vpop.f32.mrb[14].mxu0  ;;  %v1910_v63 = vpop.f32.mrb[10].mxu1 }
 0x164   :  { %v451_v0 = vadd.f32 %v2357_v15, %v443_v57  ;;  %v444_v1 = vmax.f32 %v1898_v41, %v1910_v63  ;;  %v344_v2 = vpop.f32.mrb[15].mxu0  ;;  %v413_v3 = vpop.f32.mrb[11].mxu1 }
 0x165   :  { %v449_v4 = vadd.f32 %v2357_v15, %v441_v61  ;;  %v442_v5 = vmax.f32 %v328_v45, %v413_v3 }
 0x166   :  { %v452_v6 = vadd.f32 %v2357_v15, %v444_v1  ;;  %v459_v8 = vmax.f32 %v451_v0, 0.0 }
 0x167   :  { %v450_v7 = vadd.f32 %v2357_v15, %v442_v5  ;;  %v457_v10 = vmax.f32 %v449_v4, 0.0 }
 0x168   :  { %v460_v9 = vmax.f32 %v452_v6, 0.0 }
 0x169   :  { %v458_v11 = vmax.f32 %v450_v7, 0.0  ;;  %v1913_v12 = vpop.f32.mrb[12].mxu1  ;;  %v1921_v13 = vpop.f32.mrb[16].mxu0 }
 0x16a   :  { %v466_v16 = vpack.c.bf16 %v460_v9, %v459_v8  ;;  %v447_v17 = vmax.f32 %v1901_v54, %v1913_v12  ;;  %v426_v18 = vpop.f32.mrb[13].mxu1  ;;  %v523_v19 = vpop.f32.mrb[17].mxu0 }
 0x16b   :  { %v465_v20 = vpack.c.bf16 %v458_v11, %v457_v10  ;;  %v445_v21 = vmax.f32 %v341_v58, %v426_v18  ;;  %v1914_v22 = vpop.f32.mrb[14].mxu1  ;;  %v1922_v23 = vpop.f32.mrb[18].mxu0 }
 0x16c   :  { %v455_v24 = vadd.f32 %v2357_v15, %v447_v17  ;;  %v448_v25 = vmax.f32 %v1902_v62, %v1914_v22  ;;  %v429_v26 = vpop.f32.mrb[15].mxu1  ;;  %v526_v27 = vpop.f32.mrb[19].mxu0 }
 0x16d   :  { %v453_v29 = vadd.f32 %v2357_v15, %v445_v21  ;;  %v446_v30 = vmax.f32 %v344_v2, %v429_v26  ;;  %1991 = vmatprep.mubr.msk.bf16.mxu0 %vm1101_vm3, %v465_v20 }
 0x16e   :  { %v456_v31 = vadd.f32 %v2357_v15, %v448_v25  ;;  %1992 = vmatmul.mubr.msk.bf16.vlgmr.msra.gmra.mrb[40].mxu0 %vm1101_vm3, %v466_v16  ;;  %v463_v33 = vmax.f32 %v455_v24, 0.0 }
 0x16f   :  { %v454_v32 = vadd.f32 %v2357_v15, %v446_v30  ;;  %2000 = vmatpush3.bf16.msra.mxu0 %v2350_v14  ;;  %v461_v37 = vmax.f32 %v453_v29, 0.0 }
 0x170   :  { %v464_v35 = vmax.f32 %v456_v31, 0.0  ;;  %2001 = vmatprep.subr.bf16.mxu0 %v2383_v28 }
 0x171   :  { %v462_v39 = vmax.f32 %v454_v32, 0.0  ;;  %v1925_v40 = vpop.f32.mrb[20].mxu0  ;;  %v1933_v41 = vpop.f32.mrb[16].mxu1 }
 0x172   :  { %v468_v42 = vpack.c.bf16 %v464_v35, %v463_v33  ;;  %v641_v43 = vmax.f32 %v1921_v13, %v1933_v41  ;;  %v539_v44 = vpop.f32.mrb[21].mxu0  ;;  %v608_v45 = vpop.f32.mrb[17].mxu1 }
 0x173   :  { %v467_v46 = vpack.c.bf16 %v462_v39, %v461_v37  ;;  %v639_v47 = vmax.f32 %v523_v19, %v608_v45  ;;  %v1926_v48 = vpop.f32.mrb[22].mxu0  ;;  %v1934_v49 = vpop.f32.mrb[18].mxu1  ;;  %2002 = vmatpush3.bf16.msra.mxu0 %v2383_v28 }
 0x174   :  { %v649_v50 = vadd.f32 %v2357_v15, %v641_v43  ;;  %v642_v51 = vmax.f32 %v1922_v23, %v1934_v49  ;;  %v542_v52 = vpop.f32.mrb[23].mxu0  ;;  %v611_v53 = vpop.f32.mrb[19].mxu1  ;;  %2011 = vmatprep.subr.bf16.mxu0 %v2395_v36 }
 0x175   :  { %v647_v54 = vadd.f32 %v2357_v15, %v639_v47  ;;  %v640_v55 = vmax.f32 %v526_v27, %v611_v53  ;;  %1995 = vmatprep.mubr.msk.bf16.mxu0 %vm1101_vm3, %v467_v46 }
 0x176   :  { %v650_v57 = vadd.f32 %v2357_v15, %v642_v51  ;;  %1996 = vmatmul.mubr.msk.bf16.gmra.mrb[44].mxu0 %vm1101_vm3, %v468_v42  ;;  %v657_v59 = vmax.f32 %v649_v50, 0.0 }
 0x177   :  { %v648_v58 = vadd.f32 %v2357_v15, %v640_v55  ;;  %2003 = vmatprep.mubr.msk.bf16.mxu0 %vm1101_vm3, %v2365_v38  ;;  %v655_v62 = vmax.f32 %v647_v54, 0.0  ;;  %v2415_v38 = vld [vmem:[%s2517_s3 + $0x28] sm:$0xff]  }
 0x178   :  { %v658_v61 = vmax.f32 %v650_v57, 0.0 }
 0x179   :  { %v656_v63 = vmax.f32 %v648_v58, 0.0  ;;  %v1937_v0 = vpop.f32.mrb[20].mxu1 }
 0x17a   :  { %v2407_v1 = vpack.c.bf16 %v658_v61, %v657_v59  ;;  %v645_v2 = vmax.f32 %v1925_v40, %v1937_v0  ;;  %v624_v3 = vpop.f32.mrb[21].mxu1 }
 0x17b   :  { %v2409_v4 = vpack.c.bf16 %v656_v63, %v655_v62  ;;  %v643_v5 = vmax.f32 %v539_v44, %v624_v3  ;;  %v1938_v6 = vpop.f32.mrb[22].mxu1 }
 0x17c   :  { %v653_v7 = vadd.f32 %v2357_v15, %v645_v2  ;;  %v646_v8 = vmax.f32 %v1926_v48, %v1938_v6  ;;  %v627_v9 = vpop.f32.mrb[23].mxu1  ;;  %v1945_v10 = vpop.f32.mrb[24].mxu0 }
 0x17d   :  { %v651_v11 = vadd.f32 %v2357_v15, %v643_v5  ;;  %v644_v12 = vmax.f32 %v542_v52, %v627_v9  ;;  %v721_v13 = vpop.f32.mrb[25].mxu0 }
 0x17e   :  { %v654_v16 = vadd.f32 %v2357_v15, %v646_v8  ;;  %2004 = vmatmul.mubr.msk.bf16.vlgmr.msra.gmra.mrb[40].mxu0 %vm1101_vm3, %v2363_v34  ;;  %v1946_v17 = vpop.f32.mrb[26].mxu0  ;;  %v661_v20 = vmax.f32 %v653_v7, 0.0 }
 0x17f   :  { %v652_v18 = vadd.f32 %v2357_v15, %v644_v12  ;;  %2007 = vmatprep.mubr.msk.bf16.mxu0 %vm1101_vm3, %v2373_v60  ;;  %v724_v19 = vpop.f32.mrb[27].mxu0  ;;  %2012 = vmatpush3.bf16.msra.mxu0 %v2395_v36  ;;  %v659_v22 = vmax.f32 %v651_v11, 0.0 }
 0x180   :  { %v662_v21 = vmax.f32 %v654_v16, 0.0  ;;  %2013 = vmatprep.subr.bf16.mxu0 %v2415_v38 }
 0x181   :  { %v660_v23 = vmax.f32 %v652_v18, 0.0  ;;  %v1957_v24 = vpop.f32.mrb[24].mxu1 }
 0x182   :  { %v2426_v25 = vpack.c.bf16 %v662_v21, %v661_v20  ;;  %v864_v26 = vmax.f32 %v1945_v10, %v1957_v24  ;;  %v831_v34 = vpop.f32.mrb[25].mxu1 }
 0x183   :  { %v2428_v27 = vpack.c.bf16 %v660_v23, %v659_v22  ;;  %v862_v29 = vmax.f32 %v721_v13, %v831_v34  ;;  %v1958_v30 = vpop.f32.mrb[26].mxu1  ;;  %2014 = vmatpush3.bf16.msra.mxu0 %v2415_v38 }
 0x184   :  { %v872_v60 = vadd.f32 %v2357_v15, %v864_v26  ;;  %v865_v31 = vmax.f32 %v1946_v17, %v1958_v30  ;;  %v834_v32 = vpop.f32.mrb[27].mxu1 }
 0x185   :  { %v870_v33 = vadd.f32 %v2357_v15, %v862_v29  ;;  %v863_v35 = vmax.f32 %v724_v19, %v834_v32 }
 0x186   :  { %v873_v37 = vadd.f32 %v2357_v15, %v865_v31  ;;  %2008 = vmatmul.mubr.msk.bf16.gmra.mrb[44].mxu0 %vm1101_vm3, %v2371_v56  ;;  %v880_v40 = vmax.f32 %v872_v60, 0.0 }
 0x187   :  { %v871_v39 = vadd.f32 %v2357_v15, %v863_v35  ;;  %2015 = vmatprep.mubr.msk.bf16.mxu0 %vm1101_vm3, %v2409_v4  ;;  %v878_v43 = vmax.f32 %v870_v33, 0.0 }
 0x188   :  { %v881_v41 = vmax.f32 %v873_v37, 0.0  ;;  %v1949_v42 = vpop.f32.mrb[28].mxu0 }
 0x189   :  { %v879_v44 = vmax.f32 %v871_v39, 0.0  ;;  %v737_v45 = vpop.f32.mrb[29].mxu0 }
 0x18a   :  { %v887_v46 = vpack.c.bf16 %v881_v41, %v880_v40  ;;  %v1961_v47 = vpop.f32.mrb[28].mxu1  ;;  %v1950_v48 = vpop.f32.mrb[30].mxu0 }
 0x18b   :  { %v886_v49 = vpack.c.bf16 %v879_v44, %v878_v43  ;;  %v868_v50 = vmax.f32 %v1949_v42, %v1961_v47  ;;  %v847_v51 = vpop.f32.mrb[29].mxu1  ;;  %v740_v52 = vpop.f32.mrb[31].mxu0 }
 0x18c   :  { %v866_v53 = vmax.f32 %v737_v45, %v847_v51  ;;  %v1962_v56 = vpop.f32.mrb[30].mxu1 }
 0x18d   :  { %v876_v54 = vadd.f32 %v2357_v15, %v868_v50  ;;  %v869_v55 = vmax.f32 %v1950_v48, %v1962_v56  ;;  %v850_v57 = vpop.f32.mrb[31].mxu1  ;;  %2027 = vmatprep.mubr.msk.bf16.mxu1 %vm1101_vm3, %v886_v49 }
 0x18e   :  { %v874_v58 = vadd.f32 %v2357_v15, %v866_v53  ;;  %v867_v59 = vmax.f32 %v740_v52, %v850_v57  ;;  %2016 = vmatmul.mubr.msk.bf16.vlgmr.msra.gmra.mrb[40].mxu0 %vm1101_vm3, %v2407_v1  ;;  %2028 = vmatmul.mubr.msk.bf16.vlgmr.msra.gmra.mrb[40].mxu1 %vm1101_vm3, %v887_v46 }
 0x18f   :  { %v877_v61 = vadd.f32 %v2357_v15, %v869_v55  ;;  %2019 = vmatprep.mubr.msk.bf16.mxu0 %vm1101_vm3, %v2428_v27  ;;  %2036 = vmatpush3.bf16.msra.mxu1 %v2350_v14  ;;  %v884_v0 = vmax.f32 %v876_v54, 0.0 }
 0x190   :  { %v875_v62 = vadd.f32 %v2357_v15, %v867_v59  ;;  %2037 = vmatprep.subr.bf16.mxu1 %v2383_v28  ;;  %v1969_v63 = vpop.f32.mrb[32].mxu0  ;;  %v882_v5 = vmax.f32 %v874_v58, 0.0 }
 0x191   :  { %v885_v2 = vmax.f32 %v877_v61, 0.0  ;;  %v936_v3 = vpop.f32.mrb[33].mxu0 }
 0x192   :  { %v883_v6 = vmax.f32 %v875_v62, 0.0  ;;  %v1981_v7 = vpop.f32.mrb[32].mxu1  ;;  %v1970_v8 = vpop.f32.mrb[34].mxu0 }
 0x193   :  { %v889_v9 = vpack.c.bf16 %v885_v2, %v884_v0  ;;  %2038 = vmatpush3.bf16.msra.mxu1 %v2383_v28  ;;  %v1054_v10 = vmax.f32 %v1969_v63, %v1981_v7  ;;  %v1021_v11 = vpop.f32.mrb[33].mxu1  ;;  %v939_v12 = vpop.f32.mrb[35].mxu0 }
 0x194   :  { %v888_v13 = vpack.c.bf16 %v883_v6, %v882_v5  ;;  %2047 = vmatprep.subr.bf16.mxu1 %v2395_v36  ;;  %v1052_v14 = vmax.f32 %v936_v3, %v1021_v11  ;;  %v1982_v16 = vpop.f32.mrb[34].mxu1 }
 0x195   :  { %v1062_v17 = vadd.f32 %v2357_v15, %v1054_v10  ;;  %v1055_v18 = vmax.f32 %v1970_v8, %v1982_v16  ;;  %v1024_v19 = vpop.f32.mrb[35].mxu1 }
 0x196   :  { %2020 = vmatmul.mubr.msk.bf16.gmra.mrb[44].mxu0 %vm1101_vm3, %v2426_v25  ;;  %2031 = vmatprep.mubr.msk.bf16.mxu1 %vm1101_vm3, %v888_v13  ;;  %v1060_v20 = vadd.f32 %v2357_v15, %v1052_v14  ;;  %v1053_v28 = vmax.f32 %v939_v12, %v1024_v19 }
 0x197   :  { %2032 = vmatmul.mubr.msk.bf16.gmra.mrb[44].mxu1 %vm1101_vm3, %v889_v9  ;;  %v1070_v21 = vmax.f32 %v1062_v17, 0.0  ;;  %v1063_v22 = vadd.f32 %v2357_v15, %v1055_v18 }
 0x198   :  { %2039 = vmatprep.mubr.msk.bf16.mxu1 %vm1101_vm3, %v2409_v4  ;;  %v1068_v23 = vmax.f32 %v1060_v20, 0.0  ;;  %v1061_v24 = vadd.f32 %v2357_v15, %v1053_v28  ;;  %v1973_v26 = vpop.f32.mrb[36].mxu0 }
 0x199   :  { %v1071_v34 = vmax.f32 %v1063_v22, 0.0  ;;  %v952_v29 = vpop.f32.mrb[37].mxu0 }
 0x19a   :  { %v1069_v30 = vmax.f32 %v1061_v24, 0.0  ;;  %v1985_v60 = vpop.f32.mrb[36].mxu1  ;;  %v1974_v31 = vpop.f32.mrb[38].mxu0 }
 0x19b   :  { %v1077_v32 = vpack.c.bf16 %v1071_v34, %v1070_v21  ;;  %v1058_v33 = vmax.f32 %v1973_v26, %v1985_v60  ;;  %v1037_v35 = vpop.f32.mrb[37].mxu1  ;;  %v955_v37 = vpop.f32.mrb[39].mxu0 }
 0x19c   :  { %v1076_v39 = vpack.c.bf16 %v1069_v30, %v1068_v23  ;;  %v1056_v40 = vmax.f32 %v952_v29, %v1037_v35  ;;  %v1986_v41 = vpop.f32.mrb[38].mxu1 }
 0x19d   :  { %v1066_v42 = vadd.f32 %v2357_v15, %v1058_v33  ;;  %v1059_v43 = vmax.f32 %v1974_v31, %v1986_v41  ;;  %v1040_v4 = vpop.f32.mrb[39].mxu1 }
 0x19e   :  { %v1064_v44 = vadd.f32 %v2357_v15, %v1056_v40  ;;  %v1057_v45 = vmax.f32 %v955_v37, %v1040_v4 }
 0x19f   :  { %2040 = vmatmul.mubr.msk.bf16.vlgmr.msra.gmra.mrb[40].mxu1 %vm1101_vm3, %v2407_v1  ;;  %v1074_v46 = vmax.f32 %v1066_v42, 0.0  ;;  %v1067_v47 = vadd.f32 %v2357_v15, %v1059_v43 }
 0x1a0   :  { %2048 = vmatpush3.bf16.msra.mxu1 %v2395_v36  ;;  %2043 = vmatprep.mubr.msk.bf16.mxu1 %vm1101_vm3, %v2428_v27  ;;  %v1072_v48 = vmax.f32 %v1064_v44, 0.0  ;;  %v1065_v49 = vadd.f32 %v2357_v15, %v1057_v45 }
 0x1a1   :  { %2049 = vmatprep.subr.bf16.mxu1 %v2415_v38  ;;  %v1075_v50 = vmax.f32 %v1067_v47, 0.0 }
 0x1a2   :  { %v1073_v51 = vmax.f32 %v1065_v49, 0.0 }
 0x1a3   :  { %v1079_v52 = vpack.c.bf16 %v1075_v50, %v1074_v46 }
 0x1a4   :  { %2050 = vmatpush3.bf16.msra.mxu1 %v2415_v38  ;;  %v1078_v53 = vpack.c.bf16 %v1073_v51, %v1072_v48 }
 0x1a7   :  { %2044 = vmatmul.mubr.msk.bf16.gmra.mrb[44].mxu1 %vm1101_vm3, %v2426_v25  ;;  %v1754_v25 = vld [vmem:[%s2519_s4] ss:$0 sm:$0xff] }
 0x1a8   :  { %2051 = vmatprep.mubr.msk.bf16.mxu1 %vm1101_vm3, %v1076_v39 }
 0x1af   :  { %2052 = vmatmul.mubr.msk.bf16.vlgmr.msra.gmra.mrb[40].mxu1 %vm1101_vm3, %v1077_v32 }
 0x1b0   :  { %2055 = vmatprep.mubr.msk.bf16.mxu1 %vm1101_vm3, %v1078_v53 }
 0x1b7   :  { %2056 = vmatmul.mubr.msk.bf16.gmra.mrb[44].mxu1 %vm1101_vm3, %v1079_v52 }
 0x261   :  { %v2017_v15 = vpop.f32.mrb[40].mxu0 }
 0x262   :  { %v1331_v36 = vpop.f32.mrb[41].mxu0 }
 0x263   :  { %v2018_v1 = vpop.f32.mrb[42].mxu0 }
 0x264   :  { %v1334_v27 = vpop.f32.mrb[43].mxu0 }
 0x269   :  { %v2021_v56 = vpop.f32.mrb[44].mxu0 }
 0x26a   :  { %v1347_v54 = vpop.f32.mrb[45].mxu0 }
 0x26b   :  { %v2022_v55 = vpop.f32.mrb[46].mxu0 }
 0x26c   :  { %v1350_v38 = vpop.f32.mrb[47].mxu0 }
 0x282   :  { %v2053_v57 = vpop.f32.mrb[40].mxu1 }
 0x283   :  { %v1599_v58 = vmax.f32 %v2017_v15, %v2053_v57  ;;  %v1558_v59 = vpop.f32.mrb[41].mxu1 }
 0x284   :  { %v1597_v61 = vmax.f32 %v1331_v36, %v1558_v59  ;;  %v2054_v62 = vpop.f32.mrb[42].mxu1 }
 0x285   :  { %v1614_v63 = vadd.f32 %v1754_v25, %v1599_v58  ;;  %v1600_v0 = vmax.f32 %v2018_v1, %v2054_v62  ;;  %v1561_v2 = vpop.f32.mrb[43].mxu1 }
 0x286   :  { %v1612_v3 = vadd.f32 %v1754_v25, %v1597_v61  ;;  %v1598_v5 = vmax.f32 %v1334_v27, %v1561_v2 }
 0x287   :  { %v1765_v6 = vpack.c.bf16 %v1614_v63, %v1614_v63  ;;  %v1615_v7 = vadd.f32 %v1754_v25, %v1600_v0 }
 0x288   :  { %v1763_v8 = vpack.c.bf16 %v1612_v3, %v1612_v3  ;;  %v1613_v9 = vadd.f32 %v1754_v25, %v1598_v5 }
 0x289   :  { %1655 = vst.msk [vmem:[%s2520_s5 + $0x8] sm:$0xf] %vm1652_vm4, %v1765_v6  ;;  %v1766_v10 = vpack.c.bf16 %v1615_v7, %v1615_v7 }
 0x28a   :  { %1653 = vst.msk [vmem:[%s2520_s5] sm:$0xf] %vm1652_vm4, %v1763_v8  ;;  %v1764_v11 = vpack.c.bf16 %v1613_v9, %v1613_v9  ;;  %v2057_v12 = vpop.f32.mrb[44].mxu1 }
 0x28b   :  { %1656 = vst.msk [vmem:[%s2520_s5 + $0xc] sm:$0xf] %vm1652_vm4, %v1766_v10  ;;  %v1603_v13 = vmax.f32 %v2021_v56, %v2057_v12  ;;  %v1574_v14 = vpop.f32.mrb[45].mxu1 }
 0x28c   :  { %1654 = vst.msk [vmem:[%s2520_s5 + $0x4] sm:$0xf] %vm1652_vm4, %v1764_v11  ;;  %v1601_v16 = vmax.f32 %v1347_v54, %v1574_v14  ;;  %v2058_v17 = vpop.f32.mrb[46].mxu1 }
 0x28d   :  { %v1618_v18 = vadd.f32 %v1754_v25, %v1603_v13  ;;  %v1604_v19 = vmax.f32 %v2022_v55, %v2058_v17  ;;  %v1577_v20 = vpop.f32.mrb[47].mxu1 }
 0x28e   :  { %v1616_v28 = vadd.f32 %v1754_v25, %v1601_v16  ;;  %v1602_v21 = vmax.f32 %v1350_v38, %v1577_v20 }
 0x28f   :  { %v1769_v22 = vpack.c.bf16 %v1618_v18, %v1618_v18  ;;  %v1619_v23 = vadd.f32 %v1754_v25, %v1604_v19 }
 0x290   :  { %v1767_v24 = vpack.c.bf16 %v1616_v28, %v1616_v28  ;;  %v1617_v26 = vadd.f32 %v1754_v25, %v1602_v21 }
 0x291   :  { %1659 = vst.msk [vmem:[%s2520_s5 + $0x18] sm:$0xf] %vm1652_vm4, %v1769_v22  ;;  %v1770_v34 = vpack.c.bf16 %v1619_v23, %v1619_v23 }
 0x292   :  { %1657 = vst.msk [vmem:[%s2520_s5 + $0x10] sm:$0xf] %vm1652_vm4, %v1767_v24  ;;  %v1768_v29 = vpack.c.bf16 %v1617_v26, %v1617_v26 }
 0x293   :  { %1660 = vst.msk [vmem:[%s2520_s5 + $0x1c] sm:$0xf] %vm1652_vm4, %v1770_v34 }
 0x294   :  { %1658 = vst.msk [vmem:[%s2520_s5 + $0x14] sm:$0xf] %vm1652_vm4, %v1768_v29 }

// kernel: forward.7
= control target key start
LH: loop header
LB: loop body
LE: loop exit
PB: predicated region body
PF: predicated region fallthrough
CT: control target
= control target key end

     0   :  { %vm837_vm0 = vcmask 523264   ;;  %vm4057_vm11 = vcmask 80896   ;;  %vm4092_vm13 = vcmask 7168   ;;  %s8169_s3 = inlined_call_operand.vmem [shape: bf16[960,256], index: 3, kind: input, shape index: {}]   ;;  %s8170_s0 = inlined_call_operand.vmem [shape: bf16[8,960], index: 0, kind: input, shape index: {}]   ;;  %s8171_s5 = inlined_call_operand.vmem [shape: bf16[256,256], index: 5, kind: input, shape index: {}]   ;;  %s8172_s1 = inlined_call_operand.vmem [shape: bf16[8,2560], index: 1, kind: input, shape index: {}]   ;;  %s8173_s7 = inlined_call_operand.vmem [shape: bf16[256,256], index: 7, kind: input, shape index: {}]   ;;  %s8174_s6 = inlined_call_operand.vmem [shape: f32[1,256], index: 6, kind: input, shape index: {}]   ;;  %s8175_s4 = inlined_call_operand.vmem [shape: f32[1,256], index: 4, kind: input, shape index: {}]   ;;  %s8176_s8 = inlined_call_operand.vmem [shape: f32[1,256], index: 8, kind: input, shape index: {}]   ;;  %s8177_s9 = inlined_call_operand.vmem [shape: bf16[960,256], index: 9, kind: input, shape index: {}]   ;;  %s8178_s11 = inlined_call_operand.vmem [shape: bf16[256,256], index: 11, kind: input, shape index: {}]   ;;  %s8179_s10 = inlined_call_operand.vmem [shape: f32[1,256], index: 10, kind: input, shape index: {}]   ;;  %s8180_s13 = inlined_call_operand.vmem [shape: bf16[256,256], index: 13, kind: input, shape index: {}]   ;;  %s8181_s15 = inlined_call_operand.vmem [shape: bf16[256,1], index: 15, kind: input, shape index: {}]   ;;  %s8182_s12 = inlined_call_operand.vmem [shape: f32[1,256], index: 12, kind: input, shape index: {}]   ;;  %s8183_s2 = inlined_call_operand.vmem [shape: f32[8,10], index: 2, kind: input, shape index: {}]   ;;  %s8184_s17 = inlined_call_operand.vmem [shape: f32[8,10], index: 17, kind: output, shape index: {0}]   ;;  %s8185_s14 = inlined_call_operand.vmem [shape: f32[1,256], index: 14, kind: input, shape index: {}]   ;;  %s8186_s16 = inlined_call_operand.<no memory space> [shape: f32[1,1], index: 16, kind: input, shape index: {}]   ;;  %s8187_s20 = inlined_call_operand.vmem [shape: f32[8,10], index: 20, kind: output, shape index: {3}]   ;;  %s8188_s18 = inlined_call_operand.vmem [shape: f32[8,1], index: 18, kind: output, shape index: {1}]   ;;  %s8189_s19 = inlined_call_operand.vmem [shape: f32[8,10], index: 19, kind: output, shape index: {2}]  }
   0x1   :  { %8211 = sst [smem:[#allocation18_spill]] %s8169_s3 }
   0x2   :  { %8212 = sst [smem:[#allocation19_spill]] %s8170_s0  ;;  %s8216_s23 = sld [smem:[#allocation18_spill]] }
   0x3   :  { %8213 = sst [smem:[#allocation20_spill]] %s8171_s5  ;;  %s8217_s26 = sld [smem:[#allocation19_spill]] }
   0x4   :  { %8214 = sst [smem:[#allocation21_spill]] %s8172_s1 }
   0x5   :  { %8215 = sst [smem:[#allocation22_spill]] %s8173_s7  ;;  %s8218_s7 = sld [smem:[#allocation20_spill]] }
   0x6   :  { %s8219_s29 = sld [smem:[#allocation21_spill]]  ;;  %s8220_s25 = sld [smem:[#allocation22_spill]] }
   0x8   :  { %v4595_v0 = vld [vmem:[%s8216_s23 + $0x4] ss:$8 sps:$4 sm:$0xff]   ;;  %v4599_v2 = vld [vmem:[%s8216_s23] ss:$8 sps:$4 sm:$0xff]   ;;  %v4601_v4 = vld [vmem:[%s8216_s23 + $0x14] ss:$8 sps:$4 sm:$0xff]  }
   0x9   :  { %v4597_v1 = vld [vmem:[%s8216_s23 + $0x304] ss:$8 sps:$4 sm:$0xff]   ;;  %841 = vmatprep.subr.bf16.mxu0 %v4595_v0  ;;  %v4600_v3 = vld [vmem:[%s8216_s23 + $0x300] ss:$8 sps:$4 sm:$0xff]   ;;  %v4603_v5 = vld [vmem:[%s8216_s23 + $0x314] ss:$8 sps:$4 sm:$0xff]  }
   0xa   :  { %964 = vmatprep.subr.bf16.mxu1 %v4597_v1  ;;  %842 = vmatpush1.bf16.msra.mxu0 %v4599_v2  ;;  %v4605_v6 = vld [vmem:[%s8216_s23 + $0x10] ss:$8 sps:$4 sm:$0xff]   ;;  %v4607_v8 = vld [vmem:[%s8216_s23 + $0x24] ss:$8 sps:$4 sm:$0xff]   ;;  %v4611_v10 = vld [vmem:[%s8216_s23 + $0x20] ss:$8 sps:$4 sm:$0xff]  }
   0xb   :  { %965 = vmatpush1.bf16.msra.mxu1 %v4600_v3  ;;  %843 = vmatprep.subr.bf16.mxu0 %v4601_v4  ;;  %v4606_v7 = vld [vmem:[%s8216_s23 + $0x310] ss:$8 sps:$4 sm:$0xff]   ;;  %v4609_v9 = vld [vmem:[%s8216_s23 + $0x324] ss:$8 sps:$4 sm:$0xff]   ;;  %v4612_v11 = vld [vmem:[%s8216_s23 + $0x320] ss:$8 sps:$4 sm:$0xff]  }
   0xc   :  { %966 = vmatprep.subr.bf16.mxu1 %v4603_v5  ;;  %v4613_v12 = vld [vmem:[%s8216_s23 + $0x34] ss:$8 sps:$4 sm:$0xff]   ;;  %v4617_v14 = vld [vmem:[%s8216_s23 + $0x30] ss:$8 sps:$4 sm:$0xff]   ;;  %v4619_v16 = vld [vmem:[%s8216_s23 + $0x44] ss:$8 sps:$4 sm:$0xff]  }
   0xd   :  { %v4615_v13 = vld [vmem:[%s8216_s23 + $0x334] ss:$8 sps:$4 sm:$0xff]   ;;  %v4618_v15 = vld [vmem:[%s8216_s23 + $0x330] ss:$8 sps:$4 sm:$0xff]   ;;  %v4621_v17 = vld [vmem:[%s8216_s23 + $0x344] ss:$8 sps:$4 sm:$0xff]  }
   0xe   :  { %844 = vmatpush1.bf16.msra.mxu0 %v4605_v6  ;;  %v4623_v18 = vld [vmem:[%s8216_s23 + $0x40] ss:$8 sps:$4 sm:$0xff]   ;;  %v4625_v20 = vld [vmem:[%s8216_s23 + $0x54] ss:$8 sps:$4 sm:$0xff]   ;;  %v4629_v22 = vld [vmem:[%s8216_s23 + $0x50] ss:$8 sps:$4 sm:$0xff]  }
   0xf   :  { %967 = vmatpush1.bf16.msra.mxu1 %v4606_v7  ;;  %845 = vmatprep.subr.bf16.mxu0 %v4607_v8  ;;  %v4624_v19 = vld [vmem:[%s8216_s23 + $0x340] ss:$8 sps:$4 sm:$0xff]   ;;  %v4627_v21 = vld [vmem:[%s8216_s23 + $0x354] ss:$8 sps:$4 sm:$0xff]   ;;  %v4630_v23 = vld [vmem:[%s8216_s23 + $0x350] ss:$8 sps:$4 sm:$0xff]  }
  0x10   :  { %968 = vmatprep.subr.bf16.mxu1 %v4609_v9  ;;  %v4631_v24 = vld [vmem:[%s8216_s23 + $0x64] ss:$8 sps:$4 sm:$0xff]   ;;  %v4635_v26 = vld [vmem:[%s8216_s23 + $0x60] ss:$8 sps:$4 sm:$0xff]   ;;  %v4637_v28 = vld [vmem:[%s8216_s23 + $0x74] ss:$8 sps:$4 sm:$0xff]  }
  0x11   :  { %v4633_v25 = vld [vmem:[%s8216_s23 + $0x364] ss:$8 sps:$4 sm:$0xff]   ;;  %v4636_v27 = vld [vmem:[%s8216_s23 + $0x360] ss:$8 sps:$4 sm:$0xff]   ;;  %v4639_v29 = vld [vmem:[%s8216_s23 + $0x374] ss:$8 sps:$4 sm:$0xff]  }
  0x12   :  { %846 = vmatpush1.bf16.msra.mxu0 %v4611_v10  ;;  %v4641_v30 = vld [vmem:[%s8216_s23 + $0x70] ss:$8 sps:$4 sm:$0xff]   ;;  %v4643_v32 = vld [vmem:[%s8216_s23 + $0x84] ss:$8 sps:$4 sm:$0xff]   ;;  %v4647_v34 = vld [vmem:[%s8216_s23 + $0x80] ss:$8 sps:$4 sm:$0xff]  }
  0x13   :  { %969 = vmatpush1.bf16.msra.mxu1 %v4612_v11  ;;  %847 = vmatprep.subr.bf16.mxu0 %v4613_v12  ;;  %v4642_v31 = vld [vmem:[%s8216_s23 + $0x370] ss:$8 sps:$4 sm:$0xff]   ;;  %v4645_v33 = vld [vmem:[%s8216_s23 + $0x384] ss:$8 sps:$4 sm:$0xff]   ;;  %v4648_v35 = vld [vmem:[%s8216_s23 + $0x380] ss:$8 sps:$4 sm:$0xff]  }
  0x14   :  { %970 = vmatprep.subr.bf16.mxu1 %v4615_v13  ;;  %v4649_v36 = vld [vmem:[%s8216_s23 + $0x94] ss:$8 sps:$4 sm:$0xff]   ;;  %v4653_v40 = vld [vmem:[%s8216_s23 + $0x90] ss:$8 sps:$4 sm:$0xff]   ;;  %v4655_v42 = vld [vmem:[%s8216_s23 + $0xa4] ss:$8 sps:$4 sm:$0xff]  }
  0x15   :  { %v66_v37 = vld [vmem:[%s8217_s26 + $0x18] sm:$0xff]  ;;  %v4657_v43 = vld [vmem:[%s8216_s23 + $0x3a4] ss:$8 sps:$4 sm:$0xff]   ;;  %v4659_v44 = vld [vmem:[%s8216_s23 + $0xa0] ss:$8 sps:$4 sm:$0xff]  }
  0x16   :  { %848 = vmatpush1.bf16.msra.mxu0 %v4617_v14  ;;  %v4651_v38 = vld [vmem:[%s8216_s23 + $0x394] ss:$8 sps:$4 sm:$0xff]   ;;  %v4119_v39 = vcombine.high %v66_v37, %v66_v37  ;;  %v4654_v41 = vld [vmem:[%s8216_s23 + $0x390] ss:$8 sps:$4 sm:$0xff]   ;;  %v4660_v45 = vld [vmem:[%s8216_s23 + $0x3a0] ss:$8 sps:$4 sm:$0xff]   ;;  %v4118_v54 = vcombine.low %v66_v37, %v66_v37 }
  0x17   :  { %971 = vmatpush1.bf16.msra.mxu1 %v4618_v15  ;;  %849 = vmatprep.subr.bf16.mxu0 %v4619_v16  ;;  %v4661_v46 = vld [vmem:[%s8216_s23 + $0xb4] ss:$8 sps:$4 sm:$0xff]   ;;  %v63_v48 = vld [vmem:[%s8217_s26] sm:$0xff]  ;;  %v4665_v49 = vld [vmem:[%s8216_s23 + $0xb0] ss:$8 sps:$4 sm:$0xff]  }
  0x18   :  { %972 = vmatprep.subr.bf16.mxu1 %v4621_v17  ;;  %4240 = vmatprep.mubr.msk.bf16.mxu1 %vm837_vm0, %v4119_v39  ;;  %v4663_v47 = vld [vmem:[%s8216_s23 + $0x3b4] ss:$8 sps:$4 sm:$0xff]   ;;  %v4666_v50 = vld [vmem:[%s8216_s23 + $0x3b0] ss:$8 sps:$4 sm:$0xff]   ;;  %v4113_v51 = vcombine.high %v63_v48, %v63_v48  ;;  %v4668_v52 = vld [vmem:[%s8216_s23 + $0xc4] ss:$8 sps:$4 sm:$0xff]   ;;  %v4112_v7 = vcombine.low %v63_v48, %v63_v48 }
  0x19   :  { %v5563_v53 = vld [vmem:[%s8218_s7 + $0x4] ss:$8 sps:$4 sm:$0xff]   ;;  %v4673_v55 = vld [vmem:[%s8216_s23 + $0xc0] ss:$8 sps:$4 sm:$0xff]   ;;  %v4675_v57 = vld [vmem:[%s8216_s23 + $0xd4] ss:$8 sps:$4 sm:$0xff]  }
  0x1a   :  { %850 = vmatpush1.bf16.msra.mxu0 %v4623_v18  ;;  %873 = vmatprep.mubr.bf16.mxu0 %v4113_v51  ;;  %v5571_v56 = vld [vmem:[%s8218_s7] ss:$8 sps:$4 sm:$0xff]   ;;  %v5580_v58 = vld [vmem:[%s8218_s7 + $0x14] ss:$8 sps:$4 sm:$0xff]   ;;  %v4679_v59 = vld [vmem:[%s8216_s23 + $0xd0] ss:$8 sps:$4 sm:$0xff]  }
  0x1b   :  { %973 = vmatpush1.bf16.msra.mxu1 %v4624_v19  ;;  %851 = vmatprep.subr.bf16.mxu0 %v4625_v20  ;;  %v5589_v60 = vld [vmem:[%s8218_s7 + $0x10] ss:$8 sps:$4 sm:$0xff]   ;;  %v4681_v61 = vld [vmem:[%s8216_s23 + $0xe4] ss:$8 sps:$4 sm:$0xff]   ;;  %v4685_v63 = vld [vmem:[%s8216_s23 + $0xe0] ss:$8 sps:$4 sm:$0xff]  }
  0x1c   :  { %974 = vmatprep.subr.bf16.mxu1 %v4627_v21  ;;  %v5598_v62 = vld [vmem:[%s8218_s7 + $0x24] ss:$8 sps:$4 sm:$0xff]   ;;  %v5607_v0 = vld [vmem:[%s8218_s7 + $0x20] ss:$8 sps:$4 sm:$0xff]   ;;  %v4687_v1 = vld [vmem:[%s8216_s23 + $0xf4] ss:$8 sps:$4 sm:$0xff]  }
  0x1d   :  { %v5616_v2 = vld [vmem:[%s8218_s7 + $0x34] ss:$8 sps:$4 sm:$0xff]   ;;  %v4691_v3 = vld [vmem:[%s8216_s23 + $0xf0] ss:$8 sps:$4 sm:$0xff]   ;;  %v4696_v5 = vld [vmem:[%s8216_s23 + $0x104] ss:$8 sps:$4 sm:$0xff]  }
  0x1e   :  { %852 = vmatpush1.bf16.msra.mxu0 %v4629_v22  ;;  %v5625_v4 = vld [vmem:[%s8218_s7 + $0x30] ss:$8 sps:$4 sm:$0xff]   ;;  %v5634_v6 = vld [vmem:[%s8218_s7 + $0x44] ss:$8 sps:$4 sm:$0xff]   ;;  %v4694_v8 = vld [vmem:[%s8216_s23 + $0x100] ss:$8 sps:$4 sm:$0xff]  }
  0x1f   :  { %975 = vmatpush1.bf16.msra.mxu1 %v4630_v23  ;;  %853 = vmatprep.subr.bf16.mxu0 %v4631_v24  ;;  %v5643_v9 = vld [vmem:[%s8218_s7 + $0x40] ss:$8 sps:$4 sm:$0xff]   ;;  %v4703_v10 = vld [vmem:[%s8216_s23 + $0x114] ss:$8 sps:$4 sm:$0xff]   ;;  %v4701_v12 = vld [vmem:[%s8216_s23 + $0x110] ss:$8 sps:$4 sm:$0xff]  }
  0x20   :  { %976 = vmatprep.subr.bf16.mxu1 %v4633_v25  ;;  %v5652_v11 = vld [vmem:[%s8218_s7 + $0x54] ss:$8 sps:$4 sm:$0xff]   ;;  %v5661_v13 = vld [vmem:[%s8218_s7 + $0x50] ss:$8 sps:$4 sm:$0xff]   ;;  %v4709_v14 = vld [vmem:[%s8216_s23 + $0x124] ss:$8 sps:$4 sm:$0xff]  }
  0x21   :  { %v5670_v15 = vld [vmem:[%s8218_s7 + $0x64] ss:$8 sps:$4 sm:$0xff]   ;;  %v4707_v16 = vld [vmem:[%s8216_s23 + $0x120] ss:$8 sps:$4 sm:$0xff]   ;;  %v4715_v18 = vld [vmem:[%s8216_s23 + $0x134] ss:$8 sps:$4 sm:$0xff]  }
  0x22   :  { %854 = vmatpush1.bf16.msra.mxu0 %v4635_v26  ;;  %v5679_v17 = vld [vmem:[%s8218_s7 + $0x60] ss:$8 sps:$4 sm:$0xff]   ;;  %v5688_v19 = vld [vmem:[%s8218_s7 + $0x74] ss:$8 sps:$4 sm:$0xff]   ;;  %v4713_v20 = vld [vmem:[%s8216_s23 + $0x130] ss:$8 sps:$4 sm:$0xff]  }
  0x23   :  { %977 = vmatpush1.bf16.msra.mxu1 %v4636_v27  ;;  %855 = vmatprep.subr.bf16.mxu0 %v4637_v28  ;;  %v5696_v21 = vld [vmem:[%s8219_s29] sm:$0xff]  ;;  %v5702_v22 = vld [vmem:[%s8218_s7 + $0x70] ss:$8 sps:$4 sm:$0xff]   ;;  %v4727_v28 = vld [vmem:[%s8216_s23 + $0x154] ss:$8 sps:$4 sm:$0xff]  }
  0x24   :  { %978 = vmatprep.subr.bf16.mxu1 %v4639_v29  ;;  %v4721_v23 = vld [vmem:[%s8216_s23 + $0x144] ss:$8 sps:$4 sm:$0xff]   ;;  %v4242_v24 = vcombine.high %v5696_v21, %v5696_v21  ;;  %v4719_v26 = vld [vmem:[%s8216_s23 + $0x140] ss:$8 sps:$4 sm:$0xff]   ;;  %v5730_v29 = vld [vmem:[%s8218_s7 + $0x94] ss:$8 sps:$4 sm:$0xff]  }
  0x25   :  { %v5713_v25 = vld [vmem:[%s8218_s7 + $0x84] ss:$8 sps:$4 sm:$0xff]   ;;  %v5721_v27 = vld [vmem:[%s8218_s7 + $0x80] ss:$8 sps:$4 sm:$0xff]   ;;  %v5774_v39 = vld [vmem:[%s8218_s7 + $0xb4] ss:$8 sps:$4 sm:$0xff]  }
  0x26   :  { %856 = vmatpush1.bf16.msra.mxu0 %v4641_v30  ;;  %v5736_v30 = vld [vmem:[%s8217_s26 + $0x8] sm:$0xff]  ;;  %v4749_v48 = vld [vmem:[%s8216_s23 + $0x190] ss:$8 sps:$4 sm:$0xff]  }
  0x27   :  { %979 = vmatpush1.bf16.msra.mxu1 %v4642_v31  ;;  %857 = vmatprep.subr.bf16.mxu0 %v4643_v32  ;;  %v4115_v31 = vcombine.high %v5736_v30, %v5736_v30  ;;  %v4725_v32 = vld [vmem:[%s8216_s23 + $0x150] ss:$8 sps:$4 sm:$0xff]   ;;  %v5764_v37 = vld [vmem:[%s8218_s7 + $0xa0] ss:$8 sps:$4 sm:$0xff]   ;;  %v5828_v51 = vld [vmem:[%s8218_s7 + $0xe4] ss:$8 sps:$4 sm:$0xff]  }
  0x28   :  { %980 = vmatprep.subr.bf16.mxu1 %v4645_v33  ;;  %v5746_v33 = vld [vmem:[%s8218_s7 + $0x90] ss:$8 sps:$4 sm:$0xff]  }
  0x2a   :  { %858 = vmatpush1.bf16.msra.mxu0 %v4647_v34  ;;  %v4733_v34 = vld [vmem:[%s8216_s23 + $0x164] ss:$8 sps:$4 sm:$0xff]  }
  0x2b   :  { %981 = vmatpush1.bf16.msra.mxu1 %v4648_v35  ;;  %859 = vmatprep.subr.bf16.mxu0 %v4649_v36  ;;  %v5756_v35 = vld [vmem:[%s8218_s7 + $0xa4] ss:$8 sps:$4 sm:$0xff]   ;;  %v4731_v36 = vld [vmem:[%s8216_s23 + $0x160] ss:$8 sps:$4 sm:$0xff]  }
  0x2c   :  { %982 = vmatprep.subr.bf16.mxu1 %v4651_v38  ;;  %v4739_v38 = vld [vmem:[%s8216_s23 + $0x174] ss:$8 sps:$4 sm:$0xff]  }
  0x2e   :  { %860 = vmatpush1.bf16.msra.mxu0 %v4653_v40  ;;  %v4737_v40 = vld [vmem:[%s8216_s23 + $0x170] ss:$8 sps:$4 sm:$0xff]  }
  0x2f   :  { %983 = vmatpush1.bf16.msra.mxu1 %v4654_v41  ;;  %861 = vmatprep.subr.bf16.mxu0 %v4655_v42  ;;  %v5782_v41 = vld [vmem:[%s8218_s7 + $0xb0] ss:$8 sps:$4 sm:$0xff]   ;;  %v4745_v42 = vld [vmem:[%s8216_s23 + $0x184] ss:$8 sps:$4 sm:$0xff]  }
  0x30   :  { %984 = vmatprep.subr.bf16.mxu1 %v4657_v43  ;;  %v5792_v43 = vld [vmem:[%s8218_s7 + $0xc4] ss:$8 sps:$4 sm:$0xff]  }
  0x32   :  { %862 = vmatpush1.bf16.msra.mxu0 %v4659_v44  ;;  %v4743_v44 = vld [vmem:[%s8216_s23 + $0x180] ss:$8 sps:$4 sm:$0xff]  }
  0x33   :  { %985 = vmatpush1.bf16.msra.mxu1 %v4660_v45  ;;  %863 = vmatprep.subr.bf16.mxu0 %v4661_v46  ;;  %v5800_v45 = vld [vmem:[%s8218_s7 + $0xc0] ss:$8 sps:$4 sm:$0xff]   ;;  %v4751_v46 = vld [vmem:[%s8216_s23 + $0x194] ss:$8 sps:$4 sm:$0xff]  }
  0x34   :  { %986 = vmatprep.subr.bf16.mxu1 %v4663_v47  ;;  %v5810_v47 = vld [vmem:[%s8218_s7 + $0xd4] ss:$8 sps:$4 sm:$0xff]  }
  0x36   :  { %864 = vmatpush1.bf16.msra.mxu0 %v4665_v49  ;;  %v5818_v49 = vld [vmem:[%s8218_s7 + $0xd0] ss:$8 sps:$4 sm:$0xff]  }
  0x37   :  { %987 = vmatpush1.bf16.msra.mxu1 %v4666_v50  ;;  %865 = vmatprep.subr.bf16.mxu0 %v4668_v52  ;;  %v4757_v50 = vld [vmem:[%s8216_s23 + $0x1a4] ss:$8 sps:$4 sm:$0xff]   ;;  %v4755_v52 = vld [vmem:[%s8216_s23 + $0x1a0] ss:$8 sps:$4 sm:$0xff]  }
  0x38   :  { %1218 = vmatprep.subr.bf16.mxu1 %v5563_v53 }
  0x3a   :  { %997 = vmatmul.mubr.bf16.vlgmr.msra.gmra.mrb[0].mxu1 %v4118_v54  ;;  %866 = vmatpush1.bf16.msra.mxu0 %v4673_v55  ;;  %v5837_v54 = vld [vmem:[%s8218_s7 + $0xe0] ss:$8 sps:$4 sm:$0xff]   ;;  %v4763_v55 = vld [vmem:[%s8216_s23 + $0x1b4] ss:$8 sps:$4 sm:$0xff]  }
  0x3b   :  { %1219 = vmatpush1.bf16.msra.mxu1 %v5571_v56  ;;  %867 = vmatprep.subr.bf16.mxu0 %v4675_v57  ;;  %v5846_v57 = vld [vmem:[%s8218_s7 + $0xf4] ss:$8 sps:$4 sm:$0xff]  }
  0x3c   :  { %1220 = vmatprep.subr.bf16.mxu1 %v5580_v58  ;;  %1250 = vmatprep.mubr.bf16.mxu1 %v4242_v24  ;;  %v4788_v24 = vld [vmem:[%s8216_s23 + $0x214] ss:$8 sps:$4 sm:$0xff]  }
  0x3e   :  { %868 = vmatpush1.bf16.msra.mxu0 %v4679_v59  ;;  %v4761_v59 = vld [vmem:[%s8216_s23 + $0x1b0] ss:$8 sps:$4 sm:$0xff]  }
  0x3f   :  { %1221 = vmatpush1.bf16.msra.mxu1 %v5589_v60  ;;  %869 = vmatprep.subr.bf16.mxu0 %v4681_v61  ;;  %v5855_v61 = vld [vmem:[%s8218_s7 + $0xf0] ss:$8 sps:$4 sm:$0xff]  }
  0x40   :  { %1222 = vmatprep.subr.bf16.mxu1 %v5598_v62 }
  0x42   :  { %870 = vmatpush1.bf16.msra.mxu0 %v4685_v63  ;;  %v4771_v63 = vld [vmem:[%s8216_s23 + $0x1c4] ss:$8 sps:$4 sm:$0xff]  }
  0x43   :  { %1223 = vmatpush1.bf16.msra.mxu1 %v5607_v0  ;;  %871 = vmatprep.subr.bf16.mxu0 %v4687_v1  ;;  %v4241_v1 = vcombine.low %v5696_v21, %v5696_v21  ;;  %v4782_v21 = vld [vmem:[%s8216_s23 + $0x200] ss:$8 sps:$4 sm:$0xff]  }
  0x44   :  { %1224 = vmatprep.subr.bf16.mxu1 %v5616_v2 }
  0x46   :  { %872 = vmatpush1.bf16.msra.mxu0 %v4691_v3  ;;  %v4769_v3 = vld [vmem:[%s8216_s23 + $0x1c0] ss:$8 sps:$4 sm:$0xff]  }
  0x47   :  { %1225 = vmatpush1.bf16.msra.mxu1 %v5625_v4  ;;  %882 = vmatprep.subr.bf16.mxu0 %v4696_v5  ;;  %v4774_v5 = vld [vmem:[%s8216_s23 + $0x1d4] ss:$8 sps:$4 sm:$0xff]  }
  0x48   :  { %1226 = vmatprep.subr.bf16.mxu1 %v5634_v6 }
  0x49   :  { %874 = vmatmul.mubr.bf16.vlgmr.msra.gmra.mrb[0].mxu0 %v4112_v7  ;;  %v4772_v7 = vld [vmem:[%s8216_s23 + $0x1d0] ss:$8 sps:$4 sm:$0xff]  }
  0x4a   :  { %883 = vmatpush1.bf16.msra.mxu0 %v4694_v8  ;;  %914 = vmatprep.mubr.bf16.mxu0 %v4115_v31  ;;  %v4777_v8 = vld [vmem:[%s8216_s23 + $0x1e4] ss:$8 sps:$4 sm:$0xff]   ;;  %v4794_v31 = vld [vmem:[%s8216_s23 + $0x234] ss:$8 sps:$4 sm:$0xff]  }
  0x4b   :  { %1227 = vmatpush1.bf16.msra.mxu1 %v5643_v9  ;;  %884 = vmatprep.subr.bf16.mxu0 %v4703_v10  ;;  %v4775_v10 = vld [vmem:[%s8216_s23 + $0x1e0] ss:$8 sps:$4 sm:$0xff]  }
  0x4c   :  { %1228 = vmatprep.subr.bf16.mxu1 %v5652_v11 }
  0x4e   :  { %885 = vmatpush1.bf16.msra.mxu0 %v4701_v12  ;;  %v4780_v12 = vld [vmem:[%s8216_s23 + $0x1f4] ss:$8 sps:$4 sm:$0xff]  }
  0x4f   :  { %1229 = vmatpush1.bf16.msra.mxu1 %v5661_v13  ;;  %886 = vmatprep.subr.bf16.mxu0 %v4709_v14  ;;  %v4778_v14 = vld [vmem:[%s8216_s23 + $0x1f0] ss:$8 sps:$4 sm:$0xff]  }
  0x50   :  { %1230 = vmatprep.subr.bf16.mxu1 %v5670_v15 }
  0x52   :  { %887 = vmatpush1.bf16.msra.mxu0 %v4707_v16  ;;  %v4784_v16 = vld [vmem:[%s8216_s23 + $0x204] ss:$8 sps:$4 sm:$0xff]  }
  0x53   :  { %1231 = vmatpush1.bf16.msra.mxu1 %v5679_v17  ;;  %888 = vmatprep.subr.bf16.mxu0 %v4715_v18  ;;  %v5891_v18 = vld [vmem:[%s8217_s26 + $0x10] sm:$0xff] }
  0x54   :  { %1232 = vmatprep.subr.bf16.mxu1 %v5688_v19 }
  0x56   :  { %889 = vmatpush1.bf16.msra.mxu0 %v4713_v20  ;;  %v4114_v20 = vcombine.low %v5736_v30, %v5736_v30  ;;  %v4789_v30 = vld [vmem:[%s8216_s23 + $0x220] ss:$8 sps:$4 sm:$0xff]  }
  0x57   :  { %1233 = vmatpush1.bf16.msra.mxu1 %v5702_v22  ;;  %890 = vmatprep.subr.bf16.mxu0 %v4721_v23  ;;  %v4117_v23 = vcombine.high %v5891_v18, %v5891_v18 }
  0x58   :  { %1234 = vmatprep.subr.bf16.mxu1 %v5713_v25 }
  0x5a   :  { %891 = vmatpush1.bf16.msra.mxu0 %v4719_v26  ;;  %v4786_v26 = vld [vmem:[%s8216_s23 + $0x210] ss:$8 sps:$4 sm:$0xff]  }
  0x5b   :  { %1235 = vmatpush1.bf16.msra.mxu1 %v5721_v27  ;;  %892 = vmatprep.subr.bf16.mxu0 %v4727_v28  ;;  %v4791_v28 = vld [vmem:[%s8216_s23 + $0x224] ss:$8 sps:$4 sm:$0xff]  }
  0x5c   :  { %1236 = vmatprep.subr.bf16.mxu1 %v5730_v29 }
  0x5e   :  { %893 = vmatpush1.bf16.msra.mxu0 %v4725_v32  ;;  %v4792_v32 = vld [vmem:[%s8216_s23 + $0x230] ss:$8 sps:$4 sm:$0xff]  }
  0x5f   :  { %1237 = vmatpush1.bf16.msra.mxu1 %v5746_v33  ;;  %894 = vmatprep.subr.bf16.mxu0 %v4733_v34  ;;  %v4797_v34 = vld [vmem:[%s8216_s23 + $0x244] ss:$8 sps:$4 sm:$0xff]  }
  0x60   :  { %1238 = vmatprep.subr.bf16.mxu1 %v5756_v35 }
  0x62   :  { %895 = vmatpush1.bf16.msra.mxu0 %v4731_v36  ;;  %v5924_v36 = vld [vmem:[%s8220_s25 + $0x4] ss:$8 sps:$4 sm:$0xff]  }
  0x63   :  { %1239 = vmatpush1.bf16.msra.mxu1 %v5764_v37  ;;  %896 = vmatprep.subr.bf16.mxu0 %v4739_v38  ;;  %v5929_v38 = vld [vmem:[%s8220_s25] ss:$8 sps:$4 sm:$0xff]  }
  0x64   :  { %1240 = vmatprep.subr.bf16.mxu1 %v5774_v39 }
  0x66   :  { %897 = vmatpush1.bf16.msra.mxu0 %v4737_v40  ;;  %v4795_v40 = vld [vmem:[%s8216_s23 + $0x240] ss:$8 sps:$4 sm:$0xff]  }
  0x67   :  { %1241 = vmatpush1.bf16.msra.mxu1 %v5782_v41  ;;  %898 = vmatprep.subr.bf16.mxu0 %v4745_v42  ;;  %v4800_v42 = vld [vmem:[%s8216_s23 + $0x254] ss:$8 sps:$4 sm:$0xff]  }
  0x68   :  { %1242 = vmatprep.subr.bf16.mxu1 %v5792_v43 }
  0x6a   :  { %899 = vmatpush1.bf16.msra.mxu0 %v4743_v44  ;;  %v5942_v44 = vld [vmem:[%s8220_s25 + $0x14] ss:$8 sps:$4 sm:$0xff]  }
  0x6b   :  { %1243 = vmatpush1.bf16.msra.mxu1 %v5800_v45  ;;  %900 = vmatprep.subr.bf16.mxu0 %v4751_v46  ;;  %v5947_v46 = vld [vmem:[%s8220_s25 + $0x10] ss:$8 sps:$4 sm:$0xff]  }
  0x6c   :  { %1244 = vmatprep.subr.bf16.mxu1 %v5810_v47 }
  0x6e   :  { %901 = vmatpush1.bf16.msra.mxu0 %v4749_v48  ;;  %v4798_v48 = vld [vmem:[%s8216_s23 + $0x250] ss:$8 sps:$4 sm:$0xff]  }
  0x6f   :  { %1245 = vmatpush1.bf16.msra.mxu1 %v5818_v49  ;;  %902 = vmatprep.subr.bf16.mxu0 %v4757_v50  ;;  %v4803_v50 = vld [vmem:[%s8216_s23 + $0x264] ss:$8 sps:$4 sm:$0xff]  }
  0x70   :  { %1246 = vmatprep.subr.bf16.mxu1 %v5828_v51 }
  0x72   :  { %903 = vmatpush1.bf16.msra.mxu0 %v4755_v52  ;;  %v5960_v52 = vld [vmem:[%s8220_s25 + $0x24] ss:$8 sps:$4 sm:$0xff]  }
  0x73   :  { %1247 = vmatpush1.bf16.msra.mxu1 %v5837_v54  ;;  %904 = vmatprep.subr.bf16.mxu0 %v4763_v55  ;;  %v5965_v55 = vld [vmem:[%s8220_s25 + $0x20] ss:$8 sps:$4 sm:$0xff]  }
  0x74   :  { %1248 = vmatprep.subr.bf16.mxu1 %v5846_v57 }
  0x76   :  { %905 = vmatpush1.bf16.msra.mxu0 %v4761_v59  ;;  %v4801_v59 = vld [vmem:[%s8216_s23 + $0x260] ss:$8 sps:$4 sm:$0xff]  }
  0x77   :  { %1249 = vmatpush1.bf16.msra.mxu1 %v5855_v61  ;;  %906 = vmatprep.subr.bf16.mxu0 %v4771_v63  ;;  %v5975_v63 = vld [vmem:[%s8220_s25 + $0x34] ss:$8 sps:$4 sm:$0xff]  }
  0x78   :  { %1467 = vmatprep.subr.bf16.mxu1 %v5924_v36 }
  0x7a   :  { %1251 = vmatmul.mubr.bf16.vlgmr.msra.gmra.mrb[4].mxu1 %v4241_v1  ;;  %907 = vmatpush1.bf16.msra.mxu0 %v4769_v3  ;;  %v5980_v1 = vld [vmem:[%s8220_s25 + $0x30] ss:$8 sps:$4 sm:$0xff]   ;;  %v4806_v3 = vld [vmem:[%s8216_s23 + $0x274] ss:$8 sps:$4 sm:$0xff]  }
  0x7b   :  { %908 = vmatprep.subr.bf16.mxu0 %v4774_v5  ;;  %1468 = vmatpush1.bf16.msra.mxu1 %v5929_v38  ;;  %v4804_v5 = vld [vmem:[%s8216_s23 + $0x270] ss:$8 sps:$4 sm:$0xff]  }
  0x7c   :  { %1469 = vmatprep.subr.bf16.mxu1 %v5942_v44 }
  0x7e   :  { %909 = vmatpush1.bf16.msra.mxu0 %v4772_v7  ;;  %v5993_v7 = vld [vmem:[%s8220_s25 + $0x44] ss:$8 sps:$4 sm:$0xff]  }
  0x7f   :  { %910 = vmatprep.subr.bf16.mxu0 %v4777_v8  ;;  %1470 = vmatpush1.bf16.msra.mxu1 %v5947_v46  ;;  %v5998_v8 = vld [vmem:[%s8220_s25 + $0x40] ss:$8 sps:$4 sm:$0xff]  }
  0x80   :  { %1471 = vmatprep.subr.bf16.mxu1 %v5960_v52 }
  0x82   :  { %911 = vmatpush1.bf16.msra.mxu0 %v4775_v10  ;;  %v4809_v10 = vld [vmem:[%s8216_s23 + $0x284] ss:$8 sps:$4 sm:$0xff]  }
  0x83   :  { %912 = vmatprep.subr.bf16.mxu0 %v4780_v12  ;;  %1472 = vmatpush1.bf16.msra.mxu1 %v5965_v55  ;;  %v4807_v12 = vld [vmem:[%s8216_s23 + $0x280] ss:$8 sps:$4 sm:$0xff]  }
  0x84   :  { %1473 = vmatprep.subr.bf16.mxu1 %v5975_v63 }
  0x86   :  { %913 = vmatpush1.bf16.msra.mxu0 %v4778_v14  ;;  %v6011_v14 = vld [vmem:[%s8220_s25 + $0x54] ss:$8 sps:$4 sm:$0xff]  }
  0x87   :  { %923 = vmatprep.subr.bf16.mxu0 %v4784_v16  ;;  %1474 = vmatpush1.bf16.msra.mxu1 %v5980_v1  ;;  %v6016_v16 = vld [vmem:[%s8220_s25 + $0x50] ss:$8 sps:$4 sm:$0xff]  }
  0x88   :  { %1475 = vmatprep.subr.bf16.mxu1 %v5993_v7 }
  0x89   :  { %915 = vmatmul.mubr.bf16.vlgmr.msra.gmra.mrb[0].mxu0 %v4114_v20  ;;  %v4812_v20 = vld [vmem:[%s8216_s23 + $0x294] ss:$8 sps:$4 sm:$0xff]  }
  0x8a   :  { %924 = vmatpush1.bf16.msra.mxu0 %v4782_v21  ;;  %955 = vmatprep.mubr.bf16.mxu0 %v4117_v23  ;;  %v4810_v21 = vld [vmem:[%s8216_s23 + $0x290] ss:$8 sps:$4 sm:$0xff]   ;;  %v6029_v23 = vld [vmem:[%s8220_s25 + $0x64] ss:$8 sps:$4 sm:$0xff]  }
  0x8b   :  { %925 = vmatprep.subr.bf16.mxu0 %v4788_v24  ;;  %1476 = vmatpush1.bf16.msra.mxu1 %v5998_v8  ;;  %v6034_v24 = vld [vmem:[%s8220_s25 + $0x60] ss:$8 sps:$4 sm:$0xff]  }
  0x8c   :  { %1477 = vmatprep.subr.bf16.mxu1 %v6011_v14 }
  0x8e   :  { %926 = vmatpush1.bf16.msra.mxu0 %v4786_v26  ;;  %v4815_v26 = vld [vmem:[%s8216_s23 + $0x2a4] ss:$8 sps:$4 sm:$0xff]  }
  0x8f   :  { %927 = vmatprep.subr.bf16.mxu0 %v4791_v28  ;;  %1478 = vmatpush1.bf16.msra.mxu1 %v6016_v16  ;;  %v4813_v28 = vld [vmem:[%s8216_s23 + $0x2a0] ss:$8 sps:$4 sm:$0xff]  }
  0x90   :  { %1479 = vmatprep.subr.bf16.mxu1 %v6029_v23 }
  0x92   :  { %928 = vmatpush1.bf16.msra.mxu0 %v4789_v30  ;;  %v6047_v30 = vld [vmem:[%s8220_s25 + $0x74] ss:$8 sps:$4 sm:$0xff]  }
  0x93   :  { %929 = vmatprep.subr.bf16.mxu0 %v4794_v31  ;;  %1480 = vmatpush1.bf16.msra.mxu1 %v6034_v24  ;;  %v6052_v31 = vld [vmem:[%s8220_s25 + $0x70] ss:$8 sps:$4 sm:$0xff]  }
  0x94   :  { %1481 = vmatprep.subr.bf16.mxu1 %v6047_v30 }
  0x96   :  { %930 = vmatpush1.bf16.msra.mxu0 %v4792_v32  ;;  %v4818_v32 = vld [vmem:[%s8216_s23 + $0x2b4] ss:$8 sps:$4 sm:$0xff]  }
  0x97   :  { %931 = vmatprep.subr.bf16.mxu0 %v4797_v34  ;;  %1482 = vmatpush1.bf16.msra.mxu1 %v6052_v31  ;;  %v4816_v34 = vld [vmem:[%s8216_s23 + $0x2b0] ss:$8 sps:$4 sm:$0xff]  }
  0x9a   :  { %932 = vmatpush1.bf16.msra.mxu0 %v4795_v40  ;;  %v6065_v40 = vld [vmem:[%s8220_s25 + $0x84] ss:$8 sps:$4 sm:$0xff]  }
  0x9b   :  { %933 = vmatprep.subr.bf16.mxu0 %v4800_v42  ;;  %v6070_v42 = vld [vmem:[%s8220_s25 + $0x80] ss:$8 sps:$4 sm:$0xff]   ;;  %1483 = vmatprep.subr.bf16.mxu1 %v6065_v40 }
  0x9c   :  { %8221 = vst [vmem:[#allocation3_spill] sm:$0xff] %v6070_v42  ;;  %1484 = vmatpush1.bf16.msra.mxu1 %v6070_v42 }
  0x9e   :  { %934 = vmatpush1.bf16.msra.mxu0 %v4798_v48  ;;  %v4821_v48 = vld [vmem:[%s8216_s23 + $0x2c4] ss:$8 sps:$4 sm:$0xff]  }
  0x9f   :  { %935 = vmatprep.subr.bf16.mxu0 %v4803_v50  ;;  %v4819_v50 = vld [vmem:[%s8216_s23 + $0x2c0] ss:$8 sps:$4 sm:$0xff]  }
  0xa2   :  { %936 = vmatpush1.bf16.msra.mxu0 %v4801_v59  ;;  %v6083_v59 = vld [vmem:[%s8220_s25 + $0x94] ss:$8 sps:$4 sm:$0xff]  }
  0xa3   :  { %937 = vmatprep.subr.bf16.mxu0 %v4806_v3  ;;  %8222 = vst [vmem:[#allocation4_spill] sm:$0xff] %v6083_v59  ;;  %v6088_v3 = vld [vmem:[%s8220_s25 + $0x90] ss:$8 sps:$4 sm:$0xff]   ;;  %1485 = vmatprep.subr.bf16.mxu1 %v6083_v59 }
  0xa4   :  { %8223 = vst [vmem:[#allocation5_spill] sm:$0xff] %v6088_v3  ;;  %1486 = vmatpush1.bf16.msra.mxu1 %v6088_v3 }
  0xa6   :  { %938 = vmatpush1.bf16.msra.mxu0 %v4804_v5  ;;  %v4824_v5 = vld [vmem:[%s8216_s23 + $0x2d4] ss:$8 sps:$4 sm:$0xff]  }
  0xa7   :  { %939 = vmatprep.subr.bf16.mxu0 %v4809_v10  ;;  %v4822_v10 = vld [vmem:[%s8216_s23 + $0x2d0] ss:$8 sps:$4 sm:$0xff]  }
  0xaa   :  { %940 = vmatpush1.bf16.msra.mxu0 %v4807_v12  ;;  %v6101_v12 = vld [vmem:[%s8220_s25 + $0xa4] ss:$8 sps:$4 sm:$0xff]  }
  0xab   :  { %941 = vmatprep.subr.bf16.mxu0 %v4812_v20  ;;  %8224 = vst [vmem:[#allocation6_spill] sm:$0xff] %v6101_v12  ;;  %v6106_v20 = vld [vmem:[%s8220_s25 + $0xa0] ss:$8 sps:$4 sm:$0xff]   ;;  %1487 = vmatprep.subr.bf16.mxu1 %v6101_v12 }
  0xac   :  { %8225 = vst [vmem:[#allocation7_spill] sm:$0xff] %v6106_v20  ;;  %1488 = vmatpush1.bf16.msra.mxu1 %v6106_v20 }
  0xae   :  { %942 = vmatpush1.bf16.msra.mxu0 %v4810_v21  ;;  %v4827_v21 = vld [vmem:[%s8216_s23 + $0x2e4] ss:$8 sps:$4 sm:$0xff]  }
  0xaf   :  { %943 = vmatprep.subr.bf16.mxu0 %v4815_v26  ;;  %v4825_v26 = vld [vmem:[%s8216_s23 + $0x2e0] ss:$8 sps:$4 sm:$0xff]  }
  0xb2   :  { %944 = vmatpush1.bf16.msra.mxu0 %v4813_v28  ;;  %v6119_v28 = vld [vmem:[%s8220_s25 + $0xb4] ss:$8 sps:$4 sm:$0xff]  }
  0xb3   :  { %945 = vmatprep.subr.bf16.mxu0 %v4818_v32  ;;  %8226 = vst [vmem:[#allocation8_spill] sm:$0xff] %v6119_v28  ;;  %v6124_v32 = vld [vmem:[%s8220_s25 + $0xb0] ss:$8 sps:$4 sm:$0xff]   ;;  %1489 = vmatprep.subr.bf16.mxu1 %v6119_v28 }
  0xb4   :  { %8227 = vst [vmem:[#allocation9_spill] sm:$0xff] %v6124_v32  ;;  %1490 = vmatpush1.bf16.msra.mxu1 %v6124_v32  ;;  %v6154_v32 = vld [vmem:[%s8220_s25 + $0xd4] ss:$8 sps:$4 sm:$0xff]  }
  0xb5   :  { %8230 = vst [vmem:[#allocation12_spill] sm:$0xff] %v6154_v32 }
  0xb6   :  { %946 = vmatpush1.bf16.msra.mxu0 %v4816_v34  ;;  %v4830_v34 = vld [vmem:[%s8216_s23 + $0x2f4] ss:$8 sps:$4 sm:$0xff]  }
  0xb7   :  { %947 = vmatprep.subr.bf16.mxu0 %v4821_v48  ;;  %v4828_v48 = vld [vmem:[%s8216_s23 + $0x2f0] ss:$8 sps:$4 sm:$0xff]  }
  0xba   :  { %948 = vmatpush1.bf16.msra.mxu0 %v4819_v50  ;;  %v6137_v50 = vld [vmem:[%s8220_s25 + $0xc4] ss:$8 sps:$4 sm:$0xff]  }
  0xbb   :  { %949 = vmatprep.subr.bf16.mxu0 %v4824_v5  ;;  %8228 = vst [vmem:[#allocation10_spill] sm:$0xff] %v6137_v50  ;;  %v6142_v5 = vld [vmem:[%s8220_s25 + $0xc0] ss:$8 sps:$4 sm:$0xff]   ;;  %1491 = vmatprep.subr.bf16.mxu1 %v6137_v50 }
  0xbc   :  { %8229 = vst [vmem:[#allocation11_spill] sm:$0xff] %v6142_v5  ;;  %1492 = vmatpush1.bf16.msra.mxu1 %v6142_v5  ;;  %v1039_v50 = vld [vmem:[%s8174_s6] sm:$0x3] }
  0xbd   :  { %1493 = vmatprep.subr.bf16.mxu1 %v6154_v32 }
  0xbe   :  { %950 = vmatpush1.bf16.msra.mxu0 %v4822_v10  ;;  %v69_v10 = vld [vmem:[%s8219_s29 + $0x10] sm:$0xff] }
  0xbf   :  { %951 = vmatprep.subr.bf16.mxu0 %v4827_v21  ;;  %v4116_v21 = vcombine.low %v5891_v18, %v5891_v18  ;;  %v6168_v18 = vld [vmem:[%s8220_s25 + $0xe4] ss:$8 sps:$4 sm:$0xff]  }
  0xc0   :  { %8232 = vst [vmem:[#allocation14_spill] sm:$0xff] %v6168_v18 }
  0xc2   :  { %952 = vmatpush1.bf16.msra.mxu0 %v4825_v26  ;;  %v4312_v26 = vcombine.high %v69_v10, %v69_v10 }
  0xc3   :  { %953 = vmatprep.subr.bf16.mxu0 %v4830_v34  ;;  %v6159_v34 = vld [vmem:[%s8220_s25 + $0xd0] ss:$8 sps:$4 sm:$0xff]  }
  0xc4   :  { %8231 = vst [vmem:[#allocation13_spill] sm:$0xff] %v6159_v34  ;;  %1494 = vmatpush1.bf16.msra.mxu1 %v6159_v34 }
  0xc5   :  { %1495 = vmatprep.subr.bf16.mxu1 %v6168_v18 }
  0xc6   :  { %954 = vmatpush1.bf16.msra.mxu0 %v4828_v48  ;;  %v6174_v48 = vld [vmem:[%s8220_s25 + $0xe0] ss:$8 sps:$4 sm:$0xff]  }
  0xc7   :  { %1628 = vmatprep.subr.bf16.mxu0 %v5563_v53  ;;  %8233 = vst [vmem:[#allocation15_spill] sm:$0xff] %v6174_v48 }
  0xc8   :  { %1496 = vmatpush1.bf16.msra.mxu1 %v6174_v48 }
  0xc9   :  { %956 = vmatmul.mubr.bf16.vlgmr.msra.gmra.mrb[0].mxu0 %v4116_v21  ;;  %v6182_v21 = vld [vmem:[%s8220_s25 + $0xf4] ss:$8 sps:$4 sm:$0xff]  }
  0xca   :  { %1629 = vmatpush1.bf16.msra.mxu0 %v5571_v56  ;;  %1660 = vmatprep.mubr.bf16.mxu0 %v4312_v26  ;;  %8234 = vst [vmem:[#allocation16_spill] sm:$0xff] %v6182_v21  ;;  %v6188_v26 = vld [vmem:[%s8220_s25 + $0xf0] ss:$8 sps:$4 sm:$0xff]  }
  0xcb   :  { %1630 = vmatprep.subr.bf16.mxu0 %v5580_v58  ;;  %8235 = vst [vmem:[#allocation17_spill] sm:$0xff] %v6188_v26  ;;  %1497 = vmatprep.subr.bf16.mxu1 %v6182_v21  ;;  %v4311_v21 = vcombine.low %v69_v10, %v69_v10  ;;  %v6262_v10 = vld [vmem:[%s8219_s29 + $0x20] sm:$0xff] }
  0xcc   :  { %1498 = vmatpush1.bf16.msra.mxu1 %v6188_v26  ;;  %v70_v26 = vld [vmem:[%s8219_s29 + $0x18] sm:$0xff] }
  0xcd   :  { %1525 = vmatprep.subr.bf16.mxu1 %v5563_v53  ;;  %v4315_v48 = vcombine.high %v70_v26, %v70_v26 }
  0xce   :  { %1631 = vmatpush1.bf16.msra.mxu0 %v5589_v60 }
  0xcf   :  { %1632 = vmatprep.subr.bf16.mxu0 %v5598_v62 }
  0xd2   :  { %1633 = vmatpush1.bf16.msra.mxu0 %v5607_v0 }
  0xd3   :  { %1634 = vmatprep.subr.bf16.mxu0 %v5616_v2 }
  0xd6   :  { %1635 = vmatpush1.bf16.msra.mxu0 %v5625_v4 }
  0xd7   :  { %1636 = vmatprep.subr.bf16.mxu0 %v5634_v6 }
  0xda   :  { %1637 = vmatpush1.bf16.msra.mxu0 %v5643_v9 }
  0xdb   :  { %1638 = vmatprep.subr.bf16.mxu0 %v5652_v11 }
  0xde   :  { %1639 = vmatpush1.bf16.msra.mxu0 %v5661_v13 }
  0xdf   :  { %1640 = vmatprep.subr.bf16.mxu0 %v5670_v15 }
  0xe2   :  { %1641 = vmatpush1.bf16.msra.mxu0 %v5679_v17 }
  0xe3   :  { %1642 = vmatprep.subr.bf16.mxu0 %v5688_v19 }
  0xe6   :  { %1643 = vmatpush1.bf16.msra.mxu0 %v5702_v22 }
  0xe7   :  { %1644 = vmatprep.subr.bf16.mxu0 %v5713_v25 }
  0xea   :  { %1645 = vmatpush1.bf16.msra.mxu0 %v5721_v27 }
  0xeb   :  { %1646 = vmatprep.subr.bf16.mxu0 %v5730_v29 }
  0xee   :  { %1647 = vmatpush1.bf16.msra.mxu0 %v5746_v33 }
  0xef   :  { %1648 = vmatprep.subr.bf16.mxu0 %v5756_v35 }
  0xf2   :  { %1649 = vmatpush1.bf16.msra.mxu0 %v5764_v37 }
  0xf3   :  { %1650 = vmatprep.subr.bf16.mxu0 %v5774_v39 }
  0xf6   :  { %1651 = vmatpush1.bf16.msra.mxu0 %v5782_v41 }
  0xf7   :  { %1652 = vmatprep.subr.bf16.mxu0 %v5792_v43 }
  0xfa   :  { %1653 = vmatpush1.bf16.msra.mxu0 %v5800_v45 }
  0xfb   :  { %1654 = vmatprep.subr.bf16.mxu0 %v5810_v47 }
  0xfe   :  { %1655 = vmatpush1.bf16.msra.mxu0 %v5818_v49 }
  0xff   :  { %1656 = vmatprep.subr.bf16.mxu0 %v5828_v51 }
 0x102   :  { %1657 = vmatpush1.bf16.msra.mxu0 %v5837_v54 }
 0x103   :  { %1658 = vmatprep.subr.bf16.mxu0 %v5846_v57 }
 0x106   :  { %1659 = vmatpush1.bf16.msra.mxu0 %v5855_v61 }
 0x107   :  { %1731 = vmatprep.subr.bf16.mxu0 %v5563_v53 }
 0x109   :  { %1661 = vmatmul.mubr.bf16.vlgmr.msra.gmra.mrb[4].mxu0 %v4311_v21 }
 0x10a   :  { %1732 = vmatpush1.bf16.msra.mxu0 %v5571_v56  ;;  %1763 = vmatprep.mubr.bf16.mxu0 %v4315_v48  ;;  %v4314_v48 = vcombine.low %v70_v26, %v70_v26 }
 0x10b   :  { %1733 = vmatprep.subr.bf16.mxu0 %v5580_v58 }
 0x10d   :  { %v6226_v18 = vpop.f32.mrb[0].mxu1 }
 0x10e   :  { %v6228_v34 = vpop.f32.mrb[1].mxu1  ;;  %1734 = vmatpush1.bf16.msra.mxu0 %v5589_v60 }
 0x10f   :  { %v1002_v32 = vpop.f32.mrb[2].mxu1  ;;  %1735 = vmatprep.subr.bf16.mxu0 %v5598_v62 }
 0x110   :  { %v1003_v5 = vpop.f32.mrb[3].mxu1  ;;  %v8205_v32 = vlaneseq }
 0x112   :  { %1736 = vmatpush1.bf16.msra.mxu0 %v5607_v0  ;;  %v201_v5 = vshrl.u32 %v8205_v32, 7  ;;  %v4318_v32 = vcombine.high %v6262_v10, %v6262_v10 }
 0x113   :  { %1737 = vmatprep.subr.bf16.mxu0 %v5616_v2 }
 0x114   :  { %v6264_v21 = vsub.s32 0, %v201_v5  ;;  %v6270_v28 = vsub.s32 1, %v201_v5 }
 0x116   :  { %1738 = vmatpush1.bf16.msra.mxu0 %v5625_v4  ;;  %v6276_v20 = vrot.slane %v1039_v50, %v6264_v21  ;;  %v6280_v26 = vrot.slane %v1039_v50, %v6270_v28  ;;  %v6290_v50 = vld [vmem:[%s8219_s29 + $0x8] sm:$0xff] }
 0x117   :  { %1739 = vmatprep.subr.bf16.mxu0 %v5634_v6 }
 0x11a   :  { %1740 = vmatpush1.bf16.msra.mxu0 %v5643_v9 }
 0x11b   :  { %1741 = vmatprep.subr.bf16.mxu0 %v5652_v11 }
 0x11e   :  { %1742 = vmatpush1.bf16.msra.mxu0 %v5661_v13 }
 0x11f   :  { %1743 = vmatprep.subr.bf16.mxu0 %v5670_v15 }
 0x122   :  { %1744 = vmatpush1.bf16.msra.mxu0 %v5679_v17 }
 0x123   :  { %1745 = vmatprep.subr.bf16.mxu0 %v5688_v19 }
 0x126   :  { %1746 = vmatpush1.bf16.msra.mxu0 %v5702_v22 }
 0x127   :  { %1747 = vmatprep.subr.bf16.mxu0 %v5713_v25 }
 0x12a   :  { %1748 = vmatpush1.bf16.msra.mxu0 %v5721_v27 }
 0x12b   :  { %1749 = vmatprep.subr.bf16.mxu0 %v5730_v29 }
 0x12e   :  { %1750 = vmatpush1.bf16.msra.mxu0 %v5746_v33 }
 0x12f   :  { %1751 = vmatprep.subr.bf16.mxu0 %v5756_v35 }
 0x132   :  { %1752 = vmatpush1.bf16.msra.mxu0 %v5764_v37 }
 0x133   :  { %1753 = vmatprep.subr.bf16.mxu0 %v5774_v39 }
 0x136   :  { %1754 = vmatpush1.bf16.msra.mxu0 %v5782_v41 }
 0x137   :  { %1755 = vmatprep.subr.bf16.mxu0 %v5792_v43 }
 0x13a   :  { %1756 = vmatpush1.bf16.msra.mxu0 %v5800_v45 }
 0x13b   :  { %1757 = vmatprep.subr.bf16.mxu0 %v5810_v47 }
 0x13e   :  { %1758 = vmatpush1.bf16.msra.mxu0 %v5818_v49 }
 0x13f   :  { %1759 = vmatprep.subr.bf16.mxu0 %v5828_v51 }
 0x142   :  { %1760 = vmatpush1.bf16.msra.mxu0 %v5837_v54 }
 0x143   :  { %1761 = vmatprep.subr.bf16.mxu0 %v5846_v57 }
 0x146   :  { %1762 = vmatpush1.bf16.msra.mxu0 %v5855_v61 }
 0x147   :  { %1834 = vmatprep.subr.bf16.mxu0 %v5563_v53 }
 0x149   :  { %1764 = vmatmul.mubr.bf16.vlgmr.msra.gmra.mrb[8].mxu0 %v4314_v48 }
 0x14a   :  { %1835 = vmatpush1.bf16.msra.mxu0 %v5571_v56  ;;  %1866 = vmatprep.mubr.bf16.mxu0 %v4318_v32 }
 0x14b   :  { %1836 = vmatprep.subr.bf16.mxu0 %v5580_v58 }
 0x14d   :  { %v1252_v12 = vpop.f32.mrb[4].mxu1 }
 0x14e   :  { %v1253_v5 = vadd.f32 %v1252_v12, %v6276_v20  ;;  %v1254_v3 = vpop.f32.mrb[5].mxu1  ;;  %1837 = vmatpush1.bf16.msra.mxu0 %v5589_v60 }
 0x14f   :  { %v1255_v59 = vadd.f32 %v1254_v3, %v6280_v26  ;;  %v1256_v42 = vpop.f32.mrb[6].mxu1  ;;  %1838 = vmatprep.subr.bf16.mxu0 %v5598_v62 }
 0x150   :  { %v1259_v53 = vmax.f32 %v1253_v5, 0.0  ;;  %v1257_v48 = vpop.f32.mrb[7].mxu1  ;;  %v4309_v42 = vcombine.high %v6290_v50, %v6290_v50  ;;  %v6435_v5 = vld [vmem:[%s8218_s7 + $0x54] ss:$8 sps:$4 sm:$0xff]  }
 0x151   :  { %v1260_v56 = vmax.f32 %v1255_v59, 0.0  ;;  %v6299_v59 = vld [vmem:[%s8218_s7] ss:$8 sps:$4 sm:$0xff]  }
 0x152   :  { %1839 = vmatpush1.bf16.msra.mxu0 %v5607_v0  ;;  %v1261_v12 = vpack.c.bf16 %v1259_v53, %v1259_v53 }
 0x153   :  { %v1262_v32 = vpack.c.bf16 %v1260_v56, %v1260_v56  ;;  %1840 = vmatprep.subr.bf16.mxu0 %v5616_v2 }
 0x155   :  { %1499 = vmatprep.mubr.bf16.mxu1 %v1262_v32  ;;  %v6442_v32 = vld [vmem:[%s8218_s7 + $0x50] ss:$8 sps:$4 sm:$0xff]  }
 0x156   :  { %1500 = vmatmul.mubr.bf16.vlgmr.msra.gmra.mrb[8].mxu1 %v1261_v12  ;;  %1841 = vmatpush1.bf16.msra.mxu0 %v5625_v4 }
 0x157   :  { %1526 = vmatpush1.bf16.msra.mxu1 %v6299_v59  ;;  %1842 = vmatprep.subr.bf16.mxu0 %v5634_v6 }
 0x158   :  { %1527 = vmatprep.subr.bf16.mxu1 %v5580_v58  ;;  %1557 = vmatprep.mubr.bf16.mxu1 %v4309_v42  ;;  %v4317_v58 = vcombine.low %v6262_v10, %v6262_v10  ;;  %v6427_v10 = vld [vmem:[%s8218_s7 + $0x40] ss:$8 sps:$4 sm:$0xff]  }
 0x15a   :  { %1843 = vmatpush1.bf16.msra.mxu0 %v5643_v9 }
 0x15b   :  { %1528 = vmatpush1.bf16.msra.mxu1 %v5589_v60  ;;  %1844 = vmatprep.subr.bf16.mxu0 %v5652_v11  ;;  %v6354_v60 = vld [vmem:[%s8219_s29 + $0x28] sm:$0xff] }
 0x15c   :  { %1529 = vmatprep.subr.bf16.mxu1 %v5598_v62  ;;  %v6362_v62 = vld [vmem:[%s8218_s7 + $0x4] ss:$8 sps:$4 sm:$0xff]  }
 0x15e   :  { %1845 = vmatpush1.bf16.msra.mxu0 %v5661_v13 }
 0x15f   :  { %1530 = vmatpush1.bf16.msra.mxu1 %v5607_v0  ;;  %1846 = vmatprep.subr.bf16.mxu0 %v5670_v15  ;;  %v4321_v0 = vcombine.high %v6354_v60, %v6354_v60 }
 0x160   :  { %1531 = vmatprep.subr.bf16.mxu1 %v5616_v2  ;;  %v6373_v2 = vld [vmem:[%s8218_s7 + $0x14] ss:$8 sps:$4 sm:$0xff]  }
 0x162   :  { %1847 = vmatpush1.bf16.msra.mxu0 %v5679_v17 }
 0x163   :  { %1532 = vmatpush1.bf16.msra.mxu1 %v5625_v4  ;;  %1848 = vmatprep.subr.bf16.mxu0 %v5688_v19  ;;  %v6380_v4 = vld [vmem:[%s8218_s7 + $0x10] ss:$8 sps:$4 sm:$0xff]  }
 0x164   :  { %1533 = vmatprep.subr.bf16.mxu1 %v5634_v6  ;;  %v6387_v6 = vld [vmem:[%s8218_s7 + $0x24] ss:$8 sps:$4 sm:$0xff]  }
 0x166   :  { %1849 = vmatpush1.bf16.msra.mxu0 %v5702_v22 }
 0x167   :  { %1534 = vmatpush1.bf16.msra.mxu1 %v5643_v9  ;;  %1850 = vmatprep.subr.bf16.mxu0 %v5713_v25  ;;  %v4308_v9 = vcombine.low %v6290_v50, %v6290_v50 }
 0x168   :  { %1535 = vmatprep.subr.bf16.mxu1 %v5652_v11  ;;  %v6396_v11 = vld [vmem:[%s8218_s7 + $0x20] ss:$8 sps:$4 sm:$0xff]  }
 0x16a   :  { %1851 = vmatpush1.bf16.msra.mxu0 %v5721_v27 }
 0x16b   :  { %1536 = vmatpush1.bf16.msra.mxu1 %v5661_v13  ;;  %1852 = vmatprep.subr.bf16.mxu0 %v5730_v29  ;;  %v6402_v13 = vld [vmem:[%s8218_s7 + $0x34] ss:$8 sps:$4 sm:$0xff]  }
 0x16c   :  { %1537 = vmatprep.subr.bf16.mxu1 %v5670_v15  ;;  %v6409_v15 = vld [vmem:[%s8218_s7 + $0x30] ss:$8 sps:$4 sm:$0xff]  }
 0x16e   :  { %1853 = vmatpush1.bf16.msra.mxu0 %v5746_v33 }
 0x16f   :  { %1538 = vmatpush1.bf16.msra.mxu1 %v5679_v17  ;;  %1854 = vmatprep.subr.bf16.mxu0 %v5756_v35  ;;  %v198_v17 = vld [vmem:[%s8175_s4] sm:$0x3] }
 0x170   :  { %1539 = vmatprep.subr.bf16.mxu1 %v5688_v19  ;;  %v6419_v19 = vld [vmem:[%s8218_s7 + $0x44] ss:$8 sps:$4 sm:$0xff]   ;;  %v203_v3 = vrot.slane %v198_v17, %v6264_v21 }
 0x172   :  { %1855 = vmatpush1.bf16.msra.mxu0 %v5764_v37 }
 0x173   :  { %1540 = vmatpush1.bf16.msra.mxu1 %v5702_v22  ;;  %1856 = vmatprep.subr.bf16.mxu0 %v5774_v39 }
 0x174   :  { %1541 = vmatprep.subr.bf16.mxu1 %v5713_v25 }
 0x176   :  { %1857 = vmatpush1.bf16.msra.mxu0 %v5782_v41 }
 0x177   :  { %1542 = vmatpush1.bf16.msra.mxu1 %v5721_v27  ;;  %1858 = vmatprep.subr.bf16.mxu0 %v5792_v43 }
 0x178   :  { %1543 = vmatprep.subr.bf16.mxu1 %v5730_v29 }
 0x17a   :  { %1859 = vmatpush1.bf16.msra.mxu0 %v5800_v45 }
 0x17b   :  { %1544 = vmatpush1.bf16.msra.mxu1 %v5746_v33  ;;  %1860 = vmatprep.subr.bf16.mxu0 %v5810_v47 }
 0x17c   :  { %1545 = vmatprep.subr.bf16.mxu1 %v5756_v35 }
 0x17e   :  { %1861 = vmatpush1.bf16.msra.mxu0 %v5818_v49 }
 0x17f   :  { %1546 = vmatpush1.bf16.msra.mxu1 %v5764_v37  ;;  %1862 = vmatprep.subr.bf16.mxu0 %v5828_v51 }
 0x180   :  { %1547 = vmatprep.subr.bf16.mxu1 %v5774_v39 }
 0x182   :  { %1863 = vmatpush1.bf16.msra.mxu0 %v5837_v54 }
 0x183   :  { %1548 = vmatpush1.bf16.msra.mxu1 %v5782_v41  ;;  %1864 = vmatprep.subr.bf16.mxu0 %v5846_v57 }
 0x184   :  { %1549 = vmatprep.subr.bf16.mxu1 %v5792_v43 }
 0x186   :  { %1865 = vmatpush1.bf16.msra.mxu0 %v5855_v61 }
 0x187   :  { %1550 = vmatpush1.bf16.msra.mxu1 %v5800_v45  ;;  %1937 = vmatprep.subr.bf16.mxu0 %v6362_v62 }
 0x188   :  { %1551 = vmatprep.subr.bf16.mxu1 %v5810_v47 }
 0x189   :  { %1867 = vmatmul.mubr.bf16.vlgmr.msra.gmra.mrb[12].mxu0 %v4317_v58  ;;  %v6557_v58 = vld [vmem:[%s8218_s7 + $0x80] ss:$8 sps:$4 sm:$0xff]  }
 0x18a   :  { %1938 = vmatpush1.bf16.msra.mxu0 %v6299_v59  ;;  %1969 = vmatprep.mubr.bf16.mxu0 %v4321_v0  ;;  %v6569_v0 = vld [vmem:[%s8218_s7 + $0x90] ss:$8 sps:$4 sm:$0xff]  }
 0x18b   :  { %1552 = vmatpush1.bf16.msra.mxu1 %v5818_v49  ;;  %1939 = vmatprep.subr.bf16.mxu0 %v6373_v2 }
 0x18c   :  { %1553 = vmatprep.subr.bf16.mxu1 %v5828_v51 }
 0x18e   :  { %1940 = vmatpush1.bf16.msra.mxu0 %v6380_v4 }
 0x18f   :  { %1554 = vmatpush1.bf16.msra.mxu1 %v5837_v54  ;;  %1941 = vmatprep.subr.bf16.mxu0 %v6387_v6 }
 0x190   :  { %1555 = vmatprep.subr.bf16.mxu1 %v5846_v57 }
 0x192   :  { %1942 = vmatpush1.bf16.msra.mxu0 %v6396_v11 }
 0x193   :  { %1556 = vmatpush1.bf16.msra.mxu1 %v5855_v61  ;;  %1943 = vmatprep.subr.bf16.mxu0 %v6402_v13 }
 0x194   :  { %1570 = vmatprep.subr.bf16.mxu1 %v5924_v36 }
 0x196   :  { %1558 = vmatmul.mubr.bf16.vlgmr.msra.gmra.mrb[12].mxu1 %v4308_v9  ;;  %1944 = vmatpush1.bf16.msra.mxu0 %v6409_v15  ;;  %v6575_v9 = vld [vmem:[%s8218_s7 + $0xa4] ss:$8 sps:$4 sm:$0xff]  }
 0x197   :  { %1571 = vmatpush1.bf16.msra.mxu1 %v5929_v38  ;;  %1945 = vmatprep.subr.bf16.mxu0 %v6419_v19  ;;  %v207_v38 = vrot.slane %v198_v17, %v6270_v28  ;;  %v6581_v17 = vld [vmem:[%s8218_s7 + $0xa0] ss:$8 sps:$4 sm:$0xff]  }
 0x198   :  { %1572 = vmatprep.subr.bf16.mxu1 %v5942_v44 }
 0x19a   :  { %1946 = vmatpush1.bf16.msra.mxu0 %v6427_v10 }
 0x19b   :  { %1573 = vmatpush1.bf16.msra.mxu1 %v5947_v46  ;;  %1947 = vmatprep.subr.bf16.mxu0 %v6435_v5 }
 0x19c   :  { %1574 = vmatprep.subr.bf16.mxu1 %v5960_v52  ;;  %v957_v44 = vpop.f32.mrb[0].mxu0  ;;  %v6452_v52 = vld [vmem:[%s8218_s7 + $0x64] ss:$8 sps:$4 sm:$0xff]  }
 0x19d   :  { %v4567_v53 = vadd.f32 %v957_v44, %v203_v3  ;;  %v959_v48 = vpop.f32.mrb[1].mxu0  ;;  %v6587_v3 = vld [vmem:[%s8218_s7 + $0xb4] ss:$8 sps:$4 sm:$0xff]   ;;  %v6599_v44 = vld [vmem:[%s8218_s7 + $0xc4] ss:$8 sps:$4 sm:$0xff]  }
 0x19e   :  { %v4569_v56 = vadd.f32 %v959_v48, %v207_v38  ;;  %v961_v50 = vpop.f32.mrb[2].mxu0  ;;  %1948 = vmatpush1.bf16.msra.mxu0 %v6442_v32  ;;  %v6593_v38 = vld [vmem:[%s8218_s7 + $0xb0] ss:$8 sps:$4 sm:$0xff]  }
 0x19f   :  { %1575 = vmatpush1.bf16.msra.mxu1 %v5965_v55  ;;  %v6447_v46 = vadd.f32 %v4567_v53, %v6226_v18  ;;  %v962_v12 = vpop.f32.mrb[3].mxu0  ;;  %1949 = vmatprep.subr.bf16.mxu0 %v6452_v52  ;;  %v6462_v55 = vld [vmem:[%s8218_s7 + $0x60] ss:$8 sps:$4 sm:$0xff]   ;;  %v6469_v18 = vld [vmem:[%s8218_s7 + $0x74] ss:$8 sps:$4 sm:$0xff]  }
 0x1a0   :  { %1576 = vmatprep.subr.bf16.mxu1 %v5975_v63  ;;  %v6457_v42 = vadd.f32 %v4569_v56, %v6228_v34  ;;  %v8244_v63 = vld [vmem:[#allocation11_spill] sm:$0xff]  ;;  %v6616_v48 = vld [vmem:[%s8219_s29 + $0x38] sm:$0xff] }
 0x1a1   :  { %v6551_v34 = vld [vmem:[%s8218_s7 + $0x84] ss:$8 sps:$4 sm:$0xff]   ;;  %v6605_v53 = vld [vmem:[%s8218_s7 + $0xc0] ss:$8 sps:$4 sm:$0xff]  }
 0x1a2   :  { %1950 = vmatpush1.bf16.msra.mxu0 %v6462_v55 }
 0x1a3   :  { %1577 = vmatpush1.bf16.msra.mxu1 %v5980_v1  ;;  %1951 = vmatprep.subr.bf16.mxu0 %v6469_v18  ;;  %v8245_v1 = vld [vmem:[#allocation12_spill] sm:$0xff] }
 0x1a4   :  { %1578 = vmatprep.subr.bf16.mxu1 %v5993_v7  ;;  %v8246_v7 = vld [vmem:[#allocation13_spill] sm:$0xff] }
 0x1a6   :  { %1952 = vmatpush1.bf16.msra.mxu0 %v5702_v22  ;;  %v8236_v22 = vld [vmem:[#allocation3_spill] sm:$0xff] }
 0x1a7   :  { %1579 = vmatpush1.bf16.msra.mxu1 %v5998_v8  ;;  %1953 = vmatprep.subr.bf16.mxu0 %v5713_v25  ;;  %v8237_v25 = vld [vmem:[#allocation4_spill] sm:$0xff]  ;;  %v8247_v8 = vld [vmem:[#allocation14_spill] sm:$0xff] }
 0x1a8   :  { %1580 = vmatprep.subr.bf16.mxu1 %v6011_v14  ;;  %v8248_v14 = vld [vmem:[#allocation15_spill] sm:$0xff] }
 0x1aa   :  { %1954 = vmatpush1.bf16.msra.mxu0 %v5721_v27  ;;  %v8238_v27 = vld [vmem:[#allocation5_spill] sm:$0xff] }
 0x1ab   :  { %1581 = vmatpush1.bf16.msra.mxu1 %v6016_v16  ;;  %1955 = vmatprep.subr.bf16.mxu0 %v5730_v29  ;;  %v8239_v29 = vld [vmem:[#allocation6_spill] sm:$0xff]  ;;  %v8249_v16 = vld [vmem:[#allocation16_spill] sm:$0xff] }
 0x1ac   :  { %1582 = vmatprep.subr.bf16.mxu1 %v6029_v23  ;;  %v8250_v23 = vld [vmem:[#allocation17_spill] sm:$0xff] }
 0x1ae   :  { %1956 = vmatpush1.bf16.msra.mxu0 %v5746_v33  ;;  %v8240_v33 = vld [vmem:[#allocation7_spill] sm:$0xff] }
 0x1af   :  { %1583 = vmatpush1.bf16.msra.mxu1 %v6034_v24  ;;  %1957 = vmatprep.subr.bf16.mxu0 %v5756_v35  ;;  %v8241_v35 = vld [vmem:[#allocation8_spill] sm:$0xff] }
 0x1b0   :  { %1584 = vmatprep.subr.bf16.mxu1 %v6047_v30 }
 0x1b2   :  { %1958 = vmatpush1.bf16.msra.mxu0 %v5764_v37  ;;  %v8242_v37 = vld [vmem:[#allocation9_spill] sm:$0xff] }
 0x1b3   :  { %1585 = vmatpush1.bf16.msra.mxu1 %v6052_v31  ;;  %1959 = vmatprep.subr.bf16.mxu0 %v5774_v39  ;;  %v6507_v39 = vld [vmem:[%s8219_s29 + $0x30] sm:$0xff] }
 0x1b4   :  { %1586 = vmatprep.subr.bf16.mxu1 %v6065_v40  ;;  %v4323_v56 = vcombine.low %v6507_v39, %v6507_v39 }
 0x1b6   :  { %1960 = vmatpush1.bf16.msra.mxu0 %v5782_v41  ;;  %v8243_v41 = vld [vmem:[#allocation10_spill] sm:$0xff] }
 0x1b7   :  { %1587 = vmatpush1.bf16.msra.mxu1 %v8236_v22  ;;  %1961 = vmatprep.subr.bf16.mxu0 %v5792_v43  ;;  %v4320_v43 = vcombine.low %v6354_v60, %v6354_v60  ;;  %v6563_v60 = vld [vmem:[%s8218_s7 + $0x94] ss:$8 sps:$4 sm:$0xff]  }
 0x1b8   :  { %1588 = vmatprep.subr.bf16.mxu1 %v8237_v25 }
 0x1ba   :  { %1962 = vmatpush1.bf16.msra.mxu0 %v5800_v45  ;;  %v4324_v45 = vcombine.high %v6507_v39, %v6507_v39 }
 0x1bb   :  { %1589 = vmatpush1.bf16.msra.mxu1 %v8238_v27  ;;  %1963 = vmatprep.subr.bf16.mxu0 %v5810_v47 }
 0x1bc   :  { %1590 = vmatprep.subr.bf16.mxu1 %v8239_v29 }
 0x1be   :  { %1964 = vmatpush1.bf16.msra.mxu0 %v5818_v49 }
 0x1bf   :  { %1591 = vmatpush1.bf16.msra.mxu1 %v8240_v33  ;;  %1965 = vmatprep.subr.bf16.mxu0 %v5828_v51 }
 0x1c0   :  { %1592 = vmatprep.subr.bf16.mxu1 %v8241_v35 }
 0x1c2   :  { %1966 = vmatpush1.bf16.msra.mxu0 %v5837_v54 }
 0x1c3   :  { %1593 = vmatpush1.bf16.msra.mxu1 %v8242_v37  ;;  %1967 = vmatprep.subr.bf16.mxu0 %v5846_v57 }
 0x1c4   :  { %1594 = vmatprep.subr.bf16.mxu1 %v8243_v41 }
 0x1c6   :  { %1968 = vmatpush1.bf16.msra.mxu0 %v5855_v61 }
 0x1c7   :  { %1595 = vmatpush1.bf16.msra.mxu1 %v8244_v63  ;;  %2040 = vmatprep.subr.bf16.mxu0 %v6362_v62  ;;  %v6681_v63 = vld [vmem:[%s8218_s7 + $0xe4] ss:$8 sps:$4 sm:$0xff]  }
 0x1c8   :  { %1596 = vmatprep.subr.bf16.mxu1 %v8245_v1  ;;  %v6687_v1 = vld [vmem:[%s8218_s7 + $0xe0] ss:$8 sps:$4 sm:$0xff]  }
 0x1c9   :  { %1970 = vmatmul.mubr.bf16.vlgmr.msra.gmra.mrb[16].mxu0 %v4320_v43  ;;  %v6669_v43 = vld [vmem:[%s8218_s7 + $0xd4] ss:$8 sps:$4 sm:$0xff]  }
 0x1ca   :  { %2041 = vmatpush1.bf16.msra.mxu0 %v6299_v59  ;;  %2072 = vmatprep.mubr.bf16.mxu0 %v4324_v45  ;;  %v6675_v45 = vld [vmem:[%s8218_s7 + $0xd0] ss:$8 sps:$4 sm:$0xff]  }
 0x1cb   :  { %2042 = vmatprep.subr.bf16.mxu0 %v6373_v2  ;;  %1597 = vmatpush1.bf16.msra.mxu1 %v8246_v7  ;;  %v6693_v7 = vld [vmem:[%s8218_s7 + $0xf4] ss:$8 sps:$4 sm:$0xff]  }
 0x1cc   :  { %1598 = vmatprep.subr.bf16.mxu1 %v8247_v8  ;;  %v6699_v8 = vld [vmem:[%s8219_s29 + $0x40] sm:$0xff] }
 0x1ce   :  { %2043 = vmatpush1.bf16.msra.mxu0 %v6380_v4 }
 0x1cf   :  { %2044 = vmatprep.subr.bf16.mxu0 %v6387_v6  ;;  %1599 = vmatpush1.bf16.msra.mxu1 %v8248_v14  ;;  %v4326_v14 = vcombine.low %v6616_v48, %v6616_v48 }
 0x1d0   :  { %1600 = vmatprep.subr.bf16.mxu1 %v8249_v16  ;;  %v6706_v16 = vld [vmem:[%s8218_s7 + $0xf0] ss:$8 sps:$4 sm:$0xff]  }
 0x1d2   :  { %2045 = vmatpush1.bf16.msra.mxu0 %v6396_v11 }
 0x1d3   :  { %2046 = vmatprep.subr.bf16.mxu0 %v6402_v13  ;;  %1601 = vmatpush1.bf16.msra.mxu1 %v8250_v23  ;;  %v4330_v23 = vcombine.high %v6699_v8, %v6699_v8 }
 0x1d4   :  { %1673 = vmatprep.subr.bf16.mxu1 %v5924_v36  ;;  %v6545_v36 = vld [vmem:[%s8218_s7 + $0x70] ss:$8 sps:$4 sm:$0xff]  }
 0x1d6   :  { %2047 = vmatpush1.bf16.msra.mxu0 %v6409_v15 }
 0x1d7   :  { %2048 = vmatprep.subr.bf16.mxu0 %v6419_v19 }
 0x1da   :  { %2049 = vmatpush1.bf16.msra.mxu0 %v6427_v10 }
 0x1db   :  { %2050 = vmatprep.subr.bf16.mxu0 %v6435_v5 }
 0x1dc   :  { %v6534_v24 = vpop.f32.mrb[4].mxu0 }
 0x1dd   :  { %v6536_v30 = vpop.f32.mrb[5].mxu0 }
 0x1de   :  { %2051 = vmatpush1.bf16.msra.mxu0 %v6442_v32  ;;  %v1666_v31 = vpop.f32.mrb[6].mxu0 }
 0x1df   :  { %2052 = vmatprep.subr.bf16.mxu0 %v6452_v52  ;;  %v1667_v40 = vpop.f32.mrb[7].mxu0 }
 0x1e2   :  { %2053 = vmatpush1.bf16.msra.mxu0 %v6462_v55 }
 0x1e3   :  { %2054 = vmatprep.subr.bf16.mxu0 %v6469_v18 }
 0x1e6   :  { %2055 = vmatpush1.bf16.msra.mxu0 %v6545_v36 }
 0x1e7   :  { %2056 = vmatprep.subr.bf16.mxu0 %v6551_v34 }
 0x1ea   :  { %2057 = vmatpush1.bf16.msra.mxu0 %v6557_v58 }
 0x1eb   :  { %2058 = vmatprep.subr.bf16.mxu0 %v6563_v60 }
 0x1ee   :  { %2059 = vmatpush1.bf16.msra.mxu0 %v6569_v0 }
 0x1ef   :  { %2060 = vmatprep.subr.bf16.mxu0 %v6575_v9 }
 0x1f2   :  { %2061 = vmatpush1.bf16.msra.mxu0 %v6581_v17 }
 0x1f3   :  { %2062 = vmatprep.subr.bf16.mxu0 %v6587_v3 }
 0x1f6   :  { %2063 = vmatpush1.bf16.msra.mxu0 %v6593_v38 }
 0x1f7   :  { %2064 = vmatprep.subr.bf16.mxu0 %v6599_v44 }
 0x1fa   :  { %2065 = vmatpush1.bf16.msra.mxu0 %v6605_v53 }
 0x1fb   :  { %2066 = vmatprep.subr.bf16.mxu0 %v5810_v47  ;;  %v4327_v47 = vcombine.high %v6616_v48, %v6616_v48 }
 0x1fe   :  { %2067 = vmatpush1.bf16.msra.mxu0 %v5818_v49 }
 0x1ff   :  { %2068 = vmatprep.subr.bf16.mxu0 %v5828_v51 }
 0x202   :  { %2069 = vmatpush1.bf16.msra.mxu0 %v5837_v54 }
 0x203   :  { %2070 = vmatprep.subr.bf16.mxu0 %v5846_v57 }
 0x206   :  { %2071 = vmatpush1.bf16.msra.mxu0 %v5855_v61  ;;  %v1295_v61 = vld [vmem:[%s8176_s8] sm:$0x3] }
 0x207   :  { %2143 = vmatprep.subr.bf16.mxu0 %v6362_v62  ;;  %v6646_v50 = vrot.slane %v1295_v61, %v6264_v21  ;;  %v6650_v12 = vrot.slane %v1295_v61, %v6270_v28 }
 0x209   :  { %2073 = vmatmul.mubr.bf16.vlgmr.msra.gmra.mrb[20].mxu0 %v4323_v56 }
 0x20a   :  { %2144 = vmatpush1.bf16.msra.mxu0 %v6299_v59  ;;  %2175 = vmatprep.mubr.bf16.mxu0 %v4327_v47  ;;  %v1665_v47 = vadd.f32 %v6536_v30, %v6280_v26 }
 0x20b   :  { %2145 = vmatprep.subr.bf16.mxu0 %v6373_v2 }
 0x20e   :  { %2146 = vmatpush1.bf16.msra.mxu0 %v6380_v4 }
 0x20f   :  { %2147 = vmatprep.subr.bf16.mxu0 %v6387_v6 }
 0x212   :  { %2148 = vmatpush1.bf16.msra.mxu0 %v6396_v11 }
 0x213   :  { %2149 = vmatprep.subr.bf16.mxu0 %v6402_v13 }
 0x216   :  { %2150 = vmatpush1.bf16.msra.mxu0 %v6409_v15 }
 0x217   :  { %2151 = vmatprep.subr.bf16.mxu0 %v6419_v19 }
 0x21a   :  { %2152 = vmatpush1.bf16.msra.mxu0 %v6427_v10 }
 0x21b   :  { %2153 = vmatprep.subr.bf16.mxu0 %v6435_v5 }
 0x21c   :  { %v6634_v49 = vpop.f32.mrb[8].mxu0 }
 0x21d   :  { %v6636_v51 = vpop.f32.mrb[9].mxu0 }
 0x21e   :  { %2154 = vmatpush1.bf16.msra.mxu0 %v6442_v32  ;;  %v1769_v54 = vpop.f32.mrb[10].mxu0 }
 0x21f   :  { %2155 = vmatprep.subr.bf16.mxu0 %v6452_v52  ;;  %v1770_v57 = vpop.f32.mrb[11].mxu0 }
 0x222   :  { %2156 = vmatpush1.bf16.msra.mxu0 %v6462_v55 }
 0x223   :  { %2157 = vmatprep.subr.bf16.mxu0 %v6469_v18 }
 0x226   :  { %2158 = vmatpush1.bf16.msra.mxu0 %v6545_v36 }
 0x227   :  { %2159 = vmatprep.subr.bf16.mxu0 %v6551_v34 }
 0x229   :  { %v1501_v22 = vpop.f32.mrb[8].mxu1 }
 0x22a   :  { %v1502_v25 = vadd.f32 %v1501_v22, %v6646_v50  ;;  %v1503_v27 = vpop.f32.mrb[9].mxu1  ;;  %2160 = vmatpush1.bf16.msra.mxu0 %v6557_v58 }
 0x22b   :  { %v1504_v29 = vadd.f32 %v1503_v27, %v6650_v12  ;;  %v1505_v33 = vpop.f32.mrb[10].mxu1  ;;  %2161 = vmatprep.subr.bf16.mxu0 %v6563_v60 }
 0x22c   :  { %v1506_v35 = vpop.f32.mrb[11].mxu1  ;;  %v1508_v37 = vmul.f32 %v6447_v46, %v1502_v25  ;;  %v1670_v33 = vmax.f32 %v1665_v47, 0.0  ;;  %v6778_v47 = vld [vmem:[%s8220_s25 + $0x34] ss:$8 sps:$4 sm:$0xff]  }
 0x22d   :  { %v1509_v39 = vmul.f32 %v6457_v42, %v1504_v29 }
 0x22e   :  { %2162 = vmatpush1.bf16.msra.mxu0 %v6569_v0  ;;  %v1672_v30 = vpack.c.bf16 %v1670_v33, %v1670_v33  ;;  %v6827_v33 = vld [vmem:[%s8220_s25 + $0x64] ss:$8 sps:$4 sm:$0xff]  }
 0x22f   :  { %v1510_v41 = vadd.f32 %v1509_v39, %v1508_v37  ;;  %2163 = vmatprep.subr.bf16.mxu0 %v6575_v9 }
 0x231   :  { %1511 = vadd.xlane.f32.xlu0 %v1510_v41  ;;  %v6743_v41 = vld [vmem:[%s8220_s25] ss:$8 sps:$4 sm:$0xff]  }
 0x232   :  { %2164 = vmatpush1.bf16.msra.mxu0 %v6581_v17 }
 0x233   :  { %2165 = vmatprep.subr.bf16.mxu0 %v6587_v3 }
 0x236   :  { %2166 = vmatpush1.bf16.msra.mxu0 %v6593_v38 }
 0x237   :  { %2167 = vmatprep.subr.bf16.mxu0 %v6599_v44 }
 0x23a   :  { %2168 = vmatpush1.bf16.msra.mxu0 %v6605_v53 }
 0x23b   :  { %2169 = vmatprep.subr.bf16.mxu0 %v6669_v43 }
 0x23e   :  { %2170 = vmatpush1.bf16.msra.mxu0 %v6675_v45 }
 0x23f   :  { %2171 = vmatprep.subr.bf16.mxu0 %v6681_v63 }
 0x242   :  { %2172 = vmatpush1.bf16.msra.mxu0 %v6687_v1 }
 0x243   :  { %2173 = vmatprep.subr.bf16.mxu0 %v6693_v7 }
 0x246   :  { %2174 = vmatpush1.bf16.msra.mxu0 %v6706_v16 }
 0x247   :  { %2246 = vmatprep.subr.bf16.mxu0 %v6362_v62 }
 0x249   :  { %2176 = vmatmul.mubr.bf16.vlgmr.msra.gmra.mrb[24].mxu0 %v4326_v14  ;;  %v6750_v14 = vld [vmem:[%s8220_s25 + $0x14] ss:$8 sps:$4 sm:$0xff]  }
 0x24a   :  { %2247 = vmatpush1.bf16.msra.mxu0 %v6299_v59  ;;  %2278 = vmatprep.mubr.bf16.mxu0 %v4330_v23  ;;  %v6757_v23 = vld [vmem:[%s8220_s25 + $0x10] ss:$8 sps:$4 sm:$0xff]  }
 0x24b   :  { %2248 = vmatprep.subr.bf16.mxu0 %v6373_v2 }
 0x24e   :  { %2249 = vmatpush1.bf16.msra.mxu0 %v6380_v4 }
 0x24f   :  { %2250 = vmatprep.subr.bf16.mxu0 %v6387_v6 }
 0x252   :  { %2251 = vmatpush1.bf16.msra.mxu0 %v6396_v11 }
 0x253   :  { %2252 = vmatprep.subr.bf16.mxu0 %v6402_v13 }
 0x256   :  { %2253 = vmatpush1.bf16.msra.mxu0 %v6409_v15 }
 0x257   :  { %2254 = vmatprep.subr.bf16.mxu0 %v6419_v19 }
 0x25a   :  { %2255 = vmatpush1.bf16.msra.mxu0 %v6427_v10 }
 0x25b   :  { %2256 = vmatprep.subr.bf16.mxu0 %v6435_v5 }
 0x25c   :  { %v6722_v31 = vpop.f32.mrb[12].mxu0 }
 0x25d   :  { %v6724_v40 = vpop.f32.mrb[13].mxu0 }
 0x25e   :  { %2257 = vmatpush1.bf16.msra.mxu0 %v6442_v32  ;;  %v1872_v48 = vpop.f32.mrb[14].mxu0 }
 0x25f   :  { %2258 = vmatprep.subr.bf16.mxu0 %v6452_v52  ;;  %v1873_v56 = vpop.f32.mrb[15].mxu0  ;;  %v6764_v48 = vld [vmem:[%s8220_s25 + $0x24] ss:$8 sps:$4 sm:$0xff]  }
 0x260   :  { %v6771_v56 = vld [vmem:[%s8220_s25 + $0x20] ss:$8 sps:$4 sm:$0xff]  }
 0x262   :  { %2259 = vmatpush1.bf16.msra.mxu0 %v6462_v55 }
 0x263   :  { %2260 = vmatprep.subr.bf16.mxu0 %v6469_v18 }
 0x266   :  { %2261 = vmatpush1.bf16.msra.mxu0 %v6545_v36 }
 0x267   :  { %2262 = vmatprep.subr.bf16.mxu0 %v6551_v34 }
 0x269   :  { %v1559_v54 = vpop.f32.mrb[12].mxu1 }
 0x26a   :  { %v1560_v57 = vadd.f32 %v1559_v54, %v6276_v20  ;;  %v1561_v61 = vpop.f32.mrb[13].mxu1  ;;  %2263 = vmatpush1.bf16.msra.mxu0 %v6557_v58  ;;  %v6785_v54 = vld [vmem:[%s8220_s25 + $0x30] ss:$8 sps:$4 sm:$0xff]  }
 0x26b   :  { %v1562_v22 = vadd.f32 %v1561_v61, %v6280_v26  ;;  %v1563_v25 = vpop.f32.mrb[14].mxu1  ;;  %2264 = vmatprep.subr.bf16.mxu0 %v6563_v60  ;;  %v6799_v61 = vld [vmem:[%s8220_s25 + $0x40] ss:$8 sps:$4 sm:$0xff]  }
 0x26c   :  { %v1566_v27 = vmax.f32 %v1560_v57, 0.0  ;;  %v1564_v29 = vpop.f32.mrb[15].mxu1  ;;  %v6792_v57 = vld [vmem:[%s8220_s25 + $0x44] ss:$8 sps:$4 sm:$0xff]  }
 0x26d   :  { %v1567_v35 = vmax.f32 %v1562_v22, 0.0  ;;  %v6806_v22 = vld [vmem:[%s8220_s25 + $0x54] ss:$8 sps:$4 sm:$0xff]   ;;  %v6813_v25 = vld [vmem:[%s8219_s29 + $0x48] sm:$0xff]  ;;  %v4329_v29 = vcombine.low %v6699_v8, %v6699_v8 }
 0x26e   :  { %2265 = vmatpush1.bf16.msra.mxu0 %v6569_v0  ;;  %v1568_v39 = vpack.c.bf16 %v1566_v27, %v1566_v27  ;;  %v6818_v27 = vld [vmem:[%s8220_s25 + $0x50] ss:$8 sps:$4 sm:$0xff]   ;;  %v6843_v8 = vld [vmem:[%s8220_s25 + $0x74] ss:$8 sps:$4 sm:$0xff]  }
 0x26f   :  { %v1569_v37 = vpack.c.bf16 %v1567_v35, %v1567_v35  ;;  %2266 = vmatprep.subr.bf16.mxu0 %v6575_v9  ;;  %v4333_v35 = vcombine.high %v6813_v25, %v6813_v25 }
 0x271   :  { %1602 = vmatprep.mubr.bf16.mxu1 %v1569_v37  ;;  %v6836_v37 = vld [vmem:[%s8220_s25 + $0x60] ss:$8 sps:$4 sm:$0xff]  }
 0x272   :  { %1603 = vmatmul.mubr.bf16.vlgmr.msra.gmra.mrb[16].mxu1 %v1568_v39  ;;  %2267 = vmatpush1.bf16.msra.mxu0 %v6581_v17 }
 0x273   :  { %1674 = vmatpush1.bf16.msra.mxu1 %v6743_v41  ;;  %1705 = vmatprep.mubr.bf16.mxu1 %v1672_v30  ;;  %v6910_v30 = vld [vmem:[%s8220_s25 + $0xb0] ss:$8 sps:$4 sm:$0xff]  }
 0x274   :  { %1675 = vmatprep.subr.bf16.mxu1 %v6750_v14  ;;  %2268 = vmatprep.subr.bf16.mxu0 %v6587_v3 }
 0x276   :  { %2269 = vmatpush1.bf16.msra.mxu0 %v6593_v38 }
 0x277   :  { %1676 = vmatpush1.bf16.msra.mxu1 %v6757_v23  ;;  %2270 = vmatprep.subr.bf16.mxu0 %v6599_v44 }
 0x278   :  { %1677 = vmatprep.subr.bf16.mxu1 %v6764_v48 }
 0x27a   :  { %2271 = vmatpush1.bf16.msra.mxu0 %v6605_v53 }
 0x27b   :  { %1678 = vmatpush1.bf16.msra.mxu1 %v6771_v56  ;;  %2272 = vmatprep.subr.bf16.mxu0 %v6669_v43 }
 0x27c   :  { %1679 = vmatprep.subr.bf16.mxu1 %v6778_v47 }
 0x27e   :  { %2273 = vmatpush1.bf16.msra.mxu0 %v6675_v45 }
 0x27f   :  { %1680 = vmatpush1.bf16.msra.mxu1 %v6785_v54  ;;  %2274 = vmatprep.subr.bf16.mxu0 %v6681_v63 }
 0x280   :  { %1681 = vmatprep.subr.bf16.mxu1 %v6792_v57 }
 0x282   :  { %2275 = vmatpush1.bf16.msra.mxu0 %v6687_v1 }
 0x283   :  { %1682 = vmatpush1.bf16.msra.mxu1 %v6799_v61  ;;  %2276 = vmatprep.subr.bf16.mxu0 %v6693_v7 }
 0x284   :  { %1683 = vmatprep.subr.bf16.mxu1 %v6806_v22 }
 0x286   :  { %2277 = vmatpush1.bf16.msra.mxu0 %v6706_v16 }
 0x287   :  { %1684 = vmatpush1.bf16.msra.mxu1 %v6818_v27  ;;  %2349 = vmatprep.subr.bf16.mxu0 %v6362_v62  ;;  %v6850_v62 = vld [vmem:[%s8220_s25 + $0x70] ss:$8 sps:$4 sm:$0xff]  }
 0x288   :  { %1685 = vmatprep.subr.bf16.mxu1 %v6827_v33 }
 0x289   :  { %2279 = vmatmul.mubr.bf16.vlgmr.msra.gmra.mrb[28].mxu0 %v4329_v29  ;;  %v6917_v29 = vld [vmem:[%s8220_s25 + $0xc4] ss:$8 sps:$4 sm:$0xff]  }
 0x28a   :  { %2350 = vmatpush1.bf16.msra.mxu0 %v6299_v59  ;;  %2381 = vmatprep.mubr.bf16.mxu0 %v4333_v35  ;;  %v6857_v59 = vld [vmem:[%s8220_s25 + $0x84] ss:$8 sps:$4 sm:$0xff]   ;;  %v6924_v35 = vld [vmem:[%s8220_s25 + $0xc0] ss:$8 sps:$4 sm:$0xff]  }
 0x28b   :  { %1686 = vmatpush1.bf16.msra.mxu1 %v6836_v37  ;;  %2351 = vmatprep.subr.bf16.mxu0 %v6373_v2  ;;  %v6864_v2 = vld [vmem:[%s8220_s25 + $0x80] ss:$8 sps:$4 sm:$0xff]  }
 0x28c   :  { %1687 = vmatprep.subr.bf16.mxu1 %v6843_v8 }
 0x28e   :  { %2352 = vmatpush1.bf16.msra.mxu0 %v6380_v4  ;;  %v6871_v4 = vld [vmem:[%s8220_s25 + $0x94] ss:$8 sps:$4 sm:$0xff]  }
 0x28f   :  { %1688 = vmatpush1.bf16.msra.mxu1 %v6850_v62  ;;  %2353 = vmatprep.subr.bf16.mxu0 %v6387_v6  ;;  %v6878_v6 = vld [vmem:[%s8220_s25 + $0x90] ss:$8 sps:$4 sm:$0xff]  }
 0x290   :  { %1689 = vmatprep.subr.bf16.mxu1 %v6857_v59 }
 0x292   :  { %2354 = vmatpush1.bf16.msra.mxu0 %v6396_v11  ;;  %v6885_v11 = vld [vmem:[%s8220_s25 + $0xa4] ss:$8 sps:$4 sm:$0xff]  }
 0x293   :  { %1690 = vmatpush1.bf16.msra.mxu1 %v6864_v2  ;;  %2355 = vmatprep.subr.bf16.mxu0 %v6402_v13  ;;  %v6892_v13 = vld [vmem:[%s8220_s25 + $0xa0] ss:$8 sps:$4 sm:$0xff]  }
 0x294   :  { %1691 = vmatprep.subr.bf16.mxu1 %v6871_v4 }
 0x296   :  { %2356 = vmatpush1.bf16.msra.mxu0 %v6409_v15  ;;  %v6899_v15 = vld [vmem:[%s8220_s25 + $0xb4] ss:$8 sps:$4 sm:$0xff]  }
 0x297   :  { %1692 = vmatpush1.bf16.msra.mxu1 %v6878_v6  ;;  %2357 = vmatprep.subr.bf16.mxu0 %v6419_v19 }
 0x298   :  { %1693 = vmatprep.subr.bf16.mxu1 %v6885_v11 }
 0x29a   :  { %2358 = vmatpush1.bf16.msra.mxu0 %v6427_v10 }
 0x29b   :  { %1694 = vmatpush1.bf16.msra.mxu1 %v6892_v13  ;;  %2359 = vmatprep.subr.bf16.mxu0 %v6435_v5 }
 0x29c   :  { %1695 = vmatprep.subr.bf16.mxu1 %v6899_v15  ;;  %v6903_v39 = vpop.f32.mrb[16].mxu0 }
 0x29d   :  { %v6905_v19 = vpop.f32.mrb[17].mxu0 }
 0x29e   :  { %v1975_v10 = vpop.f32.mrb[18].mxu0  ;;  %2360 = vmatpush1.bf16.msra.mxu0 %v6442_v32  ;;  %v6931_v32 = vld [vmem:[%s8220_s25 + $0xd4] ss:$8 sps:$4 sm:$0xff]  }
 0x29f   :  { %1696 = vmatpush1.bf16.msra.mxu1 %v6910_v30  ;;  %v1976_v5 = vpop.f32.mrb[19].mxu0  ;;  %2361 = vmatprep.subr.bf16.mxu0 %v6452_v52  ;;  %v6938_v52 = vld [vmem:[%s8220_s25 + $0xd0] ss:$8 sps:$4 sm:$0xff]   ;;  %v1663_v10 = vadd.f32 %v6534_v24, %v6276_v20 }
 0x2a0   :  { %1697 = vmatprep.subr.bf16.mxu1 %v6917_v29  ;;  %v6956_v5 = vld [vmem:[%s8220_s25 + $0xe0] ss:$8 sps:$4 sm:$0xff]  }
 0x2a1   :  { %v1669_v24 = vmax.f32 %v1663_v10, 0.0 }
 0x2a2   :  { %2362 = vmatpush1.bf16.msra.mxu0 %v6462_v55  ;;  %v6947_v55 = vld [vmem:[%s8220_s25 + $0xe4] ss:$8 sps:$4 sm:$0xff]  }
 0x2a3   :  { %1698 = vmatpush1.bf16.msra.mxu1 %v6924_v35  ;;  %2363 = vmatprep.subr.bf16.mxu0 %v6469_v18  ;;  %v1768_v18 = vadd.f32 %v6636_v51, %v6280_v26  ;;  %v1671_v10 = vpack.c.bf16 %v1669_v24, %v1669_v24  ;;  %v4916_v24 = vld [vmem:[%s8177_s9 + $0x54] ss:$8 sps:$4 sm:$0xff]  }
 0x2a4   :  { %1699 = vmatprep.subr.bf16.mxu1 %v6931_v32 }
 0x2a5   :  { %v1773_v51 = vmax.f32 %v1768_v18, 0.0 }
 0x2a6   :  { %2364 = vmatpush1.bf16.msra.mxu0 %v6545_v36  ;;  %v6963_v36 = vld [vmem:[%s8220_s25 + $0xf4] ss:$8 sps:$4 sm:$0xff]  }
 0x2a7   :  { %1700 = vmatpush1.bf16.msra.mxu1 %v6938_v52  ;;  %2365 = vmatprep.subr.bf16.mxu0 %v6551_v34  ;;  %v6970_v34 = vld [vmem:[%s8220_s25 + $0xf0] ss:$8 sps:$4 sm:$0xff]   ;;  %v1775_v18 = vpack.c.bf16 %v1773_v51, %v1773_v51 }
 0x2a8   :  { %1701 = vmatprep.subr.bf16.mxu1 %v6947_v55  ;;  %v4914_v51 = vld [vmem:[%s8177_s9 + $0x50] ss:$8 sps:$4 sm:$0xff]  }
 0x2aa   :  { %2366 = vmatpush1.bf16.msra.mxu0 %v6557_v58  ;;  %v6977_v58 = vld [vmem:[%s8220_s25 + $0x4] ss:$8 sps:$4 sm:$0xff]  }
 0x2ab   :  { %1702 = vmatpush1.bf16.msra.mxu1 %v6956_v5  ;;  %2367 = vmatprep.subr.bf16.mxu0 %v6563_v60  ;;  %v5263_v60 = vld [vmem:[%s8217_s26] sm:$0xff] }
 0x2ac   :  { %1703 = vmatprep.subr.bf16.mxu1 %v6963_v36 }
 0x2ae   :  { %2368 = vmatpush1.bf16.msra.mxu0 %v6569_v0  ;;  %v5299_v0 = vmov 0  }
 0x2af   :  { %1704 = vmatpush1.bf16.msra.mxu1 %v6970_v34  ;;  %2369 = vmatprep.subr.bf16.mxu0 %v6575_v9  ;;  %v7004_v9 = vmax.bf16 %v5299_v0, %v5263_v60 }
 0x2b0   :  { %1776 = vmatprep.subr.bf16.mxu1 %v6977_v58 }
 0x2b2   :  { %1706 = vmatmul.mubr.bf16.vlgmr.msra.gmra.mrb[20].mxu1 %v1671_v10  ;;  %2370 = vmatpush1.bf16.msra.mxu0 %v6581_v17  ;;  %v4901_v17 = vld [vmem:[%s8177_s9 + $0x4] ss:$8 sps:$4 sm:$0xff]  }
 0x2b3   :  { %1777 = vmatpush1.bf16.msra.mxu1 %v6743_v41  ;;  %1808 = vmatprep.mubr.bf16.mxu1 %v1775_v18  ;;  %v4919_v10 = vld [vmem:[%s8177_s9 + $0x64] ss:$8 sps:$4 sm:$0xff]  }
 0x2b4   :  { %1778 = vmatprep.subr.bf16.mxu1 %v6750_v14  ;;  %2371 = vmatprep.subr.bf16.mxu0 %v6587_v3  ;;  %v4332_v3 = vcombine.low %v6813_v25, %v6813_v25  ;;  %v4911_v25 = vld [vmem:[%s8177_s9 + $0x40] ss:$8 sps:$4 sm:$0xff]  }
 0x2b6   :  { %2372 = vmatpush1.bf16.msra.mxu0 %v6593_v38  ;;  %v4899_v38 = vld [vmem:[%s8177_s9] ss:$8 sps:$4 sm:$0xff]  }
 0x2b7   :  { %1779 = vmatpush1.bf16.msra.mxu1 %v6757_v23  ;;  %2373 = vmatprep.subr.bf16.mxu0 %v6599_v44  ;;  %v4904_v44 = vld [vmem:[%s8177_s9 + $0x14] ss:$8 sps:$4 sm:$0xff]  }
 0x2b8   :  { %1780 = vmatprep.subr.bf16.mxu1 %v6764_v48 }
 0x2ba   :  { %2374 = vmatpush1.bf16.msra.mxu0 %v6605_v53  ;;  %v4336_v53 = vcombine.high %v7004_v9, %v7004_v9 }
 0x2bb   :  { %1781 = vmatpush1.bf16.msra.mxu1 %v6771_v56  ;;  %2375 = vmatprep.subr.bf16.mxu0 %v6669_v43  ;;  %v4902_v43 = vld [vmem:[%s8177_s9 + $0x10] ss:$8 sps:$4 sm:$0xff]  }
 0x2bc   :  { %1782 = vmatprep.subr.bf16.mxu1 %v6778_v47 }
 0x2be   :  { %2376 = vmatpush1.bf16.msra.mxu0 %v6675_v45  ;;  %v4907_v45 = vld [vmem:[%s8177_s9 + $0x24] ss:$8 sps:$4 sm:$0xff]  }
 0x2bf   :  { %1783 = vmatpush1.bf16.msra.mxu1 %v6785_v54  ;;  %2377 = vmatprep.subr.bf16.mxu0 %v6681_v63  ;;  %v4905_v63 = vld [vmem:[%s8177_s9 + $0x20] ss:$8 sps:$4 sm:$0xff]  }
 0x2c0   :  { %1784 = vmatprep.subr.bf16.mxu1 %v6792_v57 }
 0x2c2   :  { %2378 = vmatpush1.bf16.msra.mxu0 %v6687_v1  ;;  %v4910_v1 = vld [vmem:[%s8177_s9 + $0x34] ss:$8 sps:$4 sm:$0xff]  }
 0x2c3   :  { %1785 = vmatpush1.bf16.msra.mxu1 %v6799_v61  ;;  %2379 = vmatprep.subr.bf16.mxu0 %v6693_v7  ;;  %v4908_v7 = vld [vmem:[%s8177_s9 + $0x30] ss:$8 sps:$4 sm:$0xff]  }
 0x2c4   :  { %1786 = vmatprep.subr.bf16.mxu1 %v6806_v22 }
 0x2c6   :  { %2380 = vmatpush1.bf16.msra.mxu0 %v6706_v16  ;;  %v4913_v16 = vld [vmem:[%s8177_s9 + $0x44] ss:$8 sps:$4 sm:$0xff]  }
 0x2c7   :  { %1787 = vmatpush1.bf16.msra.mxu1 %v6818_v27  ;;  %3211 = vmatprep.subr.bf16.mxu0 %v4901_v17 }
 0x2c8   :  { %1788 = vmatprep.subr.bf16.mxu1 %v6827_v33 }
 0x2c9   :  { %2382 = vmatmul.mubr.bf16.vlgmr.msra.gmra.mrb[32].mxu0 %v4332_v3  ;;  %v4917_v3 = vld [vmem:[%s8177_s9 + $0x60] ss:$8 sps:$4 sm:$0xff]  }
 0x2ca   :  { %3212 = vmatpush1.bf16.msra.mxu0 %v4899_v38  ;;  %3243 = vmatprep.mubr.bf16.mxu0 %v4336_v53  ;;  %v4920_v53 = vld [vmem:[%s8177_s9 + $0x70] ss:$8 sps:$4 sm:$0xff]  }
 0x2cb   :  { %1789 = vmatpush1.bf16.msra.mxu1 %v6836_v37  ;;  %3213 = vmatprep.subr.bf16.mxu0 %v4904_v44  ;;  %v4922_v44 = vld [vmem:[%s8177_s9 + $0x74] ss:$8 sps:$4 sm:$0xff]  }
 0x2cc   :  { %1790 = vmatprep.subr.bf16.mxu1 %v6843_v8 }
 0x2ce   :  { %3214 = vmatpush1.bf16.msra.mxu0 %v4902_v43  ;;  %v4925_v43 = vld [vmem:[%s8177_s9 + $0x84] ss:$8 sps:$4 sm:$0xff]  }
 0x2cf   :  { %1791 = vmatpush1.bf16.msra.mxu1 %v6850_v62  ;;  %3215 = vmatprep.subr.bf16.mxu0 %v4907_v45  ;;  %v1766_v45 = vadd.f32 %v6634_v49, %v6276_v20  ;;  %v4926_v49 = vld [vmem:[%s8177_s9 + $0x90] ss:$8 sps:$4 sm:$0xff]  }
 0x2d0   :  { %1792 = vmatprep.subr.bf16.mxu1 %v6857_v59 }
 0x2d2   :  { %3216 = vmatpush1.bf16.msra.mxu0 %v4905_v63  ;;  %v4923_v63 = vld [vmem:[%s8177_s9 + $0x80] ss:$8 sps:$4 sm:$0xff]  }
 0x2d3   :  { %1793 = vmatpush1.bf16.msra.mxu1 %v6864_v2  ;;  %3217 = vmatprep.subr.bf16.mxu0 %v4910_v1  ;;  %v1871_v1 = vadd.f32 %v6724_v40, %v6280_v26  ;;  %v4931_v40 = vld [vmem:[%s8177_s9 + $0xa4] ss:$8 sps:$4 sm:$0xff]  }
 0x2d4   :  { %1794 = vmatprep.subr.bf16.mxu1 %v6871_v4 }
 0x2d6   :  { %3218 = vmatpush1.bf16.msra.mxu0 %v4908_v7  ;;  %v4928_v7 = vld [vmem:[%s8177_s9 + $0x94] ss:$8 sps:$4 sm:$0xff]  }
 0x2d7   :  { %1795 = vmatpush1.bf16.msra.mxu1 %v6878_v6  ;;  %3219 = vmatprep.subr.bf16.mxu0 %v4913_v16  ;;  %v1772_v16 = vmax.f32 %v1766_v45, 0.0  ;;  %v4943_v45 = vld [vmem:[%s8177_s9 + $0xe4] ss:$8 sps:$4 sm:$0xff]  }
 0x2d8   :  { %1796 = vmatprep.subr.bf16.mxu1 %v6885_v11 }
 0x2da   :  { %3220 = vmatpush1.bf16.msra.mxu0 %v4911_v25  ;;  %v1876_v25 = vmax.f32 %v1871_v1, 0.0  ;;  %v4946_v1 = vld [vmem:[%s8177_s9 + $0xf4] ss:$8 sps:$4 sm:$0xff]  }
 0x2db   :  { %1797 = vmatpush1.bf16.msra.mxu1 %v6892_v13  ;;  %3221 = vmatprep.subr.bf16.mxu0 %v4916_v24  ;;  %v1774_v24 = vpack.c.bf16 %v1772_v16, %v1772_v16  ;;  %v4949_v16 = vld [vmem:[%s8177_s9 + $0x104] ss:$8 sps:$4 sm:$0xff]  }
 0x2dc   :  { %1798 = vmatprep.subr.bf16.mxu1 %v6899_v15  ;;  %v7063_v18 = vpop.f32.mrb[20].mxu0 }
 0x2dd   :  { %v7065_v60 = vpop.f32.mrb[21].mxu0 }
 0x2de   :  { %v2078_v17 = vpop.f32.mrb[22].mxu0  ;;  %3222 = vmatpush1.bf16.msra.mxu0 %v4914_v51  ;;  %v4929_v51 = vld [vmem:[%s8177_s9 + $0xa0] ss:$8 sps:$4 sm:$0xff]  }
 0x2df   :  { %1799 = vmatpush1.bf16.msra.mxu1 %v6910_v30  ;;  %v2079_v38 = vpop.f32.mrb[23].mxu0  ;;  %3223 = vmatprep.subr.bf16.mxu0 %v4919_v10  ;;  %v1878_v10 = vpack.c.bf16 %v1876_v25, %v1876_v25  ;;  %v4934_v17 = vld [vmem:[%s8177_s9 + $0xb4] ss:$8 sps:$4 sm:$0xff]  }
 0x2e0   :  { %1800 = vmatprep.subr.bf16.mxu1 %v6917_v29  ;;  %v4937_v38 = vld [vmem:[%s8177_s9 + $0xc4] ss:$8 sps:$4 sm:$0xff]  }
 0x2e2   :  { %3224 = vmatpush1.bf16.msra.mxu0 %v4917_v3  ;;  %v4932_v3 = vld [vmem:[%s8177_s9 + $0xb0] ss:$8 sps:$4 sm:$0xff]  }
 0x2e3   :  { %1801 = vmatpush1.bf16.msra.mxu1 %v6924_v35  ;;  %3225 = vmatprep.subr.bf16.mxu0 %v4922_v44  ;;  %v4935_v44 = vld [vmem:[%s8177_s9 + $0xc0] ss:$8 sps:$4 sm:$0xff]  }
 0x2e4   :  { %1802 = vmatprep.subr.bf16.mxu1 %v6931_v32 }
 0x2e6   :  { %3226 = vmatpush1.bf16.msra.mxu0 %v4920_v53  ;;  %v4940_v53 = vld [vmem:[%s8177_s9 + $0xd4] ss:$8 sps:$4 sm:$0xff]  }
 0x2e7   :  { %1803 = vmatpush1.bf16.msra.mxu1 %v6938_v52  ;;  %3227 = vmatprep.subr.bf16.mxu0 %v4925_v43  ;;  %v4938_v43 = vld [vmem:[%s8177_s9 + $0xd0] ss:$8 sps:$4 sm:$0xff]  }
 0x2e8   :  { %1804 = vmatprep.subr.bf16.mxu1 %v6947_v55 }
 0x2ea   :  { %3228 = vmatpush1.bf16.msra.mxu0 %v4923_v63  ;;  %v4941_v63 = vld [vmem:[%s8177_s9 + $0xe0] ss:$8 sps:$4 sm:$0xff]  }
 0x2eb   :  { %1805 = vmatpush1.bf16.msra.mxu1 %v6956_v5  ;;  %3229 = vmatprep.subr.bf16.mxu0 %v4928_v7  ;;  %v4944_v7 = vld [vmem:[%s8177_s9 + $0xf0] ss:$8 sps:$4 sm:$0xff]  }
 0x2ec   :  { %1806 = vmatprep.subr.bf16.mxu1 %v6963_v36 }
 0x2ee   :  { %3230 = vmatpush1.bf16.msra.mxu0 %v4926_v49  ;;  %v5264_v49 = vld [vmem:[%s8217_s26 + $0x8] sm:$0xff] }
 0x2ef   :  { %1807 = vmatpush1.bf16.msra.mxu1 %v6970_v34  ;;  %3231 = vmatprep.subr.bf16.mxu0 %v4931_v40  ;;  %v7155_v25 = vmax.bf16 %v5299_v0, %v5264_v49  ;;  %v4335_v40 = vcombine.low %v7004_v9, %v7004_v9  ;;  %v4950_v9 = vld [vmem:[%s8177_s9 + $0x110] ss:$8 sps:$4 sm:$0xff]  }
 0x2f0   :  { %1879 = vmatprep.subr.bf16.mxu1 %v6977_v58 }
 0x2f2   :  { %1809 = vmatmul.mubr.bf16.vlgmr.msra.gmra.mrb[24].mxu1 %v1774_v24  ;;  %3232 = vmatpush1.bf16.msra.mxu0 %v4929_v51  ;;  %v4947_v24 = vld [vmem:[%s8177_s9 + $0x100] ss:$8 sps:$4 sm:$0xff]   ;;  %v4952_v51 = vld [vmem:[%s8177_s9 + $0x114] ss:$8 sps:$4 sm:$0xff]  }
 0x2f3   :  { %1880 = vmatpush1.bf16.msra.mxu1 %v6743_v41  ;;  %1911 = vmatprep.mubr.bf16.mxu1 %v1878_v10  ;;  %v4338_v10 = vcombine.high %v7155_v25, %v7155_v25 }
 0x2f4   :  { %1881 = vmatprep.subr.bf16.mxu1 %v6750_v14  ;;  %3233 = vmatprep.subr.bf16.mxu0 %v4934_v17  ;;  %v4955_v17 = vld [vmem:[%s8177_s9 + $0x124] ss:$8 sps:$4 sm:$0xff]  }
 0x2f6   :  { %3234 = vmatpush1.bf16.msra.mxu0 %v4932_v3  ;;  %v4953_v3 = vld [vmem:[%s8177_s9 + $0x120] ss:$8 sps:$4 sm:$0xff]  }
 0x2f7   :  { %1882 = vmatpush1.bf16.msra.mxu1 %v6757_v23  ;;  %3235 = vmatprep.subr.bf16.mxu0 %v4937_v38  ;;  %v4958_v38 = vld [vmem:[%s8177_s9 + $0x134] ss:$8 sps:$4 sm:$0xff]  }
 0x2f8   :  { %1883 = vmatprep.subr.bf16.mxu1 %v6764_v48 }
 0x2fa   :  { %3236 = vmatpush1.bf16.msra.mxu0 %v4935_v44  ;;  %v4956_v44 = vld [vmem:[%s8177_s9 + $0x130] ss:$8 sps:$4 sm:$0xff]  }
 0x2fb   :  { %1884 = vmatpush1.bf16.msra.mxu1 %v6771_v56  ;;  %3237 = vmatprep.subr.bf16.mxu0 %v4940_v53  ;;  %v4961_v53 = vld [vmem:[%s8177_s9 + $0x144] ss:$8 sps:$4 sm:$0xff]  }
 0x2fc   :  { %1885 = vmatprep.subr.bf16.mxu1 %v6778_v47 }
 0x2fe   :  { %3238 = vmatpush1.bf16.msra.mxu0 %v4938_v43  ;;  %v4959_v43 = vld [vmem:[%s8177_s9 + $0x140] ss:$8 sps:$4 sm:$0xff]  }
 0x2ff   :  { %1886 = vmatpush1.bf16.msra.mxu1 %v6785_v54  ;;  %3239 = vmatprep.subr.bf16.mxu0 %v4943_v45  ;;  %v4964_v45 = vld [vmem:[%s8177_s9 + $0x154] ss:$8 sps:$4 sm:$0xff]  }
 0x300   :  { %1887 = vmatprep.subr.bf16.mxu1 %v6792_v57 }
 0x302   :  { %3240 = vmatpush1.bf16.msra.mxu0 %v4941_v63  ;;  %v4962_v63 = vld [vmem:[%s8177_s9 + $0x150] ss:$8 sps:$4 sm:$0xff]  }
 0x303   :  { %1888 = vmatpush1.bf16.msra.mxu1 %v6799_v61  ;;  %3241 = vmatprep.subr.bf16.mxu0 %v4946_v1  ;;  %v4967_v1 = vld [vmem:[%s8177_s9 + $0x164] ss:$8 sps:$4 sm:$0xff]  }
 0x304   :  { %1889 = vmatprep.subr.bf16.mxu1 %v6806_v22 }
 0x306   :  { %3242 = vmatpush1.bf16.msra.mxu0 %v4944_v7 }
 0x307   :  { %1890 = vmatpush1.bf16.msra.mxu1 %v6818_v27  ;;  %3252 = vmatprep.subr.bf16.mxu0 %v4949_v16 }
 0x308   :  { %1891 = vmatprep.subr.bf16.mxu1 %v6827_v33 }
 0x309   :  { %3244 = vmatmul.mubr.bf16.vlgmr.msra.gmra.mrb[36].mxu0 %v4335_v40  ;;  %v4965_v40 = vld [vmem:[%s8177_s9 + $0x160] ss:$8 sps:$4 sm:$0xff]  }
 0x30a   :  { %3253 = vmatpush1.bf16.msra.mxu0 %v4947_v24  ;;  %3284 = vmatprep.mubr.bf16.mxu0 %v4338_v10  ;;  %v4968_v10 = vld [vmem:[%s8177_s9 + $0x170] ss:$8 sps:$4 sm:$0xff]  }
 0x30b   :  { %1892 = vmatpush1.bf16.msra.mxu1 %v6836_v37  ;;  %3254 = vmatprep.subr.bf16.mxu0 %v4952_v51  ;;  %v4970_v51 = vld [vmem:[%s8177_s9 + $0x174] ss:$8 sps:$4 sm:$0xff]  }
 0x30c   :  { %1893 = vmatprep.subr.bf16.mxu1 %v6843_v8 }
 0x30e   :  { %3255 = vmatpush1.bf16.msra.mxu0 %v4950_v9  ;;  %v4973_v9 = vld [vmem:[%s8177_s9 + $0x184] ss:$8 sps:$4 sm:$0xff]  }
 0x30f   :  { %1894 = vmatpush1.bf16.msra.mxu1 %v6850_v62  ;;  %3256 = vmatprep.subr.bf16.mxu0 %v4955_v17  ;;  %v1869_v17 = vadd.f32 %v6722_v31, %v6276_v20  ;;  %v4974_v31 = vld [vmem:[%s8177_s9 + $0x190] ss:$8 sps:$4 sm:$0xff]  }
 0x310   :  { %1895 = vmatprep.subr.bf16.mxu1 %v6857_v59 }
 0x312   :  { %3257 = vmatpush1.bf16.msra.mxu0 %v4953_v3  ;;  %v4971_v3 = vld [vmem:[%s8177_s9 + $0x180] ss:$8 sps:$4 sm:$0xff]  }
 0x313   :  { %1896 = vmatpush1.bf16.msra.mxu1 %v6864_v2  ;;  %3258 = vmatprep.subr.bf16.mxu0 %v4958_v38  ;;  %v1974_v38 = vadd.f32 %v6905_v19, %v6280_v26  ;;  %v4979_v19 = vld [vmem:[%s8177_s9 + $0x1a4] ss:$8 sps:$4 sm:$0xff]  }
 0x314   :  { %1897 = vmatprep.subr.bf16.mxu1 %v6871_v4 }
 0x316   :  { %3259 = vmatpush1.bf16.msra.mxu0 %v4956_v44  ;;  %v4976_v44 = vld [vmem:[%s8177_s9 + $0x194] ss:$8 sps:$4 sm:$0xff]  }
 0x317   :  { %1898 = vmatpush1.bf16.msra.mxu1 %v6878_v6  ;;  %3260 = vmatprep.subr.bf16.mxu0 %v4961_v53  ;;  %v1875_v53 = vmax.f32 %v1869_v17, 0.0  ;;  %v4991_v17 = vld [vmem:[%s8177_s9 + $0x1e4] ss:$8 sps:$4 sm:$0xff]  }
 0x318   :  { %1899 = vmatprep.subr.bf16.mxu1 %v6885_v11 }
 0x31a   :  { %3261 = vmatpush1.bf16.msra.mxu0 %v4959_v43  ;;  %v1979_v43 = vmax.f32 %v1974_v38, 0.0  ;;  %v4994_v38 = vld [vmem:[%s8177_s9 + $0x1f4] ss:$8 sps:$4 sm:$0xff]  }
 0x31b   :  { %1900 = vmatpush1.bf16.msra.mxu1 %v6892_v13  ;;  %3262 = vmatprep.subr.bf16.mxu0 %v4964_v45  ;;  %v1877_v45 = vpack.c.bf16 %v1875_v53, %v1875_v53 }
 0x31c   :  { %1901 = vmatprep.subr.bf16.mxu1 %v6899_v15  ;;  %v7209_v7 = vpop.f32.mrb[24].mxu0 }
 0x31d   :  { %v7211_v16 = vpop.f32.mrb[25].mxu0 }
 0x31e   :  { %v2181_v49 = vpop.f32.mrb[26].mxu0  ;;  %3263 = vmatpush1.bf16.msra.mxu0 %v4962_v63  ;;  %v4977_v63 = vld [vmem:[%s8177_s9 + $0x1a0] ss:$8 sps:$4 sm:$0xff]  }
 0x31f   :  { %1902 = vmatpush1.bf16.msra.mxu1 %v6910_v30  ;;  %v2182_v24 = vpop.f32.mrb[27].mxu0  ;;  %3264 = vmatprep.subr.bf16.mxu0 %v4967_v1  ;;  %v1981_v1 = vpack.c.bf16 %v1979_v43, %v1979_v43  ;;  %v4982_v49 = vld [vmem:[%s8177_s9 + $0x1b4] ss:$8 sps:$4 sm:$0xff]  }
 0x320   :  { %1903 = vmatprep.subr.bf16.mxu1 %v6917_v29  ;;  %v4985_v24 = vld [vmem:[%s8177_s9 + $0x1c4] ss:$8 sps:$4 sm:$0xff]  }
 0x322   :  { %3265 = vmatpush1.bf16.msra.mxu0 %v4965_v40  ;;  %v4980_v40 = vld [vmem:[%s8177_s9 + $0x1b0] ss:$8 sps:$4 sm:$0xff]  }
 0x323   :  { %1904 = vmatpush1.bf16.msra.mxu1 %v6924_v35  ;;  %3266 = vmatprep.subr.bf16.mxu0 %v4970_v51  ;;  %v4983_v51 = vld [vmem:[%s8177_s9 + $0x1c0] ss:$8 sps:$4 sm:$0xff]  }
 0x324   :  { %1905 = vmatprep.subr.bf16.mxu1 %v6931_v32 }
 0x326   :  { %3267 = vmatpush1.bf16.msra.mxu0 %v4968_v10  ;;  %v4988_v10 = vld [vmem:[%s8177_s9 + $0x1d4] ss:$8 sps:$4 sm:$0xff]  }
 0x327   :  { %1906 = vmatpush1.bf16.msra.mxu1 %v6938_v52  ;;  %3268 = vmatprep.subr.bf16.mxu0 %v4973_v9  ;;  %v4986_v9 = vld [vmem:[%s8177_s9 + $0x1d0] ss:$8 sps:$4 sm:$0xff]  }
 0x328   :  { %1907 = vmatprep.subr.bf16.mxu1 %v6947_v55 }
 0x32a   :  { %3269 = vmatpush1.bf16.msra.mxu0 %v4971_v3  ;;  %v4989_v3 = vld [vmem:[%s8177_s9 + $0x1e0] ss:$8 sps:$4 sm:$0xff]  }
 0x32b   :  { %1908 = vmatpush1.bf16.msra.mxu1 %v6956_v5  ;;  %3270 = vmatprep.subr.bf16.mxu0 %v4976_v44  ;;  %v4992_v44 = vld [vmem:[%s8177_s9 + $0x1f0] ss:$8 sps:$4 sm:$0xff]  }
 0x32c   :  { %1909 = vmatprep.subr.bf16.mxu1 %v6963_v36 }
 0x32e   :  { %3271 = vmatpush1.bf16.msra.mxu0 %v4974_v31  ;;  %v4997_v31 = vld [vmem:[%s8177_s9 + $0x204] ss:$8 sps:$4 sm:$0xff]  }
 0x32f   :  { %1910 = vmatpush1.bf16.msra.mxu1 %v6970_v34  ;;  %3272 = vmatprep.subr.bf16.mxu0 %v4979_v19 }
 0x330   :  { %1982 = vmatprep.subr.bf16.mxu1 %v6977_v58 }
 0x332   :  { %1912 = vmatmul.mubr.bf16.vlgmr.msra.gmra.mrb[28].mxu1 %v1877_v45  ;;  %3273 = vmatpush1.bf16.msra.mxu0 %v4977_v63  ;;  %v5265_v45 = vld [vmem:[%s8217_s26 + $0x10] sm:$0xff] }
 0x333   :  { %1983 = vmatpush1.bf16.msra.mxu1 %v6743_v41  ;;  %2014 = vmatprep.mubr.bf16.mxu1 %v1981_v1  ;;  %v7302_v63 = vmax.bf16 %v5299_v0, %v5265_v45  ;;  %v5007_v45 = vld [vmem:[%s8177_s9 + $0x240] ss:$8 sps:$4 sm:$0xff]  }
 0x334   :  { %1984 = vmatprep.subr.bf16.mxu1 %v6750_v14  ;;  %3274 = vmatprep.subr.bf16.mxu0 %v4982_v49 }
 0x336   :  { %3275 = vmatpush1.bf16.msra.mxu0 %v4980_v40  ;;  %v4337_v40 = vcombine.low %v7155_v25, %v7155_v25  ;;  %v4340_v25 = vcombine.high %v7302_v63, %v7302_v63 }
 0x337   :  { %1985 = vmatpush1.bf16.msra.mxu1 %v6757_v23  ;;  %3276 = vmatprep.subr.bf16.mxu0 %v4985_v24 }
 0x338   :  { %1986 = vmatprep.subr.bf16.mxu1 %v6764_v48 }
 0x33a   :  { %3277 = vmatpush1.bf16.msra.mxu0 %v4983_v51 }
 0x33b   :  { %1987 = vmatpush1.bf16.msra.mxu1 %v6771_v56  ;;  %3278 = vmatprep.subr.bf16.mxu0 %v4988_v10  ;;  %v4995_v10 = vld [vmem:[%s8177_s9 + $0x200] ss:$8 sps:$4 sm:$0xff]  }
 0x33c   :  { %1988 = vmatprep.subr.bf16.mxu1 %v6778_v47 }
 0x33e   :  { %3279 = vmatpush1.bf16.msra.mxu0 %v4986_v9 }
 0x33f   :  { %1989 = vmatpush1.bf16.msra.mxu1 %v6785_v54  ;;  %3280 = vmatprep.subr.bf16.mxu0 %v4991_v17  ;;  %v5000_v17 = vld [vmem:[%s8177_s9 + $0x214] ss:$8 sps:$4 sm:$0xff]  }
 0x340   :  { %1990 = vmatprep.subr.bf16.mxu1 %v6792_v57 }
 0x342   :  { %3281 = vmatpush1.bf16.msra.mxu0 %v4989_v3 }
 0x343   :  { %1991 = vmatpush1.bf16.msra.mxu1 %v6799_v61  ;;  %3282 = vmatprep.subr.bf16.mxu0 %v4994_v38  ;;  %v4998_v38 = vld [vmem:[%s8177_s9 + $0x210] ss:$8 sps:$4 sm:$0xff]  }
 0x344   :  { %1992 = vmatprep.subr.bf16.mxu1 %v6806_v22 }
 0x345   :  { %v1604_v53 = vpop.f32.mrb[16].mxu1 }
 0x346   :  { %v1605_v43 = vadd.f32 %v1604_v53, %v6646_v50  ;;  %v1606_v19 = vpop.f32.mrb[17].mxu1  ;;  %3283 = vmatpush1.bf16.msra.mxu0 %v4992_v44  ;;  %v5003_v44 = vld [vmem:[%s8177_s9 + $0x224] ss:$8 sps:$4 sm:$0xff]   ;;  %v5001_v53 = vld [vmem:[%s8177_s9 + $0x220] ss:$8 sps:$4 sm:$0xff]  }
 0x347   :  { %v1607_v1 = vadd.f32 %v1606_v19, %v6650_v12  ;;  %1993 = vmatpush1.bf16.msra.mxu1 %v6818_v27  ;;  %v1608_v49 = vpop.f32.mrb[18].mxu1  ;;  %3293 = vmatprep.subr.bf16.mxu0 %v4997_v31  ;;  %v5006_v31 = vld [vmem:[%s8177_s9 + $0x234] ss:$8 sps:$4 sm:$0xff]   ;;  %v5009_v19 = vld [vmem:[%s8177_s9 + $0x244] ss:$8 sps:$4 sm:$0xff]  }
 0x348   :  { %v1611_v24 = vmul.f32 %v6447_v46, %v1605_v43  ;;  %v1609_v51 = vpop.f32.mrb[19].mxu1  ;;  %1994 = vmatprep.subr.bf16.mxu1 %v6827_v33  ;;  %v5004_v43 = vld [vmem:[%s8177_s9 + $0x230] ss:$8 sps:$4 sm:$0xff]  }
 0x349   :  { %v1612_v9 = vmul.f32 %v6457_v42, %v1607_v1  ;;  %3285 = vmatmul.mubr.bf16.vlgmr.msra.gmra.mrb[36].mxu0 %v4337_v40  ;;  %v5012_v1 = vld [vmem:[%s8177_s9 + $0x254] ss:$8 sps:$4 sm:$0xff]   ;;  %v5010_v49 = vld [vmem:[%s8177_s9 + $0x250] ss:$8 sps:$4 sm:$0xff]   ;;  %v5015_v40 = vld [vmem:[%s8177_s9 + $0x264] ss:$8 sps:$4 sm:$0xff]  }
 0x34a   :  { %3294 = vmatpush1.bf16.msra.mxu0 %v4995_v10  ;;  %3325 = vmatprep.mubr.bf16.mxu0 %v4340_v25  ;;  %v5013_v10 = vld [vmem:[%s8177_s9 + $0x260] ss:$8 sps:$4 sm:$0xff]  }
 0x34b   :  { %1995 = vmatpush1.bf16.msra.mxu1 %v6836_v37  ;;  %v1613_v3 = vadd.f32 %v1612_v9, %v1611_v24  ;;  %3295 = vmatprep.subr.bf16.mxu0 %v5000_v17  ;;  %v5018_v17 = vld [vmem:[%s8177_s9 + $0x274] ss:$8 sps:$4 sm:$0xff]  }
 0x34c   :  { %1996 = vmatprep.subr.bf16.mxu1 %v6843_v8 }
 0x34d   :  { %1614 = vadd.xlane.f32.xlu0 %v1613_v3  ;;  %v5016_v3 = vld [vmem:[%s8177_s9 + $0x270] ss:$8 sps:$4 sm:$0xff]  }
 0x34e   :  { %3296 = vmatpush1.bf16.msra.mxu0 %v4998_v38  ;;  %v5021_v38 = vld [vmem:[%s8177_s9 + $0x284] ss:$8 sps:$4 sm:$0xff]  }
 0x34f   :  { %1997 = vmatpush1.bf16.msra.mxu1 %v6850_v62  ;;  %3297 = vmatprep.subr.bf16.mxu0 %v5003_v44  ;;  %v1972_v44 = vadd.f32 %v6903_v39, %v6276_v20  ;;  %v5022_v39 = vld [vmem:[%s8177_s9 + $0x290] ss:$8 sps:$4 sm:$0xff]  }
 0x350   :  { %1998 = vmatprep.subr.bf16.mxu1 %v6857_v59 }
 0x352   :  { %3298 = vmatpush1.bf16.msra.mxu0 %v5001_v53  ;;  %v5019_v53 = vld [vmem:[%s8177_s9 + $0x280] ss:$8 sps:$4 sm:$0xff]  }
 0x353   :  { %1999 = vmatpush1.bf16.msra.mxu1 %v6864_v2  ;;  %3299 = vmatprep.subr.bf16.mxu0 %v5006_v31  ;;  %v2077_v31 = vadd.f32 %v7065_v60, %v6280_v26  ;;  %v5027_v60 = vld [vmem:[%s8177_s9 + $0x2a4] ss:$8 sps:$4 sm:$0xff]  }
 0x354   :  { %2000 = vmatprep.subr.bf16.mxu1 %v6871_v4 }
 0x356   :  { %3300 = vmatpush1.bf16.msra.mxu0 %v5004_v43  ;;  %v5024_v43 = vld [vmem:[%s8177_s9 + $0x294] ss:$8 sps:$4 sm:$0xff]  }
 0x357   :  { %2001 = vmatpush1.bf16.msra.mxu1 %v6878_v6  ;;  %3301 = vmatprep.subr.bf16.mxu0 %v5009_v19  ;;  %v1978_v19 = vmax.f32 %v1972_v44, 0.0 }
 0x358   :  { %2002 = vmatprep.subr.bf16.mxu1 %v6885_v11 }
 0x35a   :  { %3302 = vmatpush1.bf16.msra.mxu0 %v5007_v45  ;;  %v2082_v45 = vmax.f32 %v2077_v31, 0.0  ;;  %v4339_v31 = vcombine.low %v7302_v63, %v7302_v63 }
 0x35b   :  { %2003 = vmatpush1.bf16.msra.mxu1 %v6892_v13  ;;  %3303 = vmatprep.subr.bf16.mxu0 %v5012_v1  ;;  %v1980_v1 = vpack.c.bf16 %v1978_v19, %v1978_v19 }
 0x35c   :  { %2004 = vmatprep.subr.bf16.mxu1 %v6899_v15  ;;  %v7359_v24 = vpop.f32.mrb[28].mxu0 }
 0x35d   :  { %v7362_v51 = vpop.f32.mrb[29].mxu0 }
 0x35e   :  { %3304 = vmatpush1.bf16.msra.mxu0 %v5010_v49  ;;  %v2284_v9 = vpop.f32.mrb[30].mxu0  ;;  %v5025_v49 = vld [vmem:[%s8177_s9 + $0x2a0] ss:$8 sps:$4 sm:$0xff]  }
 0x35f   :  { %2005 = vmatpush1.bf16.msra.mxu1 %v6910_v30  ;;  %3305 = vmatprep.subr.bf16.mxu0 %v5015_v40  ;;  %v2285_v25 = vpop.f32.mrb[31].mxu0  ;;  %v2084_v40 = vpack.c.bf16 %v2082_v45, %v2082_v45  ;;  %v5028_v9 = vld [vmem:[%s8177_s9 + $0x2b0] ss:$8 sps:$4 sm:$0xff]  }
 0x360   :  { %2006 = vmatprep.subr.bf16.mxu1 %v6917_v29  ;;  %v5046_v45 = vld [vmem:[%s8177_s9 + $0x310] ss:$8 sps:$4 sm:$0xff]  }
 0x362   :  { %3306 = vmatpush1.bf16.msra.mxu0 %v5013_v10  ;;  %v5030_v10 = vld [vmem:[%s8177_s9 + $0x2b4] ss:$8 sps:$4 sm:$0xff]  }
 0x363   :  { %2007 = vmatpush1.bf16.msra.mxu1 %v6924_v35  ;;  %3307 = vmatprep.subr.bf16.mxu0 %v5018_v17  ;;  %v5033_v17 = vld [vmem:[%s8177_s9 + $0x2c4] ss:$8 sps:$4 sm:$0xff]  }
 0x364   :  { %2008 = vmatprep.subr.bf16.mxu1 %v6931_v32 }
 0x366   :  { %3308 = vmatpush1.bf16.msra.mxu0 %v5016_v3  ;;  %v5266_v3 = vld [vmem:[%s8217_s26 + $0x18] sm:$0xff] }
 0x367   :  { %2009 = vmatpush1.bf16.msra.mxu1 %v6938_v52  ;;  %3309 = vmatprep.subr.bf16.mxu0 %v5021_v38  ;;  %v7451_v38 = vmax.bf16 %v5299_v0, %v5266_v3  ;;  %v5043_v0 = vld [vmem:[%s8177_s9 + $0x300] ss:$8 sps:$4 sm:$0xff]   ;;  %v7608_v3 = vld [vmem:[%s8220_s25 + $0x44] ss:$8 sps:$4 sm:$0xff]  }
 0x368   :  { %2010 = vmatprep.subr.bf16.mxu1 %v6947_v55 }
 0x369   :  { %v4342_v63 = vcombine.high %v7451_v38, %v7451_v38 }
 0x36a   :  { %3310 = vmatpush1.bf16.msra.mxu0 %v5019_v53 }
 0x36b   :  { %2011 = vmatpush1.bf16.msra.mxu1 %v6956_v5  ;;  %3311 = vmatprep.subr.bf16.mxu0 %v5024_v43 }
 0x36c   :  { %2012 = vmatprep.subr.bf16.mxu1 %v6963_v36 }
 0x36e   :  { %3312 = vmatpush1.bf16.msra.mxu0 %v5022_v39 }
 0x36f   :  { %2013 = vmatpush1.bf16.msra.mxu1 %v6970_v34  ;;  %3313 = vmatprep.subr.bf16.mxu0 %v5027_v60  ;;  %v5051_v60 = vld [vmem:[%s8177_s9 + $0x324] ss:$8 sps:$4 sm:$0xff]  }
 0x370   :  { %2085 = vmatprep.subr.bf16.mxu1 %v6977_v58 }
 0x372   :  { %2015 = vmatmul.mubr.bf16.vlgmr.msra.gmra.mrb[32].mxu1 %v1980_v1  ;;  %3314 = vmatpush1.bf16.msra.mxu0 %v5025_v49 }
 0x373   :  { %2086 = vmatpush1.bf16.msra.mxu1 %v6743_v41  ;;  %2117 = vmatprep.mubr.bf16.mxu1 %v2084_v40  ;;  %v5031_v41 = vld [vmem:[%s8177_s9 + $0x2c0] ss:$8 sps:$4 sm:$0xff]   ;;  %v5066_v40 = vld [vmem:[%s8177_s9 + $0x374] ss:$8 sps:$4 sm:$0xff]  }
 0x374   :  { %2087 = vmatprep.subr.bf16.mxu1 %v6750_v14  ;;  %3315 = vmatprep.subr.bf16.mxu0 %v5030_v10  ;;  %v5036_v14 = vld [vmem:[%s8177_s9 + $0x2d4] ss:$8 sps:$4 sm:$0xff]  }
 0x376   :  { %3316 = vmatpush1.bf16.msra.mxu0 %v5028_v9  ;;  %v2075_v9 = vadd.f32 %v7063_v18, %v6276_v20 }
 0x377   :  { %2088 = vmatpush1.bf16.msra.mxu1 %v6757_v23  ;;  %3317 = vmatprep.subr.bf16.mxu0 %v5033_v17  ;;  %v5034_v23 = vld [vmem:[%s8177_s9 + $0x2d0] ss:$8 sps:$4 sm:$0xff]   ;;  %v5072_v17 = vld [vmem:[%s8177_s9 + $0x394] ss:$8 sps:$4 sm:$0xff]  }
 0x378   :  { %2089 = vmatprep.subr.bf16.mxu1 %v6764_v48  ;;  %v5039_v48 = vld [vmem:[%s8177_s9 + $0x2e4] ss:$8 sps:$4 sm:$0xff]  }
 0x37a   :  { %3318 = vmatpush1.bf16.msra.mxu0 %v5031_v41 }
 0x37b   :  { %2090 = vmatpush1.bf16.msra.mxu1 %v6771_v56  ;;  %3319 = vmatprep.subr.bf16.mxu0 %v5036_v14  ;;  %v5037_v56 = vld [vmem:[%s8177_s9 + $0x2e0] ss:$8 sps:$4 sm:$0xff]   ;;  %v5078_v14 = vld [vmem:[%s8177_s9 + $0x3b4] ss:$8 sps:$4 sm:$0xff]  }
 0x37c   :  { %2091 = vmatprep.subr.bf16.mxu1 %v6778_v47  ;;  %v5042_v47 = vld [vmem:[%s8177_s9 + $0x2f4] ss:$8 sps:$4 sm:$0xff]  }
 0x37e   :  { %3320 = vmatpush1.bf16.msra.mxu0 %v5034_v23  ;;  %v7561_v23 = vld [vmem:[%s8220_s25] ss:$8 sps:$4 sm:$0xff]  }
 0x37f   :  { %2092 = vmatpush1.bf16.msra.mxu1 %v6785_v54  ;;  %3321 = vmatprep.subr.bf16.mxu0 %v5039_v48  ;;  %v5040_v54 = vld [vmem:[%s8177_s9 + $0x2f0] ss:$8 sps:$4 sm:$0xff]  }
 0x380   :  { %2093 = vmatprep.subr.bf16.mxu1 %v6792_v57  ;;  %v5045_v57 = vld [vmem:[%s8177_s9 + $0x304] ss:$8 sps:$4 sm:$0xff]   ;;  %v7576_v48 = vld [vmem:[%s8220_s25 + $0x10] ss:$8 sps:$4 sm:$0xff]  }
 0x382   :  { %3322 = vmatpush1.bf16.msra.mxu0 %v5037_v56  ;;  %v4341_v56 = vcombine.low %v7451_v38, %v7451_v38  ;;  %v7614_v38 = vld [vmem:[%s8220_s25 + $0x40] ss:$8 sps:$4 sm:$0xff]  }
 0x383   :  { %2094 = vmatpush1.bf16.msra.mxu1 %v6799_v61  ;;  %3323 = vmatprep.subr.bf16.mxu0 %v5042_v47  ;;  %v7584_v47 = vld [vmem:[%s8220_s25 + $0x24] ss:$8 sps:$4 sm:$0xff]  }
 0x384   :  { %2095 = vmatprep.subr.bf16.mxu1 %v6806_v22 }
 0x385   :  { %v1707_v25 = vpop.f32.mrb[20].mxu1 }
 0x386   :  { %v1708_v61 = vadd.f32 %v1707_v25, %v6646_v50  ;;  %v1709_v22 = vpop.f32.mrb[21].mxu1  ;;  %3324 = vmatpush1.bf16.msra.mxu0 %v5040_v54  ;;  %v7590_v54 = vld [vmem:[%s8220_s25 + $0x20] ss:$8 sps:$4 sm:$0xff]   ;;  %v7596_v25 = vld [vmem:[%s8220_s25 + $0x34] ss:$8 sps:$4 sm:$0xff]  }
 0x387   :  { %v1710_v44 = vadd.f32 %v1709_v22, %v6650_v12  ;;  %v1711_v53 = vpop.f32.mrb[22].mxu1  ;;  %2096 = vmatpush1.bf16.msra.mxu1 %v6818_v27  ;;  %3334 = vmatprep.subr.bf16.mxu0 %v5045_v57  ;;  %v5048_v27 = vld [vmem:[%s8177_s9 + $0x314] ss:$8 sps:$4 sm:$0xff]   ;;  %v7602_v57 = vld [vmem:[%s8220_s25 + $0x30] ss:$8 sps:$4 sm:$0xff]  }
 0x388   :  { %v1712_v43 = vpop.f32.mrb[23].mxu1  ;;  %2097 = vmatprep.subr.bf16.mxu1 %v6827_v33  ;;  %v1714_v19 = vmul.f32 %v6447_v46, %v1708_v61  ;;  %v7620_v61 = vld [vmem:[%s8220_s25 + $0x54] ss:$8 sps:$4 sm:$0xff]  }
 0x389   :  { %v1715_v39 = vmul.f32 %v6457_v42, %v1710_v44  ;;  %3326 = vmatmul.mubr.bf16.vlgmr.msra.gmra.mrb[36].mxu0 %v4339_v31 }
 0x38a   :  { %3335 = vmatpush1.bf16.msra.mxu0 %v5043_v0  ;;  %4463 = vmatprep.mubr.msk.bf16.mxu0 %vm837_vm0, %v4342_v63  ;;  %v7628_v0 = vld [vmem:[%s8220_s25 + $0x50] ss:$8 sps:$4 sm:$0xff]  }
 0x38b   :  { %2098 = vmatpush1.bf16.msra.mxu1 %v6836_v37  ;;  %v1716_v33 = vadd.f32 %v1715_v39, %v1714_v19  ;;  %3336 = vmatprep.subr.bf16.mxu0 %v5048_v27  ;;  %v5049_v37 = vld [vmem:[%s8177_s9 + $0x320] ss:$8 sps:$4 sm:$0xff]   ;;  %v7635_v27 = vld [vmem:[%s8220_s25 + $0x64] ss:$8 sps:$4 sm:$0xff]  }
 0x38c   :  { %2099 = vmatprep.subr.bf16.mxu1 %v6843_v8  ;;  %v5054_v8 = vld [vmem:[%s8177_s9 + $0x334] ss:$8 sps:$4 sm:$0xff]  }
 0x38d   :  { %1717 = vadd.xlane.f32.xlu1 %v1716_v33  ;;  %v7642_v33 = vld [vmem:[%s8220_s25 + $0x60] ss:$8 sps:$4 sm:$0xff]  }
 0x38e   :  { %3337 = vmatpush1.bf16.msra.mxu0 %v5046_v45 }
 0x38f   :  { %2100 = vmatpush1.bf16.msra.mxu1 %v6850_v62  ;;  %3338 = vmatprep.subr.bf16.mxu0 %v5051_v60  ;;  %v5052_v62 = vld [vmem:[%s8177_s9 + $0x330] ss:$8 sps:$4 sm:$0xff]   ;;  %v7648_v60 = vld [vmem:[%s8220_s25 + $0x74] ss:$8 sps:$4 sm:$0xff]  }
 0x390   :  { %2101 = vmatprep.subr.bf16.mxu1 %v6857_v59  ;;  %v5057_v59 = vld [vmem:[%s8177_s9 + $0x344] ss:$8 sps:$4 sm:$0xff]  }
 0x392   :  { %3339 = vmatpush1.bf16.msra.mxu0 %v5049_v37  ;;  %v7654_v37 = vld [vmem:[%s8220_s25 + $0x70] ss:$8 sps:$4 sm:$0xff]  }
 0x393   :  { %2102 = vmatpush1.bf16.msra.mxu1 %v6864_v2  ;;  %3340 = vmatprep.subr.bf16.mxu0 %v5054_v8  ;;  %v5055_v2 = vld [vmem:[%s8177_s9 + $0x340] ss:$8 sps:$4 sm:$0xff]   ;;  %v7660_v8 = vld [vmem:[%s8220_s25 + $0x84] ss:$8 sps:$4 sm:$0xff]  }
 0x394   :  { %2103 = vmatprep.subr.bf16.mxu1 %v6871_v4  ;;  %v5060_v4 = vld [vmem:[%s8177_s9 + $0x354] ss:$8 sps:$4 sm:$0xff]  }
 0x396   :  { %3341 = vmatpush1.bf16.msra.mxu0 %v5052_v62  ;;  %v7666_v62 = vld [vmem:[%s8220_s25 + $0x80] ss:$8 sps:$4 sm:$0xff]  }
 0x397   :  { %2104 = vmatpush1.bf16.msra.mxu1 %v6878_v6  ;;  %3342 = vmatprep.subr.bf16.mxu0 %v5057_v59  ;;  %v5058_v6 = vld [vmem:[%s8177_s9 + $0x350] ss:$8 sps:$4 sm:$0xff]   ;;  %v7672_v59 = vld [vmem:[%s8220_s25 + $0x94] ss:$8 sps:$4 sm:$0xff]  }
 0x398   :  { %2105 = vmatprep.subr.bf16.mxu1 %v6885_v11  ;;  %v5063_v11 = vld [vmem:[%s8177_s9 + $0x364] ss:$8 sps:$4 sm:$0xff]  }
 0x39a   :  { %3343 = vmatpush1.bf16.msra.mxu0 %v5055_v2  ;;  %v7678_v2 = vld [vmem:[%s8220_s25 + $0x90] ss:$8 sps:$4 sm:$0xff]  }
 0x39b   :  { %2106 = vmatpush1.bf16.msra.mxu1 %v6892_v13  ;;  %3344 = vmatprep.subr.bf16.mxu0 %v5060_v4  ;;  %v5061_v13 = vld [vmem:[%s8177_s9 + $0x360] ss:$8 sps:$4 sm:$0xff]   ;;  %v7684_v4 = vld [vmem:[%s8220_s25 + $0xa4] ss:$8 sps:$4 sm:$0xff]  }
 0x39c   :  { %2107 = vmatprep.subr.bf16.mxu1 %v6899_v15  ;;  %v7510_v1 = vpop.f32.mrb[32].mxu0 }
 0x39d   :  { %v7513_v49 = vpop.f32.mrb[33].mxu0 }
 0x39e   :  { %3345 = vmatpush1.bf16.msra.mxu0 %v5058_v6  ;;  %v2387_v15 = vpop.f32.mrb[34].mxu0  ;;  %v7690_v6 = vld [vmem:[%s8220_s25 + $0xa0] ss:$8 sps:$4 sm:$0xff]  }
 0x39f   :  { %2108 = vmatpush1.bf16.msra.mxu1 %v6910_v30  ;;  %3346 = vmatprep.subr.bf16.mxu0 %v5063_v11  ;;  %v2388_v10 = vpop.f32.mrb[35].mxu0  ;;  %v5064_v30 = vld [vmem:[%s8177_s9 + $0x370] ss:$8 sps:$4 sm:$0xff]   ;;  %v7696_v11 = vld [vmem:[%s8220_s25 + $0xb4] ss:$8 sps:$4 sm:$0xff]  }
 0x3a0   :  { %2109 = vmatprep.subr.bf16.mxu1 %v6917_v29  ;;  %v5069_v29 = vld [vmem:[%s8177_s9 + $0x384] ss:$8 sps:$4 sm:$0xff]   ;;  %v7720_v10 = vld [vmem:[%s8220_s25 + $0xd4] ss:$8 sps:$4 sm:$0xff]  }
 0x3a1   :  { %v7708_v15 = vld [vmem:[%s8220_s25 + $0xc4] ss:$8 sps:$4 sm:$0xff]  }
 0x3a2   :  { %3347 = vmatpush1.bf16.msra.mxu0 %v5061_v13  ;;  %v7702_v13 = vld [vmem:[%s8220_s25 + $0xb0] ss:$8 sps:$4 sm:$0xff]  }
 0x3a3   :  { %2110 = vmatpush1.bf16.msra.mxu1 %v6924_v35  ;;  %3348 = vmatprep.subr.bf16.mxu0 %v5066_v40  ;;  %v5067_v35 = vld [vmem:[%s8177_s9 + $0x380] ss:$8 sps:$4 sm:$0xff]  }
 0x3a4   :  { %2111 = vmatprep.subr.bf16.mxu1 %v6931_v32  ;;  %v2180_v32 = vadd.f32 %v7211_v16, %v6280_v26  ;;  %v5075_v16 = vld [vmem:[%s8177_s9 + $0x3a4] ss:$8 sps:$4 sm:$0xff]   ;;  %v7714_v40 = vld [vmem:[%s8220_s25 + $0xc0] ss:$8 sps:$4 sm:$0xff]  }
 0x3a6   :  { %3349 = vmatpush1.bf16.msra.mxu0 %v5064_v30  ;;  %v2185_v18 = vmax.f32 %v2180_v32, 0.0  ;;  %v7726_v30 = vld [vmem:[%s8220_s25 + $0xd0] ss:$8 sps:$4 sm:$0xff]   ;;  %v7742_v32 = vld [vmem:[%s8220_s25 + $0xe0] ss:$8 sps:$4 sm:$0xff]  }
 0x3a7   :  { %2112 = vmatpush1.bf16.msra.mxu1 %v6938_v52  ;;  %3350 = vmatprep.subr.bf16.mxu0 %v5069_v29  ;;  %v2081_v52 = vmax.f32 %v2075_v9, 0.0  ;;  %v2178_v29 = vadd.f32 %v7209_v7, %v6276_v20  ;;  %v7734_v9 = vld [vmem:[%s8220_s25 + $0xe4] ss:$8 sps:$4 sm:$0xff]   ;;  %v7748_v7 = vld [vmem:[%s8220_s25 + $0xf4] ss:$8 sps:$4 sm:$0xff]  }
 0x3a8   :  { %2113 = vmatprep.subr.bf16.mxu1 %v6947_v55  ;;  %v5070_v55 = vld [vmem:[%s8177_s9 + $0x390] ss:$8 sps:$4 sm:$0xff]  }
 0x3a9   :  { %v2083_v41 = vpack.c.bf16 %v2081_v52, %v2081_v52 }
 0x3aa   :  { %3351 = vmatpush1.bf16.msra.mxu0 %v5067_v35  ;;  %v2283_v35 = vadd.f32 %v7362_v51, %v6280_v26  ;;  %v7754_v51 = vld [vmem:[%s8220_s25 + $0xf0] ss:$8 sps:$4 sm:$0xff]  }
 0x3ab   :  { %2114 = vmatpush1.bf16.msra.mxu1 %v6956_v5  ;;  %3352 = vmatprep.subr.bf16.mxu0 %v5072_v17  ;;  %v5073_v5 = vld [vmem:[%s8177_s9 + $0x3a0] ss:$8 sps:$4 sm:$0xff]   ;;  %v2184_v17 = vmax.f32 %v2178_v29, 0.0 }
 0x3ac   :  { %2115 = vmatprep.subr.bf16.mxu1 %v6963_v36  ;;  %v2187_v36 = vpack.c.bf16 %v2185_v18, %v2185_v18  ;;  %v2288_v52 = vmax.f32 %v2283_v35, 0.0  ;;  %v5298_v18 = vld [vmem:[%s8220_s25 + $0x4] ss:$8 sps:$4 sm:$0xff]  }
 0x3ae   :  { %3353 = vmatpush1.bf16.msra.mxu0 %v5070_v55  ;;  %v2186_v55 = vpack.c.bf16 %v2184_v17, %v2184_v17 }
 0x3af   :  { %2116 = vmatpush1.bf16.msra.mxu1 %v6970_v34  ;;  %3354 = vmatprep.subr.bf16.mxu0 %v5075_v16  ;;  %v7567_v34 = vld [vmem:[%s8220_s25 + $0x14] ss:$8 sps:$4 sm:$0xff]   ;;  %v2290_v16 = vpack.c.bf16 %v2288_v52, %v2288_v52 }
 0x3b0   :  { %2188 = vmatprep.subr.bf16.mxu1 %v6977_v58  ;;  %v5076_v58 = vld [vmem:[%s8177_s9 + $0x3b0] ss:$8 sps:$4 sm:$0xff]  }
 0x3b2   :  { %2118 = vmatmul.mubr.bf16.vlgmr.msra.gmra.mrb[36].mxu1 %v2083_v41  ;;  %3355 = vmatpush1.bf16.msra.mxu0 %v5073_v5 }
 0x3b3   :  { %2189 = vmatpush1.bf16.msra.mxu1 %v7561_v23  ;;  %2220 = vmatprep.mubr.bf16.mxu1 %v2187_v36 }
 0x3b4   :  { %2190 = vmatprep.subr.bf16.mxu1 %v7567_v34  ;;  %3356 = vmatprep.subr.bf16.mxu0 %v5078_v14 }
 0x3b6   :  { %3357 = vmatpush1.bf16.msra.mxu0 %v5076_v58 }
 0x3b7   :  { %2191 = vmatpush1.bf16.msra.mxu1 %v7576_v48 }
 0x3b8   :  { %2192 = vmatprep.subr.bf16.mxu1 %v7584_v47 }
 0x3b9   :  { %3367 = vmatmul.mubr.bf16.vlgmr.msra.gmra.mrb[36].mxu0 %v4341_v56 }
 0x3bb   :  { %2193 = vmatpush1.bf16.msra.mxu1 %v7590_v54 }
 0x3bc   :  { %2194 = vmatprep.subr.bf16.mxu1 %v7596_v25 }
 0x3bf   :  { %2195 = vmatpush1.bf16.msra.mxu1 %v7602_v57 }
 0x3c0   :  { %2196 = vmatprep.subr.bf16.mxu1 %v7608_v3 }
 0x3c3   :  { %2197 = vmatpush1.bf16.msra.mxu1 %v7614_v38 }
 0x3c4   :  { %2198 = vmatprep.subr.bf16.mxu1 %v7620_v61 }
 0x3c5   :  { %v1810_v22 = vpop.f32.mrb[24].mxu1 }
 0x3c6   :  { %v1811_v44 = vadd.f32 %v1810_v22, %v6646_v50  ;;  %v1812_v53 = vpop.f32.mrb[25].mxu1 }
 0x3c7   :  { %v1813_v31 = vadd.f32 %v1812_v53, %v6650_v12  ;;  %v1814_v43 = vpop.f32.mrb[26].mxu1  ;;  %2199 = vmatpush1.bf16.msra.mxu1 %v7628_v0 }
 0x3c8   :  { %v1817_v19 = vmul.f32 %v6447_v46, %v1811_v44  ;;  %v1815_v39 = vpop.f32.mrb[27].mxu1  ;;  %2200 = vmatprep.subr.bf16.mxu1 %v7635_v27  ;;  %v2386_v43 = vadd.f32 %v7513_v49, %v6280_v26 }
 0x3c9   :  { %v1818_v63 = vmul.f32 %v6457_v42, %v1813_v31  ;;  %v2281_v31 = vadd.f32 %v7359_v24, %v6276_v20 }
 0x3ca   :  { %v2391_v39 = vmax.f32 %v2386_v43, 0.0  ;;  %v5112_v43 = vld [vmem:[%s8178_s11 + $0xb0] ss:$8 sps:$4 sm:$0xff]  }
 0x3cb   :  { %2201 = vmatpush1.bf16.msra.mxu1 %v7642_v33  ;;  %v1819_v45 = vadd.f32 %v1818_v63, %v1817_v19  ;;  %v2287_v19 = vmax.f32 %v2281_v31, 0.0  ;;  %v5114_v31 = vld [vmem:[%s8178_s11 + $0xb4] ss:$8 sps:$4 sm:$0xff]  }
 0x3cc   :  { %2202 = vmatprep.subr.bf16.mxu1 %v7648_v60 }
 0x3cd   :  { %1820 = vadd.xlane.f32.xlu1 %v1819_v45  ;;  %v2289_v63 = vpack.c.bf16 %v2287_v19, %v2287_v19  ;;  %v2393_v45 = vpack.c.bf16 %v2391_v39, %v2391_v39  ;;  %v5117_v19 = vld [vmem:[%s8178_s11 + $0xc4] ss:$8 sps:$4 sm:$0xff]   ;;  %v5115_v39 = vld [vmem:[%s8178_s11 + $0xc0] ss:$8 sps:$4 sm:$0xff]  }
 0x3cf   :  { %2203 = vmatpush1.bf16.msra.mxu1 %v7654_v37 }
 0x3d0   :  { %2204 = vmatprep.subr.bf16.mxu1 %v7660_v8 }
 0x3d3   :  { %2205 = vmatpush1.bf16.msra.mxu1 %v7666_v62 }
 0x3d4   :  { %2206 = vmatprep.subr.bf16.mxu1 %v7672_v59 }
 0x3d7   :  { %2207 = vmatpush1.bf16.msra.mxu1 %v7678_v2 }
 0x3d8   :  { %2208 = vmatprep.subr.bf16.mxu1 %v7684_v4 }
 0x3db   :  { %2209 = vmatpush1.bf16.msra.mxu1 %v7690_v6 }
 0x3dc   :  { %2210 = vmatprep.subr.bf16.mxu1 %v7696_v11 }
 0x3df   :  { %2211 = vmatpush1.bf16.msra.mxu1 %v7702_v13 }
 0x3e0   :  { %2212 = vmatprep.subr.bf16.mxu1 %v7708_v15 }
 0x3e3   :  { %2213 = vmatpush1.bf16.msra.mxu1 %v7714_v40 }
 0x3e4   :  { %2214 = vmatprep.subr.bf16.mxu1 %v7720_v10 }
 0x3e7   :  { %2215 = vmatpush1.bf16.msra.mxu1 %v7726_v30 }
 0x3e8   :  { %2216 = vmatprep.subr.bf16.mxu1 %v7734_v9 }
 0x3eb   :  { %2217 = vmatpush1.bf16.msra.mxu1 %v7742_v32 }
 0x3ec   :  { %2218 = vmatprep.subr.bf16.mxu1 %v7748_v7 }
 0x3ef   :  { %2219 = vmatpush1.bf16.msra.mxu1 %v7754_v51 }
 0x3f0   :  { %2291 = vmatprep.subr.bf16.mxu1 %v5298_v18 }
 0x3f2   :  { %2221 = vmatmul.mubr.bf16.vlgmr.msra.gmra.mrb[40].mxu1 %v2186_v55 }
 0x3f3   :  { %2292 = vmatpush1.bf16.msra.mxu1 %v7561_v23  ;;  %2323 = vmatprep.mubr.bf16.mxu1 %v2290_v16  ;;  %v5103_v16 = vld [vmem:[%s8178_s11 + $0x80] ss:$8 sps:$4 sm:$0xff]  }
 0x3f4   :  { %2293 = vmatprep.subr.bf16.mxu1 %v7567_v34 }
 0x3f7   :  { %2294 = vmatpush1.bf16.msra.mxu1 %v7576_v48 }
 0x3f8   :  { %2295 = vmatprep.subr.bf16.mxu1 %v7584_v47 }
 0x3fb   :  { %2296 = vmatpush1.bf16.msra.mxu1 %v7590_v54 }
 0x3fc   :  { %2297 = vmatprep.subr.bf16.mxu1 %v7596_v25 }
 0x3ff   :  { %2298 = vmatpush1.bf16.msra.mxu1 %v7602_v57 }
 0x400   :  { %2299 = vmatprep.subr.bf16.mxu1 %v7608_v3 }
 0x403   :  { %2300 = vmatpush1.bf16.msra.mxu1 %v7614_v38 }
 0x404   :  { %2301 = vmatprep.subr.bf16.mxu1 %v7620_v61 }
 0x405   :  { %v1913_v41 = vpop.f32.mrb[28].mxu1 }
 0x406   :  { %v1914_v5 = vadd.f32 %v1913_v41, %v6646_v50  ;;  %v1915_v36 = vpop.f32.mrb[29].mxu1 }
 0x407   :  { %v1916_v14 = vadd.f32 %v1915_v36, %v6650_v12  ;;  %v1917_v58 = vpop.f32.mrb[30].mxu1  ;;  %2302 = vmatpush1.bf16.msra.mxu1 %v7628_v0  ;;  %v5108_v36 = vld [vmem:[%s8178_s11 + $0x94] ss:$8 sps:$4 sm:$0xff]  }
 0x408   :  { %v1920_v56 = vmul.f32 %v6447_v46, %v1914_v5  ;;  %v1918_v22 = vpop.f32.mrb[31].mxu1  ;;  %2303 = vmatprep.subr.bf16.mxu1 %v7635_v27 }
 0x409   :  { %v1921_v44 = vmul.f32 %v6457_v42, %v1916_v14 }
 0x40b   :  { %2304 = vmatpush1.bf16.msra.mxu1 %v7642_v33  ;;  %v1922_v53 = vadd.f32 %v1921_v44, %v1920_v56  ;;  %v5106_v56 = vld [vmem:[%s8178_s11 + $0x90] ss:$8 sps:$4 sm:$0xff]   ;;  %v5111_v44 = vld [vmem:[%s8178_s11 + $0xa4] ss:$8 sps:$4 sm:$0xff]  }
 0x40c   :  { %2305 = vmatprep.subr.bf16.mxu1 %v7648_v60 }
 0x40d   :  { %1923 = vadd.xlane.f32.xlu0 %v1922_v53  ;;  %v5109_v53 = vld [vmem:[%s8178_s11 + $0xa0] ss:$8 sps:$4 sm:$0xff]  }
 0x40f   :  { %2306 = vmatpush1.bf16.msra.mxu1 %v7654_v37 }
 0x410   :  { %2307 = vmatprep.subr.bf16.mxu1 %v7660_v8 }
 0x413   :  { %2308 = vmatpush1.bf16.msra.mxu1 %v7666_v62 }
 0x414   :  { %2309 = vmatprep.subr.bf16.mxu1 %v7672_v59 }
 0x417   :  { %2310 = vmatpush1.bf16.msra.mxu1 %v7678_v2 }
 0x418   :  { %2311 = vmatprep.subr.bf16.mxu1 %v7684_v4 }
 0x41b   :  { %2312 = vmatpush1.bf16.msra.mxu1 %v7690_v6 }
 0x41c   :  { %2313 = vmatprep.subr.bf16.mxu1 %v7696_v11 }
 0x41f   :  { %2314 = vmatpush1.bf16.msra.mxu1 %v7702_v13 }
 0x420   :  { %2315 = vmatprep.subr.bf16.mxu1 %v7708_v15 }
 0x423   :  { %2316 = vmatpush1.bf16.msra.mxu1 %v7714_v40 }
 0x424   :  { %2317 = vmatprep.subr.bf16.mxu1 %v7720_v10 }
 0x427   :  { %2318 = vmatpush1.bf16.msra.mxu1 %v7726_v30 }
 0x428   :  { %2319 = vmatprep.subr.bf16.mxu1 %v7734_v9 }
 0x42b   :  { %2320 = vmatpush1.bf16.msra.mxu1 %v7742_v32 }
 0x42c   :  { %2321 = vmatprep.subr.bf16.mxu1 %v7748_v7 }
 0x42f   :  { %2322 = vmatpush1.bf16.msra.mxu1 %v7754_v51 }
 0x430   :  { %2394 = vmatprep.subr.bf16.mxu1 %v5298_v18 }
 0x432   :  { %2324 = vmatmul.mubr.bf16.vlgmr.msra.gmra.mrb[44].mxu1 %v2289_v63  ;;  %v5120_v63 = vld [vmem:[%s8178_s11 + $0xd4] ss:$8 sps:$4 sm:$0xff]  }
 0x433   :  { %2395 = vmatpush1.bf16.msra.mxu1 %v7561_v23  ;;  %2426 = vmatprep.mubr.bf16.mxu1 %v2393_v45  ;;  %v5118_v45 = vld [vmem:[%s8178_s11 + $0xd0] ss:$8 sps:$4 sm:$0xff]  }
 0x434   :  { %2396 = vmatprep.subr.bf16.mxu1 %v7567_v34 }
 0x437   :  { %2397 = vmatpush1.bf16.msra.mxu1 %v7576_v48 }
 0x438   :  { %2398 = vmatprep.subr.bf16.mxu1 %v7584_v47 }
 0x43b   :  { %2399 = vmatpush1.bf16.msra.mxu1 %v7590_v54 }
 0x43c   :  { %2400 = vmatprep.subr.bf16.mxu1 %v7596_v25 }
 0x43f   :  { %2401 = vmatpush1.bf16.msra.mxu1 %v7602_v57  ;;  %v2384_v57 = vadd.f32 %v7510_v1, %v6276_v20  ;;  %v5084_v20 = vld [vmem:[%s8178_s11 + $0x14] ss:$8 sps:$4 sm:$0xff]   ;;  %v5082_v1 = vld [vmem:[%s8178_s11 + $0x10] ss:$8 sps:$4 sm:$0xff]  }
 0x440   :  { %2402 = vmatprep.subr.bf16.mxu1 %v7608_v3 }
 0x441   :  { %v2390_v3 = vmax.f32 %v2384_v57, 0.0 }
 0x443   :  { %2403 = vmatpush1.bf16.msra.mxu1 %v7614_v38  ;;  %v5081_v38 = vld [vmem:[%s8178_s11 + $0x4] ss:$8 sps:$4 sm:$0xff]  }
 0x444   :  { %2404 = vmatprep.subr.bf16.mxu1 %v7620_v61  ;;  %v5079_v61 = vld [vmem:[%s8178_s11] ss:$8 sps:$4 sm:$0xff]  }
 0x445   :  { %v2016_v26 = vpop.f32.mrb[32].mxu1 }
 0x446   :  { %v2017_v24 = vadd.f32 %v2016_v26, %v6646_v50  ;;  %v2018_v49 = vpop.f32.mrb[33].mxu1 }
 0x447   :  { %v2019_v23 = vadd.f32 %v2018_v49, %v6650_v12  ;;  %v2020_v34 = vpop.f32.mrb[34].mxu1  ;;  %2405 = vmatpush1.bf16.msra.mxu1 %v7628_v0  ;;  %v2392_v0 = vpack.c.bf16 %v2390_v3, %v2390_v3  ;;  %v5121_v49 = vld [vmem:[%s8178_s11 + $0xe0] ss:$8 sps:$4 sm:$0xff]  }
 0x448   :  { %v2023_v48 = vmul.f32 %v6447_v46, %v2017_v24  ;;  %v2021_v47 = vpop.f32.mrb[35].mxu1  ;;  %2406 = vmatprep.subr.bf16.mxu1 %v7635_v27  ;;  %v5087_v27 = vld [vmem:[%s8178_s11 + $0x24] ss:$8 sps:$4 sm:$0xff]   ;;  %v5126_v34 = vld [vmem:[%s8178_s11 + $0xf4] ss:$8 sps:$4 sm:$0xff]  }
 0x449   :  { %v2024_v54 = vmul.f32 %v6457_v42, %v2019_v23  ;;  %v5123_v24 = vld [vmem:[%s8178_s11 + $0xe4] ss:$8 sps:$4 sm:$0xff]  }
 0x44b   :  { %2407 = vmatpush1.bf16.msra.mxu1 %v7642_v33  ;;  %v2025_v25 = vadd.f32 %v2024_v54, %v2023_v48  ;;  %v5085_v33 = vld [vmem:[%s8178_s11 + $0x20] ss:$8 sps:$4 sm:$0xff]   ;;  %v5124_v48 = vld [vmem:[%s8178_s11 + $0xf0] ss:$8 sps:$4 sm:$0xff]  }
 0x44c   :  { %2408 = vmatprep.subr.bf16.mxu1 %v7648_v60  ;;  %v5090_v60 = vld [vmem:[%s8178_s11 + $0x34] ss:$8 sps:$4 sm:$0xff]  }
 0x44d   :  { %2026 = vadd.xlane.f32.xlu1 %v2025_v25 }
 0x44f   :  { %2409 = vmatpush1.bf16.msra.mxu1 %v7654_v37  ;;  %v5088_v37 = vld [vmem:[%s8178_s11 + $0x30] ss:$8 sps:$4 sm:$0xff]  }
 0x450   :  { %2410 = vmatprep.subr.bf16.mxu1 %v7660_v8  ;;  %v5093_v8 = vld [vmem:[%s8178_s11 + $0x44] ss:$8 sps:$4 sm:$0xff]  }
 0x453   :  { %2411 = vmatpush1.bf16.msra.mxu1 %v7666_v62  ;;  %v5091_v62 = vld [vmem:[%s8178_s11 + $0x40] ss:$8 sps:$4 sm:$0xff]  }
 0x454   :  { %2412 = vmatprep.subr.bf16.mxu1 %v7672_v59  ;;  %v5096_v59 = vld [vmem:[%s8178_s11 + $0x54] ss:$8 sps:$4 sm:$0xff]  }
 0x457   :  { %2413 = vmatpush1.bf16.msra.mxu1 %v7678_v2  ;;  %v5094_v2 = vld [vmem:[%s8178_s11 + $0x50] ss:$8 sps:$4 sm:$0xff]  }
 0x458   :  { %2414 = vmatprep.subr.bf16.mxu1 %v7684_v4  ;;  %v5099_v4 = vld [vmem:[%s8178_s11 + $0x64] ss:$8 sps:$4 sm:$0xff]  }
 0x45b   :  { %2415 = vmatpush1.bf16.msra.mxu1 %v7690_v6 }
 0x45c   :  { %2416 = vmatprep.subr.bf16.mxu1 %v7696_v11 }
 0x45f   :  { %2417 = vmatpush1.bf16.msra.mxu1 %v7702_v13 }
 0x460   :  { %2418 = vmatprep.subr.bf16.mxu1 %v7708_v15 }
 0x463   :  { %2419 = vmatpush1.bf16.msra.mxu1 %v7714_v40 }
 0x464   :  { %2420 = vmatprep.subr.bf16.mxu1 %v7720_v10  ;;  %v5097_v10 = vld [vmem:[%s8178_s11 + $0x60] ss:$8 sps:$4 sm:$0xff]  }
 0x467   :  { %2421 = vmatpush1.bf16.msra.mxu1 %v7726_v30 }
 0x468   :  { %2422 = vmatprep.subr.bf16.mxu1 %v7734_v9  ;;  %v5102_v9 = vld [vmem:[%s8178_s11 + $0x74] ss:$8 sps:$4 sm:$0xff]  }
 0x46b   :  { %2423 = vmatpush1.bf16.msra.mxu1 %v7742_v32  ;;  %v2569_v32 = vld [vmem:[%s8179_s10] sm:$0x3] }
 0x46c   :  { %2424 = vmatprep.subr.bf16.mxu1 %v7748_v7  ;;  %v5100_v7 = vld [vmem:[%s8178_s11 + $0x70] ss:$8 sps:$4 sm:$0xff]   ;;  %v2578_v52 = vrot.slane %v2569_v32, %v6270_v28  ;;  %v2574_v26 = vrot.slane %v2569_v32, %v6264_v21  ;;  %v5156_v32 = vld [vmem:[%s8180_s13 + $0x94] ss:$8 sps:$4 sm:$0xff]  }
 0x46f   :  { %2425 = vmatpush1.bf16.msra.mxu1 %v7754_v51  ;;  %v5105_v51 = vld [vmem:[%s8178_s11 + $0x84] ss:$8 sps:$4 sm:$0xff]  }
 0x470   :  { %3583 = vmatprep.subr.bf16.mxu1 %v5081_v38 }
 0x472   :  { %2427 = vmatmul.mubr.bf16.vlgmr.msra.gmra.mrb[48].mxu1 %v2392_v0 }
 0x473   :  { %3584 = vmatpush1.bf16.msra.mxu1 %v5079_v61 }
 0x474   :  { %3585 = vmatprep.subr.bf16.mxu1 %v5084_v20 }
 0x477   :  { %3586 = vmatpush1.bf16.msra.mxu1 %v5082_v1 }
 0x478   :  { %3587 = vmatprep.subr.bf16.mxu1 %v5087_v27 }
 0x47b   :  { %3588 = vmatpush1.bf16.msra.mxu1 %v5085_v33  ;;  %v5127_v33 = vld [vmem:[%s8180_s13] ss:$8 sps:$4 sm:$0xff]  }
 0x47c   :  { %3589 = vmatprep.subr.bf16.mxu1 %v5090_v60  ;;  %v5129_v60 = vld [vmem:[%s8180_s13 + $0x4] ss:$8 sps:$4 sm:$0xff]  }
 0x47f   :  { %3590 = vmatpush1.bf16.msra.mxu1 %v5088_v37  ;;  %v5132_v37 = vld [vmem:[%s8180_s13 + $0x14] ss:$8 sps:$4 sm:$0xff]  }
 0x480   :  { %3591 = vmatprep.subr.bf16.mxu1 %v5093_v8  ;;  %v5130_v8 = vld [vmem:[%s8180_s13 + $0x10] ss:$8 sps:$4 sm:$0xff]  }
 0x483   :  { %3592 = vmatpush1.bf16.msra.mxu1 %v5091_v62  ;;  %v5135_v62 = vld [vmem:[%s8180_s13 + $0x24] ss:$8 sps:$4 sm:$0xff]  }
 0x484   :  { %3593 = vmatprep.subr.bf16.mxu1 %v5096_v59  ;;  %v5133_v59 = vld [vmem:[%s8180_s13 + $0x20] ss:$8 sps:$4 sm:$0xff]  }
 0x485   :  { %v2119_v6 = vpop.f32.mrb[36].mxu1 }
 0x486   :  { %v2120_v11 = vadd.f32 %v2119_v6, %v6646_v50  ;;  %v2121_v13 = vpop.f32.mrb[37].mxu1  ;;  %v5141_v6 = vld [vmem:[%s8180_s13 + $0x44] ss:$8 sps:$4 sm:$0xff]  }
 0x487   :  { %v2122_v15 = vadd.f32 %v2121_v13, %v6650_v12  ;;  %v2123_v40 = vpop.f32.mrb[38].mxu1  ;;  %3594 = vmatpush1.bf16.msra.mxu1 %v5094_v2  ;;  %v5138_v2 = vld [vmem:[%s8180_s13 + $0x34] ss:$8 sps:$4 sm:$0xff]  }
 0x488   :  { %v2126_v30 = vmul.f32 %v6447_v46, %v2120_v11  ;;  %v2124_v29 = vpop.f32.mrb[39].mxu1  ;;  %3595 = vmatprep.subr.bf16.mxu1 %v5099_v4  ;;  %v5136_v4 = vld [vmem:[%s8180_s13 + $0x30] ss:$8 sps:$4 sm:$0xff]   ;;  %v5139_v11 = vld [vmem:[%s8180_s13 + $0x40] ss:$8 sps:$4 sm:$0xff]  }
 0x489   :  { %v2127_v35 = vmul.f32 %v6457_v42, %v2122_v15  ;;  %v5144_v13 = vld [vmem:[%s8180_s13 + $0x54] ss:$8 sps:$4 sm:$0xff]   ;;  %v5142_v15 = vld [vmem:[%s8180_s13 + $0x50] ss:$8 sps:$4 sm:$0xff]   ;;  %v5147_v40 = vld [vmem:[%s8180_s13 + $0x64] ss:$8 sps:$4 sm:$0xff]  }
 0x48a   :  { %v5148_v29 = vld [vmem:[%s8180_s13 + $0x70] ss:$8 sps:$4 sm:$0xff]  }
 0x48b   :  { %3596 = vmatpush1.bf16.msra.mxu1 %v5097_v10  ;;  %v2128_v17 = vadd.f32 %v2127_v35, %v2126_v30  ;;  %v5145_v10 = vld [vmem:[%s8180_s13 + $0x60] ss:$8 sps:$4 sm:$0xff]   ;;  %v5150_v30 = vld [vmem:[%s8180_s13 + $0x74] ss:$8 sps:$4 sm:$0xff]  }
 0x48c   :  { %3597 = vmatprep.subr.bf16.mxu1 %v5102_v9  ;;  %v3368_v55 = vpop.f32.mrb[36].mxu0  ;;  %v5153_v9 = vld [vmem:[%s8180_s13 + $0x84] ss:$8 sps:$4 sm:$0xff]   ;;  %v5151_v35 = vld [vmem:[%s8180_s13 + $0x80] ss:$8 sps:$4 sm:$0xff]  }
 0x48d   :  { %2129 = vadd.xlane.f32.xlu0 %v2128_v17  ;;  %v3370_v18 = vpop.f32.mrb[37].mxu0  ;;  %v7938_v23 = vadd.f32 %v3368_v55, %v2574_v26  ;;  %v5154_v17 = vld [vmem:[%s8180_s13 + $0x90] ss:$8 sps:$4 sm:$0xff]  }
 0x48e   :  { %v7898_v41 = vadd.f32 %v3370_v18, %v2578_v52  ;;  %v3372_v5 = vpop.f32.mrb[38].mxu0  ;;  %v5157_v52 = vld [vmem:[%s8180_s13 + $0xa0] ss:$8 sps:$4 sm:$0xff]   ;;  %v5160_v55 = vld [vmem:[%s8180_s13 + $0xb0] ss:$8 sps:$4 sm:$0xff]  }
 0x48f   :  { %3598 = vmatpush1.bf16.msra.mxu1 %v5100_v7  ;;  %v3373_v14 = vpop.f32.mrb[39].mxu0  ;;  %v3375_v47 = vmax.f32 %v7938_v23, 0.0  ;;  %v5159_v7 = vld [vmem:[%s8180_s13 + $0xa4] ss:$8 sps:$4 sm:$0xff]   ;;  %v5168_v5 = vld [vmem:[%s8180_s13 + $0xd4] ss:$8 sps:$4 sm:$0xff]  }
 0x490   :  { %3599 = vmatprep.subr.bf16.mxu1 %v5105_v51  ;;  %v3376_v58 = vmax.f32 %v7898_v41, 0.0  ;;  %v5162_v51 = vld [vmem:[%s8180_s13 + $0xb4] ss:$8 sps:$4 sm:$0xff]   ;;  %v5165_v18 = vld [vmem:[%s8180_s13 + $0xc4] ss:$8 sps:$4 sm:$0xff]  }
 0x491   :  { %v3377_v54 = vpack.c.bf16 %v3375_v47, %v3375_v47  ;;  %v5172_v26 = vld [vmem:[%s8180_s13 + $0xf0] ss:$8 sps:$4 sm:$0xff]  }
 0x492   :  { %v3378_v22 = vpack.c.bf16 %v3376_v58, %v3376_v58 }
 0x493   :  { %3600 = vmatpush1.bf16.msra.mxu1 %v5103_v16  ;;  %v5163_v16 = vld [vmem:[%s8180_s13 + $0xc0] ss:$8 sps:$4 sm:$0xff]  }
 0x494   :  { %3601 = vmatprep.subr.bf16.mxu1 %v5108_v36  ;;  %3615 = vmatprep.mubr.bf16.mxu1 %v3378_v22  ;;  %v5166_v36 = vld [vmem:[%s8180_s13 + $0xd0] ss:$8 sps:$4 sm:$0xff]   ;;  %v5171_v22 = vld [vmem:[%s8180_s13 + $0xe4] ss:$8 sps:$4 sm:$0xff]  }
 0x497   :  { %3602 = vmatpush1.bf16.msra.mxu1 %v5106_v56 }
 0x498   :  { %3603 = vmatprep.subr.bf16.mxu1 %v5111_v44 }
 0x49b   :  { %3604 = vmatpush1.bf16.msra.mxu1 %v5109_v53 }
 0x49c   :  { %3605 = vmatprep.subr.bf16.mxu1 %v5114_v31  ;;  %v5169_v31 = vld [vmem:[%s8180_s13 + $0xe0] ss:$8 sps:$4 sm:$0xff]  }
 0x49f   :  { %3606 = vmatpush1.bf16.msra.mxu1 %v5112_v43 }
 0x4a0   :  { %3607 = vmatprep.subr.bf16.mxu1 %v5117_v19 }
 0x4a3   :  { %3608 = vmatpush1.bf16.msra.mxu1 %v5115_v39 }
 0x4a4   :  { %3609 = vmatprep.subr.bf16.mxu1 %v5120_v63  ;;  %v5174_v63 = vld [vmem:[%s8180_s13 + $0xf4] ss:$8 sps:$4 sm:$0xff]  }
 0x4a7   :  { %3610 = vmatpush1.bf16.msra.mxu1 %v5118_v45 }
 0x4a8   :  { %3611 = vmatprep.subr.bf16.mxu1 %v5123_v24 }
 0x4ab   :  { %3612 = vmatpush1.bf16.msra.mxu1 %v5121_v49 }
 0x4ac   :  { %3613 = vmatprep.subr.bf16.mxu1 %v5126_v34 }
 0x4af   :  { %3614 = vmatpush1.bf16.msra.mxu1 %v5124_v48 }
 0x4b0   :  { %3834 = vmatprep.subr.bf16.mxu1 %v5129_v60 }
 0x4b2   :  { %3616 = vmatmul.mubr.bf16.vlgmr.msra.gmra.mrb[52].mxu1 %v3377_v54 }
 0x4b3   :  { %3835 = vmatpush1.bf16.msra.mxu1 %v5127_v33 }
 0x4b4   :  { %3836 = vmatprep.subr.bf16.mxu1 %v5132_v37 }
 0x4b7   :  { %3837 = vmatpush1.bf16.msra.mxu1 %v5130_v8 }
 0x4b8   :  { %3838 = vmatprep.subr.bf16.mxu1 %v5135_v62 }
 0x4bb   :  { %3839 = vmatpush1.bf16.msra.mxu1 %v5133_v59  ;;  %v5176_v59 = vld [vmem:[%s8181_s15] sm:$0xff]  }
 0x4bc   :  { %3840 = vmatprep.subr.bf16.mxu1 %v5138_v2 }
 0x4bf   :  { %3841 = vmatpush1.bf16.msra.mxu1 %v5136_v4  ;;  %v5177_v4 = vld [vmem:[%s8181_s15 + $0x48] sm:$0xff]  }
 0x4c0   :  { %3842 = vmatprep.subr.bf16.mxu1 %v5141_v6  ;;  %v5180_v6 = vld [vmem:[%s8181_s15 + $0x10] sm:$0xff]  }
 0x4c3   :  { %3843 = vmatpush1.bf16.msra.mxu1 %v5139_v11  ;;  %v5181_v11 = vld [vmem:[%s8181_s15 + $0x58] sm:$0xff]  }
 0x4c4   :  { %3844 = vmatprep.subr.bf16.mxu1 %v5144_v13  ;;  %v5182_v13 = vld [vmem:[%s8181_s15 + $0x18] sm:$0xff]  }
 0x4c5   :  { %v2222_v25 = vpop.f32.mrb[40].mxu1 }
 0x4c6   :  { %v2223_v57 = vadd.f32 %v2222_v25, %v6646_v50  ;;  %v2224_v3 = vpop.f32.mrb[41].mxu1 }
 0x4c7   :  { %v2225_v38 = vadd.f32 %v2224_v3, %v6650_v12  ;;  %v2226_v61 = vpop.f32.mrb[42].mxu1  ;;  %3845 = vmatpush1.bf16.msra.mxu1 %v5142_v15  ;;  %v5183_v15 = vld [vmem:[%s8181_s15 + $0x60] sm:$0xff]  }
 0x4c8   :  { %v2229_v0 = vmul.f32 %v6447_v46, %v2223_v57  ;;  %v2227_v20 = vpop.f32.mrb[43].mxu1  ;;  %3846 = vmatprep.subr.bf16.mxu1 %v5147_v40  ;;  %v5184_v40 = vld [vmem:[%s8181_s15 + $0x20] sm:$0xff]  }
 0x4c9   :  { %v2230_v1 = vmul.f32 %v6457_v42, %v2225_v38  ;;  %v5175_v38 = vld [vmem:[%s8181_s15 + $0x40] sm:$0xff]  }
 0x4cb   :  { %v2231_v27 = vadd.f32 %v2230_v1, %v2229_v0  ;;  %3847 = vmatpush1.bf16.msra.mxu1 %v5145_v10  ;;  %v5185_v10 = vld [vmem:[%s8181_s15 + $0x68] sm:$0xff]  }
 0x4cc   :  { %3848 = vmatprep.subr.bf16.mxu1 %v5150_v30  ;;  %v8251_v30 = vlaneseq }
 0x4cd   :  { %2232 = vadd.xlane.f32.xlu1 %v2231_v27 }
 0x4cf   :  { %3849 = vmatpush1.bf16.msra.mxu1 %v5148_v29  ;;  %v1006_v29 = vand.u32 127, %v8251_v30 }
 0x4d0   :  { %3850 = vmatprep.subr.bf16.mxu1 %v5153_v9  ;;  %v1512_v9 = vpop.xlane.xlu0 %1511 }
 0x4d1   :  { %vm1616_vm1 = vcmp.eq.s32.totalorder %v1006_v29, 1  ;;  %vm1513_vm2 = vcmp.eq.s32.totalorder %v1006_v29, 0  ;;  %vm1719_vm3 = vcmp.eq.s32.totalorder %v1006_v29, 2  ;;  %vm1822_vm4 = vcmp.eq.s32.totalorder %v1006_v29, 3 }
 0x4d2   :  { %vm1925_vm5 = vcmp.eq.s32.totalorder %v1006_v29, 4  ;;  %vm2028_vm6 = vcmp.eq.s32.totalorder %v1006_v29, 5  ;;  %vm2131_vm7 = vcmp.eq.s32.totalorder %v1006_v29, 6  ;;  %vm2234_vm8 = vcmp.eq.s32.totalorder %v1006_v29, 7 }
 0x4d3   :  { %3851 = vmatpush1.bf16.msra.mxu1 %v5151_v35  ;;  %v5300_v35 = vmov 0.0   ;;  %vm2337_vm9 = vcmp.eq.s32.totalorder %v1006_v29, 8  ;;  %vm2440_vm10 = vcmp.eq.s32.totalorder %v1006_v29, 9 }
 0x4d4   :  { %3852 = vmatprep.subr.bf16.mxu1 %v5156_v32  ;;  %v4310_v32 = vsel %vm1616_vm1, 1.0, %v5300_v35 }
 0x4d7   :  { %3853 = vmatpush1.bf16.msra.mxu1 %v5154_v17  ;;  %v1615_v17 = vpop.xlane.xlu0 %1614 }
 0x4d8   :  { %3854 = vmatprep.subr.bf16.mxu1 %v5159_v7  ;;  %v1718_v7 = vpop.xlane.xlu1 %1717 }
 0x4db   :  { %3855 = vmatpush1.bf16.msra.mxu1 %v5157_v52  ;;  %v4307_v52 = vsel %vm1513_vm2, 1.0, %v5300_v35 }
 0x4dc   :  { %3856 = vmatprep.subr.bf16.mxu1 %v5162_v51  ;;  %v4313_v51 = vsel %vm1719_vm3, 1.0, %v5300_v35 }
 0x4df   :  { %3857 = vmatpush1.bf16.msra.mxu1 %v5160_v55  ;;  %v1619_v55 = vmul.f32 %v4310_v32, %v1615_v17 }
 0x4e0   :  { %3858 = vmatprep.subr.bf16.mxu1 %v5165_v18  ;;  %v4316_v18 = vsel %vm1822_vm4, 1.0, %v5300_v35 }
 0x4e3   :  { %3859 = vmatpush1.bf16.msra.mxu1 %v5163_v16  ;;  %v1821_v16 = vpop.xlane.xlu1 %1820 }
 0x4e4   :  { %3860 = vmatprep.subr.bf16.mxu1 %v5168_v5  ;;  %v1516_v5 = vmul.f32 %v4307_v52, %v1512_v9 }
 0x4e7   :  { %3861 = vmatpush1.bf16.msra.mxu1 %v5166_v36  ;;  %v1722_v36 = vmul.f32 %v4313_v51, %v1718_v7 }
 0x4e8   :  { %3862 = vmatprep.subr.bf16.mxu1 %v5171_v22  ;;  %v1825_v22 = vmul.f32 %v4316_v18, %v1821_v16  ;;  %v26_v18 = vstv %s8186_s16 }
 0x4e9   :  { %27 = vst [vmem:[#allocation2] sm:$0x1] %v26_v18 }
 0x4eb   :  { %3863 = vmatpush1.bf16.msra.mxu1 %v5169_v31 }
 0x4ec   :  { %3864 = vmatprep.subr.bf16.mxu1 %v5174_v63 }
 0x4ef   :  { %3865 = vmatpush1.bf16.msra.mxu1 %v5172_v26  ;;  %v4328_v26 = vsel %vm2234_vm8, 1.0, %v5300_v35 }
 0x4f0   :  { %4545 = vmatprep.subr.bf16.mxu1 %v5175_v38  ;;  %v4334_v38 = vsel %vm2440_vm10, 1.0, %v5300_v35 }
 0x505   :  { %v2325_v14 = vpop.f32.mrb[44].mxu1 }
 0x506   :  { %v2326_v58 = vadd.f32 %v2325_v14, %v6646_v50  ;;  %v2327_v56 = vpop.f32.mrb[45].mxu1  ;;  %v4319_v14 = vsel %vm1925_vm5, 1.0, %v5300_v35 }
 0x507   :  { %v2328_v44 = vadd.f32 %v2327_v56, %v6650_v12  ;;  %v2329_v53 = vpop.f32.mrb[46].mxu1  ;;  %v1620_v56 = vadd.f32 %v1619_v55, %v1516_v5 }
 0x508   :  { %v2332_v43 = vmul.f32 %v6447_v46, %v2326_v58  ;;  %v2330_v19 = vpop.f32.mrb[47].mxu1  ;;  %v1924_v58 = vpop.xlane.xlu0 %1923 }
 0x509   :  { %v2333_v39 = vmul.f32 %v6457_v42, %v2328_v44  ;;  %v4322_v44 = vsel %vm2028_vm6, 1.0, %v5300_v35  ;;  %v2027_v53 = vpop.xlane.xlu1 %2026  ;;  %v1723_v31 = vadd.f32 %v1722_v36, %v1620_v56  ;;  %v4325_v19 = vsel %vm2131_vm7, 1.0, %v5300_v35 }
 0x50b   :  { %v2334_v45 = vadd.f32 %v2333_v39, %v2332_v43  ;;  %v1928_v43 = vmul.f32 %v4319_v14, %v1924_v58  ;;  %v1826_v63 = vadd.f32 %v1825_v22, %v1723_v31 }
 0x50d   :  { %2335 = vadd.xlane.f32.xlu0 %v2334_v45  ;;  %v2031_v45 = vmul.f32 %v4322_v44, %v2027_v53 }
 0x51a   :  { %v2130_v39 = vpop.xlane.xlu0 %2129 }
 0x545   :  { %v2428_v24 = vpop.f32.mrb[48].mxu1 }
 0x546   :  { %v2429_v49 = vadd.f32 %v2428_v24, %v6646_v50  ;;  %v2430_v34 = vpop.f32.mrb[49].mxu1  ;;  %v3411_v50 = vld [vmem:[%s8182_s12] sm:$0x3] }
 0x547   :  { %v2431_v48 = vadd.f32 %v2430_v34, %v6650_v12  ;;  %v2432_v47 = vpop.f32.mrb[50].mxu1  ;;  %v3416_v61 = vrot.slane %v3411_v50, %v6264_v21  ;;  %v3420_v12 = vrot.slane %v3411_v50, %v6270_v28  ;;  %v2134_v34 = vmul.f32 %v4325_v19, %v2130_v39 }
 0x548   :  { %v2435_v54 = vmul.f32 %v6447_v46, %v2429_v49  ;;  %v2433_v25 = vpop.f32.mrb[51].mxu1  ;;  %v1929_v49 = vadd.f32 %v1928_v43, %v1826_v63 }
 0x549   :  { %v2436_v57 = vmul.f32 %v6457_v42, %v2431_v48  ;;  %v4331_v48 = vsel %vm2337_vm9, 1.0, %v5300_v35 }
 0x54b   :  { %v2437_v3 = vadd.f32 %v2436_v57, %v2435_v54  ;;  %v2032_v54 = vadd.f32 %v2031_v45, %v1929_v49  ;;  %v4528_v45 = vld [vmem:[#allocation2] ss:$0 sm:$0xff] }
 0x54d   :  { %2438 = vadd.xlane.f32.xlu1 %v2437_v3  ;;  %v2135_v57 = vadd.f32 %v2134_v34, %v2032_v54 }
 0x55a   :  { %v2233_v24 = vpop.xlane.xlu1 %2232 }
 0x55b   :  { %v2237_v25 = vmul.f32 %v4328_v26, %v2233_v24 }
 0x55d   :  { %v2238_v50 = vadd.f32 %v2237_v25, %v2135_v57 }
 0x585   :  { %v3617_v0 = vpop.f32.mrb[52].mxu1 }
 0x586   :  { %v3618_v46 = vadd.f32 %v3617_v0, %v3416_v61  ;;  %v3619_v20 = vpop.f32.mrb[53].mxu1 }
 0x587   :  { %v3620_v1 = vadd.f32 %v3619_v20, %v3420_v12  ;;  %v3621_v42 = vpop.f32.mrb[54].mxu1  ;;  %v8105_v12 = vld [vmem:[%s8183_s2] sm:$0xff] }
 0x588   :  { %v8064_v27 = vadd.f32 %v7938_v23, %v3618_v46  ;;  %v3622_v33 = vpop.f32.mrb[55].mxu1  ;;  %v5179_v23 = vld [vmem:[%s8181_s15 + $0x50] sm:$0xff]   ;;  %vm4056_vm12 = vcmp.gt.f32.partialorder %v8105_v12, 0.0 }
 0x589   :  { %v8067_v60 = vadd.f32 %v7898_v41, %v3620_v1  ;;  %v5178_v41 = vld [vmem:[%s8181_s15 + $0x8] sm:$0xff]  }
 0x58a   :  { %v3626_v37 = vmax.f32 %v8064_v27, 0.0  ;;  %v5186_v33 = vld [vmem:[%s8181_s15 + $0x28] sm:$0xff]  }
 0x58b   :  { %v3627_v8 = vmax.f32 %v8067_v60, 0.0 }
 0x58c   :  { %v3628_v2 = vpack.c.bf16 %v3626_v37, %v3626_v37 }
 0x58d   :  { %v3629_v62 = vpack.c.bf16 %v3627_v8, %v3627_v8  ;;  %v5187_v8 = vld [vmem:[%s8181_s15 + $0x70] sm:$0xff]  }
 0x58f   :  { %3866 = vmatprep.mubr.bf16.mxu1 %v3629_v62  ;;  %v5188_v62 = vld [vmem:[%s8181_s15 + $0x30] sm:$0xff]  }
 0x590   :  { %3867 = vmatmul.mubr.bf16.vlgmr.msra.gmra.mrb[56].mxu1 %v3628_v2  ;;  %v5190_v2 = vld [vmem:[%s8181_s15 + $0x38] sm:$0xff]  }
 0x591   :  { %4546 = vmatpush3.bf16.msra.mxu1 %v5176_v59  ;;  %v5189_v59 = vld [vmem:[%s8181_s15 + $0x78] sm:$0xff]  }
 0x592   :  { %4547 = vmatprep.subr.bf16.mxu1 %v5177_v4  ;;  %v3662_v4 = vld [vmem:[%s8185_s14] sm:$0x3] }
 0x595   :  { %4548 = vmatpush3.bf16.msra.mxu1 %v5178_v41  ;;  %v3667_v41 = vrot.slane %v3662_v4, %v6264_v21 }
 0x596   :  { %4549 = vmatprep.subr.bf16.mxu1 %v5179_v23  ;;  %v3671_v23 = vrot.slane %v3662_v4, %v6270_v28 }
 0x599   :  { %4550 = vmatpush3.bf16.msra.mxu1 %v5180_v6 }
 0x59a   :  { %4551 = vmatprep.subr.bf16.mxu1 %v5181_v11  ;;  %v2336_v47 = vpop.xlane.xlu0 %2335 }
 0x59b   :  { %v2340_v3 = vmul.f32 %v4331_v48, %v2336_v47 }
 0x59d   :  { %4552 = vmatpush3.bf16.msra.mxu1 %v5182_v13  ;;  %v2341_v0 = vadd.f32 %v2340_v3, %v2238_v50 }
 0x59e   :  { %4553 = vmatprep.subr.bf16.mxu1 %v5183_v15 }
 0x5a1   :  { %4554 = vmatpush3.bf16.msra.mxu1 %v5184_v40 }
 0x5a2   :  { %4555 = vmatprep.subr.bf16.mxu1 %v5185_v10 }
 0x5a5   :  { %4556 = vmatpush3.bf16.msra.mxu1 %v5186_v33 }
 0x5a6   :  { %4557 = vmatprep.subr.bf16.mxu1 %v5187_v8 }
 0x5a9   :  { %4558 = vmatpush3.bf16.msra.mxu1 %v5188_v62 }
 0x5aa   :  { %4559 = vmatprep.subr.bf16.mxu1 %v5189_v59 }
 0x5ad   :  { %4560 = vmatpush3.bf16.msra.mxu1 %v5190_v2 }
 0x5da   :  { %v2439_v61 = vpop.xlane.xlu1 %2438 }
 0x5db   :  { %v2443_v46 = vmul.f32 %v4334_v38, %v2439_v61 }
 0x5dd   :  { %v8107_v20 = vadd.f32 %v2443_v46, %v2341_v0 }
 0x5df   :  { %4091 = vst.msk [vmem:[%s8184_s17] sm:$0xff] %vm4057_vm11, %v8107_v20  ;;  %v4058_v1 = vsel %vm4057_vm11, %v8107_v20, inf  ;;  %v4076_v42 = vsel %vm4056_vm12, %v8107_v20, -1e+30 }
 0x5e0   :  { %4059 = vmin.xlane.f32.xlu0 %v4058_v1  ;;  %v4077_v37 = vsel %vm4057_vm11, %v4076_v42, -inf }
 0x5e4   :  { %4078 = vmax.xlane.f32.xlu0 %v4077_v37 }
 0x663   :  { %v3868_v6 = vpop.f32.mrb[56].mxu1 }
 0x664   :  { %v3869_v11 = vadd.f32 %v3868_v6, %v3667_v41  ;;  %v3870_v13 = vpop.f32.mrb[57].mxu1 }
 0x665   :  { %v3871_v15 = vadd.f32 %v3870_v13, %v3671_v23  ;;  %v3872_v40 = vpop.f32.mrb[58].mxu1 }
 0x666   :  { %v3875_v10 = vadd.f32 %v3869_v11, %v8064_v27  ;;  %v3873_v30 = vpop.f32.mrb[59].mxu1 }
 0x667   :  { %v3876_v29 = vadd.f32 %v3871_v15, %v8067_v60 }
 0x668   :  { %v3877_v9 = vmax.f32 %v3875_v10, 0.0 }
 0x669   :  { %v3878_v35 = vmax.f32 %v3876_v29, 0.0 }
 0x66a   :  { %v3879_v17 = vpack.c.bf16 %v3877_v9, %v3877_v9 }
 0x66b   :  { %v3880_v32 = vpack.c.bf16 %v3878_v35, %v3878_v35 }
 0x66d   :  { %4048 = vmatprep.mubr.bf16.mxu1 %v3880_v32  ;;  %v4060_v7 = vpop.xlane.xlu0 %4059 }
 0x66e   :  { %4049 = vmatmul.mubr.bf16.vlgmr.msra.gmra.mrb[60].mxu1 %v3879_v17  ;;  %v4061_v28 = vsel %vm4056_vm12, %v8107_v20, %v4060_v7 }
 0x66f   :  { %v4062_v21 = vsel %vm4057_vm11, %v4061_v28, -inf }
 0x670   :  { %4063 = vmax.xlane.f32.xlu1 %v4062_v21 }
 0x671   :  { %v4079_v52 = vpop.xlane.xlu0 %4078 }
 0x672   :  { %v4080_v51 = vsub.f32 %v4076_v42, %v4079_v52  ;;  %v4086_v31 = vsub.f32 %v8107_v20, %v4079_v52 }
 0x674   :  { %v4081_v27 = vmul.f32 1.442695, %v4080_v51 }
 0x676   :  { %5191 = vpow2.f32 %v4081_v27 }
 0x680   :  { %v5192_v55 = vpop.eup %5191 }
 0x681   :  { %v4083_v60 = vsel %vm4057_vm11, %v5192_v55, 0.0 }
 0x682   :  { %4084 = vadd.xlane.f32.xlu1 %v4083_v60 }
 0x6fd   :  { %v4064_v16 = vpop.xlane.xlu1 %4063 }
 0x6fe   :  { %v4065_v5 = vsub.f32 %v4061_v28, %v4064_v16 }
 0x700   :  { %v4066_v36 = vsel %vm4056_vm12, %v4065_v5, 0.0 }
 0x701   :  { %v4067_v14 = vmul.f32 1.442695, %v4066_v36 }
 0x703   :  { %5193 = vpow2.f32 %v4067_v14 }
 0x70d   :  { %v5194_v58 = vpop.eup %5193 }
 0x70e   :  { %v4069_v56 = vsel %vm4056_vm12, %v5194_v58, 0.0 }
 0x70f   :  { %v4085_v22 = vpop.xlane.xlu1 %4084  ;;  %v4070_v44 = vsel %vm4057_vm11, %v4069_v56, 0.0 }
 0x710   :  { %5195 = vlog2.f32 %v4085_v22  ;;  %4071 = vadd.xlane.f32.xlu0 %v4070_v44 }
 0x71a   :  { %v5196_v53 = vpop.eup %5195 }
 0x71b   :  { %v4088_v43 = vmul.f32 0.6931472, %v5196_v53 }
 0x71d   :  { %v4089_v19 = vsub.f32 %v4086_v31, %v4088_v43 }
 0x71f   :  { %v4090_v39 = vmul.f32 %v4089_v19, %v8105_v12 }
 0x721   :  { %4095 = vst.msk [vmem:[%s8187_s20] sm:$0xff] %vm4057_vm11, %v4090_v39 }
 0x741   :  { %v4561_v63 = vpop.f32.mrb[60].mxu1 }
 0x742   :  { %v4562_v26 = vpop.f32.mrb[61].mxu1 }
 0x743   :  { %v4563_v24 = vadd.f32 %v4562_v26, %v4561_v63  ;;  %v4564_v49 = vpop.f32.mrb[62].mxu1 }
 0x744   :  { %v4565_v34 = vpop.f32.mrb[63].mxu1 }
 0x745   :  { %v4051_v48 = vadd.f32 %v4563_v24, %v4528_v45 }
 0x747   :  { %4093 = vst.msk [vmem:[%s8188_s18] sm:$0xff] %vm4092_vm13, %v4051_v48 }
 0x79d   :  { %v4072_v47 = vpop.xlane.xlu0 %4071 }
 0x79e   :  { %v4073_v54 = vmax.f32 %v4072_v47, 1e-30 }
 0x7a0   :  { %5197 = vrcp.f32 %v4073_v54 }
 0x7aa   :  { %v5198_v25 = vpop.eup %5197 }
 0x7ab   :  { %v4075_v57 = vmul.f32 %v5198_v25, %v4069_v56 }
 0x7ad   :  { %4094 = vst.msk [vmem:[%s8189_s19] sm:$0xff] %vm4057_vm11, %v4075_v57 }

</bundles_post_ra>
